<compile_context>
chip_gen: v6e
topology: v6e:2x2x1
jax: 0.10.0
libtpu: 0.0.40
codegen_flags: <defaults>
</compile_context>

<pallas_src>
import jax
import jax.numpy as jnp
from jax.experimental import pallas as pl
from jax.experimental.pallas import tpu as pltpu


# ---------------------------------------------------------------------------
# Pallas kernels
# ---------------------------------------------------------------------------
def conv_relu_pool_kernel(xs_ref, w_ref, b_ref, o_ref):
    """Fused 3x3 conv (pad=1) + bias + ReLU + 2x2 max-pool for one (image, tile).

    xs_ref: (1, 1, 4*TM, 9*Cin) bf16  im2col rows, quadrant-major within the tile
    w_ref : (9*Cin, Cout)       bf16  conv weights with taps folded into K
    b_ref : (1, Cout)           f32   bias
    o_ref : (1, TM, Cout)       bf16  pooled output tile
    """
    tm = o_ref.shape[1]
    x = xs_ref[0, 0]                                   # (4*TM, 9*Cin)
    acc = jnp.dot(x, w_ref[...], preferred_element_type=jnp.float32)
    y = jnp.maximum(acc + b_ref[...], 0.0)             # bias + ReLU in f32
    p = jnp.maximum(jnp.maximum(y[0:tm], y[tm:2 * tm]),
                    jnp.maximum(y[2 * tm:3 * tm], y[3 * tm:4 * tm]))
    o_ref[0] = p.astype(o_ref.dtype)                   # 2x2 max-pool result


def linear_head_kernel(x_ref, w1_ref, b1_ref, w2_ref, b2_ref,
                       proto_ref, out_ref):
    """proto = x @ W1f + b1 ; out = proto @ W2^T + b2 (weights pre-arranged)."""
    proto = jnp.dot(x_ref[...], w1_ref[...],
                    preferred_element_type=jnp.float32) + b1_ref[...]
    proto_ref[...] = proto.astype(proto_ref.dtype)
    out = jnp.dot(proto, w2_ref[...],
                  preferred_element_type=jnp.float32) + b2_ref[...]
    out_ref[...] = out.astype(out_ref.dtype)


# ---------------------------------------------------------------------------
# Pallas wrappers
# ---------------------------------------------------------------------------
def conv_relu_pool(xs, wk, bb, tm):
    B, MT, R, K = xs.shape                 # R == 4*tm
    M = MT * tm
    Cout = wk.shape[-1]
    return pl.pallas_call(
        conv_relu_pool_kernel,
        out_shape=jax.ShapeDtypeStruct((B, M, Cout), jnp.bfloat16),
        grid=(B, MT),
        in_specs=[
            pl.BlockSpec((1, 1, R, K), lambda b, m: (b, m, 0, 0)),
            pl.BlockSpec((K, Cout), lambda b, m: (0, 0)),
            pl.BlockSpec((1, Cout), lambda b, m: (0, 0)),
        ],
        out_specs=pl.BlockSpec((1, tm, Cout), lambda b, m: (b, m, 0)),
        compiler_params=pltpu.CompilerParams(
            dimension_semantics=("parallel", "parallel")),
    )(xs, wk, bb)


def linear_head(x, w1t, b1, w2t, b2):
    B, D = x.shape
    Dh = w1t.shape[1]
    Nc = w2t.shape[1]
    return pl.pallas_call(
        linear_head_kernel,
        out_shape=(jax.ShapeDtypeStruct((B, Dh), jnp.float32),
                   jax.ShapeDtypeStruct((B, Nc), jnp.float32)),
        grid=(1,),
        in_specs=[
            pl.BlockSpec((B, D), lambda i: (0, 0)),
            pl.BlockSpec((D, Dh), lambda i: (0, 0)),
            pl.BlockSpec((1, Dh), lambda i: (0, 0)),
            pl.BlockSpec((Dh, Nc), lambda i: (0, 0)),
            pl.BlockSpec((1, Nc), lambda i: (0, 0)),
        ],
        out_specs=(pl.BlockSpec((B, Dh), lambda i: (0, 0)),
                   pl.BlockSpec((B, Nc), lambda i: (0, 0))),
        compiler_params=pltpu.CompilerParams(
            dimension_semantics=("arbitrary",)),
    )(x, w1t, b1, w2t, b2)


# ---------------------------------------------------------------------------
# Glue: im2col with taps folded into K and quadrants folded into rows
# ---------------------------------------------------------------------------
def build_im2col(x, tm):
    """x: (B, H, W, C) NHWC -> (B, M//tm, 4*tm, 9*C).

    Rows within each tile are quadrant-major over that tile's pooled pixels,
    so the kernel pools with four aligned sublane slices of size tm.
    """
    B, H, W, C = x.shape
    H2, W2 = H // 2, W // 2
    M = H2 * W2
    xp = jnp.pad(x, ((0, 0), (1, 1), (1, 1), (0, 0)))
    taps = [xp[:, dy:dy + H, dx:dx + W, :]
            for dy in range(3) for dx in range(3)]
    xs = jnp.concatenate(taps, axis=-1)                 # (B, H, W, 9C), k=tap*C+c
    xs = xs.reshape(B, H2, 2, W2, 2, 9 * C)
    xs = xs.transpose(0, 2, 4, 1, 3, 5)                 # (B, qy, qx, H2, W2, 9C)
    xs = xs.reshape(B, 4, M, 9 * C)
    mt = M // tm
    xs = xs.reshape(B, 4, mt, tm, 9 * C).transpose(0, 2, 1, 3, 4)
    return xs.reshape(B, mt, 4 * tm, 9 * C)


# ---------------------------------------------------------------------------
# Full forward pass (matches CNN_3_proto.forward -> returns (out, proto))
# ---------------------------------------------------------------------------
def forward_pallas(params, x_nchw):
    convs, (w1, b1), (w2, b2) = params
    x = jnp.transpose(x_nchw, (0, 2, 3, 1)).astype(jnp.bfloat16)   # NCHW -> NHWC
    for w_oihw, b in convs:
        B, H, W, Cin = x.shape
        Cout = w_oihw.shape[0]
        M = (H // 2) * (W // 2)
        tm = M if M <= 512 else 512                                 # pooled-pixel tile
        xs = build_im2col(x, tm)                                    # bf16
        wk = jnp.transpose(w_oihw, (2, 3, 1, 0)).reshape(9 * Cin, Cout)
        pooled = conv_relu_pool(xs, wk.astype(jnp.bfloat16),
                                b.reshape(1, Cout).astype(jnp.float32), tm)
        x = pooled.reshape(B, H // 2, W // 2, Cout)                 # bf16 NHWC

    B, Hf, Wf, Cf = x.shape
    flat = x.reshape(B, Hf * Wf * Cf)                   # NHWC flatten (bf16)
    # Fold the PyTorch NCHW-flatten permutation into w1's input columns.
    w1f = jnp.transpose(w1.reshape(w1.shape[0], Cf, Hf, Wf),
                        (0, 2, 3, 1)).reshape(w1.shape[0], -1).T
    proto, out = linear_head(flat, w1f.astype(jnp.bfloat16),
                             b1.reshape(1, -1).astype(jnp.float32),
                             w2.T.astype(jnp.float32),
                             b2.reshape(1, -1).astype(jnp.float32))
    return out, proto


# Pure-JAX reference (mirrors the PyTorch module exactly), for verification.
def forward_ref(params, x_nchw):
    convs, (w1, b1), (w2, b2) = params
    y = x_nchw
    for w, b in convs:
        y = jax.lax.conv_general_dilated(
            y, w, window_strides=(1, 1), padding=((1, 1), (1, 1)),
            dimension_numbers=("NCHW", "OIHW", "NCHW"),
            precision=jax.lax.Precision.HIGHEST)
        y = jnp.maximum(y + b[None, :, None, None], 0.0)
        B, C, H, W = y.shape
        y = y.reshape(B, C, H // 2, 2, W // 2, 2).max(axis=(3, 5))
    flat = y.reshape(y.shape[0], -1)
    proto = flat @ w1.T + b1
    out = proto @ w2.T + b2
    return out, proto


# ---------------------------------------------------------------------------
# Deterministic parameter init (PyTorch-default-style uniform, synthetic)
# ---------------------------------------------------------------------------
def init_params(key, in_ch=3, mid_dim=64, num_classes=10):
    def uinit(k, shape, fan_in):
        bound = float(fan_in) ** -0.5
        return jax.random.uniform(k, shape, jnp.float32, -bound, bound)

    keys = jax.random.split(key, 12)
    chans = [in_ch, 32, 64, 64, 64]
    convs = []
    for i in range(4):
        cin, cout = chans[i], chans[i + 1]
        w = uinit(keys[2 * i], (cout, cin, 3, 3), cin * 9)
        b = uinit(keys[2 * i + 1], (cout,), cin * 9)
        convs.append((w, b))
    d_in = mid_dim * 4 * 4                                 # 1024
    w1 = uinit(keys[8], (512, d_in), d_in)
    b1 = uinit(keys[9], (512,), d_in)
    w2 = uinit(keys[10], (num_classes, 512), 512)
    b2 = uinit(keys[11], (num_classes,), 512)
    return convs, (w1, b1), (w2, b2)


if __name__ == "__main__":
    key = jax.random.PRNGKey(0)
    pkey, xkey = jax.random.split(key)
    params = init_params(pkey, in_ch=3, mid_dim=64, num_classes=10)
    # Linear(mid_dim*4*4, 512) after four 2x2 pools implies 64x64 spatial input.
    x = jax.random.normal(xkey, (2, 3, 64, 64), jnp.float32)

    out, proto = jax.jit(forward_pallas)(params, x)
    jax.block_until_ready((out, proto))

    out_r, proto_r = forward_ref(params, x)
    assert out.shape == (2, 10) and proto.shape == (2, 512)
    # bf16 operands / f32 accumulation -> slightly looser tolerance than f32.
    assert bool(jnp.allclose(proto, proto_r, rtol=2e-2, atol=2e-2)), \
        float(jnp.max(jnp.abs(proto - proto_r)))
    assert bool(jnp.allclose(out, out_r, rtol=2e-2, atol=2e-2)), \
        float(jnp.max(jnp.abs(out - out_r)))
    print("KERNEL_OK")
</pallas_src>

<mosaic_0001>
module attributes {stable_mosaic.version = 11 : i64} {
  func.func @conv_relu_pool_kernel(%arg0: i32, %arg1: i32, %arg2: memref<1x1x2048x27xbf16, #tpu.memory_space<vmem>>, %arg3: memref<27x32xbf16, #tpu.memory_space<vmem>>, %arg4: memref<1x32xf32, #tpu.memory_space<vmem>>, %arg5: memref<1x512x32xbf16, #tpu.memory_space<vmem>>) attributes {dimension_semantics = [#tpu.dimension_semantics<parallel>, #tpu.dimension_semantics<parallel>], iteration_bounds = array<i64: 2, 2>, scalar_prefetch = 0 : i64, scratch_operands = 0 : i64, tpu.core_type = #tpu.core_type<tc>, window_params = [{transform_indices = @transform_0, window_bounds = array<i64: 1, 1, 2048, 27>}, {pipeline_mode = #tpu.pipeline_mode<synchronous>, transform_indices = @transform_1, window_bounds = array<i64: 27, 32>}, {pipeline_mode = #tpu.pipeline_mode<synchronous>, transform_indices = @transform_2, window_bounds = array<i64: 1, 32>}, {transform_indices = @transform_3, window_bounds = array<i64: 1, 512, 32>}]} {
    %c0 = arith.constant 0 : index
    %c0_0 = arith.constant 0 : index
    %c0_1 = arith.constant 0 : index
    %c0_2 = arith.constant 0 : index
    %0 = vector.load %arg2[%c0, %c0_0, %c0_1, %c0_2] : memref<1x1x2048x27xbf16, #tpu.memory_space<vmem>>, vector<1x1x2048x27xbf16>
    %1 = vector.shape_cast %0 : vector<1x1x2048x27xbf16> to vector<2048x27xbf16>
    %c0_3 = arith.constant 0 : index
    %c0_4 = arith.constant 0 : index
    %2 = vector.load %arg3[%c0_3, %c0_4] : memref<27x32xbf16, #tpu.memory_space<vmem>>, vector<27x32xbf16>
    %cst = arith.constant dense<0.000000e+00> : vector<2048x32xf32>
    %3 = tpu.matmul %1, %2, %cst {dimension_numbers = #tpu.dot_dimension_numbers<[1], [0], [0], [1], [0, 0, 1, 1], [], []>} : vector<2048x27xbf16>, vector<27x32xbf16>, vector<2048x32xf32> -> vector<2048x32xf32>
    %c0_5 = arith.constant 0 : index
    %c0_6 = arith.constant 0 : index
    %4 = vector.load %arg4[%c0_5, %c0_6] : memref<1x32xf32, #tpu.memory_space<vmem>>, vector<1x32xf32>
    %5 = vector.broadcast %4 : vector<1x32xf32> to vector<2048x32xf32>
    %6 = arith.addf %3, %5 : vector<2048x32xf32>
    %cst_7 = arith.constant 0.000000e+00 : f32
    %7 = vector.broadcast %cst_7 : f32 to vector<2048x32xf32>
    %8 = arith.maximumf %6, %7 : vector<2048x32xf32>
    %9 = vector.extract_strided_slice %8 {offsets = [0, 0], sizes = [512, 32], strides = [1, 1]} : vector<2048x32xf32> to vector<512x32xf32>
    %10 = vector.extract_strided_slice %8 {offsets = [512, 0], sizes = [512, 32], strides = [1, 1]} : vector<2048x32xf32> to vector<512x32xf32>
    %11 = arith.maximumf %9, %10 : vector<512x32xf32>
    %12 = vector.extract_strided_slice %8 {offsets = [1024, 0], sizes = [512, 32], strides = [1, 1]} : vector<2048x32xf32> to vector<512x32xf32>
    %13 = vector.extract_strided_slice %8 {offsets = [1536, 0], sizes = [512, 32], strides = [1, 1]} : vector<2048x32xf32> to vector<512x32xf32>
    %14 = arith.maximumf %12, %13 : vector<512x32xf32>
    %15 = arith.maximumf %11, %14 : vector<512x32xf32>
    %16 = arith.truncf %15 : vector<512x32xf32> to vector<512x32xbf16>
    %c0_8 = arith.constant 0 : index
    %c0_9 = arith.constant 0 : index
    %c0_10 = arith.constant 0 : index
    %17 = vector.load %arg5[%c0_8, %c0_9, %c0_10] : memref<1x512x32xbf16, #tpu.memory_space<vmem>>, vector<1x512x32xbf16>
    %18 = vector.shape_cast %17 : vector<1x512x32xbf16> to vector<512x32xbf16>
    %19 = vector.shape_cast %16 : vector<512x32xbf16> to vector<1x512x32xbf16>
    tpu.vector_store %arg5[%c0_8, %c0_9, %c0_10], %19 {strides = array<i32>} : memref<1x512x32xbf16, #tpu.memory_space<vmem>>, vector<1x512x32xbf16>,
    return
  }
  func.func @transform_0(%arg0: i32, %arg1: i32) -> (i32, i32, i32, i32) {
    %c0_i32 = arith.constant 0 : i32
    %c0_i32_0 = arith.constant 0 : i32
    %c0_i32_1 = arith.constant 0 : i32
    return %arg0, %arg1, %c0_i32, %c0_i32_0 : i32, i32, i32, i32
  }
  func.func @transform_1(%arg0: i32, %arg1: i32) -> (i32, i32) {
    %c0_i32 = arith.constant 0 : i32
    %c0_i32_0 = arith.constant 0 : i32
    %c0_i32_1 = arith.constant 0 : i32
    return %c0_i32, %c0_i32_0 : i32, i32
  }
  func.func @transform_2(%arg0: i32, %arg1: i32) -> (i32, i32) {
    %c0_i32 = arith.constant 0 : i32
    %c0_i32_0 = arith.constant 0 : i32
    %c0_i32_1 = arith.constant 0 : i32
    return %c0_i32, %c0_i32_0 : i32, i32
  }
  func.func @transform_3(%arg0: i32, %arg1: i32) -> (i32, i32, i32) {
    %c0_i32 = arith.constant 0 : i32
    %c0_i32_0 = arith.constant 0 : i32
    return %arg0, %arg1, %c0_i32 : i32, i32, i32
  }
}

module attributes {stable_mosaic.version = 11 : i64} {
  func.func @conv_relu_pool_kernel(%arg0: i32, %arg1: i32, %arg2: memref<1x1x1024x288xbf16, #tpu.memory_space<vmem>>, %arg3: memref<288x64xbf16, #tpu.memory_space<vmem>>, %arg4: memref<1x64xf32, #tpu.memory_space<vmem>>, %arg5: memref<1x256x64xbf16, #tpu.memory_space<vmem>>) attributes {dimension_semantics = [#tpu.dimension_semantics<parallel>, #tpu.dimension_semantics<parallel>], iteration_bounds = array<i64: 2, 1>, scalar_prefetch = 0 : i64, scratch_operands = 0 : i64, tpu.core_type = #tpu.core_type<tc>, window_params = [{transform_indices = @transform_0, window_bounds = array<i64: 1, 1, 1024, 288>}, {pipeline_mode = #tpu.pipeline_mode<synchronous>, transform_indices = @transform_1, window_bounds = array<i64: 288, 64>}, {pipeline_mode = #tpu.pipeline_mode<synchronous>, transform_indices = @transform_2, window_bounds = array<i64: 1, 64>}, {transform_indices = @transform_3, window_bounds = array<i64: 1, 256, 64>}]} {
    %c0 = arith.constant 0 : index
    %c0_0 = arith.constant 0 : index
    %c0_1 = arith.constant 0 : index
    %c0_2 = arith.constant 0 : index
    %0 = vector.load %arg2[%c0, %c0_0, %c0_1, %c0_2] : memref<1x1x1024x288xbf16, #tpu.memory_space<vmem>>, vector<1x1x1024x288xbf16>
    %1 = vector.shape_cast %0 : vector<1x1x1024x288xbf16> to vector<1024x288xbf16>
    %c0_3 = arith.constant 0 : index
    %c0_4 = arith.constant 0 : index
    %2 = vector.load %arg3[%c0_3, %c0_4] : memref<288x64xbf16, #tpu.memory_space<vmem>>, vector<288x64xbf16>
    %cst = arith.constant dense<0.000000e+00> : vector<1024x64xf32>
    %3 = tpu.matmul %1, %2, %cst {dimension_numbers = #tpu.dot_dimension_numbers<[1], [0], [0], [1], [0, 0, 1, 1], [], []>} : vector<1024x288xbf16>, vector<288x64xbf16>, vector<1024x64xf32> -> vector<1024x64xf32>
    %c0_5 = arith.constant 0 : index
    %c0_6 = arith.constant 0 : index
    %4 = vector.load %arg4[%c0_5, %c0_6] : memref<1x64xf32, #tpu.memory_space<vmem>>, vector<1x64xf32>
    %5 = vector.broadcast %4 : vector<1x64xf32> to vector<1024x64xf32>
    %6 = arith.addf %3, %5 : vector<1024x64xf32>
    %cst_7 = arith.constant 0.000000e+00 : f32
    %7 = vector.broadcast %cst_7 : f32 to vector<1024x64xf32>
    %8 = arith.maximumf %6, %7 : vector<1024x64xf32>
    %9 = vector.extract_strided_slice %8 {offsets = [0, 0], sizes = [256, 64], strides = [1, 1]} : vector<1024x64xf32> to vector<256x64xf32>
    %10 = vector.extract_strided_slice %8 {offsets = [256, 0], sizes = [256, 64], strides = [1, 1]} : vector<1024x64xf32> to vector<256x64xf32>
    %11 = arith.maximumf %9, %10 : vector<256x64xf32>
    %12 = vector.extract_strided_slice %8 {offsets = [512, 0], sizes = [256, 64], strides = [1, 1]} : vector<1024x64xf32> to vector<256x64xf32>
    %13 = vector.extract_strided_slice %8 {offsets = [768, 0], sizes = [256, 64], strides = [1, 1]} : vector<1024x64xf32> to vector<256x64xf32>
    %14 = arith.maximumf %12, %13 : vector<256x64xf32>
    %15 = arith.maximumf %11, %14 : vector<256x64xf32>
    %16 = arith.truncf %15 : vector<256x64xf32> to vector<256x64xbf16>
    %c0_8 = arith.constant 0 : index
    %c0_9 = arith.constant 0 : index
    %c0_10 = arith.constant 0 : index
    %17 = vector.load %arg5[%c0_8, %c0_9, %c0_10] : memref<1x256x64xbf16, #tpu.memory_space<vmem>>, vector<1x256x64xbf16>
    %18 = vector.shape_cast %17 : vector<1x256x64xbf16> to vector<256x64xbf16>
    %19 = vector.shape_cast %16 : vector<256x64xbf16> to vector<1x256x64xbf16>
    tpu.vector_store %arg5[%c0_8, %c0_9, %c0_10], %19 {strides = array<i32>} : memref<1x256x64xbf16, #tpu.memory_space<vmem>>, vector<1x256x64xbf16>,
    return
  }
  func.func @transform_0(%arg0: i32, %arg1: i32) -> (i32, i32, i32, i32) {
    %c0_i32 = arith.constant 0 : i32
    %c0_i32_0 = arith.constant 0 : i32
    %c0_i32_1 = arith.constant 0 : i32
    return %arg0, %arg1, %c0_i32, %c0_i32_0 : i32, i32, i32, i32
  }
  func.func @transform_1(%arg0: i32, %arg1: i32) -> (i32, i32) {
    %c0_i32 = arith.constant 0 : i32
    %c0_i32_0 = arith.constant 0 : i32
    %c0_i32_1 = arith.constant 0 : i32
    return %c0_i32, %c0_i32_0 : i32, i32
  }
  func.func @transform_2(%arg0: i32, %arg1: i32) -> (i32, i32) {
    %c0_i32 = arith.constant 0 : i32
    %c0_i32_0 = arith.constant 0 : i32
    %c0_i32_1 = arith.constant 0 : i32
    return %c0_i32, %c0_i32_0 : i32, i32
  }
  func.func @transform_3(%arg0: i32, %arg1: i32) -> (i32, i32, i32) {
    %c0_i32 = arith.constant 0 : i32
    %c0_i32_0 = arith.constant 0 : i32
    return %arg0, %arg1, %c0_i32 : i32, i32, i32
  }
}

module attributes {stable_mosaic.version = 11 : i64} {
  func.func @conv_relu_pool_kernel(%arg0: i32, %arg1: i32, %arg2: memref<1x1x256x576xbf16, #tpu.memory_space<vmem>>, %arg3: memref<576x64xbf16, #tpu.memory_space<vmem>>, %arg4: memref<1x64xf32, #tpu.memory_space<vmem>>, %arg5: memref<1x64x64xbf16, #tpu.memory_space<vmem>>) attributes {dimension_semantics = [#tpu.dimension_semantics<parallel>, #tpu.dimension_semantics<parallel>], iteration_bounds = array<i64: 2, 1>, scalar_prefetch = 0 : i64, scratch_operands = 0 : i64, tpu.core_type = #tpu.core_type<tc>, window_params = [{transform_indices = @transform_0, window_bounds = array<i64: 1, 1, 256, 576>}, {pipeline_mode = #tpu.pipeline_mode<synchronous>, transform_indices = @transform_1, window_bounds = array<i64: 576, 64>}, {pipeline_mode = #tpu.pipeline_mode<synchronous>, transform_indices = @transform_2, window_bounds = array<i64: 1, 64>}, {transform_indices = @transform_3, window_bounds = array<i64: 1, 64, 64>}]} {
    %c0 = arith.constant 0 : index
    %c0_0 = arith.constant 0 : index
    %c0_1 = arith.constant 0 : index
    %c0_2 = arith.constant 0 : index
    %0 = vector.load %arg2[%c0, %c0_0, %c0_1, %c0_2] : memref<1x1x256x576xbf16, #tpu.memory_space<vmem>>, vector<1x1x256x576xbf16>
    %1 = vector.shape_cast %0 : vector<1x1x256x576xbf16> to vector<256x576xbf16>
    %c0_3 = arith.constant 0 : index
    %c0_4 = arith.constant 0 : index
    %2 = vector.load %arg3[%c0_3, %c0_4] : memref<576x64xbf16, #tpu.memory_space<vmem>>, vector<576x64xbf16>
    %cst = arith.constant dense<0.000000e+00> : vector<256x64xf32>
    %3 = tpu.matmul %1, %2, %cst {dimension_numbers = #tpu.dot_dimension_numbers<[1], [0], [0], [1], [0, 0, 1, 1], [], []>} : vector<256x576xbf16>, vector<576x64xbf16>, vector<256x64xf32> -> vector<256x64xf32>
    %c0_5 = arith.constant 0 : index
    %c0_6 = arith.constant 0 : index
    %4 = vector.load %arg4[%c0_5, %c0_6] : memref<1x64xf32, #tpu.memory_space<vmem>>, vector<1x64xf32>
    %5 = vector.broadcast %4 : vector<1x64xf32> to vector<256x64xf32>
    %6 = arith.addf %3, %5 : vector<256x64xf32>
    %cst_7 = arith.constant 0.000000e+00 : f32
    %7 = vector.broadcast %cst_7 : f32 to vector<256x64xf32>
    %8 = arith.maximumf %6, %7 : vector<256x64xf32>
    %9 = vector.extract_strided_slice %8 {offsets = [0, 0], sizes = [64, 64], strides = [1, 1]} : vector<256x64xf32> to vector<64x64xf32>
    %10 = vector.extract_strided_slice %8 {offsets = [64, 0], sizes = [64, 64], strides = [1, 1]} : vector<256x64xf32> to vector<64x64xf32>
    %11 = arith.maximumf %9, %10 : vector<64x64xf32>
    %12 = vector.extract_strided_slice %8 {offsets = [128, 0], sizes = [64, 64], strides = [1, 1]} : vector<256x64xf32> to vector<64x64xf32>
    %13 = vector.extract_strided_slice %8 {offsets = [192, 0], sizes = [64, 64], strides = [1, 1]} : vector<256x64xf32> to vector<64x64xf32>
    %14 = arith.maximumf %12, %13 : vector<64x64xf32>
    %15 = arith.maximumf %11, %14 : vector<64x64xf32>
    %16 = arith.truncf %15 : vector<64x64xf32> to vector<64x64xbf16>
    %c0_8 = arith.constant 0 : index
    %c0_9 = arith.constant 0 : index
    %c0_10 = arith.constant 0 : index
    %17 = vector.load %arg5[%c0_8, %c0_9, %c0_10] : memref<1x64x64xbf16, #tpu.memory_space<vmem>>, vector<1x64x64xbf16>
    %18 = vector.shape_cast %17 : vector<1x64x64xbf16> to vector<64x64xbf16>
    %19 = vector.shape_cast %16 : vector<64x64xbf16> to vector<1x64x64xbf16>
    tpu.vector_store %arg5[%c0_8, %c0_9, %c0_10], %19 {strides = array<i32>} : memref<1x64x64xbf16, #tpu.memory_space<vmem>>, vector<1x64x64xbf16>,
    return
  }
  func.func @transform_0(%arg0: i32, %arg1: i32) -> (i32, i32, i32, i32) {
    %c0_i32 = arith.constant 0 : i32
    %c0_i32_0 = arith.constant 0 : i32
    %c0_i32_1 = arith.constant 0 : i32
    return %arg0, %arg1, %c0_i32, %c0_i32_0 : i32, i32, i32, i32
  }
  func.func @transform_1(%arg0: i32, %arg1: i32) -> (i32, i32) {
    %c0_i32 = arith.constant 0 : i32
    %c0_i32_0 = arith.constant 0 : i32
    %c0_i32_1 = arith.constant 0 : i32
    return %c0_i32, %c0_i32_0 : i32, i32
  }
  func.func @transform_2(%arg0: i32, %arg1: i32) -> (i32, i32) {
    %c0_i32 = arith.constant 0 : i32
    %c0_i32_0 = arith.constant 0 : i32
    %c0_i32_1 = arith.constant 0 : i32
    return %c0_i32, %c0_i32_0 : i32, i32
  }
  func.func @transform_3(%arg0: i32, %arg1: i32) -> (i32, i32, i32) {
    %c0_i32 = arith.constant 0 : i32
    %c0_i32_0 = arith.constant 0 : i32
    return %arg0, %arg1, %c0_i32 : i32, i32, i32
  }
}

module attributes {stable_mosaic.version = 11 : i64} {
  func.func @conv_relu_pool_kernel(%arg0: i32, %arg1: i32, %arg2: memref<1x1x64x576xbf16, #tpu.memory_space<vmem>>, %arg3: memref<576x64xbf16, #tpu.memory_space<vmem>>, %arg4: memref<1x64xf32, #tpu.memory_space<vmem>>, %arg5: memref<1x16x64xbf16, #tpu.memory_space<vmem>>) attributes {dimension_semantics = [#tpu.dimension_semantics<parallel>, #tpu.dimension_semantics<parallel>], iteration_bounds = array<i64: 2, 1>, scalar_prefetch = 0 : i64, scratch_operands = 0 : i64, tpu.core_type = #tpu.core_type<tc>, window_params = [{transform_indices = @transform_0, window_bounds = array<i64: 1, 1, 64, 576>}, {pipeline_mode = #tpu.pipeline_mode<synchronous>, transform_indices = @transform_1, window_bounds = array<i64: 576, 64>}, {pipeline_mode = #tpu.pipeline_mode<synchronous>, transform_indices = @transform_2, window_bounds = array<i64: 1, 64>}, {transform_indices = @transform_3, window_bounds = array<i64: 1, 16, 64>}]} {
    %c0 = arith.constant 0 : index
    %c0_0 = arith.constant 0 : index
    %c0_1 = arith.constant 0 : index
    %c0_2 = arith.constant 0 : index
    %0 = vector.load %arg2[%c0, %c0_0, %c0_1, %c0_2] : memref<1x1x64x576xbf16, #tpu.memory_space<vmem>>, vector<1x1x64x576xbf16>
    %1 = vector.shape_cast %0 : vector<1x1x64x576xbf16> to vector<64x576xbf16>
    %c0_3 = arith.constant 0 : index
    %c0_4 = arith.constant 0 : index
    %2 = vector.load %arg3[%c0_3, %c0_4] : memref<576x64xbf16, #tpu.memory_space<vmem>>, vector<576x64xbf16>
    %cst = arith.constant dense<0.000000e+00> : vector<64x64xf32>
    %3 = tpu.matmul %1, %2, %cst {dimension_numbers = #tpu.dot_dimension_numbers<[1], [0], [0], [1], [0, 0, 1, 1], [], []>} : vector<64x576xbf16>, vector<576x64xbf16>, vector<64x64xf32> -> vector<64x64xf32>
    %c0_5 = arith.constant 0 : index
    %c0_6 = arith.constant 0 : index
    %4 = vector.load %arg4[%c0_5, %c0_6] : memref<1x64xf32, #tpu.memory_space<vmem>>, vector<1x64xf32>
    %5 = vector.broadcast %4 : vector<1x64xf32> to vector<64x64xf32>
    %6 = arith.addf %3, %5 : vector<64x64xf32>
    %cst_7 = arith.constant 0.000000e+00 : f32
    %7 = vector.broadcast %cst_7 : f32 to vector<64x64xf32>
    %8 = arith.maximumf %6, %7 : vector<64x64xf32>
    %9 = vector.extract_strided_slice %8 {offsets = [0, 0], sizes = [16, 64], strides = [1, 1]} : vector<64x64xf32> to vector<16x64xf32>
    %10 = vector.extract_strided_slice %8 {offsets = [16, 0], sizes = [16, 64], strides = [1, 1]} : vector<64x64xf32> to vector<16x64xf32>
    %11 = arith.maximumf %9, %10 : vector<16x64xf32>
    %12 = vector.extract_strided_slice %8 {offsets = [32, 0], sizes = [16, 64], strides = [1, 1]} : vector<64x64xf32> to vector<16x64xf32>
    %13 = vector.extract_strided_slice %8 {offsets = [48, 0], sizes = [16, 64], strides = [1, 1]} : vector<64x64xf32> to vector<16x64xf32>
    %14 = arith.maximumf %12, %13 : vector<16x64xf32>
    %15 = arith.maximumf %11, %14 : vector<16x64xf32>
    %16 = arith.truncf %15 : vector<16x64xf32> to vector<16x64xbf16>
    %c0_8 = arith.constant 0 : index
    %c0_9 = arith.constant 0 : index
    %c0_10 = arith.constant 0 : index
    %17 = vector.load %arg5[%c0_8, %c0_9, %c0_10] : memref<1x16x64xbf16, #tpu.memory_space<vmem>>, vector<1x16x64xbf16>
    %18 = vector.shape_cast %17 : vector<1x16x64xbf16> to vector<16x64xbf16>
    %19 = vector.shape_cast %16 : vector<16x64xbf16> to vector<1x16x64xbf16>
    tpu.vector_store %arg5[%c0_8, %c0_9, %c0_10], %19 {strides = array<i32>} : memref<1x16x64xbf16, #tpu.memory_space<vmem>>, vector<1x16x64xbf16>,
    return
  }
  func.func @transform_0(%arg0: i32, %arg1: i32) -> (i32, i32, i32, i32) {
    %c0_i32 = arith.constant 0 : i32
    %c0_i32_0 = arith.constant 0 : i32
    %c0_i32_1 = arith.constant 0 : i32
    return %arg0, %arg1, %c0_i32, %c0_i32_0 : i32, i32, i32, i32
  }
  func.func @transform_1(%arg0: i32, %arg1: i32) -> (i32, i32) {
    %c0_i32 = arith.constant 0 : i32
    %c0_i32_0 = arith.constant 0 : i32
    %c0_i32_1 = arith.constant 0 : i32
    return %c0_i32, %c0_i32_0 : i32, i32
  }
  func.func @transform_2(%arg0: i32, %arg1: i32) -> (i32, i32) {
    %c0_i32 = arith.constant 0 : i32
    %c0_i32_0 = arith.constant 0 : i32
    %c0_i32_1 = arith.constant 0 : i32
    return %c0_i32, %c0_i32_0 : i32, i32
  }
  func.func @transform_3(%arg0: i32, %arg1: i32) -> (i32, i32, i32) {
    %c0_i32 = arith.constant 0 : i32
    %c0_i32_0 = arith.constant 0 : i32
    return %arg0, %arg1, %c0_i32 : i32, i32, i32
  }
}

module attributes {stable_mosaic.version = 11 : i64} {
  func.func @linear_head_kernel(%arg0: i32, %arg1: memref<2x1024xbf16, #tpu.memory_space<vmem>>, %arg2: memref<1024x512xbf16, #tpu.memory_space<vmem>>, %arg3: memref<1x512xf32, #tpu.memory_space<vmem>>, %arg4: memref<512x10xf32, #tpu.memory_space<vmem>>, %arg5: memref<1x10xf32, #tpu.memory_space<vmem>>, %arg6: memref<2x512xf32, #tpu.memory_space<vmem>>, %arg7: memref<2x10xf32, #tpu.memory_space<vmem>>) attributes {dimension_semantics = [#tpu.dimension_semantics<arbitrary>], iteration_bounds = array<i64: 1>, scalar_prefetch = 0 : i64, scratch_operands = 0 : i64, tpu.core_type = #tpu.core_type<tc>, window_params = [{pipeline_mode = #tpu.pipeline_mode<synchronous>, transform_indices = @transform_0, window_bounds = array<i64: 2, 1024>}, {pipeline_mode = #tpu.pipeline_mode<synchronous>, transform_indices = @transform_1, window_bounds = array<i64: 1024, 512>}, {pipeline_mode = #tpu.pipeline_mode<synchronous>, transform_indices = @transform_2, window_bounds = array<i64: 1, 512>}, {pipeline_mode = #tpu.pipeline_mode<synchronous>, transform_indices = @transform_3, window_bounds = array<i64: 512, 10>}, {pipeline_mode = #tpu.pipeline_mode<synchronous>, transform_indices = @transform_4, window_bounds = array<i64: 1, 10>}, {pipeline_mode = #tpu.pipeline_mode<synchronous>, transform_indices = @transform_5, window_bounds = array<i64: 2, 512>}, {pipeline_mode = #tpu.pipeline_mode<synchronous>, transform_indices = @transform_6, window_bounds = array<i64: 2, 10>}]} {
    %c0 = arith.constant 0 : index
    %c0_0 = arith.constant 0 : index
    %0 = vector.load %arg1[%c0, %c0_0] : memref<2x1024xbf16, #tpu.memory_space<vmem>>, vector<2x1024xbf16>
    %c0_1 = arith.constant 0 : index
    %c0_2 = arith.constant 0 : index
    %1 = vector.load %arg2[%c0_1, %c0_2] : memref<1024x512xbf16, #tpu.memory_space<vmem>>, vector<1024x512xbf16>
    %cst = arith.constant dense<0.000000e+00> : vector<2x512xf32>
    %2 = tpu.matmul %0, %1, %cst {dimension_numbers = #tpu.dot_dimension_numbers<[1], [0], [0], [1], [0, 0, 1, 1], [], []>} : vector<2x1024xbf16>, vector<1024x512xbf16>, vector<2x512xf32> -> vector<2x512xf32>
    %c0_3 = arith.constant 0 : index
    %c0_4 = arith.constant 0 : index
    %3 = vector.load %arg3[%c0_3, %c0_4] : memref<1x512xf32, #tpu.memory_space<vmem>>, vector<1x512xf32>
    %4 = vector.broadcast %3 : vector<1x512xf32> to vector<2x512xf32>
    %5 = arith.addf %2, %4 : vector<2x512xf32>
    %c0_5 = arith.constant 0 : index
    %c0_6 = arith.constant 0 : index
    %6 = vector.load %arg6[%c0_5, %c0_6] : memref<2x512xf32, #tpu.memory_space<vmem>>, vector<2x512xf32>
    tpu.vector_store %arg6[%c0_5, %c0_6], %5 {strides = array<i32>} : memref<2x512xf32, #tpu.memory_space<vmem>>, vector<2x512xf32>,
    %c0_7 = arith.constant 0 : index
    %c0_8 = arith.constant 0 : index
    %7 = vector.load %arg4[%c0_7, %c0_8] : memref<512x10xf32, #tpu.memory_space<vmem>>, vector<512x10xf32>
    %cst_9 = arith.constant dense<0.000000e+00> : vector<2x10xf32>
    %8 = tpu.matmul %5, %7, %cst_9 {dimension_numbers = #tpu.dot_dimension_numbers<[1], [0], [0], [1], [0, 0, 1, 1], [], []>} : vector<2x512xf32>, vector<512x10xf32>, vector<2x10xf32> -> vector<2x10xf32>
    %c0_10 = arith.constant 0 : index
    %c0_11 = arith.constant 0 : index
    %9 = vector.load %arg5[%c0_10, %c0_11] : memref<1x10xf32, #tpu.memory_space<vmem>>, vector<1x10xf32>
    %10 = vector.broadcast %9 : vector<1x10xf32> to vector<2x10xf32>
    %11 = arith.addf %8, %10 : vector<2x10xf32>
    %c0_12 = arith.constant 0 : index
    %c0_13 = arith.constant 0 : index
    %12 = vector.load %arg7[%c0_12, %c0_13] : memref<2x10xf32, #tpu.memory_space<vmem>>, vector<2x10xf32>
    tpu.vector_store %arg7[%c0_12, %c0_13], %11 {strides = array<i32>} : memref<2x10xf32, #tpu.memory_space<vmem>>, vector<2x10xf32>,
    return
  }
  func.func @transform_0(%arg0: i32) -> (i32, i32) {
    %c0_i32 = arith.constant 0 : i32
    %c0_i32_0 = arith.constant 0 : i32
    %c0_i32_1 = arith.constant 0 : i32
    return %c0_i32, %c0_i32_0 : i32, i32
  }
  func.func @transform_1(%arg0: i32) -> (i32, i32) {
    %c0_i32 = arith.constant 0 : i32
    %c0_i32_0 = arith.constant 0 : i32
    %c0_i32_1 = arith.constant 0 : i32
    return %c0_i32, %c0_i32_0 : i32, i32
  }
  func.func @transform_2(%arg0: i32) -> (i32, i32) {
    %c0_i32 = arith.constant 0 : i32
    %c0_i32_0 = arith.constant 0 : i32
    %c0_i32_1 = arith.constant 0 : i32
    return %c0_i32, %c0_i32_0 : i32, i32
  }
  func.func @transform_3(%arg0: i32) -> (i32, i32) {
    %c0_i32 = arith.constant 0 : i32
    %c0_i32_0 = arith.constant 0 : i32
    %c0_i32_1 = arith.constant 0 : i32
    return %c0_i32, %c0_i32_0 : i32, i32
  }
  func.func @transform_4(%arg0: i32) -> (i32, i32) {
    %c0_i32 = arith.constant 0 : i32
    %c0_i32_0 = arith.constant 0 : i32
    %c0_i32_1 = arith.constant 0 : i32
    return %c0_i32, %c0_i32_0 : i32, i32
  }
  func.func @transform_5(%arg0: i32) -> (i32, i32) {
    %c0_i32 = arith.constant 0 : i32
    %c0_i32_0 = arith.constant 0 : i32
    %c0_i32_1 = arith.constant 0 : i32
    return %c0_i32, %c0_i32_0 : i32, i32
  }
  func.func @transform_6(%arg0: i32) -> (i32, i32) {
    %c0_i32 = arith.constant 0 : i32
    %c0_i32_0 = arith.constant 0 : i32
    %c0_i32_1 = arith.constant 0 : i32
    return %c0_i32, %c0_i32_0 : i32, i32
  }
}

</mosaic_0001>

<bundles_post_ra>
// kernel: forward_pallas.5
= control target key start
LH: loop header
LB: loop body
LE: loop exit
PB: predicated region body
PF: predicated region fallthrough
CT: control target
= control target key end

     0   :  { %s4465_s12 = smov 0   ;;  %s4467_s13 = smov 0   ;;  %s6160_s0 = inlined_call_operand.vmem [shape: bf16[2,2,2048,27], index: 0, kind: input, shape index: {}]   ;;  %s6161_s1 = inlined_call_operand.vmem [shape: bf16[27,32], index: 1, kind: input, shape index: {}]   ;;  %s6162_s2 = inlined_call_operand.vmem [shape: f32[1,32], index: 2, kind: input, shape index: {}]   ;;  %s6163_s3 = inlined_call_operand.vmem [shape: bf16[2,1024,32], index: 3, kind: output, shape index: {}]  }
   0x1   :  { %s4469_s14 = smov 0   ;;  %s4471_s15 = smov 0  }
   0x2   :  { %s4473_s16 = smov 0  }
   0x3 LB: > { %s22_s17 = sadd.s32 1, %s4434_s14  ;;  %s25_s18 = sadd.s32 1, %s4438_s15  ;;  %s4442_s16 = sphi %s4473_s16, %s13_s16   ;;  %s4438_s15 = sphi %s4471_s15, %s6585_s15   ;;  %s4434_s14 = sphi %s4469_s14, %s6584_s14   ;;  %s4430_s13 = sphi %s4467_s13, %s6583_s13   ;;  %s4426_s12 = sphi %s4465_s12, %s6582_s12  }
   0x4   : > { %p23_p0 = scmp.ge.s32.totalorder %s22_s17, 2  ;;  %p3442_p1 = scmp.ge.s32.totalorder %s4442_s16, 1 }
   0x5   : > { %p157_p2 = scmp.lt.s32.totalorder %s4442_s16, 5 }
   0x6   : > { %s6587_s17 = smov (%p23_p0, %s22_s17), 0  ;;  %s6589_s18 = smov (!%p23_p0, %s25_s18), %s4438_s15 }
   0x7   : > { %p158_p3 = pnand %p3442_p1, %p157_p2  ;;  %p27_p4 = scmp.ge.s32.totalorder %s6589_s18, 2 }
   0x9   : > { %s6591_s18 = smov (%p27_p4, %s6589_s18), 0  ;;  %161 = sbr.rel (%p158_p3) target bundleno = 515 (0x203), region = 32 }
   0xe   : > { %v4273_v0 = vld [vmem:[%s6161_s1 + $0x8] sm:$0x3f]   ;;  %vm1512_vm0 = vcmask 1044480   ;;  %vm1513_vm1 = vcmask 1045504   ;;  %v4444_v1 = vmov 65535   ;;  %p189_p5 = scmp.lt.s32.totalorder %s4430_s13, 1 }
   0xf   : > { %v1514_v2 = vsel %vm1512_vm0, 4294967295, %v4444_v1  ;;  %p191_p6 = scmp.lt.s32.totalorder %s4426_s12, 1  ;;  %v4274_v5 = vld [vmem:[%s6161_s1] sm:$0xff]   ;;  %vm1127_vm2 = vcmask 220160   ;;  %s3446_s6 = sshll.u32 %s4426_s12, 6  ;;  %vm3280_vm3 = vcmask 257024  }
  0x10   : > { %v1515_v3 = vsel %vm1513_vm1, %v1514_v2, 0  ;;  %s6593_s13 = smov (!%p189_p5, %s4430_s13), 1  ;;  %p5550_p7 = scmp.lt.s32.totalorder %s3446_s6, 127 }
  0x11   : > { %v1517_v4 = vand.u32 %v4273_v0, %v1515_v3  ;;  %s192_s23 = scalar_select %p191_p6, %s4426_s12, 1 }
  0x12   : > { %s3444_s24 = sshll.u32 %s6593_s13, 9  ;;  %s6595_s6 = smov (!%p5550_p7, %s3446_s6), 127 }
  0x13   : > { %3968 = vmatprep.subr.bf16.mxu0 %v1517_v4  ;;  %4228 = vmatprep.subr.bf16.mxu1 %v1517_v4  ;;  %s3443_s25 = sshll.u32 %s192_s23, 8  ;;  %s3447_s8 = sshll.u32 %s6593_s13, 7 }
  0x14   : > { %3969 = vmatpush3.bf16.msra.mxu0 %v1517_v4  ;;  %4230 = vmatpush3.bf16.msra.mxu1 %v1517_v4  ;;  %s195_s26 = sadd.s32 %s3444_s24, %s3443_s25  ;;  %s5613_s9 = sadd.s32 %s3447_s8, %s6595_s6 }
  0x15   : > { %3970 = vmatprep.subr.bf16.mxu0 %v4274_v5  ;;  %4229 = vmatprep.subr.bf16.mxu1 %v4274_v5  ;;  %s3445_s27 = sshll.u32 %s195_s26, 2  ;;  %s3448_s10 = sshll.u32 %s5613_s9, 2 }
  0x16   : > { %s4511_s30 = scalar_lea.vmem %s6160_s0, %s3445_s27  ;;  %s5643_s13 = scalar_lea.vmem %s6163_s3, %s3448_s10 }
  0x17   : > { %v4275_v6 = vld [vmem:[%s4511_s30] sm:$0xff]   ;;  %v4277_v8 = vld [vmem:[%s4511_s30 + $0x8] sm:$0xff]   ;;  %v4279_v10 = vld [vmem:[%s4511_s30 + $0x10] sm:$0xff]  }
  0x18   : > { %3971 = vmatpush3.bf16.msra.mxu0 %v4274_v5  ;;  %4231 = vmatpush3.bf16.msra.mxu1 %v4274_v5  ;;  %v4276_v7 = vld [vmem:[%s4511_s30 + $0x200] sm:$0xff]   ;;  %v4278_v9 = vld [vmem:[%s4511_s30 + $0x208] sm:$0xff]   ;;  %v4280_v11 = vld [vmem:[%s4511_s30 + $0x210] sm:$0xff]  }
  0x19   : > { %3972 = vmatprep.mubr.msk.bf16.mxu0 %vm1127_vm2, %v4275_v6  ;;  %4100 = vmatprep.mubr.msk.bf16.mxu1 %vm1127_vm2, %v4276_v7  ;;  %v4281_v12 = vld [vmem:[%s4511_s30 + $0x18] sm:$0xff]   ;;  %v4283_v14 = vld [vmem:[%s4511_s30 + $0x20] sm:$0xff]   ;;  %v4285_v16 = vld [vmem:[%s4511_s30 + $0x28] sm:$0xff]  }
  0x1a   : > { %v4282_v13 = vld [vmem:[%s4511_s30 + $0x218] sm:$0xff]   ;;  %v4284_v15 = vld [vmem:[%s4511_s30 + $0x220] sm:$0xff]   ;;  %v4286_v17 = vld [vmem:[%s4511_s30 + $0x228] sm:$0xff]  }
  0x1b   : > { %3973 = vmatmul.mubr.msk.bf16.vlgmr.msra.gmra.mxu0 %vm1127_vm2, %v4277_v8  ;;  %4101 = vmatmul.mubr.msk.bf16.vlgmr.msra.gmra.mxu1 %vm1127_vm2, %v4278_v9  ;;  %v4287_v18 = vld [vmem:[%s4511_s30 + $0x30] sm:$0xff]   ;;  %v4289_v20 = vld [vmem:[%s4511_s30 + $0x38] sm:$0xff]   ;;  %v4291_v22 = vld [vmem:[%s4511_s30 + $0x40] sm:$0xff]  }
  0x1c   : > { %3976 = vmatprep.mubr.msk.bf16.mxu0 %vm1127_vm2, %v4279_v10  ;;  %4104 = vmatprep.mubr.msk.bf16.mxu1 %vm1127_vm2, %v4280_v11  ;;  %v4288_v19 = vld [vmem:[%s4511_s30 + $0x230] sm:$0xff]   ;;  %v4290_v21 = vld [vmem:[%s4511_s30 + $0x238] sm:$0xff]   ;;  %v4292_v23 = vld [vmem:[%s4511_s30 + $0x240] sm:$0xff]  }
  0x1d   : > { %v4293_v24 = vld [vmem:[%s4511_s30 + $0x48] sm:$0xff]   ;;  %v4295_v26 = vld [vmem:[%s4511_s30 + $0x50] sm:$0xff]   ;;  %v4297_v28 = vld [vmem:[%s4511_s30 + $0x58] sm:$0xff]  }
  0x1e   : > { %v4294_v25 = vld [vmem:[%s4511_s30 + $0x248] sm:$0xff]   ;;  %v4296_v27 = vld [vmem:[%s4511_s30 + $0x250] sm:$0xff]   ;;  %v4298_v29 = vld [vmem:[%s4511_s30 + $0x258] sm:$0xff]  }
  0x1f   : > { %v4299_v30 = vld [vmem:[%s4511_s30 + $0x60] sm:$0xff]   ;;  %v4301_v32 = vld [vmem:[%s4511_s30 + $0x68] sm:$0xff]   ;;  %v4303_v34 = vld [vmem:[%s4511_s30 + $0x70] sm:$0xff]  }
  0x20   : > { %v4300_v31 = vld [vmem:[%s4511_s30 + $0x260] sm:$0xff]   ;;  %v4302_v33 = vld [vmem:[%s4511_s30 + $0x268] sm:$0xff]   ;;  %v4304_v35 = vld [vmem:[%s4511_s30 + $0x270] sm:$0xff]  }
  0x21   : > { %v4305_v36 = vld [vmem:[%s4511_s30 + $0x78] sm:$0xff]   ;;  %v4307_v38 = vld [vmem:[%s4511_s30 + $0x80] sm:$0xff]   ;;  %v4309_v40 = vld [vmem:[%s4511_s30 + $0x88] sm:$0xff]  }
  0x22   : > { %v4306_v37 = vld [vmem:[%s4511_s30 + $0x278] sm:$0xff]   ;;  %v4308_v39 = vld [vmem:[%s4511_s30 + $0x280] sm:$0xff]   ;;  %v4310_v41 = vld [vmem:[%s4511_s30 + $0x288] sm:$0xff]  }
  0x23   : > { %3977 = vmatmul.mubr.msk.bf16.gmra.mxu0 %vm1127_vm2, %v4281_v12  ;;  %4105 = vmatmul.mubr.msk.bf16.gmra.mxu1 %vm1127_vm2, %v4282_v13  ;;  %v4311_v42 = vld [vmem:[%s4511_s30 + $0x90] sm:$0xff]   ;;  %v4313_v44 = vld [vmem:[%s4511_s30 + $0x98] sm:$0xff]   ;;  %v4315_v46 = vld [vmem:[%s4511_s30 + $0xa0] sm:$0xff]  }
  0x24   : > { %3980 = vmatprep.mubr.msk.bf16.mxu0 %vm1127_vm2, %v4283_v14  ;;  %4108 = vmatprep.mubr.msk.bf16.mxu1 %vm1127_vm2, %v4284_v15  ;;  %v4312_v43 = vld [vmem:[%s4511_s30 + $0x290] sm:$0xff]   ;;  %v4314_v45 = vld [vmem:[%s4511_s30 + $0x298] sm:$0xff]   ;;  %v4316_v47 = vld [vmem:[%s4511_s30 + $0x2a0] sm:$0xff]  }
  0x25   : > { %v4317_v48 = vld [vmem:[%s4511_s30 + $0xa8] sm:$0xff]   ;;  %v4319_v50 = vld [vmem:[%s4511_s30 + $0xb0] sm:$0xff]   ;;  %v4321_v52 = vld [vmem:[%s4511_s30 + $0xb8] sm:$0xff]  }
  0x26   : > { %v4318_v49 = vld [vmem:[%s4511_s30 + $0x2a8] sm:$0xff]   ;;  %v4320_v51 = vld [vmem:[%s4511_s30 + $0x2b0] sm:$0xff]   ;;  %v4322_v53 = vld [vmem:[%s4511_s30 + $0x2b8] sm:$0xff]  }
  0x27   : > { %v4323_v54 = vld [vmem:[%s4511_s30 + $0xc0] sm:$0xff]   ;;  %v4325_v56 = vld [vmem:[%s4511_s30 + $0xc8] sm:$0xff]   ;;  %v4327_v58 = vld [vmem:[%s4511_s30 + $0xd0] sm:$0xff]  }
  0x28   : > { %v4324_v55 = vld [vmem:[%s4511_s30 + $0x2c0] sm:$0xff]   ;;  %v4326_v57 = vld [vmem:[%s4511_s30 + $0x2c8] sm:$0xff]   ;;  %v4328_v59 = vld [vmem:[%s4511_s30 + $0x2d0] sm:$0xff]  }
  0x29   : > { %v4329_v60 = vld [vmem:[%s4511_s30 + $0xd8] sm:$0xff]   ;;  %v4331_v62 = vld [vmem:[%s4511_s30 + $0xe0] sm:$0xff]   ;;  %v4333_v0 = vld [vmem:[%s4511_s30 + $0xe8] sm:$0xff]  }
  0x2a   : > { %v4330_v61 = vld [vmem:[%s4511_s30 + $0x2d8] sm:$0xff]   ;;  %v4332_v63 = vld [vmem:[%s4511_s30 + $0x2e0] sm:$0xff]   ;;  %v4334_v1 = vld [vmem:[%s4511_s30 + $0x2e8] sm:$0xff]  }
  0x2b   : > { %3981 = vmatmul.mubr.msk.bf16.gmra.mxu0 %vm1127_vm2, %v4285_v16  ;;  %4109 = vmatmul.mubr.msk.bf16.gmra.mxu1 %vm1127_vm2, %v4286_v17  ;;  %v4335_v2 = vld [vmem:[%s4511_s30 + $0xf0] sm:$0xff]   ;;  %v4337_v4 = vld [vmem:[%s4511_s30 + $0xf8] sm:$0xff]   ;;  %v4339_v6 = vld [vmem:[%s4511_s30 + $0x100] sm:$0xff]  }
  0x2c   : > { %3984 = vmatprep.mubr.msk.bf16.mxu0 %vm1127_vm2, %v4287_v18  ;;  %4112 = vmatprep.mubr.msk.bf16.mxu1 %vm1127_vm2, %v4288_v19  ;;  %v4336_v3 = vld [vmem:[%s4511_s30 + $0x2f0] sm:$0xff]   ;;  %v4338_v5 = vld [vmem:[%s4511_s30 + $0x2f8] sm:$0xff]   ;;  %v4340_v7 = vld [vmem:[%s4511_s30 + $0x300] sm:$0xff]  }
  0x2d   : > { %v4341_v8 = vld [vmem:[%s4511_s30 + $0x108] sm:$0xff]   ;;  %v4343_v10 = vld [vmem:[%s4511_s30 + $0x110] sm:$0xff]   ;;  %v4345_v12 = vld [vmem:[%s4511_s30 + $0x118] sm:$0xff]  }
  0x2e   : > { %v4342_v9 = vld [vmem:[%s4511_s30 + $0x308] sm:$0xff]   ;;  %v4344_v11 = vld [vmem:[%s4511_s30 + $0x310] sm:$0xff]   ;;  %v4346_v13 = vld [vmem:[%s4511_s30 + $0x318] sm:$0xff]  }
  0x2f   : > { %v4347_v14 = vld [vmem:[%s4511_s30 + $0x120] sm:$0xff]   ;;  %v4349_v16 = vld [vmem:[%s4511_s30 + $0x128] sm:$0xff]   ;;  %v4351_v18 = vld [vmem:[%s4511_s30 + $0x130] sm:$0xff]  }
  0x30   : > { %v4348_v15 = vld [vmem:[%s4511_s30 + $0x320] sm:$0xff]   ;;  %v4350_v17 = vld [vmem:[%s4511_s30 + $0x328] sm:$0xff]   ;;  %v4352_v19 = vld [vmem:[%s4511_s30 + $0x330] sm:$0xff]  }
  0x33   : > { %3985 = vmatmul.mubr.msk.bf16.gmra.mxu0 %vm1127_vm2, %v4289_v20  ;;  %4113 = vmatmul.mubr.msk.bf16.gmra.mxu1 %vm1127_vm2, %v4290_v21  ;;  %v4353_v20 = vld [vmem:[%s4511_s30 + $0x138] sm:$0xff]  }
  0x34   : > { %3988 = vmatprep.mubr.msk.bf16.mxu0 %vm1127_vm2, %v4291_v22  ;;  %4116 = vmatprep.mubr.msk.bf16.mxu1 %vm1127_vm2, %v4292_v23  ;;  %v4354_v21 = vld [vmem:[%s4511_s30 + $0x338] sm:$0xff]   ;;  %v4355_v22 = vld [vmem:[%s4511_s30 + $0x140] sm:$0xff]  }
  0x35   : > { %v4356_v23 = vld [vmem:[%s4511_s30 + $0x340] sm:$0xff]  }
  0x3b   : > { %3989 = vmatmul.mubr.msk.bf16.gmra.mxu0 %vm1127_vm2, %v4293_v24  ;;  %4117 = vmatmul.mubr.msk.bf16.gmra.mxu1 %vm1127_vm2, %v4294_v25  ;;  %v4357_v24 = vld [vmem:[%s4511_s30 + $0x148] sm:$0xff]  }
  0x3c   : > { %3992 = vmatprep.mubr.msk.bf16.mxu0 %vm1127_vm2, %v4295_v26  ;;  %4120 = vmatprep.mubr.msk.bf16.mxu1 %vm1127_vm2, %v4296_v27  ;;  %v4358_v25 = vld [vmem:[%s4511_s30 + $0x348] sm:$0xff]   ;;  %v4359_v26 = vld [vmem:[%s4511_s30 + $0x150] sm:$0xff]  }
  0x3d   : > { %v4360_v27 = vld [vmem:[%s4511_s30 + $0x350] sm:$0xff]  }
  0x43   : > { %3993 = vmatmul.mubr.msk.bf16.gmra.mxu0 %vm1127_vm2, %v4297_v28  ;;  %4121 = vmatmul.mubr.msk.bf16.gmra.mxu1 %vm1127_vm2, %v4298_v29  ;;  %v4361_v28 = vld [vmem:[%s4511_s30 + $0x158] sm:$0xff]  }
  0x44   : > { %3996 = vmatprep.mubr.msk.bf16.mxu0 %vm1127_vm2, %v4299_v30  ;;  %4124 = vmatprep.mubr.msk.bf16.mxu1 %vm1127_vm2, %v4300_v31  ;;  %v4362_v29 = vld [vmem:[%s4511_s30 + $0x358] sm:$0xff]   ;;  %v4363_v30 = vld [vmem:[%s4511_s30 + $0x160] sm:$0xff]  }
  0x45   : > { %v4364_v31 = vld [vmem:[%s4511_s30 + $0x360] sm:$0xff]  }
  0x4b   : > { %3997 = vmatmul.mubr.msk.bf16.gmra.mxu0 %vm1127_vm2, %v4301_v32  ;;  %4125 = vmatmul.mubr.msk.bf16.gmra.mxu1 %vm1127_vm2, %v4302_v33  ;;  %v4365_v32 = vld [vmem:[%s4511_s30 + $0x168] sm:$0xff]  }
  0x4c   : > { %4000 = vmatprep.mubr.msk.bf16.mxu0 %vm1127_vm2, %v4303_v34  ;;  %4128 = vmatprep.mubr.msk.bf16.mxu1 %vm1127_vm2, %v4304_v35  ;;  %v4366_v33 = vld [vmem:[%s4511_s30 + $0x368] sm:$0xff]   ;;  %v4367_v34 = vld [vmem:[%s4511_s30 + $0x170] sm:$0xff]  }
  0x4d   : > { %v4368_v35 = vld [vmem:[%s4511_s30 + $0x370] sm:$0xff]  }
  0x53   : > { %4001 = vmatmul.mubr.msk.bf16.gmra.mxu0 %vm1127_vm2, %v4305_v36  ;;  %4129 = vmatmul.mubr.msk.bf16.gmra.mxu1 %vm1127_vm2, %v4306_v37  ;;  %v4369_v36 = vld [vmem:[%s4511_s30 + $0x178] sm:$0xff]  }
  0x54   : > { %4004 = vmatprep.mubr.msk.bf16.mxu0 %vm1127_vm2, %v4307_v38  ;;  %4132 = vmatprep.mubr.msk.bf16.mxu1 %vm1127_vm2, %v4308_v39  ;;  %v4370_v37 = vld [vmem:[%s4511_s30 + $0x378] sm:$0xff]   ;;  %v4371_v38 = vld [vmem:[%s4511_s30 + $0x180] sm:$0xff]  }
  0x55   : > { %v4372_v39 = vld [vmem:[%s4511_s30 + $0x380] sm:$0xff]  }
  0x5b   : > { %4005 = vmatmul.mubr.msk.bf16.gmra.mxu0 %vm1127_vm2, %v4309_v40  ;;  %4133 = vmatmul.mubr.msk.bf16.gmra.mxu1 %vm1127_vm2, %v4310_v41  ;;  %v4373_v40 = vld [vmem:[%s4511_s30 + $0x188] sm:$0xff]  }
  0x5c   : > { %4008 = vmatprep.mubr.msk.bf16.mxu0 %vm1127_vm2, %v4311_v42  ;;  %4136 = vmatprep.mubr.msk.bf16.mxu1 %vm1127_vm2, %v4312_v43  ;;  %v4374_v41 = vld [vmem:[%s4511_s30 + $0x388] sm:$0xff]   ;;  %v4375_v42 = vld [vmem:[%s4511_s30 + $0x190] sm:$0xff]  }
  0x5d   : > { %v4376_v43 = vld [vmem:[%s4511_s30 + $0x390] sm:$0xff]  }
  0x63   : > { %4009 = vmatmul.mubr.msk.bf16.gmra.mxu0 %vm1127_vm2, %v4313_v44  ;;  %4137 = vmatmul.mubr.msk.bf16.gmra.mxu1 %vm1127_vm2, %v4314_v45 }
  0x64   : > { %4012 = vmatprep.mubr.msk.bf16.mxu0 %vm1127_vm2, %v4315_v46  ;;  %4140 = vmatprep.mubr.msk.bf16.mxu1 %vm1127_vm2, %v4316_v47 }
  0x6b   : > { %4013 = vmatmul.mubr.msk.bf16.gmra.mxu0 %vm1127_vm2, %v4317_v48  ;;  %4141 = vmatmul.mubr.msk.bf16.gmra.mxu1 %vm1127_vm2, %v4318_v49  ;;  %v4377_v49 = vld [vmem:[%s4511_s30 + $0x198] sm:$0xff]  }
  0x6c   : > { %4016 = vmatprep.mubr.msk.bf16.mxu0 %vm1127_vm2, %v4319_v50  ;;  %4144 = vmatprep.mubr.msk.bf16.mxu1 %vm1127_vm2, %v4320_v51  ;;  %v4378_v51 = vld [vmem:[%s4511_s30 + $0x398] sm:$0xff]  }
  0x73   : > { %4017 = vmatmul.mubr.msk.bf16.gmra.mxu0 %vm1127_vm2, %v4321_v52  ;;  %4145 = vmatmul.mubr.msk.bf16.gmra.mxu1 %vm1127_vm2, %v4322_v53  ;;  %v4379_v52 = vld [vmem:[%s4511_s30 + $0x1a0] sm:$0xff]  }
  0x74   : > { %4020 = vmatprep.mubr.msk.bf16.mxu0 %vm1127_vm2, %v4323_v54  ;;  %4148 = vmatprep.mubr.msk.bf16.mxu1 %vm1127_vm2, %v4324_v55  ;;  %v4380_v54 = vld [vmem:[%s4511_s30 + $0x3a0] sm:$0xff]  }
  0x7b   : > { %4021 = vmatmul.mubr.msk.bf16.gmra.mxu0 %vm1127_vm2, %v4325_v56  ;;  %4149 = vmatmul.mubr.msk.bf16.gmra.mxu1 %vm1127_vm2, %v4326_v57 }
  0x7c   : > { %4024 = vmatprep.mubr.msk.bf16.mxu0 %vm1127_vm2, %v4327_v58  ;;  %4152 = vmatprep.mubr.msk.bf16.mxu1 %vm1127_vm2, %v4328_v59 }
  0x83   : > { %4025 = vmatmul.mubr.msk.bf16.gmra.mxu0 %vm1127_vm2, %v4329_v60  ;;  %4153 = vmatmul.mubr.msk.bf16.gmra.mxu1 %vm1127_vm2, %v4330_v61  ;;  %v4381_v61 = vld [vmem:[%s4511_s30 + $0x1a8] sm:$0xff]  }
  0x84   : > { %4028 = vmatprep.mubr.msk.bf16.mxu0 %vm1127_vm2, %v4331_v62  ;;  %4156 = vmatprep.mubr.msk.bf16.mxu1 %vm1127_vm2, %v4332_v63  ;;  %v4382_v63 = vld [vmem:[%s4511_s30 + $0x3a8] sm:$0xff]  }
  0x8b   : > { %4029 = vmatmul.mubr.msk.bf16.gmra.mxu0 %vm1127_vm2, %v4333_v0  ;;  %4157 = vmatmul.mubr.msk.bf16.gmra.mxu1 %vm1127_vm2, %v4334_v1  ;;  %v4383_v0 = vld [vmem:[%s4511_s30 + $0x1b0] sm:$0xff]  }
  0x8c   : > { %4032 = vmatprep.mubr.msk.bf16.mxu0 %vm1127_vm2, %v4335_v2  ;;  %4160 = vmatprep.mubr.msk.bf16.mxu1 %vm1127_vm2, %v4336_v3  ;;  %v4384_v2 = vld [vmem:[%s4511_s30 + $0x3b0] sm:$0xff]  }
  0x93   : > { %4033 = vmatmul.mubr.msk.bf16.gmra.mxu0 %vm1127_vm2, %v4337_v4  ;;  %4161 = vmatmul.mubr.msk.bf16.gmra.mxu1 %vm1127_vm2, %v4338_v5 }
  0x94   : > { %4036 = vmatprep.mubr.msk.bf16.mxu0 %vm1127_vm2, %v4339_v6  ;;  %4164 = vmatprep.mubr.msk.bf16.mxu1 %vm1127_vm2, %v4340_v7 }
  0x9b   : > { %4037 = vmatmul.mubr.msk.bf16.gmra.mxu0 %vm1127_vm2, %v4341_v8  ;;  %4165 = vmatmul.mubr.msk.bf16.gmra.mxu1 %vm1127_vm2, %v4342_v9  ;;  %v4385_v9 = vld [vmem:[%s4511_s30 + $0x1b8] sm:$0xff]  }
  0x9c   : > { %4040 = vmatprep.mubr.msk.bf16.mxu0 %vm1127_vm2, %v4343_v10  ;;  %4168 = vmatprep.mubr.msk.bf16.mxu1 %vm1127_vm2, %v4344_v11  ;;  %v4386_v11 = vld [vmem:[%s4511_s30 + $0x3b8] sm:$0xff]  }
  0xa3   : > { %4041 = vmatmul.mubr.msk.bf16.gmra.mxu0 %vm1127_vm2, %v4345_v12  ;;  %4169 = vmatmul.mubr.msk.bf16.gmra.mxu1 %vm1127_vm2, %v4346_v13  ;;  %v4387_v12 = vld [vmem:[%s4511_s30 + $0x1c0] sm:$0xff]  }
  0xa4   : > { %4044 = vmatprep.mubr.msk.bf16.mxu0 %vm1127_vm2, %v4347_v14  ;;  %4172 = vmatprep.mubr.msk.bf16.mxu1 %vm1127_vm2, %v4348_v15  ;;  %v4388_v14 = vld [vmem:[%s4511_s30 + $0x3c0] sm:$0xff]  }
  0xab   : > { %4045 = vmatmul.mubr.msk.bf16.gmra.mxu0 %vm1127_vm2, %v4349_v16  ;;  %4173 = vmatmul.mubr.msk.bf16.gmra.mxu1 %vm1127_vm2, %v4350_v17 }
  0xac   : > { %4048 = vmatprep.mubr.msk.bf16.mxu0 %vm1127_vm2, %v4351_v18  ;;  %4176 = vmatprep.mubr.msk.bf16.mxu1 %vm1127_vm2, %v4352_v19 }
  0xb3   : > { %4049 = vmatmul.mubr.msk.bf16.gmra.mxu0 %vm1127_vm2, %v4353_v20  ;;  %4177 = vmatmul.mubr.msk.bf16.gmra.mxu1 %vm1127_vm2, %v4354_v21  ;;  %v4389_v21 = vld [vmem:[%s4511_s30 + $0x1c8] sm:$0xff]  }
  0xb4   : > { %4052 = vmatprep.mubr.msk.bf16.mxu0 %vm1127_vm2, %v4355_v22  ;;  %4180 = vmatprep.mubr.msk.bf16.mxu1 %vm1127_vm2, %v4356_v23  ;;  %v4390_v23 = vld [vmem:[%s4511_s30 + $0x3c8] sm:$0xff]  }
  0xbb   : > { %4053 = vmatmul.mubr.msk.bf16.gmra.mxu0 %vm1127_vm2, %v4357_v24  ;;  %4181 = vmatmul.mubr.msk.bf16.gmra.mxu1 %vm1127_vm2, %v4358_v25  ;;  %v4391_v24 = vld [vmem:[%s4511_s30 + $0x1d0] sm:$0xff]  }
  0xbc   : > { %4056 = vmatprep.mubr.msk.bf16.mxu0 %vm1127_vm2, %v4359_v26  ;;  %4184 = vmatprep.mubr.msk.bf16.mxu1 %vm1127_vm2, %v4360_v27  ;;  %v4392_v26 = vld [vmem:[%s4511_s30 + $0x3d0] sm:$0xff]  }
  0xc3   : > { %4057 = vmatmul.mubr.msk.bf16.gmra.mxu0 %vm1127_vm2, %v4361_v28  ;;  %4185 = vmatmul.mubr.msk.bf16.gmra.mxu1 %vm1127_vm2, %v4362_v29 }
  0xc4   : > { %4060 = vmatprep.mubr.msk.bf16.mxu0 %vm1127_vm2, %v4363_v30  ;;  %4188 = vmatprep.mubr.msk.bf16.mxu1 %vm1127_vm2, %v4364_v31 }
  0xcb   : > { %4061 = vmatmul.mubr.msk.bf16.gmra.mxu0 %vm1127_vm2, %v4365_v32  ;;  %4189 = vmatmul.mubr.msk.bf16.gmra.mxu1 %vm1127_vm2, %v4366_v33  ;;  %v4393_v33 = vld [vmem:[%s4511_s30 + $0x1d8] sm:$0xff]  }
  0xcc   : > { %4064 = vmatprep.mubr.msk.bf16.mxu0 %vm1127_vm2, %v4367_v34  ;;  %4192 = vmatprep.mubr.msk.bf16.mxu1 %vm1127_vm2, %v4368_v35  ;;  %v4394_v35 = vld [vmem:[%s4511_s30 + $0x3d8] sm:$0xff]  }
  0xd3   : > { %4065 = vmatmul.mubr.msk.bf16.gmra.mxu0 %vm1127_vm2, %v4369_v36  ;;  %4193 = vmatmul.mubr.msk.bf16.gmra.mxu1 %vm1127_vm2, %v4370_v37  ;;  %v4395_v36 = vld [vmem:[%s4511_s30 + $0x1e0] sm:$0xff]  }
  0xd4   : > { %4068 = vmatprep.mubr.msk.bf16.mxu0 %vm1127_vm2, %v4371_v38  ;;  %4196 = vmatprep.mubr.msk.bf16.mxu1 %vm1127_vm2, %v4372_v39  ;;  %v4396_v38 = vld [vmem:[%s4511_s30 + $0x3e0] sm:$0xff]  }
  0xdb   : > { %v4713_v44 = vpop.f32.mrf.mxu0  ;;  %4069 = vmatmul.mubr.msk.bf16.gmra.mxu0 %vm1127_vm2, %v4373_v40  ;;  %v4716_v45 = vpop.f32.mrf.mxu1  ;;  %4197 = vmatmul.mubr.msk.bf16.gmra.mxu1 %vm1127_vm2, %v4374_v41 }
  0xdc   : > { %4072 = vmatprep.mubr.msk.bf16.mxu0 %vm1127_vm2, %v4375_v42  ;;  %4200 = vmatprep.mubr.msk.bf16.mxu1 %vm1127_vm2, %v4376_v43 }
  0xdd   : > { %v4720_v46 = vpop.f32.mrf.mxu0  ;;  %v4723_v47 = vpop.f32.mrf.mxu1 }
  0xdf   : > { %v4725_v48 = vpop.f32.mrf.mxu0  ;;  %v4728_v50 = vpop.f32.mrf.mxu1 }
  0xe1   : > { %v4732_v53 = vpop.f32.mrf.mxu0  ;;  %v4735_v55 = vpop.f32.mrf.mxu1 }
  0xe3   : > { %v4737_v56 = vpop.f32.mrf.mxu0  ;;  %4073 = vmatmul.mubr.msk.bf16.gmra.mxu0 %vm1127_vm2, %v4377_v49  ;;  %v4740_v57 = vpop.f32.mrf.mxu1  ;;  %4201 = vmatmul.mubr.msk.bf16.gmra.mxu1 %vm1127_vm2, %v4378_v51  ;;  %v4397_v51 = vld [vmem:[%s4511_s30 + $0x1e8] sm:$0xff]  }
  0xe4   : > { %4076 = vmatprep.mubr.msk.bf16.mxu0 %vm1127_vm2, %v4379_v52  ;;  %4204 = vmatprep.mubr.msk.bf16.mxu1 %vm1127_vm2, %v4380_v54  ;;  %v4398_v54 = vld [vmem:[%s4511_s30 + $0x3e8] sm:$0xff]  }
  0xe5   : > { %v4744_v58 = vpop.f32.mrf.mxu0  ;;  %v4747_v59 = vpop.f32.mrf.mxu1 }
  0xe7   : > { %v4749_v60 = vpop.f32.mrf.mxu0  ;;  %v4752_v62 = vpop.f32.mrf.mxu1 }
  0xe9   : > { %v4756_v1 = vpop.f32.mrf.mxu0  ;;  %v4759_v3 = vpop.f32.mrf.mxu1 }
  0xeb   : > { %v4761_v4 = vpop.f32.mrf.mxu0  ;;  %4077 = vmatmul.mubr.msk.bf16.gmra.mxu0 %vm1127_vm2, %v4381_v61  ;;  %v4764_v5 = vpop.f32.mrf.mxu1  ;;  %4205 = vmatmul.mubr.msk.bf16.gmra.mxu1 %vm1127_vm2, %v4382_v63  ;;  %v4399_v61 = vld [vmem:[%s4511_s30 + $0x1f0] sm:$0xff]  }
  0xec   : > { %4080 = vmatprep.mubr.msk.bf16.mxu0 %vm1127_vm2, %v4383_v0  ;;  %4208 = vmatprep.mubr.msk.bf16.mxu1 %vm1127_vm2, %v4384_v2  ;;  %v4400_v0 = vld [vmem:[%s4511_s30 + $0x3f0] sm:$0xff]  }
  0xed   : > { %v4768_v6 = vpop.f32.mrf.mxu0  ;;  %v4771_v7 = vpop.f32.mrf.mxu1 }
  0xef   : > { %v4773_v8 = vpop.f32.mrf.mxu0  ;;  %v4776_v10 = vpop.f32.mrf.mxu1 }
  0xf1   : > { %v4780_v13 = vpop.f32.mrf.mxu0  ;;  %v4783_v15 = vpop.f32.mrf.mxu1 }
  0xf3   : > { %v4785_v16 = vpop.f32.mrf.mxu0  ;;  %4081 = vmatmul.mubr.msk.bf16.gmra.mxu0 %vm1127_vm2, %v4385_v9  ;;  %v4788_v17 = vpop.f32.mrf.mxu1  ;;  %4209 = vmatmul.mubr.msk.bf16.gmra.mxu1 %vm1127_vm2, %v4386_v11 }
  0xf4   : > { %4084 = vmatprep.mubr.msk.bf16.mxu0 %vm1127_vm2, %v4387_v12  ;;  %4212 = vmatprep.mubr.msk.bf16.mxu1 %vm1127_vm2, %v4388_v14 }
  0xf5   : > { %v4792_v18 = vpop.f32.mrf.mxu0  ;;  %v4795_v19 = vpop.f32.mrf.mxu1 }
  0xf7   : > { %v4797_v20 = vpop.f32.mrf.mxu0  ;;  %v4800_v22 = vpop.f32.mrf.mxu1 }
  0xf9   : > { %v4804_v25 = vpop.f32.mrf.mxu0  ;;  %v4807_v27 = vpop.f32.mrf.mxu1 }
  0xfb   : > { %v4809_v28 = vpop.f32.mrf.mxu0  ;;  %4085 = vmatmul.mubr.msk.bf16.gmra.mxu0 %vm1127_vm2, %v4389_v21  ;;  %v4812_v29 = vpop.f32.mrf.mxu1  ;;  %4213 = vmatmul.mubr.msk.bf16.gmra.mxu1 %vm1127_vm2, %v4390_v23  ;;  %v4401_v23 = vld [vmem:[%s4511_s30 + $0x1f8] sm:$0xff]  }
  0xfc   : > { %4088 = vmatprep.mubr.msk.bf16.mxu0 %vm1127_vm2, %v4391_v24  ;;  %4216 = vmatprep.mubr.msk.bf16.mxu1 %vm1127_vm2, %v4392_v26  ;;  %v4402_v26 = vld [vmem:[%s4511_s30 + $0x3f8] sm:$0xff]  }
  0xfd   : > { %v4816_v30 = vpop.f32.mrf.mxu0  ;;  %v4819_v31 = vpop.f32.mrf.mxu1 }
  0xff   : > { %v4821_v32 = vpop.f32.mrf.mxu0  ;;  %v4824_v34 = vpop.f32.mrf.mxu1 }
 0x101   : > { %v4828_v37 = vpop.f32.mrf.mxu0  ;;  %v4831_v39 = vpop.f32.mrf.mxu1 }
 0x103   : > { %v4833_v40 = vpop.f32.mrf.mxu0  ;;  %4089 = vmatmul.mubr.msk.bf16.gmra.mxu0 %vm1127_vm2, %v4393_v33  ;;  %v4836_v41 = vpop.f32.mrf.mxu1  ;;  %4217 = vmatmul.mubr.msk.bf16.gmra.mxu1 %vm1127_vm2, %v4394_v35 }
 0x104   : > { %4092 = vmatprep.mubr.msk.bf16.mxu0 %vm1127_vm2, %v4395_v36  ;;  %4220 = vmatprep.mubr.msk.bf16.mxu1 %vm1127_vm2, %v4396_v38 }
 0x105   : > { %v4840_v42 = vpop.f32.mrf.mxu0  ;;  %v4843_v43 = vpop.f32.mrf.mxu1 }
 0x107   : > { %v4845_v49 = vpop.f32.mrf.mxu0  ;;  %v4848_v52 = vpop.f32.mrf.mxu1 }
 0x109   : > { %v4852_v63 = vpop.f32.mrf.mxu0  ;;  %v4855_v2 = vpop.f32.mrf.mxu1 }
 0x10b   : > { %v4857_v9 = vpop.f32.mrf.mxu0  ;;  %4093 = vmatmul.mubr.msk.bf16.gmra.mxu0 %vm1127_vm2, %v4397_v51  ;;  %v4860_v11 = vpop.f32.mrf.mxu1  ;;  %4221 = vmatmul.mubr.msk.bf16.gmra.mxu1 %vm1127_vm2, %v4398_v54 }
 0x10c   : > { %4096 = vmatprep.mubr.msk.bf16.mxu0 %vm1127_vm2, %v4399_v61  ;;  %4224 = vmatprep.mubr.msk.bf16.mxu1 %vm1127_vm2, %v4400_v0 }
 0x10d   : > { %v4864_v12 = vpop.f32.mrf.mxu0  ;;  %v4867_v14 = vpop.f32.mrf.mxu1 }
 0x10f   : > { %v4869_v21 = vpop.f32.mrf.mxu0  ;;  %v4872_v24 = vpop.f32.mrf.mxu1 }
 0x110   : > { %6250 = vst [vmem:[#allocation2_spill] sm:$0xff] %v4872_v24 }
 0x111   : > { %v4875_v33 = vpop.f32.mrf.mxu0  ;;  %v4877_v35 = vpop.f32.mrf.mxu1 }
 0x112   : > { %6251 = vst [vmem:[#allocation3_spill] sm:$0xff] %v4875_v33 }
 0x113   : > { %v4879_v36 = vpop.f32.mrf.mxu0  ;;  %4097 = vmatmul.mubr.msk.bf16.gmra.mxu0 %vm1127_vm2, %v4401_v23  ;;  %v4882_v38 = vpop.f32.mrf.mxu1  ;;  %4225 = vmatmul.mubr.msk.bf16.gmra.mxu1 %vm1127_vm2, %v4402_v26  ;;  %v4900_v23 = vld [vmem:[%s6162_s2] ss:$0 sm:$0xff] }
 0x114   : > { %6252 = vst [vmem:[#allocation4_spill] sm:$0xff] %v4882_v38 }
 0x115   : > { %v4885_v51 = vpop.f32.mrf.mxu0  ;;  %v4887_v54 = vpop.f32.mrf.mxu1 }
 0x116   : > { %6253 = vst [vmem:[#allocation5_spill] sm:$0xff] %v4885_v51  ;;  %6254 = vst [vmem:[#allocation6_spill] sm:$0xff] %v4887_v54  ;;  %v4981_v54 = vadd.f32 %v4752_v62, %v4900_v23  ;;  %v5017_v62 = vadd.f32 %v4900_v23, %v4771_v7  ;;  %v5077_v7 = vadd.f32 %v4800_v22, %v4900_v23 }
 0x117   : > { %v4889_v61 = vpop.f32.mrf.mxu0  ;;  %v4891_v0 = vpop.f32.mrf.mxu1  ;;  %v5113_v22 = vadd.f32 %v4900_v23, %v4819_v31  ;;  %v5173_v31 = vadd.f32 %v4848_v52, %v4900_v23  ;;  %v5209_v52 = vadd.f32 %v4900_v23, %v4867_v14 }
 0x118   : > { %6255 = vst [vmem:[#allocation7_spill] sm:$0xff] %v4889_v61  ;;  %6256 = vst [vmem:[#allocation8_spill] sm:$0xff] %v4891_v0  ;;  %v4910_v61 = vadd.f32 %v4713_v44, %v4900_v23  ;;  %v4920_v0 = vadd.f32 %v4900_v23, %v4720_v46  ;;  %v4930_v44 = vadd.f32 %v4725_v48, %v4900_v23 }
 0x119   : > { %v4893_v24 = vpop.f32.mrf.mxu0  ;;  %v4895_v33 = vpop.f32.mrf.mxu1  ;;  %6272 = vst [vmem:[#allocation24_spill] sm:$0xff] %v4981_v54  ;;  %6275 = vst [vmem:[#allocation27_spill] sm:$0xff] %v5017_v62  ;;  %v5089_v54 = vadd.f32 %v4900_v23, %v4807_v27  ;;  %v5101_v62 = vadd.f32 %v4812_v29, %v4900_v23  ;;  %v5120_v29 = vadd.f32 %v4821_v32, %v4900_v23 }
 0x11a   : > { %6257 = vst [vmem:[#allocation9_spill] sm:$0xff] %v4893_v24  ;;  %6258 = vst [vmem:[#allocation10_spill] sm:$0xff] %v4895_v33  ;;  %v4914_v24 = vadd.f32 %v4716_v45, %v4900_v23  ;;  %v4934_v45 = vadd.f32 %v4728_v50, %v4900_v23  ;;  %v4972_v50 = vadd.f32 %v4749_v60, %v4900_v23 }
 0x11b   : > { %v4902_v38 = vpop.f32.mrf.mxu0  ;;  %v4904_v26 = vpop.f32.mrf.mxu1  ;;  %v4989_v60 = vadd.f32 %v4900_v23, %v4756_v1  ;;  %6280 = vst [vmem:[#allocation32_spill] sm:$0xff] %v5077_v7  ;;  %6282 = vst [vmem:[#allocation34_spill] sm:$0xff] %v5089_v54  ;;  %v5140_v32 = vadd.f32 %v4833_v40, %v4900_v23  ;;  %v5160_v54 = vadd.f32 %v4900_v23, %v4843_v43  ;;  %v6304_v43 = vld [vmem:[#allocation2_spill] sm:$0xff] }
 0x11c   : > { %6259 = vst [vmem:[#allocation11_spill] sm:$0xff] %v4902_v38  ;;  %6260 = vst [vmem:[#allocation12_spill] sm:$0xff] %v4904_v26  ;;  %v4924_v38 = vadd.f32 %v4900_v23, %v4723_v47  ;;  %v4944_v47 = vadd.f32 %v4900_v23, %v4735_v55  ;;  %v5185_v7 = vadd.f32 %v4900_v23, %v4855_v2  ;;  %v6306_v2 = vld [vmem:[#allocation3_spill] sm:$0xff] }
 0x11d   : > { %v4906_v51 = vpop.f32.mrf.mxu0  ;;  %6262 = vst [vmem:[#allocation14_spill] sm:$0xff] %v4914_v24  ;;  %v4916_v33 = vpop.f32.mrf.mxu1  ;;  %6271 = vst [vmem:[#allocation23_spill] sm:$0xff] %v4972_v50  ;;  %v5040_v24 = vadd.f32 %v4900_v23, %v4783_v15  ;;  %v5056_v50 = vadd.f32 %v4900_v23, %v4792_v18  ;;  %v6312_v14 = vld [vmem:[#allocation5_spill] sm:$0xff] }
 0x11e   : > { %6261 = vst [vmem:[#allocation13_spill] sm:$0xff] %v4906_v51  ;;  %6263 = vst [vmem:[#allocation15_spill] sm:$0xff] %v4916_v33  ;;  %v4938_v33 = vadd.f32 %v4900_v23, %v4732_v53  ;;  %v4956_v53 = vadd.f32 %v4740_v57, %v4900_v23  ;;  %v4993_v51 = vadd.f32 %v4900_v23, %v4759_v3 }
 0x11f   : > { %6264 = vst [vmem:[#allocation16_spill] sm:$0xff] %v4924_v38  ;;  %v4926_v26 = vpop.f32.mrf.mxu0  ;;  %v4940_v46 = vpop.f32.mrf.mxu1  ;;  %v5005_v38 = vadd.f32 %v4764_v5, %v4900_v23  ;;  %v5024_v5 = vadd.f32 %v4773_v8, %v4900_v23  ;;  %v5044_v8 = vadd.f32 %v4785_v16, %v4900_v23  ;;  %6284 = vst [vmem:[#allocation36_spill] sm:$0xff] %v5101_v62 }
 0x120   : > { %6265 = vst [vmem:[#allocation17_spill] sm:$0xff] %v4926_v26  ;;  %6266 = vst [vmem:[#allocation18_spill] sm:$0xff] %v4938_v33  ;;  %v4948_v26 = vadd.f32 %v4737_v56, %v4900_v23  ;;  %v5001_v33 = vadd.f32 %v4761_v4, %v4900_v23  ;;  %v5232_v62 = vadd.f32 %v4900_v23, %v4877_v35 }
 0x121   : > { %6267 = vst [vmem:[#allocation19_spill] sm:$0xff] %v4940_v46  ;;  %v4950_v48 = vpop.f32.mrf.mxu0  ;;  %v4960_v46 = vadd.f32 %v4900_v23, %v4744_v58  ;;  %v4962_v55 = vpop.f32.mrf.mxu1  ;;  %6273 = vst [vmem:[#allocation25_spill] sm:$0xff] %v4993_v51  ;;  %v5064_v51 = vadd.f32 %v4900_v23, %v4795_v19  ;;  %v5124_v19 = vadd.f32 %v4824_v34, %v4900_v23 }
 0x122   : > { %6268 = vst [vmem:[#allocation20_spill] sm:$0xff] %v4948_v26  ;;  %6269 = vst [vmem:[#allocation21_spill] sm:$0xff] %v4950_v48  ;;  %v4968_v48 = vadd.f32 %v4900_v23, %v4747_v59  ;;  %v5013_v26 = vadd.f32 %v4900_v23, %v4768_v6  ;;  %v5028_v59 = vadd.f32 %v4776_v10, %v4900_v23 }
 0x123   : > { %v4974_v57 = vpop.f32.mrf.mxu0  ;;  %v4983_v56 = vpop.f32.mrf.mxu1  ;;  %6274 = vst [vmem:[#allocation26_spill] sm:$0xff] %v5005_v38  ;;  %v5032_v6 = vadd.f32 %v4900_v23, %v4780_v13  ;;  %6277 = vst [vmem:[#allocation29_spill] sm:$0xff] %v5044_v8  ;;  %v5068_v13 = vadd.f32 %v4797_v20, %v4900_v23  ;;  %v5085_v20 = vadd.f32 %v4900_v23, %v4804_v25 }
 0x124   : > { %6270 = vst [vmem:[#allocation22_spill] sm:$0xff] %v4968_v48  ;;  %v5052_v48 = vadd.f32 %v4788_v17, %v4900_v23  ;;  %6278 = vst [vmem:[#allocation30_spill] sm:$0xff] %v5064_v51  ;;  %v5109_v8 = vadd.f32 %v4900_v23, %v4816_v30  ;;  %v5128_v30 = vadd.f32 %v4900_v23, %v4828_v37 }
 0x125   : > { %v4995_v58 = vpop.f32.mrf.mxu0  ;;  %v5007_v1 = vpop.f32.mrf.mxu1  ;;  %6276 = vst [vmem:[#allocation28_spill] sm:$0xff] %v5032_v6  ;;  %6279 = vst [vmem:[#allocation31_spill] sm:$0xff] %v5068_v13  ;;  %v5097_v6 = vadd.f32 %v4809_v28, %v4900_v23  ;;  %v5136_v38 = vadd.f32 %v4900_v23, %v4831_v39  ;;  %v5148_v51 = vadd.f32 %v4836_v41, %v4900_v23 }
 0x126   : > { %6281 = vst [vmem:[#allocation33_spill] sm:$0xff] %v5085_v20  ;;  %6285 = vst [vmem:[#allocation37_spill] sm:$0xff] %v5109_v8  ;;  %v5152_v13 = vadd.f32 %v4900_v23, %v4840_v42  ;;  %v5164_v37 = vadd.f32 %v4845_v49, %v4900_v23  ;;  %v5181_v49 = vadd.f32 %v4900_v23, %v4852_v63  ;;  %v6321_v8 = vld [vmem:[#allocation10_spill] sm:$0xff] }
 0x127   : > { %v5019_v4 = vpop.f32.mrf.mxu0  ;;  %v5034_v3 = vpop.f32.mrf.mxu1  ;;  %6283 = vst [vmem:[#allocation35_spill] sm:$0xff] %v5097_v6  ;;  %6286 = vst [vmem:[#allocation38_spill] sm:$0xff] %v5113_v22  ;;  %v5197_v22 = vadd.f32 %v4860_v11, %v4900_v23  ;;  %v5216_v11 = vadd.f32 %v4869_v21, %v4900_v23  ;;  %v5236_v21 = vadd.f32 %v4879_v36, %v4900_v23 }
 0x128   : > { %6287 = vst [vmem:[#allocation39_spill] sm:$0xff] %v5120_v29  ;;  %6288 = vst [vmem:[#allocation40_spill] sm:$0xff] %v5124_v19  ;;  %v5340_v20 = vadd.f32 %v4983_v56, %v4900_v23  ;;  %v5344_v6 = vadd.f32 %v4900_v23, %v4995_v58 }
 0x129   : > { %v5046_v10 = vpop.f32.mrf.mxu0  ;;  %v5058_v15 = vpop.f32.mrf.mxu1  ;;  %6289 = vst [vmem:[#allocation41_spill] sm:$0xff] %v5128_v30  ;;  %6290 = vst [vmem:[#allocation42_spill] sm:$0xff] %v5136_v38  ;;  %v5193_v30 = vadd.f32 %v4857_v9, %v4900_v23 }
 0x12a   : > { %6291 = vst [vmem:[#allocation43_spill] sm:$0xff] %v5140_v32  ;;  %6292 = vst [vmem:[#allocation44_spill] sm:$0xff] %v5148_v51  ;;  %v5205_v32 = vadd.f32 %v4900_v23, %v4864_v12  ;;  %v5224_v12 = vadd.f32 %v4900_v23, %v6306_v2  ;;  %v6310_v51 = vld [vmem:[#allocation4_spill] sm:$0xff]  ;;  %v6316_v2 = vld [vmem:[#allocation7_spill] sm:$0xff] }
 0x12b   : > { %v5070_v17 = vpop.f32.mrf.mxu0  ;;  %v5079_v16 = vpop.f32.mrf.mxu1  ;;  %6293 = vst [vmem:[#allocation45_spill] sm:$0xff] %v5152_v13  ;;  %6294 = vst [vmem:[#allocation46_spill] sm:$0xff] %v5160_v54  ;;  %v5220_v54 = vadd.f32 %v6304_v43, %v4900_v23  ;;  %v5244_v38 = vadd.f32 %v6310_v51, %v4900_v23  ;;  %v5248_v13 = vadd.f32 %v4900_v23, %v6312_v14 }
 0x12c   : > { %6295 = vst [vmem:[#allocation47_spill] sm:$0xff] %v5164_v37  ;;  %6296 = vst [vmem:[#allocation48_spill] sm:$0xff] %v5173_v31  ;;  %v5260_v31 = vadd.f32 %v6316_v2, %v4900_v23  ;;  %v6320_v2 = vld [vmem:[#allocation9_spill] sm:$0xff] }
 0x12d   : > { %v5091_v18 = vpop.f32.mrf.mxu0  ;;  %v5103_v25 = vpop.f32.mrf.mxu1  ;;  %6297 = vst [vmem:[#allocation49_spill] sm:$0xff] %v5181_v49  ;;  %6298 = vst [vmem:[#allocation50_spill] sm:$0xff] %v5185_v7  ;;  %v6314_v49 = vld [vmem:[#allocation6_spill] sm:$0xff]  ;;  %v6318_v7 = vld [vmem:[#allocation8_spill] sm:$0xff]  ;;  %v5277_v29 = vadd.f32 %v4900_v23, %v6320_v2 }
 0x12e   : > { %6299 = vst [vmem:[#allocation51_spill] sm:$0xff] %v5193_v30  ;;  %6300 = vst [vmem:[#allocation52_spill] sm:$0xff] %v5197_v22  ;;  %v5256_v19 = vadd.f32 %v4900_v23, %v6314_v49  ;;  %v5281_v22 = vadd.f32 %v4900_v23, %v6321_v8  ;;  %v6327_v30 = vld [vmem:[#allocation15_spill] sm:$0xff]  ;;  %v6331_v8 = vld [vmem:[#allocation21_spill] sm:$0xff] }
 0x12f   : > { %v5115_v28 = vpop.f32.mrf.mxu0  ;;  %v5130_v27 = vpop.f32.mrf.mxu1  ;;  %6301 = vst [vmem:[#allocation53_spill] sm:$0xff] %v5205_v32  ;;  %6302 = vst [vmem:[#allocation54_spill] sm:$0xff] %v5209_v52  ;;  %v5269_v32 = vadd.f32 %v6318_v7, %v4900_v23  ;;  %v6324_v52 = vld [vmem:[#allocation12_spill] sm:$0xff]  ;;  %v5305_v7 = vadd.f32 %v4900_v23, %v6327_v30  ;;  %v5365_v30 = vadd.f32 %v5034_v3, %v4900_v23 }
 0x130   : > { %6303 = vst [vmem:[#allocation55_spill] sm:$0xff] %v5216_v11  ;;  %6305 = vst [vmem:[#allocation2_spill] sm:$0xff] %v5220_v54  ;;  %v5293_v49 = vadd.f32 %v6324_v52, %v4900_v23  ;;  %v6329_v52 = vld [vmem:[#allocation17_spill] sm:$0xff]  ;;  %v5401_v3 = vadd.f32 %v4900_v23, %v5103_v25 }
 0x131   : > { %v5142_v34 = vpop.f32.mrf.mxu0  ;;  %v5154_v39 = vpop.f32.mrf.mxu1  ;;  %6307 = vst [vmem:[#allocation3_spill] sm:$0xff] %v5224_v12  ;;  %6308 = vst [vmem:[#allocation56_spill] sm:$0xff] %v5232_v62  ;;  %v6323_v12 = vld [vmem:[#allocation11_spill] sm:$0xff]  ;;  %v6326_v62 = vld [vmem:[#allocation13_spill] sm:$0xff] }
 0x132   : > { %6309 = vst [vmem:[#allocation57_spill] sm:$0xff] %v5236_v21  ;;  %6311 = vst [vmem:[#allocation4_spill] sm:$0xff] %v5244_v38  ;;  %v5289_v54 = vadd.f32 %v6323_v12, %v4900_v23  ;;  %v5301_v11 = vadd.f32 %v4900_v23, %v6326_v62  ;;  %v5312_v38 = vadd.f32 %v6329_v52, %v4900_v23  ;;  %v6330_v21 = vld [vmem:[#allocation19_spill] sm:$0xff] }
 0x133   : > { %v5166_v41 = vpop.f32.mrf.mxu0  ;;  %v5175_v40 = vpop.f32.mrf.mxu1  ;;  %6313 = vst [vmem:[#allocation5_spill] sm:$0xff] %v5248_v13  ;;  %6315 = vst [vmem:[#allocation6_spill] sm:$0xff] %v5256_v19  ;;  %v5316_v19 = vadd.f32 %v6330_v21, %v4900_v23  ;;  %v5320_v62 = vadd.f32 %v4900_v23, %v6331_v8  ;;  %v5328_v13 = vadd.f32 %v4900_v23, %v4962_v55 }
 0x134   : > { %6317 = vst [vmem:[#allocation7_spill] sm:$0xff] %v5260_v31  ;;  %6319 = vst [vmem:[#allocation8_spill] sm:$0xff] %v5269_v32  ;;  %v5332_v52 = vadd.f32 %v4974_v57, %v4900_v23  ;;  %v5356_v8 = vadd.f32 %v5019_v4, %v4900_v23  ;;  %v5373_v4 = vadd.f32 %v4900_v23, %v5046_v10 }
 0x135   : > { %v5187_v42 = vpop.f32.mrf.mxu0  ;;  %v5199_v63 = vpop.f32.mrf.mxu1  ;;  %6322 = vst [vmem:[#allocation9_spill] sm:$0xff] %v5281_v22  ;;  %6325 = vst [vmem:[#allocation10_spill] sm:$0xff] %v5293_v49  ;;  %v5352_v22 = vadd.f32 %v4900_v23, %v5007_v1  ;;  %v5377_v32 = vadd.f32 %v4900_v23, %v5058_v15  ;;  %v5410_v1 = vadd.f32 %v5130_v27, %v4900_v23 }
 0x136   : > { %6328 = vst [vmem:[#allocation11_spill] sm:$0xff] %v5305_v7  ;;  %6332 = vst [vmem:[#allocation12_spill] sm:$0xff] %v5320_v62  ;;  %v5385_v62 = vadd.f32 %v5070_v17, %v4900_v23  ;;  %v5389_v7 = vadd.f32 %v5079_v16, %v4900_v23  ;;  %v5406_v16 = vadd.f32 %v5115_v28, %v4900_v23 }
 0x137   : > { %v5211_v9 = vpop.f32.mrf.mxu0  ;;  %v5226_v37 = vpop.f32.mrf.mxu1  ;;  %6333 = vst [vmem:[#allocation13_spill] sm:$0xff] %v5332_v52  ;;  %6334 = vst [vmem:[#allocation15_spill] sm:$0xff] %v5352_v22  ;;  %v5397_v52 = vadd.f32 %v4900_v23, %v5091_v18  ;;  %v5414_v15 = vadd.f32 %v4900_v23, %v5142_v34  ;;  %v5420_v49 = vadd.f32 %v4900_v23, %v5154_v39 }
 0x138   : > { %6335 = vst [vmem:[#allocation17_spill] sm:$0xff] %v5356_v8  ;;  %6336 = vst [vmem:[#allocation19_spill] sm:$0xff] %v5365_v30  ;;  %v5424_v28 = vadd.f32 %v5166_v41, %v4900_v23  ;;  %v5430_v34 = vadd.f32 %v5175_v40, %v4900_v23  ;;  %v5434_v25 = vadd.f32 %v4900_v23, %v5187_v42 }
 0x139   : > { %v5238_v43 = vpop.f32.mrf.mxu0  ;;  %v5250_v35 = vpop.f32.mrf.mxu1  ;;  %6337 = vst [vmem:[#allocation21_spill] sm:$0xff] %v5377_v32  ;;  %6338 = vst [vmem:[#allocation58_spill] sm:$0xff] %v5389_v7  ;;  %v5440_v41 = vadd.f32 %v4900_v23, %v5199_v63  ;;  %v5444_v22 = vadd.f32 %v5211_v9, %v4900_v23  ;;  %v5451_v39 = vadd.f32 %v5226_v37, %v4900_v23 }
 0x13a   : > { %6339 = vst [vmem:[#allocation59_spill] sm:$0xff] %v5401_v3  ;;  %6340 = vst [vmem:[#allocation60_spill] sm:$0xff] %v5414_v15  ;;  %v5457_v9 = vadd.f32 %v4900_v23, %v5238_v43  ;;  %v5461_v40 = vadd.f32 %v4900_v23, %v5250_v35 }
 0x13b   : > { %v5262_v51 = vpop.f32.mrf.mxu0  ;;  %v5271_v36 = vpop.f32.mrf.mxu1  ;;  %6341 = vst [vmem:[#allocation61_spill] sm:$0xff] %v5424_v28  ;;  %6342 = vst [vmem:[#allocation62_spill] sm:$0xff] %v5440_v41 }
 0x13c   : > { %6343 = vst [vmem:[#allocation63_spill] sm:$0xff] %v5444_v22  ;;  %6344 = vst [vmem:[#allocation64_spill] sm:$0xff] %v5451_v39  ;;  %v5467_v37 = vadd.f32 %v5262_v51, %v4900_v23  ;;  %v5471_v63 = vadd.f32 %v5271_v36, %v4900_v23 }
 0x13d   : > { %v5283_v14 = vpop.f32.mrf.mxu0  ;;  %v5295_v2 = vpop.f32.mrf.mxu1  ;;  %6345 = vst [vmem:[#allocation65_spill] sm:$0xff] %v5461_v40 }
 0x13e   : > { %6346 = vst [vmem:[#allocation66_spill] sm:$0xff] %v5467_v37  ;;  %6347 = vst [vmem:[#allocation67_spill] sm:$0xff] %v5471_v63  ;;  %v5477_v35 = vadd.f32 %v4900_v23, %v5283_v14  ;;  %v5481_v15 = vadd.f32 %v4900_v23, %v5295_v2 }
 0x13f   : > { %v5307_v12 = vpop.f32.mrf.mxu0  ;;  %v5322_v31 = vpop.f32.mrf.mxu1 }
 0x140   : > { %6348 = vst [vmem:[#allocation68_spill] sm:$0xff] %v5477_v35  ;;  %6349 = vst [vmem:[#allocation69_spill] sm:$0xff] %v5481_v15  ;;  %v5486_v36 = vadd.f32 %v5307_v12, %v4900_v23  ;;  %v5490_v43 = vadd.f32 %v5322_v31, %v4900_v23 }
 0x141   : > { %v5334_v21 = vpop.f32.mrf.mxu0  ;;  %v5346_v55 = vpop.f32.mrf.mxu1 }
 0x142   : > { %v5494_v28 = vadd.f32 %v4900_v23, %v5334_v21  ;;  %v5500_v51 = vadd.f32 %v4900_v23, %v5346_v55 }
 0x143   : > { %v5358_v56 = vpop.f32.mrf.mxu0  ;;  %v5367_v57 = vpop.f32.mrf.mxu1 }
 0x144   : > { %v5504_v12 = vadd.f32 %v5358_v56, %v4900_v23  ;;  %v5510_v41 = vadd.f32 %v5367_v57, %v4900_v23 }
 0x145   : > { %v5379_v58 = vpop.f32.mrf.mxu0  ;;  %v5391_v10 = vpop.f32.mrf.mxu1 }
 0x146   : > { %v5514_v22 = vadd.f32 %v4900_v23, %v5379_v58  ;;  %v5520_v56 = vadd.f32 %v4900_v23, %v5391_v10 }
 0x147   : > { %v4027_v17 = vpop.f32.mrf.mxu0  ;;  %v4155_v18 = vpop.f32.mrf.mxu1 }
 0x148   : > { %6350 = vst [vmem:[#allocation70_spill] sm:$0xff] %v5514_v22  ;;  %6351 = vst [vmem:[#allocation71_spill] sm:$0xff] %v5520_v56  ;;  %v5523_v39 = vadd.f32 %v4027_v17, %v4900_v23  ;;  %v5530_v55 = vadd.f32 %v4155_v18, %v4900_v23 }
 0x149   : > { %v1764_v30 = vpop.f32.mrf.mxu0  ;;  %v2276_v8 = vpop.f32.mrf.mxu1 }
 0x14a   : > { %6352 = vst [vmem:[#allocation72_spill] sm:$0xff] %v5523_v39  ;;  %6353 = vst [vmem:[#allocation73_spill] sm:$0xff] %v5530_v55  ;;  %v5535_v17 = vadd.f32 %v4900_v23, %v1764_v30  ;;  %v5538_v35 = vadd.f32 %v4900_v23, %v2276_v8 }
 0x14b   : > { %v4030_v27 = vpop.f32.mrf.mxu0  ;;  %v4158_v32 = vpop.f32.mrf.mxu1 }
 0x14c   : > { %6354 = vst [vmem:[#allocation74_spill] sm:$0xff] %v5538_v35  ;;  %v5543_v63 = vadd.f32 %v4030_v27, %v4900_v23  ;;  %v5546_v18 = vadd.f32 %v4158_v32, %v4900_v23 }
 0x14d   : > { %v1777_v7 = vpop.f32.mrf.mxu0  ;;  %v2289_v3 = vpop.f32.mrf.mxu1 }
 0x14e   : > { %6355 = vst [vmem:[#allocation75_spill] sm:$0xff] %v5543_v63  ;;  %6356 = vst [vmem:[#allocation76_spill] sm:$0xff] %v5546_v18  ;;  %v5557_v57 = vadd.f32 %v4900_v23, %v1777_v7  ;;  %v5560_v58 = vadd.f32 %v4900_v23, %v2289_v3 }
 0x14f   : > { %v4031_v42 = vpop.f32.mrf.mxu0  ;;  %v4159_v14 = vpop.f32.mrf.mxu1 }
 0x150   : > { %6358 = vst [vmem:[#allocation77_spill] sm:$0xff] %v5560_v58  ;;  %v5564_v10 = vadd.f32 %v4031_v42, %v4900_v23  ;;  %v5567_v22 = vadd.f32 %v4159_v14, %v4900_v23 }
 0x151   : > { %v1780_v31 = vpop.f32.mrf.mxu0  ;;  %v2292_v2 = vpop.f32.mrf.mxu1 }
 0x152   : > { %6359 = vst [vmem:[#allocation78_spill] sm:$0xff] %v5564_v10  ;;  %6360 = vst [vmem:[#allocation79_spill] sm:$0xff] %v5567_v22  ;;  %v5570_v30 = vadd.f32 %v4900_v23, %v1780_v31  ;;  %v5575_v39 = vadd.f32 %v4900_v23, %v2292_v2 }
 0x153   : > { %v4034_v21 = vpop.f32.mrf.mxu0  ;;  %v4162_v40 = vpop.f32.mrf.mxu1 }
 0x154   : > { %6361 = vst [vmem:[#allocation80_spill] sm:$0xff] %v5570_v30  ;;  %6362 = vst [vmem:[#allocation81_spill] sm:$0xff] %v5575_v39  ;;  %v5578_v32 = vadd.f32 %v4034_v21, %v4900_v23  ;;  %v5583_v31 = vadd.f32 %v4162_v40, %v4900_v23  ;;  %v6370_v21 = vld [vmem:[#allocation14_spill] sm:$0xff] }
 0x155   : > { %v1793_v37 = vpop.f32.mrf.mxu0  ;;  %v2305_v15 = vpop.f32.mrf.mxu1 }
 0x156   : > { %6363 = vst [vmem:[#allocation82_spill] sm:$0xff] %v5578_v32  ;;  %6364 = vst [vmem:[#allocation83_spill] sm:$0xff] %v5583_v31  ;;  %v5586_v56 = vadd.f32 %v4900_v23, %v1793_v37  ;;  %v5595_v3 = vadd.f32 %v4900_v23, %v2305_v15  ;;  %v6369_v37 = vmax.f32 %v4910_v61, 0.0  ;;  %v6372_v61 = vmax.f32 %v4920_v0, 0.0 }
 0x157   : > { %v4035_v27 = vpop.f32.mrf.mxu0  ;;  %v4163_v8 = vpop.f32.mrf.mxu1  ;;  %v6375_v0 = vmax.f32 %v4930_v44, 0.0 }
 0x158   : > { %6365 = vst [vmem:[#allocation84_spill] sm:$0xff] %v5586_v56  ;;  %6366 = vst [vmem:[#allocation85_spill] sm:$0xff] %v5595_v3  ;;  %v5598_v55 = vadd.f32 %v4035_v27, %v4900_v23  ;;  %v5608_v2 = vadd.f32 %v4163_v8, %v4900_v23  ;;  %v6371_v3 = vmax.f32 %v6370_v21, 0.0 }
 0x159   : > { %v1796_v42 = vpop.f32.mrf.mxu0  ;;  %v2308_v7 = vpop.f32.mrf.mxu1 }
 0x15a   : > { %6367 = vst [vmem:[#allocation86_spill] sm:$0xff] %v5598_v55  ;;  %6368 = vst [vmem:[#allocation87_spill] sm:$0xff] %v5608_v2  ;;  %v5620_v39 = vadd.f32 %v4900_v23, %v1796_v42  ;;  %v5631_v42 = vadd.f32 %v4900_v23, %v2308_v7 }
 0x15b   : > { %v4038_v14 = vpop.f32.mrf.mxu0  ;;  %v4166_v35 = vpop.f32.mrf.mxu1 }
 0x15c   : > { %v1818_v63 = vadd.f32 %v4038_v14, %v4900_v23  ;;  %v2330_v27 = vadd.f32 %v4166_v35, %v4900_v23 }
 0x15d   : > { %v1809_v58 = vpop.f32.mrf.mxu0  ;;  %v2321_v18 = vpop.f32.mrf.mxu1 }
 0x15e   : > { %v2642_v22 = vmax.f32 %v1818_v63, 0.0  ;;  %v1810_v14 = vadd.f32 %v4900_v23, %v1809_v58  ;;  %v2770_v8 = vmax.f32 %v2330_v27, 0.0  ;;  %v2322_v32 = vadd.f32 %v4900_v23, %v2321_v18  ;;  %v6373_v58 = vld [vmem:[#allocation16_spill] sm:$0xff] }
 0x15f   : > { %v4039_v35 = vpop.f32.mrf.mxu0  ;;  %v4167_v31 = vpop.f32.mrf.mxu1  ;;  %v6374_v2 = vmax.f32 %v6373_v58, 0.0 }
 0x160   : > { %v2834_v63 = vmax.f32 %v6369_v37, %v2642_v22  ;;  %v2640_v40 = vmax.f32 %v1810_v14, 0.0  ;;  %v1821_v56 = vadd.f32 %v4039_v35, %v4900_v23  ;;  %v2898_v15 = vmax.f32 %v6371_v3, %v2770_v8 }
 0x161   : > { %v2768_v27 = vmax.f32 %v2322_v32, 0.0  ;;  %v2333_v18 = vadd.f32 %v4167_v31, %v4900_v23  ;;  %v1812_v55 = vpop.f32.mrf.mxu0  ;;  %v2324_v35 = vpop.f32.mrf.mxu1  ;;  %v6376_v8 = vmax.f32 %v4934_v45, 0.0 }
 0x162   : > { %v2832_v22 = vmax.f32 %v6372_v61, %v2640_v40  ;;  %v2643_v37 = vmax.f32 %v1821_v56, 0.0  ;;  %v1813_v14 = vadd.f32 %v4900_v23, %v1812_v55  ;;  %v2962_v30 = vmax.f32 %v2834_v63, %v2898_v15 }
 0x163   : > { %v2896_v10 = vmax.f32 %v6374_v2, %v2768_v27  ;;  %v2771_v21 = vmax.f32 %v2333_v18, 0.0  ;;  %v2325_v32 = vadd.f32 %v4900_v23, %v2324_v35  ;;  %v4042_v3 = vpop.f32.mrf.mxu0  ;;  %v4170_v40 = vpop.f32.mrf.mxu1  ;;  %v6377_v18 = vld [vmem:[#allocation18_spill] sm:$0xff] }
 0x164   : > { %v2835_v55 = vmax.f32 %v6375_v0, %v2643_v37  ;;  %v2641_v56 = vmax.f32 %v1813_v14, 0.0  ;;  %v1834_v7 = vadd.f32 %v4042_v3, %v4900_v23  ;;  %v3776_v2 = vpack.c.bf16 %v2962_v30, %v2962_v30 }
 0x165   : > { %v2960_v15 = vmax.f32 %v2832_v22, %v2896_v10  ;;  %v2899_v63 = vmax.f32 %v6376_v8, %v2771_v21  ;;  %v2769_v58 = vmax.f32 %v2325_v32, 0.0  ;;  %v1825_v27 = vpop.f32.mrf.mxu0  ;;  %v6378_v61 = vmax.f32 %v6377_v18, 0.0  ;;  %v2337_v14 = vpop.f32.mrf.mxu1  ;;  %v6380_v32 = vld [vmem:[#allocation20_spill] sm:$0xff] }
 0x166   : > { %v2646_v31 = vmax.f32 %v1834_v7, 0.0  ;;  %v2346_v44 = vadd.f32 %v4170_v40, %v4900_v23  ;;  %v1826_v37 = vadd.f32 %v4900_v23, %v1825_v27  ;;  %3283 = vst.msk [vmem:[%s5643_s13 + $0x8] sm:$0xf] %vm3280_vm3, %v3776_v2  ;;  %v6379_v10 = vmax.f32 %v4944_v47, 0.0 }
 0x167   : > { %v2833_v35 = vmax.f32 %v6378_v61, %v2641_v56  ;;  %v3774_v3 = vpack.c.bf16 %v2960_v15, %v2960_v15  ;;  %v2963_v30 = vmax.f32 %v2835_v55, %v2899_v63  ;;  %v2338_v22 = vadd.f32 %v4900_v23, %v2337_v14  ;;  %v4043_v21 = vpop.f32.mrf.mxu0  ;;  %v4171_v27 = vpop.f32.mrf.mxu1 }
 0x168   : > { %v2897_v45 = vmax.f32 %v6379_v10, %v2769_v58  ;;  %v6381_v0 = vmax.f32 %v6380_v32, 0.0  ;;  %v2774_v7 = vmax.f32 %v2346_v44, 0.0  ;;  %v2644_v8 = vmax.f32 %v1826_v37, 0.0  ;;  %v6386_v32 = vld [vmem:[#allocation23_spill] sm:$0xff] }
 0x169   : > { %v1837_v40 = vadd.f32 %v4043_v21, %v4900_v23  ;;  %3281 = vst.msk [vmem:[%s5643_s13] sm:$0xf] %vm3280_vm3, %v3774_v3  ;;  %v3777_v2 = vpack.c.bf16 %v2963_v30, %v2963_v30  ;;  %v2772_v55 = vmax.f32 %v2338_v22, 0.0  ;;  %v2349_v47 = vadd.f32 %v4171_v27, %v4900_v23  ;;  %v1828_v63 = vpop.f32.mrf.mxu0  ;;  %v2340_v14 = vpop.f32.mrf.mxu1  ;;  %v6384_v30 = vld [vmem:[#allocation22_spill] sm:$0xff] }
 0x16a   : > { %v2838_v56 = vmax.f32 %v6381_v0, %v2646_v31  ;;  %v2961_v15 = vmax.f32 %v2833_v35, %v2897_v45  ;;  %v6382_v58 = vmax.f32 %v4956_v53, 0.0  ;;  %v6383_v61 = vmax.f32 %v4960_v46, 0.0 }
 0x16b   : > { %v2647_v44 = vmax.f32 %v1837_v40, 0.0  ;;  %v1829_v37 = vadd.f32 %v4900_v23, %v1828_v63  ;;  %3284 = vst.msk [vmem:[%s5643_s13 + $0xc] sm:$0xf] %vm3280_vm3, %v3777_v2  ;;  %v6385_v35 = vmax.f32 %v6384_v30, 0.0  ;;  %v2775_v45 = vmax.f32 %v2349_v47, 0.0  ;;  %v4046_v21 = vpop.f32.mrf.mxu0  ;;  %v4174_v40 = vpop.f32.mrf.mxu1  ;;  %v6388_v2 = vld [vmem:[#allocation24_spill] sm:$0xff] }
 0x16c   : > { %v2902_v18 = vmax.f32 %v6382_v58, %v2774_v7  ;;  %v2836_v31 = vmax.f32 %v6383_v61, %v2644_v8  ;;  %v3775_v3 = vpack.c.bf16 %v2961_v15, %v2961_v15  ;;  %v2341_v22 = vadd.f32 %v4900_v23, %v2340_v14 }
 0x16d   : > { %v2900_v10 = vmax.f32 %v6385_v35, %v2772_v55  ;;  %v6387_v0 = vmax.f32 %v6386_v32, 0.0  ;;  %v2645_v7 = vmax.f32 %v1829_v37, 0.0  ;;  %v1850_v8 = vadd.f32 %v4046_v21, %v4900_v23  ;;  %v1841_v58 = vpop.f32.mrf.mxu0  ;;  %v2353_v14 = vpop.f32.mrf.mxu1  ;;  %v6391_v35 = vld [vmem:[#allocation25_spill] sm:$0xff] }
 0x16e   : > { %v2966_v53 = vmax.f32 %v2838_v56, %v2902_v18  ;;  %3282 = vst.msk [vmem:[%s5643_s13 + $0x4] sm:$0xf] %vm3280_vm3, %v3775_v3  ;;  %v6389_v15 = vmax.f32 %v6388_v2, 0.0  ;;  %v2773_v55 = vmax.f32 %v2341_v22, 0.0  ;;  %v2362_v47 = vadd.f32 %v4174_v40, %v4900_v23  ;;  %v6394_v40 = vld [vmem:[#allocation26_spill] sm:$0xff] }
 0x16f   : > { %v2839_v46 = vmax.f32 %v6387_v0, %v2647_v44  ;;  %v2964_v27 = vmax.f32 %v2836_v31, %v2900_v10  ;;  %v6390_v56 = vmax.f32 %v4989_v60, 0.0  ;;  %v2650_v44 = vmax.f32 %v1850_v8, 0.0 }
 0x170   : > { %v2903_v63 = vmax.f32 %v6389_v15, %v2775_v45  ;;  %v3780_v61 = vpack.c.bf16 %v2966_v53, %v2966_v53  ;;  %v1842_v37 = vadd.f32 %v4900_v23, %v1841_v58  ;;  %v6392_v31 = vmax.f32 %v6391_v35, 0.0  ;;  %v4047_v45 = vpop.f32.mrf.mxu0 }
 0x171   : > { %v2837_v18 = vmax.f32 %v6390_v56, %v2645_v7  ;;  %v3778_v30 = vpack.c.bf16 %v2964_v27, %v2964_v27  ;;  %v2778_v21 = vmax.f32 %v2362_v47, 0.0  ;;  %v6393_v22 = vmax.f32 %v5001_v33, 0.0  ;;  %v4175_v7 = vpop.f32.mrf.mxu1 }
 0x172   : > { %v2967_v3 = vmax.f32 %v2839_v46, %v2903_v63  ;;  %v2901_v10 = vmax.f32 %v6392_v31, %v2773_v55  ;;  %3287 = vst.msk [vmem:[%s5643_s13 + $0x18] sm:$0xf] %vm3280_vm3, %v3780_v61  ;;  %v2648_v60 = vmax.f32 %v1842_v37, 0.0  ;;  %v2354_v32 = vadd.f32 %v4900_v23, %v2353_v14  ;;  %v1844_v63 = vpop.f32.mrf.mxu0 }
 0x173   : > { %v2842_v53 = vmax.f32 %v6393_v22, %v2650_v44  ;;  %v1853_v0 = vadd.f32 %v4047_v45, %v4900_v23  ;;  %3285 = vst.msk [vmem:[%s5643_s13 + $0x10] sm:$0xf] %vm3280_vm3, %v3778_v30  ;;  %v6395_v27 = vmax.f32 %v6394_v40, 0.0  ;;  %v2365_v15 = vadd.f32 %v4175_v7, %v4900_v23  ;;  %v2356_v56 = vpop.f32.mrf.mxu1  ;;  %v6401_v40 = vld [vmem:[#allocation28_spill] sm:$0xff] }
 0x174   : > { %v3781_v46 = vpack.c.bf16 %v2967_v3, %v2967_v3  ;;  %v2965_v8 = vmax.f32 %v2837_v18, %v2901_v10  ;;  %v6396_v33 = vmax.f32 %v5013_v26, 0.0  ;;  %v2776_v47 = vmax.f32 %v2354_v32, 0.0  ;;  %v4050_v30 = vpop.f32.mrf.mxu0  ;;  %v6397_v3 = vld [vmem:[#allocation27_spill] sm:$0xff] }
 0x175   : > { %v2906_v2 = vmax.f32 %v6395_v27, %v2778_v21  ;;  %v2651_v58 = vmax.f32 %v1853_v0, 0.0  ;;  %v1845_v61 = vadd.f32 %v4900_v23, %v1844_v63  ;;  %v2779_v18 = vmax.f32 %v2365_v15, 0.0  ;;  %v4178_v22 = vpop.f32.mrf.mxu1 }
 0x176   : > { %v2840_v55 = vmax.f32 %v6396_v33, %v2648_v60  ;;  %3288 = vst.msk [vmem:[%s5643_s13 + $0x1c] sm:$0xf] %vm3280_vm3, %v3781_v46  ;;  %v3779_v44 = vpack.c.bf16 %v2965_v8, %v2965_v8  ;;  %v2357_v14 = vadd.f32 %v4900_v23, %v2356_v56  ;;  %v6398_v35 = vmax.f32 %v6397_v3, 0.0  ;;  %v1857_v46 = vpop.f32.mrf.mxu0 }
 0x177   : > { %v2970_v37 = vmax.f32 %v2842_v53, %v2906_v2  ;;  %v6399_v26 = vmax.f32 %v5024_v5, 0.0  ;;  %v2649_v21 = vmax.f32 %v1845_v61, 0.0  ;;  %v1866_v45 = vadd.f32 %v4050_v30, %v4900_v23  ;;  %v2369_v63 = vpop.f32.mrf.mxu1 }
 0x178   : > { %v2904_v31 = vmax.f32 %v6398_v35, %v2776_v47  ;;  %3286 = vst.msk [vmem:[%s5643_s13 + $0x14] sm:$0xf] %vm3280_vm3, %v3779_v44  ;;  %v6400_v53 = vmax.f32 %v5028_v59, 0.0  ;;  %v2777_v0 = vmax.f32 %v2357_v14, 0.0  ;;  %v2378_v7 = vadd.f32 %v4178_v22, %v4900_v23  ;;  %v4051_v56 = vpop.f32.mrf.mxu0 }
 0x179   : > { %v2843_v10 = vmax.f32 %v6399_v26, %v2651_v58  ;;  %v3784_v60 = vpack.c.bf16 %v2970_v37, %v2970_v37  ;;  %v6402_v27 = vmax.f32 %v6401_v40, 0.0  ;;  %v2654_v2 = vmax.f32 %v1866_v45, 0.0  ;;  %v4179_v3 = vpop.f32.mrf.mxu1 }
 0x17a   : > { %v2907_v32 = vmax.f32 %v6400_v53, %v2779_v18  ;;  %v2968_v8 = vmax.f32 %v2840_v55, %v2904_v31  ;;  %v1858_v15 = vadd.f32 %v4900_v23, %v1857_v46  ;;  %v6403_v47 = vmax.f32 %v5040_v24, 0.0  ;;  %v6404_v55 = vld [vmem:[#allocation29_spill] sm:$0xff] }
 0x17b   : > { %v2841_v5 = vmax.f32 %v6402_v27, %v2649_v21  ;;  %3291 = vst.msk [vmem:[%s5643_s13 + $0x28] sm:$0xf] %vm3280_vm3, %v3784_v60  ;;  %v2782_v58 = vmax.f32 %v2378_v7, 0.0  ;;  %v2370_v61 = vadd.f32 %v4900_v23, %v2369_v63  ;;  %v6405_v37 = vmax.f32 %v6404_v55, 0.0  ;;  %v1860_v21 = vpop.f32.mrf.mxu0 }
 0x17c   : > { %v2971_v33 = vmax.f32 %v2843_v10, %v2907_v32  ;;  %v2905_v59 = vmax.f32 %v6403_v47, %v2777_v0  ;;  %v3782_v44 = vpack.c.bf16 %v2968_v8, %v2968_v8  ;;  %v2652_v14 = vmax.f32 %v1858_v15, 0.0  ;;  %v2372_v0 = vpop.f32.mrf.mxu1 }
 0x17d   : > { %v2846_v18 = vmax.f32 %v6405_v37, %v2654_v2  ;;  %v1869_v30 = vadd.f32 %v4051_v56, %v4900_v23  ;;  %v6406_v26 = vmax.f32 %v5052_v48, 0.0  ;;  %v2780_v24 = vmax.f32 %v2370_v61, 0.0  ;;  %v6408_v48 = vld [vmem:[#allocation30_spill] sm:$0xff]  ;;  %v6410_v2 = vld [vmem:[#allocation31_spill] sm:$0xff]  ;;  %v6412_v37 = vld [vmem:[#allocation32_spill] sm:$0xff] }
 0x17e   : > { %v3785_v35 = vpack.c.bf16 %v2971_v33, %v2971_v33  ;;  %v2969_v31 = vmax.f32 %v2841_v5, %v2905_v59  ;;  %3289 = vst.msk [vmem:[%s5643_s13 + $0x20] sm:$0xf] %vm3280_vm3, %v3782_v44  ;;  %v6407_v45 = vmax.f32 %v5056_v50, 0.0  ;;  %v2381_v53 = vadd.f32 %v4179_v3, %v4900_v23  ;;  %v4054_v5 = vpop.f32.mrf.mxu0  ;;  %v4182_v59 = vpop.f32.mrf.mxu1 }
 0x17f   : > { %v2910_v10 = vmax.f32 %v6406_v26, %v2782_v58  ;;  %v2655_v60 = vmax.f32 %v1869_v30, 0.0  ;;  %v1861_v32 = vadd.f32 %v4900_v23, %v1860_v21  ;;  %v6409_v8 = vmax.f32 %v6408_v48, 0.0  ;;  %v6414_v30 = vld [vmem:[#allocation33_spill] sm:$0xff]  ;;  %v6416_v21 = vld [vmem:[#allocation34_spill] sm:$0xff] }
 0x180   : > { %v2844_v22 = vmax.f32 %v6407_v45, %v2652_v14  ;;  %3292 = vst.msk [vmem:[%s5643_s13 + $0x2c] sm:$0xf] %vm3280_vm3, %v3785_v35  ;;  %v3783_v7 = vpack.c.bf16 %v2969_v31, %v2969_v31  ;;  %v2373_v27 = vadd.f32 %v4900_v23, %v2372_v0  ;;  %v6411_v50 = vmax.f32 %v6410_v2, 0.0  ;;  %v1873_v55 = vpop.f32.mrf.mxu0  ;;  %v6420_v2 = vld [vmem:[#allocation36_spill] sm:$0xff] }
 0x181   : > { %v2974_v46 = vmax.f32 %v2846_v18, %v2910_v10  ;;  %v2908_v40 = vmax.f32 %v6409_v8, %v2780_v24  ;;  %v2783_v63 = vmax.f32 %v2381_v53, 0.0  ;;  %v2653_v33 = vmax.f32 %v1861_v32, 0.0  ;;  %v2385_v10 = vpop.f32.mrf.mxu1 }
 0x182   : > { %v2847_v15 = vmax.f32 %v6411_v50, %v2655_v60  ;;  %v1882_v47 = vadd.f32 %v4054_v5, %v4900_v23  ;;  %3290 = vst.msk [vmem:[%s5643_s13 + $0x24] sm:$0xf] %vm3280_vm3, %v3783_v7  ;;  %v2781_v56 = vmax.f32 %v2373_v27, 0.0  ;;  %v2394_v44 = vadd.f32 %v4182_v59, %v4900_v23  ;;  %v4055_v32 = vpop.f32.mrf.mxu0  ;;  %v6418_v7 = vld [vmem:[#allocation35_spill] sm:$0xff] }
 0x183   : > { %v3788_v58 = vpack.c.bf16 %v2974_v46, %v2974_v46  ;;  %v2972_v61 = vmax.f32 %v2844_v22, %v2908_v40  ;;  %v6413_v18 = vmax.f32 %v6412_v37, 0.0  ;;  %v6415_v3 = vmax.f32 %v6414_v30, 0.0  ;;  %v4183_v27 = vpop.f32.mrf.mxu1  ;;  %v6424_v30 = vld [vmem:[#allocation38_spill] sm:$0xff] }
 0x184   : > { %v2658_v31 = vmax.f32 %v1882_v47, 0.0  ;;  %v1874_v26 = vadd.f32 %v4900_v23, %v1873_v55  ;;  %v6417_v45 = vmax.f32 %v6416_v21, 0.0  ;;  %v2786_v60 = vmax.f32 %v2394_v44, 0.0  ;;  %v5765_v47 = vld [vmem:[%s6162_s2] ss:$0 sm:$0xff]  ;;  %v1876_v59 = vpop.f32.mrf.mxu0 }
 0x185   : > { %v2911_v14 = vmax.f32 %v6413_v18, %v2783_v63  ;;  %v2845_v35 = vmax.f32 %v6415_v3, %v2653_v33  ;;  %3295 = vst.msk [vmem:[%s5643_s13 + $0x38] sm:$0xf] %vm3280_vm3, %v3788_v58  ;;  %v3786_v24 = vpack.c.bf16 %v2972_v61, %v2972_v61  ;;  %v2386_v53 = vadd.f32 %v4900_v23, %v2385_v10  ;;  %v6422_v61 = vld [vmem:[#allocation37_spill] sm:$0xff]  ;;  %v2388_v37 = vpop.f32.mrf.mxu1  ;;  %v6426_v10 = vld [vmem:[#allocation39_spill] sm:$0xff] }
 0x186   : > { %v2909_v22 = vmax.f32 %v6417_v45, %v2781_v56  ;;  %v6419_v46 = vmax.f32 %v6418_v7, 0.0  ;;  %v2656_v8 = vmax.f32 %v1874_v26, 0.0  ;;  %v1885_v40 = vadd.f32 %v4055_v32, %v4900_v23  ;;  %v4058_v26 = vpop.f32.mrf.mxu0  ;;  %v6428_v7 = vld [vmem:[#allocation40_spill] sm:$0xff] }
 0x187   : > { %v2975_v0 = vmax.f32 %v2847_v15, %v2911_v14  ;;  %3293 = vst.msk [vmem:[%s5643_s13 + $0x30] sm:$0xf] %vm3280_vm3, %v3786_v24  ;;  %v6421_v50 = vmax.f32 %v6420_v2, 0.0  ;;  %v2784_v33 = vmax.f32 %v2386_v53, 0.0  ;;  %v2397_v15 = vadd.f32 %v5765_v47, %v4183_v27  ;;  %v4186_v53 = vpop.f32.mrf.mxu1  ;;  %v6430_v27 = vld [vmem:[#allocation41_spill] sm:$0xff] }
 0x188   : > { %v2850_v48 = vmax.f32 %v6419_v46, %v2658_v31  ;;  %v2973_v5 = vmax.f32 %v2845_v35, %v2909_v22  ;;  %v6423_v23 = vmax.f32 %v6422_v61, 0.0  ;;  %v2659_v44 = vmax.f32 %v1885_v40, 0.0  ;;  %v1889_v40 = vpop.f32.mrf.mxu0 }
 0x189   : > { %v2914_v63 = vmax.f32 %v6421_v50, %v2786_v60  ;;  %v3789_v58 = vpack.c.bf16 %v2975_v0, %v2975_v0  ;;  %v1877_v55 = vadd.f32 %v5765_v47, %v1876_v59  ;;  %v6425_v3 = vmax.f32 %v6424_v30, 0.0 }
 0x18a   : > { %v2848_v56 = vmax.f32 %v6423_v23, %v2656_v8  ;;  %v3787_v18 = vpack.c.bf16 %v2973_v5, %v2973_v5  ;;  %v2787_v31 = vmax.f32 %v2397_v15, 0.0  ;;  %v6427_v24 = vmax.f32 %v6426_v10, 0.0  ;;  %v2401_v15 = vpop.f32.mrf.mxu1  ;;  %v6436_v10 = vld [vmem:[#allocation44_spill] sm:$0xff] }
 0x18b   : > { %v2978_v14 = vmax.f32 %v2850_v48, %v2914_v63  ;;  %v2912_v35 = vmax.f32 %v6425_v3, %v2784_v33  ;;  %3296 = vst.msk [vmem:[%s5643_s13 + $0x3c] sm:$0xf] %vm3280_vm3, %v3789_v58  ;;  %v2657_v45 = vmax.f32 %v1877_v55, 0.0  ;;  %v2389_v22 = vadd.f32 %v5765_v47, %v2388_v37 }
 0x18c   : > { %v2851_v21 = vmax.f32 %v6427_v24, %v2659_v44  ;;  %v1898_v60 = vadd.f32 %v5765_v47, %v4058_v26  ;;  %3294 = vst.msk [vmem:[%s5643_s13 + $0x34] sm:$0xf] %vm3280_vm3, %v3787_v18  ;;  %v6429_v46 = vmax.f32 %v6428_v7, 0.0  ;;  %v2410_v8 = vadd.f32 %v5765_v47, %v4186_v53  ;;  %v6432_v44 = vld [vmem:[#allocation42_spill] sm:$0xff]  ;;  %v6434_v18 = vld [vmem:[#allocation43_spill] sm:$0xff] }
 0x18d   : > { %v3792_v32 = vpack.c.bf16 %v2978_v14, %v2978_v14  ;;  %v2976_v0 = vmax.f32 %v2848_v56, %v2912_v35  ;;  %v6431_v5 = vmax.f32 %v6430_v27, 0.0  ;;  %v2785_v50 = vmax.f32 %v2389_v22, 0.0  ;;  %v4059_v56 = vpop.f32.mrf.mxu0  ;;  %v6440_v27 = vld [vmem:[#allocation46_spill] sm:$0xff] }
 0x18e   : > { %v2915_v48 = vmax.f32 %v6429_v46, %v2787_v31  ;;  %v2662_v63 = vmax.f32 %v1898_v60, 0.0  ;;  %v1890_v33 = vadd.f32 %v5765_v47, %v1889_v40  ;;  %v2790_v61 = vmax.f32 %v2410_v8, 0.0  ;;  %v4187_v31 = vpop.f32.mrf.mxu1 }
 0x18f   : > { %v2849_v2 = vmax.f32 %v6431_v5, %v2657_v45  ;;  %3299 = vst.msk [vmem:[%s5643_s13 + $0x48] sm:$0xf] %vm3280_vm3, %v3792_v32  ;;  %v3790_v59 = vpack.c.bf16 %v2976_v0, %v2976_v0  ;;  %v2402_v23 = vadd.f32 %v5765_v47, %v2401_v15  ;;  %v6433_v55 = vmax.f32 %v6432_v44, 0.0  ;;  %v1892_v60 = vpop.f32.mrf.mxu0  ;;  %v6438_v32 = vld [vmem:[#allocation45_spill] sm:$0xff] }
 0x190   : > { %v2979_v58 = vmax.f32 %v2851_v21, %v2915_v48  ;;  %v6435_v14 = vmax.f32 %v6434_v18, 0.0  ;;  %v2660_v3 = vmax.f32 %v1890_v33, 0.0  ;;  %v1901_v35 = vadd.f32 %v5765_v47, %v4059_v56  ;;  %v2404_v8 = vpop.f32.mrf.mxu1  ;;  %v6444_v18 = vld [vmem:[#allocation48_spill] sm:$0xff] }
 0x191   : > { %v2913_v37 = vmax.f32 %v6433_v55, %v2785_v50  ;;  %3297 = vst.msk [vmem:[%s5643_s13 + $0x40] sm:$0xf] %vm3280_vm3, %v3790_v59  ;;  %v6437_v24 = vmax.f32 %v6436_v10, 0.0  ;;  %v2788_v45 = vmax.f32 %v2402_v23, 0.0  ;;  %v2413_v22 = vadd.f32 %v5765_v47, %v4187_v31  ;;  %v4062_v15 = vpop.f32.mrf.mxu0  ;;  %v6446_v31 = vld [vmem:[#allocation49_spill] sm:$0xff] }
 0x192   : > { %v2854_v30 = vmax.f32 %v6435_v14, %v2662_v63  ;;  %v3793_v26 = vpack.c.bf16 %v2979_v58, %v2979_v58  ;;  %v6439_v0 = vmax.f32 %v6438_v32, 0.0  ;;  %v2663_v46 = vmax.f32 %v1901_v35, 0.0  ;;  %v4190_v44 = vpop.f32.mrf.mxu1  ;;  %v6448_v32 = vld [vmem:[#allocation50_spill] sm:$0xff] }
 0x193   : > { %v2918_v21 = vmax.f32 %v6437_v24, %v2790_v61  ;;  %v2977_v53 = vmax.f32 %v2849_v2, %v2913_v37  ;;  %v1893_v48 = vadd.f32 %v5765_v47, %v1892_v60  ;;  %v6441_v5 = vmax.f32 %v6440_v27, 0.0  ;;  %v6442_v2 = vld [vmem:[#allocation47_spill] sm:$0xff]  ;;  %v1905_v35 = vpop.f32.mrf.mxu0 }
 0x194   : > { %v2852_v7 = vmax.f32 %v6439_v0, %v2660_v3  ;;  %3300 = vst.msk [vmem:[%s5643_s13 + $0x4c] sm:$0xf] %vm3280_vm3, %v3793_v26  ;;  %v2791_v63 = vmax.f32 %v2413_v22, 0.0  ;;  %v2405_v33 = vadd.f32 %v5765_v47, %v2404_v8  ;;  %v6443_v58 = vmax.f32 %v6442_v2, 0.0  ;;  %v2417_v22 = vpop.f32.mrf.mxu1  ;;  %v6450_v8 = vld [vmem:[#allocation51_spill] sm:$0xff] }
 0x195   : > { %v2982_v40 = vmax.f32 %v2854_v30, %v2918_v21  ;;  %v2916_v50 = vmax.f32 %v6441_v5, %v2788_v45  ;;  %v3791_v59 = vpack.c.bf16 %v2977_v53, %v2977_v53  ;;  %v2661_v23 = vmax.f32 %v1893_v48, 0.0  ;;  %v4063_v48 = vpop.f32.mrf.mxu0 }
 0x196   : > { %v2855_v61 = vmax.f32 %v6443_v58, %v2663_v46  ;;  %v1914_v56 = vadd.f32 %v5765_v47, %v4062_v15  ;;  %v6445_v14 = vmax.f32 %v6444_v18, 0.0  ;;  %v2789_v3 = vmax.f32 %v2405_v33, 0.0  ;;  %v4191_v33 = vpop.f32.mrf.mxu1 }
 0x197   : > { %v3796_v55 = vpack.c.bf16 %v2982_v40, %v2982_v40  ;;  %v2980_v37 = vmax.f32 %v2852_v7, %v2916_v50  ;;  %3298 = vst.msk [vmem:[%s5643_s13 + $0x44] sm:$0xf] %vm3280_vm3, %v3791_v59  ;;  %v6447_v26 = vmax.f32 %v6446_v31, 0.0  ;;  %v2426_v21 = vadd.f32 %v5765_v47, %v4190_v44  ;;  %v6456_v31 = vld [vmem:[#allocation54_spill] sm:$0xff] }
 0x198   : > { %v2919_v30 = vmax.f32 %v6445_v14, %v2791_v63  ;;  %v2666_v24 = vmax.f32 %v1914_v56, 0.0  ;;  %v1906_v45 = vadd.f32 %v5765_v47, %v1905_v35  ;;  %v6449_v0 = vmax.f32 %v6448_v32, 0.0 }
 0x199   : > { %v2853_v10 = vmax.f32 %v6447_v26, %v2661_v23  ;;  %3303 = vst.msk [vmem:[%s5643_s13 + $0x58] sm:$0xf] %vm3280_vm3, %v3796_v55  ;;  %v3794_v60 = vpack.c.bf16 %v2980_v37, %v2980_v37  ;;  %v2418_v46 = vadd.f32 %v5765_v47, %v2417_v22  ;;  %v6451_v40 = vmax.f32 %v6450_v8, 0.0  ;;  %v6452_v23 = vld [vmem:[#allocation52_spill] sm:$0xff]  ;;  %v6454_v55 = vld [vmem:[#allocation53_spill] sm:$0xff]  ;;  %v6460_v8 = vld [vmem:[#allocation2_spill] sm:$0xff] }
 0x19a   : > { %v2983_v53 = vmax.f32 %v2855_v61, %v2919_v30  ;;  %v2917_v7 = vmax.f32 %v6449_v0, %v2789_v3  ;;  %v2794_v5 = vmax.f32 %v2426_v21, 0.0  ;;  %v2664_v50 = vmax.f32 %v1906_v45, 0.0  ;;  %v1908_v61 = vpop.f32.mrf.mxu0  ;;  %v2420_v3 = vpop.f32.mrf.mxu1 }
 0x19b   : > { %v2858_v27 = vmax.f32 %v6451_v40, %v2666_v24  ;;  %v1917_v63 = vadd.f32 %v5765_v47, %v4063_v48  ;;  %3301 = vst.msk [vmem:[%s5643_s13 + $0x50] sm:$0xf] %vm3280_vm3, %v3794_v60  ;;  %v2792_v2 = vmax.f32 %v2418_v46, 0.0  ;;  %v2429_v58 = vadd.f32 %v5765_v47, %v4191_v33  ;;  %v6458_v60 = vld [vmem:[#allocation55_spill] sm:$0xff] }
 0x19c   : > { %v3797_v15 = vpack.c.bf16 %v2983_v53, %v2983_v53  ;;  %v2981_v59 = vmax.f32 %v2853_v10, %v2917_v7  ;;  %v6453_v56 = vmax.f32 %v6452_v23, 0.0  ;;  %v6455_v37 = vmax.f32 %v6454_v55, 0.0  ;;  %v4066_v45 = vpop.f32.mrf.mxu0  ;;  %v4194_v46 = vpop.f32.mrf.mxu1  ;;  %v6464_v55 = vld [vmem:[#allocation56_spill] sm:$0xff] }
 0x19d   : > { %v2667_v14 = vmax.f32 %v1917_v63, 0.0  ;;  %v1909_v30 = vadd.f32 %v5765_v47, %v1908_v61  ;;  %v6457_v26 = vmax.f32 %v6456_v31, 0.0  ;;  %v2795_v24 = vmax.f32 %v2429_v58, 0.0 }
 0x19e   : > { %v2922_v44 = vmax.f32 %v6453_v56, %v2794_v5  ;;  %v2856_v18 = vmax.f32 %v6455_v37, %v2664_v50  ;;  %3304 = vst.msk [vmem:[%s5643_s13 + $0x5c] sm:$0xf] %vm3280_vm3, %v3797_v15  ;;  %v3795_v35 = vpack.c.bf16 %v2981_v59, %v2981_v59  ;;  %v2421_v21 = vadd.f32 %v5765_v47, %v2420_v3  ;;  %v1921_v33 = vpop.f32.mrf.mxu0  ;;  %v2433_v23 = vpop.f32.mrf.mxu1  ;;  %v6466_v3 = vld [vmem:[#allocation57_spill] sm:$0xff] }
 0x19f   : > { %v2920_v10 = vmax.f32 %v6457_v26, %v2792_v2  ;;  %v6459_v53 = vmax.f32 %v6458_v60, 0.0  ;;  %v2665_v0 = vmax.f32 %v1909_v30, 0.0  ;;  %v1930_v7 = vadd.f32 %v5765_v47, %v4066_v45  ;;  %v6468_v60 = vld [vmem:[#allocation4_spill] sm:$0xff] }
 0x1a0   : > { %v2986_v22 = vmax.f32 %v2858_v27, %v2922_v44  ;;  %3302 = vst.msk [vmem:[%s5643_s13 + $0x54] sm:$0xf] %vm3280_vm3, %v3795_v35  ;;  %v6461_v40 = vmax.f32 %v6460_v8, 0.0  ;;  %v2793_v50 = vmax.f32 %v2421_v21, 0.0  ;;  %v2442_v63 = vadd.f32 %v5765_v47, %v4194_v46  ;;  %v6462_v27 = vld [vmem:[#allocation3_spill] sm:$0xff]  ;;  %v4067_v30 = vpop.f32.mrf.mxu0  ;;  %v4195_v21 = vpop.f32.mrf.mxu1  ;;  %v6470_v46 = vld [vmem:[#allocation5_spill] sm:$0xff] }
 0x1a1   : > { %v2859_v32 = vmax.f32 %v6459_v53, %v2667_v14  ;;  %v2984_v48 = vmax.f32 %v2856_v18, %v2920_v10  ;;  %v6463_v59 = vmax.f32 %v6462_v27, 0.0  ;;  %v2670_v58 = vmax.f32 %v1930_v7, 0.0 }
 0x1a2   : > { %v2923_v5 = vmax.f32 %v6461_v40, %v2795_v24  ;;  %v3800_v15 = vpack.c.bf16 %v2986_v22, %v2986_v22  ;;  %v1922_v61 = vadd.f32 %v5765_v47, %v1921_v33  ;;  %v6465_v37 = vmax.f32 %v6464_v55, 0.0  ;;  %v1924_v7 = vpop.f32.mrf.mxu0 }
 0x1a3   : > { %v2857_v2 = vmax.f32 %v6463_v59, %v2665_v0  ;;  %v3798_v56 = vpack.c.bf16 %v2984_v48, %v2984_v48  ;;  %v2798_v14 = vmax.f32 %v2442_v63, 0.0  ;;  %v6467_v35 = vmax.f32 %v6466_v3, 0.0  ;;  %v2436_v63 = vpop.f32.mrf.mxu1  ;;  %v6476_v3 = vld [vmem:[#allocation8_spill] sm:$0xff] }
 0x1a4   : > { %v2987_v44 = vmax.f32 %v2859_v32, %v2923_v5  ;;  %v2921_v18 = vmax.f32 %v6465_v37, %v2793_v50  ;;  %3307 = vst.msk [vmem:[%s5643_s13 + $0x68] sm:$0xf] %vm3280_vm3, %v3800_v15  ;;  %v2668_v26 = vmax.f32 %v1922_v61, 0.0  ;;  %v2434_v10 = vadd.f32 %v5765_v47, %v2433_v23 }
 0x1a5   : > { %v2862_v31 = vmax.f32 %v6467_v35, %v2670_v58  ;;  %v1933_v24 = vadd.f32 %v5765_v47, %v4067_v30  ;;  %3305 = vst.msk [vmem:[%s5643_s13 + $0x60] sm:$0xf] %vm3280_vm3, %v3798_v56  ;;  %v6469_v53 = vmax.f32 %v6468_v60, 0.0  ;;  %v2445_v0 = vadd.f32 %v5765_v47, %v4195_v21  ;;  %v6472_v58 = vld [vmem:[#allocation6_spill] sm:$0xff]  ;;  %v6474_v56 = vld [vmem:[#allocation7_spill] sm:$0xff] }
 0x1a6   : > { %v3801_v45 = vpack.c.bf16 %v2987_v44, %v2987_v44  ;;  %v2985_v22 = vmax.f32 %v2857_v2, %v2921_v18  ;;  %v6471_v48 = vmax.f32 %v6470_v46, 0.0  ;;  %v2796_v40 = vmax.f32 %v2434_v10, 0.0  ;;  %v4070_v2 = vpop.f32.mrf.mxu0 }
 0x1a7   : > { %v2926_v32 = vmax.f32 %v6469_v53, %v2798_v14  ;;  %v2671_v5 = vmax.f32 %v1933_v24, 0.0  ;;  %v1925_v50 = vadd.f32 %v5765_v47, %v1924_v7  ;;  %v2799_v27 = vmax.f32 %v2445_v0, 0.0  ;;  %v4198_v14 = vpop.f32.mrf.mxu1  ;;  %v6479_v7 = vld [vmem:[#allocation9_spill] sm:$0xff] }
 0x1a8   : > { %v2860_v8 = vmax.f32 %v6471_v48, %v2668_v26  ;;  %3308 = vst.msk [vmem:[%s5643_s13 + $0x6c] sm:$0xf] %vm3280_vm3, %v3801_v45  ;;  %v3799_v33 = vpack.c.bf16 %v2985_v22, %v2985_v22  ;;  %v2437_v59 = vadd.f32 %v5765_v47, %v2436_v63  ;;  %v6473_v61 = vmax.f32 %v6472_v58, 0.0  ;;  %v1937_v24 = vpop.f32.mrf.mxu0  ;;  %v6482_v58 = vld [vmem:[#allocation10_spill] sm:$0xff] }
 0x1a9   : > { %v2990_v15 = vmax.f32 %v2862_v31, %v2926_v32  ;;  %v6475_v44 = vmax.f32 %v6474_v56, 0.0  ;;  %v2669_v37 = vmax.f32 %v1925_v50, 0.0  ;;  %v1946_v18 = vadd.f32 %v5765_v47, %v4070_v2  ;;  %v2449_v32 = vpop.f32.mrf.mxu1 }
 0x1aa   : > { %v2924_v23 = vmax.f32 %v6473_v61, %v2796_v40  ;;  %3306 = vst.msk [vmem:[%s5643_s13 + $0x64] sm:$0xf] %vm3280_vm3, %v3799_v33  ;;  %v6477_v35 = vmax.f32 %v6476_v3, 0.0  ;;  %v2797_v26 = vmax.f32 %v2437_v59, 0.0  ;;  %v2458_v10 = vadd.f32 %v5765_v47, %v4198_v14  ;;  %v4071_v50 = vpop.f32.mrf.mxu0 }
 0x1ab   : > { %v2863_v55 = vmax.f32 %v6475_v44, %v2671_v5  ;;  %v3804_v30 = vpack.c.bf16 %v2990_v15, %v2990_v15  ;;  %v6478_v45 = vmax.f32 %v5277_v29, 0.0  ;;  %v2674_v60 = vmax.f32 %v1946_v18, 0.0 }
 0x1ac   : > { %v2927_v31 = vmax.f32 %v6477_v35, %v2799_v27  ;;  %v2988_v21 = vmax.f32 %v2860_v8, %v2924_v23  ;;  %v1938_v53 = vadd.f32 %v5765_v47, %v1937_v24  ;;  %v6480_v46 = vmax.f32 %v6479_v7, 0.0  ;;  %v4199_v27 = vpop.f32.mrf.mxu1  ;;  %v1940_v44 = vpop.f32.mrf.mxu0 }
 0x1ad   : > { %v2861_v22 = vmax.f32 %v6478_v45, %v2669_v37  ;;  %3311 = vst.msk [vmem:[%s5643_s13 + $0x78] sm:$0xf] %vm3280_vm3, %v3804_v30  ;;  %v2802_v40 = vmax.f32 %v2458_v10, 0.0  ;;  %v2450_v5 = vadd.f32 %v5765_v47, %v2449_v32  ;;  %v6481_v8 = vmax.f32 %v5289_v54, 0.0 }
 0x1ae   : > { %v2991_v0 = vmax.f32 %v2863_v55, %v2927_v31  ;;  %v2925_v48 = vmax.f32 %v6480_v46, %v2797_v26  ;;  %v3802_v63 = vpack.c.bf16 %v2988_v21, %v2988_v21  ;;  %v2672_v33 = vmax.f32 %v1938_v53, 0.0  ;;  %v2452_v30 = vpop.f32.mrf.mxu1  ;;  %v6485_v31 = vld [vmem:[#allocation11_spill] sm:$0xff]  ;;  %v4074_v21 = vpop.f32.mrf.mxu0 }
 0x1af   : > { %v2866_v29 = vmax.f32 %v6481_v8, %v2674_v60  ;;  %v1949_v15 = vadd.f32 %v5765_v47, %v4071_v50  ;;  %v6483_v61 = vmax.f32 %v6482_v58, 0.0  ;;  %v2800_v56 = vmax.f32 %v2450_v5, 0.0 }
 0x1b0   : > { %v3805_v59 = vpack.c.bf16 %v2991_v0, %v2991_v0  ;;  %v2989_v2 = vmax.f32 %v2861_v22, %v2925_v48  ;;  %3309 = vst.msk [vmem:[%s5643_s13 + $0x70] sm:$0xf] %vm3280_vm3, %v3802_v63  ;;  %v6484_v55 = vmax.f32 %v5301_v11, 0.0  ;;  %v2461_v18 = vadd.f32 %v5765_v47, %v4199_v27  ;;  %v4202_v32 = vpop.f32.mrf.mxu1  ;;  %v6489_v63 = vld [vmem:[#allocation12_spill] sm:$0xff] }
 0x1b1   : > { %v2930_v23 = vmax.f32 %v6483_v61, %v2802_v40  ;;  %v2675_v54 = vmax.f32 %v1949_v15, 0.0  ;;  %v1941_v14 = vadd.f32 %v5765_v47, %v1940_v44  ;;  %v6486_v26 = vmax.f32 %v6485_v31, 0.0  ;;  %v1953_v40 = vpop.f32.mrf.mxu0 }
 0x1b2   : > { %v2864_v37 = vmax.f32 %v6484_v55, %v2672_v33  ;;  %3312 = vst.msk [vmem:[%s5643_s13 + $0x7c] sm:$0xf] %vm3280_vm3, %v3805_v59  ;;  %v3803_v3 = vpack.c.bf16 %v2989_v2, %v2989_v2  ;;  %v2453_v24 = vadd.f32 %v5765_v47, %v2452_v30  ;;  %v6487_v11 = vmax.f32 %v5312_v38, 0.0  ;;  %v2465_v15 = vpop.f32.mrf.mxu1 }
 0x1b3   : > { %v2994_v35 = vmax.f32 %v2866_v29, %v2930_v23  ;;  %v2928_v10 = vmax.f32 %v6486_v26, %v2800_v56  ;;  %v2803_v22 = vmax.f32 %v2461_v18, 0.0  ;;  %v2673_v60 = vmax.f32 %v1941_v14, 0.0  ;;  %v4075_v23 = vpop.f32.mrf.mxu0  ;;  %v6492_v56 = vld [vmem:[#allocation13_spill] sm:$0xff] }
 0x1b4   : > { %v2867_v45 = vmax.f32 %v6487_v11, %v2675_v54  ;;  %v1962_v53 = vadd.f32 %v5765_v47, %v4074_v21  ;;  %3310 = vst.msk [vmem:[%s5643_s13 + $0x74] sm:$0xf] %vm3280_vm3, %v3803_v3  ;;  %v2801_v46 = vmax.f32 %v2453_v24, 0.0  ;;  %v2474_v48 = vadd.f32 %v5765_v47, %v4202_v32  ;;  %v4203_v18 = vpop.f32.mrf.mxu1 }
 0x1b5   : > { %v3808_v0 = vpack.c.bf16 %v2994_v35, %v2994_v35  ;;  %v2992_v7 = vmax.f32 %v2864_v37, %v2928_v10  ;;  %v6488_v5 = vmax.f32 %v5316_v19, 0.0  ;;  %v6490_v38 = vmax.f32 %v6489_v63, 0.0  ;;  %v1956_v31 = vpop.f32.mrf.mxu0 }
 0x1b6   : > { %v2678_v29 = vmax.f32 %v1962_v53, 0.0  ;;  %v1954_v33 = vadd.f32 %v5765_v47, %v1953_v40  ;;  %v6491_v59 = vmax.f32 %v5328_v13, 0.0  ;;  %v2806_v58 = vmax.f32 %v2474_v48, 0.0  ;;  %v6496_v53 = vld [vmem:[#allocation15_spill] sm:$0xff] }
 0x1b7   : > { %v2931_v50 = vmax.f32 %v6488_v5, %v2803_v22  ;;  %v2865_v8 = vmax.f32 %v6490_v38, %v2673_v60  ;;  %3315 = vst.msk [vmem:[%s5643_s13 + $0x88] sm:$0xf] %vm3280_vm3, %v3808_v0  ;;  %v3806_v27 = vpack.c.bf16 %v2992_v7, %v2992_v7  ;;  %v2466_v61 = vadd.f32 %v5765_v47, %v2465_v15  ;;  %v4078_v7 = vpop.f32.mrf.mxu0 }
 0x1b8   : > { %v2929_v2 = vmax.f32 %v6491_v59, %v2801_v46  ;;  %v6493_v44 = vmax.f32 %v6492_v56, 0.0  ;;  %v2676_v37 = vmax.f32 %v1954_v33, 0.0  ;;  %v1965_v54 = vadd.f32 %v5765_v47, %v4075_v23  ;;  %v6498_v46 = vld [vmem:[#allocation17_spill] sm:$0xff] }
 0x1b9   : > { %v2995_v19 = vmax.f32 %v2867_v45, %v2931_v50  ;;  %3313 = vst.msk [vmem:[%s5643_s13 + $0x80] sm:$0xf] %vm3280_vm3, %v3806_v27  ;;  %v6494_v30 = vmax.f32 %v5340_v20, 0.0  ;;  %v2804_v3 = vmax.f32 %v2466_v61, 0.0  ;;  %v2477_v35 = vadd.f32 %v5765_v47, %v4203_v18  ;;  %v2468_v45 = vpop.f32.mrf.mxu1  ;;  %v1969_v59 = vpop.f32.mrf.mxu0 }
 0x1ba   : > { %v2870_v55 = vmax.f32 %v6493_v44, %v2678_v29  ;;  %v2993_v14 = vmax.f32 %v2865_v8, %v2929_v2  ;;  %v6495_v10 = vmax.f32 %v5344_v6, 0.0  ;;  %v2679_v21 = vmax.f32 %v1965_v54, 0.0  ;;  %v6500_v29 = vld [vmem:[#allocation19_spill] sm:$0xff] }
 0x1bb   : > { %v2934_v13 = vmax.f32 %v6494_v30, %v2806_v58  ;;  %v3809_v26 = vpack.c.bf16 %v2995_v19, %v2995_v19  ;;  %v1957_v11 = vadd.f32 %v5765_v47, %v1956_v31  ;;  %v6497_v32 = vmax.f32 %v6496_v53, 0.0  ;;  %v4206_v63 = vpop.f32.mrf.mxu1  ;;  %v4079_v18 = vpop.f32.mrf.mxu0 }
 0x1bc   : > { %v2868_v24 = vmax.f32 %v6495_v10, %v2676_v37  ;;  %v3807_v22 = vpack.c.bf16 %v2993_v14, %v2993_v14  ;;  %v2807_v20 = vmax.f32 %v2477_v35, 0.0  ;;  %v6499_v48 = vmax.f32 %v6498_v46, 0.0  ;;  %v6503_v14 = vld [vmem:[#allocation21_spill] sm:$0xff] }
 0x1bd   : > { %v2998_v60 = vmax.f32 %v2870_v55, %v2934_v13  ;;  %v2932_v0 = vmax.f32 %v6497_v32, %v2804_v3  ;;  %3316 = vst.msk [vmem:[%s5643_s13 + $0x8c] sm:$0xf] %vm3280_vm3, %v3809_v26  ;;  %v2677_v6 = vmax.f32 %v1957_v11, 0.0  ;;  %v2469_v5 = vadd.f32 %v5765_v47, %v2468_v45  ;;  %v2481_v56 = vpop.f32.mrf.mxu1 }
 0x1be   : > { %v2871_v40 = vmax.f32 %v6499_v48, %v2679_v21  ;;  %v1978_v50 = vadd.f32 %v5765_v47, %v4078_v7  ;;  %3314 = vst.msk [vmem:[%s5643_s13 + $0x84] sm:$0xf] %vm3280_vm3, %v3807_v22  ;;  %v6501_v33 = vmax.f32 %v6500_v29, 0.0  ;;  %v2490_v27 = vadd.f32 %v5765_v47, %v4206_v63  ;;  %v6509_v48 = vld [vmem:[#allocation59_spill] sm:$0xff] }
 0x1bf   : > { %v3812_v38 = vpack.c.bf16 %v2998_v60, %v2998_v60  ;;  %v2996_v8 = vmax.f32 %v2868_v24, %v2932_v0  ;;  %v6502_v2 = vmax.f32 %v5373_v4, 0.0  ;;  %v2805_v61 = vmax.f32 %v2469_v5, 0.0  ;;  %v4207_v26 = vpop.f32.mrf.mxu1  ;;  %v6506_v24 = vld [vmem:[#allocation58_spill] sm:$0xff]  ;;  %v1972_v60 = vpop.f32.mrf.mxu0 }
 0x1c0   : > { %v2935_v15 = vmax.f32 %v6501_v33, %v2807_v20  ;;  %v2682_v23 = vmax.f32 %v1978_v50, 0.0  ;;  %v1970_v19 = vadd.f32 %v5765_v47, %v1969_v59  ;;  %v2810_v37 = vmax.f32 %v2490_v27, 0.0 }
 0x1c1   : > { %v2869_v58 = vmax.f32 %v6502_v2, %v2677_v6  ;;  %3319 = vst.msk [vmem:[%s5643_s13 + $0x98] sm:$0xf] %vm3280_vm3, %v3812_v38  ;;  %v3810_v44 = vpack.c.bf16 %v2996_v8, %v2996_v8  ;;  %v2482_v54 = vadd.f32 %v5765_v47, %v2481_v56  ;;  %v6504_v30 = vmax.f32 %v6503_v14, 0.0  ;;  %v2484_v7 = vpop.f32.mrf.mxu1  ;;  %v4082_v63 = vpop.f32.mrf.mxu0 }
 0x1c2   : > { %v2999_v55 = vmax.f32 %v2871_v40, %v2935_v15  ;;  %v6505_v4 = vmax.f32 %v5385_v62, 0.0  ;;  %v2680_v35 = vmax.f32 %v1970_v19, 0.0  ;;  %v1981_v31 = vadd.f32 %v5765_v47, %v4079_v18  ;;  %v6513_v19 = vld [vmem:[#allocation60_spill] sm:$0xff] }
 0x1c3   : > { %v2933_v13 = vmax.f32 %v6504_v30, %v2805_v61  ;;  %3317 = vst.msk [vmem:[%s5643_s13 + $0x90] sm:$0xf] %vm3280_vm3, %v3810_v44  ;;  %v6507_v21 = vmax.f32 %v6506_v24, 0.0  ;;  %v2808_v45 = vmax.f32 %v2482_v54, 0.0  ;;  %v2493_v22 = vadd.f32 %v5765_v47, %v4207_v26  ;;  %v4210_v15 = vpop.f32.mrf.mxu1 }
 0x1c4   : > { %v2874_v3 = vmax.f32 %v6505_v4, %v2682_v23  ;;  %v3813_v10 = vpack.c.bf16 %v2999_v55, %v2999_v55  ;;  %v6508_v32 = vmax.f32 %v5397_v52, 0.0  ;;  %v2683_v0 = vmax.f32 %v1981_v31, 0.0  ;;  %v1985_v23 = vpop.f32.mrf.mxu0 }
 0x1c5   : > { %v2938_v11 = vmax.f32 %v6507_v21, %v2810_v37  ;;  %v2997_v53 = vmax.f32 %v2869_v58, %v2933_v13  ;;  %v1973_v20 = vadd.f32 %v5765_v47, %v1972_v60  ;;  %v6510_v40 = vmax.f32 %v6509_v48, 0.0  ;;  %v2497_v54 = vpop.f32.mrf.mxu1 }
 0x1c6   : > { %v2872_v62 = vmax.f32 %v6508_v32, %v2680_v35  ;;  %3320 = vst.msk [vmem:[%s5643_s13 + $0x9c] sm:$0xf] %vm3280_vm3, %v3813_v10  ;;  %v2811_v5 = vmax.f32 %v2493_v22, 0.0  ;;  %v2485_v50 = vadd.f32 %v5765_v47, %v2484_v7  ;;  %v6511_v8 = vmax.f32 %v5406_v16, 0.0  ;;  %v4083_v4 = vpop.f32.mrf.mxu0 }
 0x1c7   : > { %v3002_v46 = vmax.f32 %v2874_v3, %v2938_v11  ;;  %v2936_v6 = vmax.f32 %v6510_v40, %v2808_v45  ;;  %v3811_v38 = vpack.c.bf16 %v2997_v53, %v2997_v53  ;;  %v2681_v29 = vmax.f32 %v1973_v20, 0.0  ;;  %v6516_v3 = vld [vmem:[#allocation61_spill] sm:$0xff]  ;;  %v4211_v21 = vpop.f32.mrf.mxu1  ;;  %v6520_v40 = vld [vmem:[#allocation62_spill] sm:$0xff] }
 0x1c8   : > { %v2875_v52 = vmax.f32 %v6511_v8, %v2683_v0  ;;  %v1994_v33 = vadd.f32 %v5765_v47, %v4082_v63  ;;  %v6512_v2 = vmax.f32 %v5410_v1, 0.0  ;;  %v2809_v61 = vmax.f32 %v2485_v50, 0.0  ;;  %v1988_v60 = vpop.f32.mrf.mxu0  ;;  %v6522_v8 = vld [vmem:[#allocation63_spill] sm:$0xff] }
 0x1c9   : > { %v3816_v27 = vpack.c.bf16 %v3002_v46, %v3002_v46  ;;  %v3000_v59 = vmax.f32 %v2872_v62, %v2936_v6  ;;  %3318 = vst.msk [vmem:[%s5643_s13 + $0x94] sm:$0xf] %vm3280_vm3, %v3811_v38  ;;  %v6514_v56 = vmax.f32 %v6513_v19, 0.0  ;;  %v2506_v55 = vadd.f32 %v5765_v47, %v4210_v15  ;;  %v2500_v46 = vpop.f32.mrf.mxu1 }
 0x1ca   : > { %v2939_v58 = vmax.f32 %v6512_v2, %v2811_v5  ;;  %v2686_v16 = vmax.f32 %v1994_v33, 0.0  ;;  %v1986_v37 = vadd.f32 %v5765_v47, %v1985_v23  ;;  %v6515_v1 = vmax.f32 %v5420_v49, 0.0  ;;  %v4086_v38 = vpop.f32.mrf.mxu0 }
 0x1cb   : > { %v2873_v44 = vmax.f32 %v6514_v56, %v2681_v29  ;;  %3323 = vst.msk [vmem:[%s5643_s13 + $0xa8] sm:$0xf] %vm3280_vm3, %v3816_v27  ;;  %v3814_v18 = vpack.c.bf16 %v3000_v59, %v3000_v59  ;;  %v2498_v13 = vadd.f32 %v5765_v47, %v2497_v54  ;;  %v6517_v35 = vmax.f32 %v6516_v3, 0.0  ;;  %v4214_v15 = vpop.f32.mrf.mxu1  ;;  %v6524_v59 = vld [vmem:[#allocation64_spill] sm:$0xff] }
 0x1cc   : > { %v3003_v14 = vmax.f32 %v2875_v52, %v2939_v58  ;;  %v2937_v30 = vmax.f32 %v6515_v1, %v2809_v61  ;;  %v2814_v26 = vmax.f32 %v2506_v55, 0.0  ;;  %v2684_v10 = vmax.f32 %v1986_v37, 0.0  ;;  %v2001_v19 = vpop.f32.mrf.mxu0  ;;  %v6527_v1 = vld [vmem:[#allocation65_spill] sm:$0xff] }
 0x1cd   : > { %v2878_v31 = vmax.f32 %v6517_v35, %v2686_v16  ;;  %v1997_v24 = vadd.f32 %v5765_v47, %v4083_v4  ;;  %3321 = vst.msk [vmem:[%s5643_s13 + $0xa0] sm:$0xf] %vm3280_vm3, %v3814_v18  ;;  %v2812_v22 = vmax.f32 %v2498_v13, 0.0  ;;  %v2509_v49 = vadd.f32 %v5765_v47, %v4211_v21  ;;  %v2513_v54 = vpop.f32.mrf.mxu1  ;;  %v6529_v35 = vld [vmem:[#allocation66_spill] sm:$0xff] }
 0x1ce   : > { %v3817_v11 = vpack.c.bf16 %v3003_v14, %v3003_v14  ;;  %v3001_v45 = vmax.f32 %v2873_v44, %v2937_v30  ;;  %v6518_v53 = vmax.f32 %v5430_v34, 0.0  ;;  %v6519_v62 = vmax.f32 %v5434_v25, 0.0  ;;  %v4087_v3 = vpop.f32.mrf.mxu0 }
 0x1cf   : > { %v2687_v20 = vmax.f32 %v1997_v24, 0.0  ;;  %v1989_v7 = vadd.f32 %v5765_v47, %v1988_v60  ;;  %v6521_v6 = vmax.f32 %v6520_v40, 0.0  ;;  %v2815_v50 = vmax.f32 %v2509_v49, 0.0  ;;  %v4215_v21 = vpop.f32.mrf.mxu1 }
 0x1d0   : > { %v2942_v32 = vmax.f32 %v6518_v53, %v2814_v26  ;;  %v2876_v0 = vmax.f32 %v6519_v62, %v2684_v10  ;;  %3324 = vst.msk [vmem:[%s5643_s13 + $0xac] sm:$0xf] %vm3280_vm3, %v3817_v11  ;;  %v3815_v48 = vpack.c.bf16 %v3001_v45, %v3001_v45  ;;  %v2501_v63 = vadd.f32 %v5765_v47, %v2500_v46  ;;  %v6533_v62 = vld [vmem:[#allocation68_spill] sm:$0xff] }
 0x1d1   : > { %v2940_v5 = vmax.f32 %v6521_v6, %v2812_v22  ;;  %v6523_v52 = vmax.f32 %v6522_v8, 0.0  ;;  %v2685_v29 = vmax.f32 %v1989_v7, 0.0  ;;  %v2010_v33 = vadd.f32 %v5765_v47, %v4086_v38  ;;  %v6531_v22 = vld [vmem:[#allocation67_spill] sm:$0xff]  ;;  %v2516_v40 = vpop.f32.mrf.mxu1 }
 0x1d2   : > { %v3006_v34 = vmax.f32 %v2878_v31, %v2942_v32  ;;  %3322 = vst.msk [vmem:[%s5643_s13 + $0xa4] sm:$0xf] %vm3280_vm3, %v3815_v48  ;;  %v6525_v2 = vmax.f32 %v6524_v59, 0.0  ;;  %v2813_v61 = vmax.f32 %v2501_v63, 0.0  ;;  %v2522_v23 = vadd.f32 %v5765_v47, %v4214_v15  ;;  %v2004_v32 = vpop.f32.mrf.mxu0 }
 0x1d3   : > { %v2879_v25 = vmax.f32 %v6523_v52, %v2687_v20  ;;  %v3004_v27 = vmax.f32 %v2876_v0, %v2940_v5  ;;  %v6526_v44 = vmax.f32 %v5457_v9, 0.0  ;;  %v2690_v55 = vmax.f32 %v2010_v33, 0.0 }
 0x1d4   : > { %v2943_v58 = vmax.f32 %v6525_v2, %v2815_v50  ;;  %v3820_v56 = vpack.c.bf16 %v3006_v34, %v3006_v34  ;;  %v2002_v37 = vadd.f32 %v5765_v47, %v2001_v19  ;;  %v6528_v30 = vmax.f32 %v6527_v1, 0.0  ;;  %v4090_v38 = vpop.f32.mrf.mxu0  ;;  %v6535_v34 = vld [vmem:[#allocation69_spill] sm:$0xff] }
 0x1d5   : > { %v2877_v16 = vmax.f32 %v6526_v44, %v2685_v29  ;;  %v3818_v18 = vpack.c.bf16 %v3004_v27, %v3004_v27  ;;  %v2818_v4 = vmax.f32 %v2522_v23, 0.0  ;;  %v6530_v31 = vmax.f32 %v6529_v35, 0.0  ;;  %v4218_v27 = vpop.f32.mrf.mxu1 }
 0x1d6   : > { %v3007_v14 = vmax.f32 %v2879_v25, %v2943_v58  ;;  %v2941_v13 = vmax.f32 %v6528_v30, %v2813_v61  ;;  %3327 = vst.msk [vmem:[%s5643_s13 + $0xb8] sm:$0xf] %vm3280_vm3, %v3820_v56  ;;  %v2688_v9 = vmax.f32 %v2002_v37, 0.0  ;;  %v2514_v10 = vadd.f32 %v5765_v47, %v2513_v54  ;;  %v2017_v19 = vpop.f32.mrf.mxu0 }
 0x1d7   : > { %v2882_v26 = vmax.f32 %v6530_v31, %v2690_v55  ;;  %v2013_v24 = vadd.f32 %v5765_v47, %v4087_v3  ;;  %3325 = vst.msk [vmem:[%s5643_s13 + $0xb0] sm:$0xf] %vm3280_vm3, %v3818_v18  ;;  %v6532_v49 = vmax.f32 %v6531_v22, 0.0  ;;  %v2525_v53 = vadd.f32 %v5765_v47, %v4215_v21  ;;  %v2529_v37 = vpop.f32.mrf.mxu1 }
 0x1d8   : > { %v3821_v11 = vpack.c.bf16 %v3007_v14, %v3007_v14  ;;  %v3005_v45 = vmax.f32 %v2877_v16, %v2941_v13  ;;  %v6534_v0 = vmax.f32 %v6533_v62, 0.0  ;;  %v2816_v7 = vmax.f32 %v2514_v10, 0.0  ;;  %v4091_v30 = vpop.f32.mrf.mxu0 }
 0x1d9   : > { %v2946_v60 = vmax.f32 %v6532_v49, %v2818_v4  ;;  %v2691_v46 = vmax.f32 %v2013_v24, 0.0  ;;  %v2005_v48 = vadd.f32 %v5765_v47, %v2004_v32  ;;  %v2819_v50 = vmax.f32 %v2525_v53, 0.0  ;;  %v4219_v31 = vpop.f32.mrf.mxu1 }
 0x1da   : > { %v2880_v20 = vmax.f32 %v6534_v0, %v2688_v9  ;;  %3328 = vst.msk [vmem:[%s5643_s13 + $0xbc] sm:$0xf] %vm3280_vm3, %v3821_v11  ;;  %v3819_v6 = vpack.c.bf16 %v3005_v45, %v3005_v45  ;;  %v2517_v63 = vadd.f32 %v5765_v47, %v2516_v40  ;;  %v6536_v8 = vmax.f32 %v6535_v34, 0.0  ;;  %v2020_v21 = vpop.f32.mrf.mxu0  ;;  %v6543_v11 = vld [vmem:[#allocation70_spill] sm:$0xff] }
 0x1db   : > { %v3010_v5 = vmax.f32 %v2882_v26, %v2946_v60  ;;  %v6537_v25 = vmax.f32 %v5486_v36, 0.0  ;;  %v2689_v33 = vmax.f32 %v2005_v48, 0.0  ;;  %v2026_v15 = vadd.f32 %v5765_v47, %v4090_v38  ;;  %v2532_v53 = vpop.f32.mrf.mxu1  ;;  %v6547_v48 = vld [vmem:[#allocation72_spill] sm:$0xff] }
 0x1dc   : > { %v2944_v52 = vmax.f32 %v6536_v8, %v2816_v7  ;;  %3326 = vst.msk [vmem:[%s5643_s13 + $0xb4] sm:$0xf] %vm3280_vm3, %v3819_v6  ;;  %v6538_v2 = vmax.f32 %v5490_v43, 0.0  ;;  %v2817_v61 = vmax.f32 %v2517_v63, 0.0  ;;  %v2538_v23 = vadd.f32 %v5765_v47, %v4218_v27 }
 0x1dd   : > { %v2883_v29 = vmax.f32 %v6537_v25, %v2691_v46  ;;  %v3824_v59 = vpack.c.bf16 %v3010_v5, %v3010_v5  ;;  %v6539_v44 = vmax.f32 %v5494_v28, 0.0  ;;  %v2694_v16 = vmax.f32 %v2026_v15, 0.0  ;;  %v4094_v46 = vpop.f32.mrf.mxu0  ;;  %v4222_v38 = vpop.f32.mrf.mxu1 }
 0x1de   : > { %v2947_v58 = vmax.f32 %v6538_v2, %v2819_v50  ;;  %v3008_v56 = vmax.f32 %v2880_v20, %v2944_v52  ;;  %v2018_v55 = vadd.f32 %v5765_v47, %v2017_v19  ;;  %v6540_v18 = vmax.f32 %v5500_v51, 0.0 }
 0x1df   : > { %v2881_v36 = vmax.f32 %v6539_v44, %v2689_v33  ;;  %3331 = vst.msk [vmem:[%s5643_s13 + $0xc8] sm:$0xf] %vm3280_vm3, %v3824_v59  ;;  %v2822_v14 = vmax.f32 %v2538_v23, 0.0  ;;  %v2530_v1 = vadd.f32 %v5765_v47, %v2529_v37  ;;  %v6541_v4 = vmax.f32 %v5504_v12, 0.0  ;;  %v6549_v33 = vld [vmem:[#allocation73_spill] sm:$0xff]  ;;  %v2545_v23 = vpop.f32.mrf.mxu1 }
 0x1e0   : > { %v3011_v54 = vmax.f32 %v2883_v29, %v2947_v58  ;;  %v2945_v43 = vmax.f32 %v6540_v18, %v2817_v61  ;;  %v3822_v13 = vpack.c.bf16 %v3008_v56, %v3008_v56  ;;  %v2692_v3 = vmax.f32 %v2018_v55, 0.0  ;;  %v2033_v29 = vpop.f32.mrf.mxu0  ;;  %v6552_v56 = vld [vmem:[#allocation74_spill] sm:$0xff]  ;;  %v6554_v18 = vld [vmem:[#allocation75_spill] sm:$0xff] }
 0x1e1   : > { %v2886_v28 = vmax.f32 %v6541_v4, %v2694_v16  ;;  %v2029_v35 = vadd.f32 %v5765_v47, %v4091_v30  ;;  %v6542_v10 = vmax.f32 %v5510_v41, 0.0  ;;  %v2820_v51 = vmax.f32 %v2530_v1, 0.0  ;;  %v6545_v41 = vld [vmem:[#allocation71_spill] sm:$0xff]  ;;  %v4223_v30 = vpop.f32.mrf.mxu1  ;;  %v6556_v4 = vld [vmem:[#allocation76_spill] sm:$0xff] }
 0x1e2   : > { %v3825_v26 = vpack.c.bf16 %v3011_v54, %v3011_v54  ;;  %v3009_v9 = vmax.f32 %v2881_v36, %v2945_v43  ;;  %3329 = vst.msk [vmem:[%s5643_s13 + $0xc0] sm:$0xf] %vm3280_vm3, %v3822_v13  ;;  %v6544_v45 = vmax.f32 %v6543_v11, 0.0  ;;  %v2541_v49 = vadd.f32 %v5765_v47, %v4219_v31  ;;  %v4095_v37 = vpop.f32.mrf.mxu0 }
 0x1e3   : > { %v2950_v24 = vmax.f32 %v6542_v10, %v2822_v14  ;;  %v2695_v12 = vmax.f32 %v2029_v35, 0.0  ;;  %v2021_v60 = vadd.f32 %v5765_v47, %v2020_v21  ;;  %v6546_v0 = vmax.f32 %v6545_v41, 0.0  ;;  %v2548_v11 = vpop.f32.mrf.mxu1 }
 0x1e4   : > { %v2884_v22 = vmax.f32 %v6544_v45, %v2692_v3  ;;  %3332 = vst.msk [vmem:[%s5643_s13 + $0xcc] sm:$0xf] %vm3280_vm3, %v3825_v26  ;;  %v3823_v32 = vpack.c.bf16 %v3009_v9, %v3009_v9  ;;  %v2533_v7 = vadd.f32 %v5765_v47, %v2532_v53  ;;  %v6548_v40 = vmax.f32 %v6547_v48, 0.0  ;;  %v2036_v26 = vpop.f32.mrf.mxu0 }
 0x1e5   : > { %v3014_v62 = vmax.f32 %v2886_v28, %v2950_v24  ;;  %v2948_v20 = vmax.f32 %v6546_v0, %v2820_v51  ;;  %v2823_v5 = vmax.f32 %v2541_v49, 0.0  ;;  %v2693_v50 = vmax.f32 %v2021_v60, 0.0 }
 0x1e6   : > { %v2887_v6 = vmax.f32 %v6548_v40, %v2695_v12  ;;  %v2042_v63 = vadd.f32 %v5765_v47, %v4094_v46  ;;  %3330 = vst.msk [vmem:[%s5643_s13 + $0xc4] sm:$0xf] %vm3280_vm3, %v3823_v32  ;;  %v2821_v52 = vmax.f32 %v2533_v7, 0.0  ;;  %v2554_v25 = vadd.f32 %v5765_v47, %v4222_v38  ;;  %v6559_v12 = vld [vmem:[#allocation77_spill] sm:$0xff]  ;;  %v4098_v32 = vpop.f32.mrf.mxu0  ;;  %v4226_v46 = vpop.f32.mrf.mxu1 }
 0x1e7   : > { %v3828_v34 = vpack.c.bf16 %v3014_v62, %v3014_v62  ;;  %v3012_v8 = vmax.f32 %v2884_v22, %v2948_v20  ;;  %v6550_v15 = vmax.f32 %v6549_v33, 0.0  ;;  %v6551_v59 = vmax.f32 %v5535_v17, 0.0  ;;  %v6561_v62 = vld [vmem:[#allocation78_spill] sm:$0xff] }
 0x1e8   : > { %v2698_v58 = vmax.f32 %v2042_v63, 0.0  ;;  %v2034_v61 = vadd.f32 %v5765_v47, %v2033_v29  ;;  %v6553_v44 = vmax.f32 %v6552_v56, 0.0  ;;  %v2826_v16 = vmax.f32 %v2554_v25, 0.0  ;;  %v2049_v38 = vpop.f32.mrf.mxu0 }
 0x1e9   : > { %v2951_v27 = vmax.f32 %v6550_v15, %v2823_v5  ;;  %v2885_v2 = vmax.f32 %v6551_v59, %v2693_v50  ;;  %3335 = vst.msk [vmem:[%s5643_s13 + $0xd8] sm:$0xf] %vm3280_vm3, %v3828_v34  ;;  %v3826_v19 = vpack.c.bf16 %v3012_v8, %v3012_v8  ;;  %v2546_v55 = vadd.f32 %v5765_v47, %v2545_v23  ;;  %v6565_v34 = vld [vmem:[#allocation80_spill] sm:$0xff]  ;;  %v2561_v15 = vpop.f32.mrf.mxu1  ;;  %v6567_v23 = vld [vmem:[#allocation81_spill] sm:$0xff] }
 0x1ea   : > { %v2949_v36 = vmax.f32 %v6553_v44, %v2821_v52  ;;  %v6555_v43 = vmax.f32 %v6554_v18, 0.0  ;;  %v2696_v14 = vmax.f32 %v2034_v61, 0.0  ;;  %v2045_v1 = vadd.f32 %v5765_v47, %v4095_v37  ;;  %v4099_v61 = vpop.f32.mrf.mxu0  ;;  %v6569_v44 = vld [vmem:[#allocation82_spill] sm:$0xff] }
 0x1eb   : > { %v3015_v54 = vmax.f32 %v2887_v6, %v2951_v27  ;;  %3333 = vst.msk [vmem:[%s5643_s13 + $0xd0] sm:$0xf] %vm3280_vm3, %v3826_v19  ;;  %v6557_v28 = vmax.f32 %v6556_v4, 0.0  ;;  %v2824_v35 = vmax.f32 %v2546_v55, 0.0  ;;  %v2557_v31 = vadd.f32 %v5765_v47, %v4223_v30  ;;  %v6563_v6 = vld [vmem:[#allocation79_spill] sm:$0xff] }
 0x1ec   : > { %v2890_v17 = vmax.f32 %v6555_v43, %v2698_v58  ;;  %v3013_v13 = vmax.f32 %v2885_v2, %v2949_v36  ;;  %v6558_v10 = vmax.f32 %v5557_v57, 0.0  ;;  %v2699_v51 = vmax.f32 %v2045_v1, 0.0  ;;  %v6571_v43 = vld [vmem:[#allocation83_spill] sm:$0xff] }
 0x1ed   : > { %v2954_v3 = vmax.f32 %v6557_v28, %v2826_v16  ;;  %v3829_v9 = vpack.c.bf16 %v3015_v54, %v3015_v54  ;;  %v2037_v21 = vadd.f32 %v5765_v47, %v2036_v26  ;;  %v6560_v49 = vmax.f32 %v6559_v12, 0.0  ;;  %v4227_v54 = vpop.f32.mrf.mxu1  ;;  %v6573_v28 = vld [vmem:[#allocation84_spill] sm:$0xff] }
 0x1ee   : > { %v2888_v24 = vmax.f32 %v6558_v10, %v2696_v14  ;;  %v3827_v45 = vpack.c.bf16 %v3013_v13, %v3013_v13  ;;  %v2827_v53 = vmax.f32 %v2557_v31, 0.0  ;;  %v6562_v41 = vmax.f32 %v6561_v62, 0.0  ;;  %v2052_v13 = vpop.f32.mrf.mxu0 }
 0x1ef   : > { %v3018_v22 = vmax.f32 %v2890_v17, %v2954_v3  ;;  %v2952_v60 = vmax.f32 %v6560_v49, %v2824_v35  ;;  %3336 = vst.msk [vmem:[%s5643_s13 + $0xdc] sm:$0xf] %vm3280_vm3, %v3829_v9  ;;  %v2697_v57 = vmax.f32 %v2037_v21, 0.0  ;;  %v2549_v20 = vadd.f32 %v5765_v47, %v2548_v11  ;;  %v2564_v9 = vpop.f32.mrf.mxu1  ;;  %v6577_v49 = vld [vmem:[#allocation86_spill] sm:$0xff] }
 0x1f0   : > { %v2891_v0 = vmax.f32 %v6562_v41, %v2699_v51  ;;  %v2058_v7 = vadd.f32 %v5765_v47, %v4098_v32  ;;  %3334 = vst.msk [vmem:[%s5643_s13 + $0xd4] sm:$0xf] %vm3280_vm3, %v3827_v45  ;;  %v6564_v5 = vmax.f32 %v6563_v6, 0.0  ;;  %v2570_v63 = vadd.f32 %v5765_v47, %v4226_v46 }
 0x1f1   : > { %v3832_v48 = vpack.c.bf16 %v3018_v22, %v3018_v22  ;;  %v3016_v40 = vmax.f32 %v2888_v24, %v2952_v60  ;;  %v6566_v8 = vmax.f32 %v6565_v34, 0.0  ;;  %v2825_v25 = vmax.f32 %v2549_v20, 0.0  ;;  %v6575_v24 = vld [vmem:[#allocation85_spill] sm:$0xff] }
 0x1f2   : > { %v2955_v50 = vmax.f32 %v6564_v5, %v2827_v53  ;;  %v2702_v29 = vmax.f32 %v2058_v7, 0.0  ;;  %v2050_v33 = vadd.f32 %v5765_v47, %v2049_v38  ;;  %v2830_v2 = vmax.f32 %v2570_v63, 0.0 }
 0x1f3   : > { %v2889_v52 = vmax.f32 %v6566_v8, %v2697_v57  ;;  %3339 = vst.msk [vmem:[%s5643_s13 + $0xe8] sm:$0xf] %vm3280_vm3, %v3832_v48  ;;  %v3830_v27 = vpack.c.bf16 %v3016_v40, %v3016_v40  ;;  %v2562_v58 = vadd.f32 %v5765_v47, %v2561_v15  ;;  %v6568_v19 = vmax.f32 %v6567_v23, 0.0 }
 0x1f4   : > { %v3019_v59 = vmax.f32 %v2891_v0, %v2955_v50  ;;  %v6570_v36 = vmax.f32 %v6569_v44, 0.0  ;;  %v2700_v55 = vmax.f32 %v2050_v33, 0.0  ;;  %v2061_v37 = vadd.f32 %v5765_v47, %v4099_v61  ;;  %v6579_v0 = vld [vmem:[#allocation87_spill] sm:$0xff] }
 0x1f5   : > { %v2953_v56 = vmax.f32 %v6568_v19, %v2825_v25  ;;  %3337 = vst.msk [vmem:[%s5643_s13 + $0xe0] sm:$0xf] %vm3280_vm3, %v3830_v27  ;;  %v6572_v17 = vmax.f32 %v6571_v43, 0.0  ;;  %v2828_v1 = vmax.f32 %v2562_v58, 0.0  ;;  %v2573_v30 = vadd.f32 %v5765_v47, %v4227_v54 }
 0x1f6   : > { %v2894_v16 = vmax.f32 %v6570_v36, %v2702_v29  ;;  %v3833_v18 = vpack.c.bf16 %v3019_v59, %v3019_v59  ;;  %v6574_v3 = vmax.f32 %v6573_v28, 0.0  ;;  %v2703_v31 = vmax.f32 %v2061_v37, 0.0 }
 0x1f7   : > { %v2958_v14 = vmax.f32 %v6572_v17, %v2830_v2  ;;  %v3017_v4 = vmax.f32 %v2889_v52, %v2953_v56  ;;  %v2053_v26 = vadd.f32 %v5765_v47, %v2052_v13  ;;  %v6576_v51 = vmax.f32 %v6575_v24, 0.0 }
 0x1f8   : > { %v2892_v35 = vmax.f32 %v6574_v3, %v2700_v55  ;;  %3340 = vst.msk [vmem:[%s5643_s13 + $0xec] sm:$0xf] %vm3280_vm3, %v3833_v18  ;;  %v2831_v11 = vmax.f32 %v2573_v30, 0.0  ;;  %v2565_v45 = vadd.f32 %v5765_v47, %v2564_v9  ;;  %v2765_v22 = vmax.f32 %v5631_v42, 0.0 }
 0x1f9   : > { %v3022_v10 = vmax.f32 %v2894_v16, %v2958_v14  ;;  %v2956_v21 = vmax.f32 %v6576_v51, %v2828_v1  ;;  %v3831_v12 = vpack.c.bf16 %v3017_v4, %v3017_v4  ;;  %v6578_v60 = vmax.f32 %v6577_v49, 0.0 }
 0x1fa   : > { %v2701_v32 = vmax.f32 %v2053_v26, 0.0  ;;  %v6580_v57 = vmax.f32 %v6579_v0, 0.0  ;;  %v2829_v7 = vmax.f32 %v2565_v45, 0.0  ;;  %v6581_v46 = vmax.f32 %v5620_v39, 0.0 }
 0x1fb   : > { %v2895_v53 = vmax.f32 %v6578_v60, %v2703_v31  ;;  %v3836_v62 = vpack.c.bf16 %v3022_v10, %v3022_v10  ;;  %v3020_v41 = vmax.f32 %v2892_v35, %v2956_v21  ;;  %3338 = vst.msk [vmem:[%s5643_s13 + $0xe4] sm:$0xf] %vm3280_vm3, %v3831_v12 }
 0x1fc   : > { %v2959_v20 = vmax.f32 %v6580_v57, %v2831_v11  ;;  %v2893_v47 = vmax.f32 %v6581_v46, %v2701_v32  ;;  %v2957_v40 = vmax.f32 %v2765_v22, %v2829_v7 }
 0x1fd   : > { %3343 = vst.msk [vmem:[%s5643_s13 + $0xf8] sm:$0xf] %vm3280_vm3, %v3836_v62  ;;  %v3834_v42 = vpack.c.bf16 %v3020_v41, %v3020_v41 }
 0x1fe   : > { %v3023_v48 = vmax.f32 %v2895_v53, %v2959_v20  ;;  %v3021_v5 = vmax.f32 %v2893_v47, %v2957_v40 }
 0x1ff   : > { %3341 = vst.msk [vmem:[%s5643_s13 + $0xf0] sm:$0xf] %vm3280_vm3, %v3834_v42 }
 0x200   : > { %v3837_v6 = vpack.c.bf16 %v3023_v48, %v3023_v48  ;;  %v3835_v50 = vpack.c.bf16 %v3021_v5, %v3021_v5 }
 0x202   : > { %3344 = vst.msk [vmem:[%s5643_s13 + $0xfc] sm:$0xf] %vm3280_vm3, %v3837_v6  ;;  %3342 = vst.msk [vmem:[%s5643_s13 + $0xf4] sm:$0xf] %vm3280_vm3, %v3835_v50 }
 0x203 PF: > { %s13_s16 = sadd.s32 1, %s4442_s16   ;;  %s6582_s12 = smov %s4434_s14 }
 0x204   : > { %p10_p8 = scmp.ge.s32.totalorder %s13_s16, 6   ;;  %s6583_s13 = smov %s4438_s15 }
 0x205   : > { %s6584_s14 = smov %s6587_s17  ;;  %s6585_s15 = smov %s6591_s18 }
 0x206   :  { %12 = sbr.rel (!%p10_p8) target bundleno = 3 (0x3), region = 62 }

// kernel: forward_pallas.6
= control target key start
LH: loop header
LB: loop body
LE: loop exit
PB: predicated region body
PF: predicated region fallthrough
CT: control target
= control target key end

     0   :  { %s4260_s12 = smov 0   ;;  %s4262_s13 = smov 0   ;;  %s5523_s0 = inlined_call_operand.vmem [shape: bf16[2,1,1024,288], index: 0, kind: input, shape index: {}]   ;;  %s5524_s1 = inlined_call_operand.vmem [shape: bf16[288,64], index: 1, kind: input, shape index: {}]   ;;  %s5525_s2 = inlined_call_operand.vmem [shape: f32[1,64], index: 2, kind: input, shape index: {}]   ;;  %s5526_s3 = inlined_call_operand.vmem [shape: bf16[2,256,64], index: 3, kind: output, shape index: {}]  }
   0x1   :  { %s4264_s14 = smov 0  }
   0x2 LB: > { %s25_s15 = sadd.s32 1, %s4233_s13  ;;  %p3338_p0 = scmp.ge.s32.totalorder %s4237_s14, 1  ;;  %s4237_s14 = sphi %s4264_s14, %s13_s14   ;;  %s4233_s13 = sphi %s4262_s13, %s5696_s13   ;;  %s4229_s12 = sphi %s4260_s12, %s5695_s12  }
   0x3   : > { %p27_p1 = scmp.ge.s32.totalorder %s25_s15, 2  ;;  %p157_p2 = scmp.lt.s32.totalorder %s4237_s14, 3 }
   0x5   : > { %s5698_s15 = smov (%p27_p1, %s25_s15), 0  ;;  %p158_p3 = pnand %p3338_p0, %p157_p2 }
   0x7   : > { %161 = sbr.rel (%p158_p3) target bundleno = 664 (0x298), region = 32 }
   0xc   : > { %v3940_v0 = vld [vmem:[%s5524_s1 + $0x38] sm:$0xff]   ;;  %v4239_v1 = vmov 0   ;;  %v3941_v2 = vld [vmem:[%s5524_s1 + $0x30] sm:$0xff]   ;;  %p189_p4 = scmp.lt.s32.totalorder %s4229_s12, 1  ;;  %v3942_v3 = vld [vmem:[%s5524_s1 + $0x28] sm:$0xff]   ;;  %vm1576_vm0 = vcmask 261120  }
   0xd   : > { %1769 = vmatprep.subr.bf16.mxu0 %v4239_v1  ;;  %3882 = vmatprep.subr.bf16.mxu1 %v4239_v1  ;;  %v3943_v4 = vld [vmem:[%s5524_s1 + $0x20] sm:$0xff]   ;;  %v3944_v5 = vld [vmem:[%s5524_s1 + $0x18] sm:$0xff]   ;;  %v3945_v7 = vld [vmem:[%s5524_s1 + $0x10] sm:$0xff]   ;;  %vm3211_vm1 = vcmask 519168  }
   0xe   : > { %1770 = vmatpush1.bf16.msra.mxu0 %v3940_v0  ;;  %3898 = vmatpush1.bf16.msra.mxu1 %v3940_v0  ;;  %s5700_s12 = smov (!%p189_p4, %s4229_s12), 1  ;;  %v3946_v9 = vld [vmem:[%s5524_s1 + $0x8] sm:$0xff]   ;;  %v3947_v10 = vld [vmem:[%s5524_s1] sm:$0xff]   ;;  %v3948_v11 = vld [vmem:[%s5524_s1 + $0x78] sm:$0xff]  }
   0xf   : > { %1771 = vmatprep.subr.bf16.mxu0 %v4239_v1  ;;  %3883 = vmatprep.subr.bf16.mxu1 %v4239_v1  ;;  %s3914_s24 = smul.u32 1536, %s5700_s12  ;;  %v3949_v12 = vld [vmem:[%s5524_s1 + $0x70] sm:$0xff]   ;;  %v3950_v13 = vld [vmem:[%s5524_s1 + $0x68] sm:$0xff]   ;;  %v3951_v14 = vld [vmem:[%s5524_s1 + $0x60] sm:$0xff]   ;;  %s3651_s10 = sshll.u32 %s5700_s12, 7 }
  0x10   : > { %v3952_v15 = vld [vmem:[%s5524_s1 + $0x58] sm:$0xff]   ;;  %v3953_v16 = vld [vmem:[%s5524_s1 + $0x50] sm:$0xff]   ;;  %v3954_v17 = vld [vmem:[%s5524_s1 + $0x48] sm:$0xff]   ;;  %s5298_s16 = scalar_lea.vmem %s5526_s3, %s3651_s10 }
  0x11   : > { %s4307_s29 = scalar_lea.vmem %s5523_s0, %s3914_s24  ;;  %v3955_v18 = vld [vmem:[%s5524_s1 + $0x40] sm:$0xff]   ;;  %v3962_v19 = vld [vmem:[%s5524_s1 + $0x88] sm:$0xff]  }
  0x12   : > { %1772 = vmatpush1.bf16.msra.mxu0 %v3941_v2  ;;  %3899 = vmatpush1.bf16.msra.mxu1 %v3941_v2  ;;  %v3958_v6 = vld [vmem:[%s4307_s29 + $0x4] ss:$12 sps:$4 sm:$0xff]   ;;  %v3956_v20 = vld [vmem:[%s4307_s29] ss:$12 sps:$4 sm:$0xff]   ;;  %v3963_v22 = vld [vmem:[%s4307_s29 + $0x1c] ss:$12 sps:$4 sm:$0xff]  }
  0x13   : > { %1773 = vmatprep.subr.bf16.mxu0 %v4239_v1  ;;  %3884 = vmatprep.subr.bf16.mxu1 %v4239_v1  ;;  %v3961_v8 = vld [vmem:[%s4307_s29 + $0x484] ss:$12 sps:$4 sm:$0xff]   ;;  %v3959_v21 = vld [vmem:[%s4307_s29 + $0x480] ss:$12 sps:$4 sm:$0xff]   ;;  %v3965_v23 = vld [vmem:[%s4307_s29 + $0x49c] ss:$12 sps:$4 sm:$0xff]  }
  0x14   : > { %1801 = vmatprep.mubr.bf16.mxu0 %v3958_v6  ;;  %2185 = vmatprep.mubr.bf16.mxu1 %v3961_v8  ;;  %v4011_v24 = vld [vmem:[%s5524_s1 + $0x80] sm:$0xff]   ;;  %v3973_v29 = vld [vmem:[%s4307_s29 + $0x30] ss:$12 sps:$4 sm:$0xff]   ;;  %v3975_v31 = vld [vmem:[%s4307_s29 + $0x4c] ss:$12 sps:$4 sm:$0xff]  }
  0x15   : > { %v3967_v25 = vld [vmem:[%s4307_s29 + $0x18] ss:$12 sps:$4 sm:$0xff]   ;;  %v3969_v27 = vld [vmem:[%s4307_s29 + $0x34] ss:$12 sps:$4 sm:$0xff]   ;;  %v3974_v30 = vld [vmem:[%s4307_s29 + $0x4b0] ss:$12 sps:$4 sm:$0xff]  }
  0x16   : > { %1774 = vmatpush1.bf16.msra.mxu0 %v3942_v3  ;;  %3900 = vmatpush1.bf16.msra.mxu1 %v3942_v3  ;;  %v3968_v26 = vld [vmem:[%s4307_s29 + $0x498] ss:$12 sps:$4 sm:$0xff]   ;;  %v3971_v28 = vld [vmem:[%s4307_s29 + $0x4b4] ss:$12 sps:$4 sm:$0xff]   ;;  %v3987_v39 = vld [vmem:[%s4307_s29 + $0x7c] ss:$12 sps:$4 sm:$0xff]  }
  0x17   : > { %1775 = vmatprep.subr.bf16.mxu0 %v4239_v1  ;;  %3885 = vmatprep.subr.bf16.mxu1 %v4239_v1  ;;  %v3977_v32 = vld [vmem:[%s4307_s29 + $0x4cc] ss:$12 sps:$4 sm:$0xff]   ;;  %v3979_v33 = vld [vmem:[%s4307_s29 + $0x48] ss:$12 sps:$4 sm:$0xff]   ;;  %v3981_v35 = vld [vmem:[%s4307_s29 + $0x64] ss:$12 sps:$4 sm:$0xff]  }
  0x18   : > { %v3980_v34 = vld [vmem:[%s4307_s29 + $0x4c8] ss:$12 sps:$4 sm:$0xff]   ;;  %v3983_v36 = vld [vmem:[%s4307_s29 + $0x4e4] ss:$12 sps:$4 sm:$0xff]   ;;  %v3985_v37 = vld [vmem:[%s4307_s29 + $0x60] ss:$12 sps:$4 sm:$0xff]  }
  0x19   : > { %v3986_v38 = vld [vmem:[%s4307_s29 + $0x4e0] ss:$12 sps:$4 sm:$0xff]   ;;  %v3989_v40 = vld [vmem:[%s4307_s29 + $0x4fc] ss:$12 sps:$4 sm:$0xff]   ;;  %v3991_v41 = vld [vmem:[%s4307_s29 + $0x78] ss:$12 sps:$4 sm:$0xff]  }
  0x1a   : > { %1776 = vmatpush1.bf16.msra.mxu0 %v3943_v4  ;;  %3901 = vmatpush1.bf16.msra.mxu1 %v3943_v4  ;;  %v3992_v42 = vld [vmem:[%s4307_s29 + $0x4f8] ss:$12 sps:$4 sm:$0xff]   ;;  %v3993_v43 = vld [vmem:[%s4307_s29 + $0x94] ss:$12 sps:$4 sm:$0xff]   ;;  %v3997_v45 = vld [vmem:[%s4307_s29 + $0x90] ss:$12 sps:$4 sm:$0xff]  }
  0x1b   : > { %1777 = vmatprep.subr.bf16.mxu0 %v4239_v1  ;;  %3886 = vmatprep.subr.bf16.mxu1 %v4239_v1  ;;  %v3995_v44 = vld [vmem:[%s4307_s29 + $0x514] ss:$12 sps:$4 sm:$0xff]   ;;  %v3998_v46 = vld [vmem:[%s4307_s29 + $0x510] ss:$12 sps:$4 sm:$0xff]   ;;  %v3999_v47 = vld [vmem:[%s4307_s29 + $0xac] ss:$12 sps:$4 sm:$0xff]  }
  0x1c   : > { %v4001_v48 = vld [vmem:[%s4307_s29 + $0x52c] ss:$12 sps:$4 sm:$0xff]   ;;  %v4003_v49 = vld [vmem:[%s4307_s29 + $0xa8] ss:$12 sps:$4 sm:$0xff]   ;;  %v4005_v51 = vld [vmem:[%s4307_s29 + $0xc4] ss:$12 sps:$4 sm:$0xff]  }
  0x1d   : > { %v4004_v50 = vld [vmem:[%s4307_s29 + $0x528] ss:$12 sps:$4 sm:$0xff]   ;;  %v4007_v52 = vld [vmem:[%s4307_s29 + $0x544] ss:$12 sps:$4 sm:$0xff]   ;;  %v4009_v53 = vld [vmem:[%s4307_s29 + $0xc0] ss:$12 sps:$4 sm:$0xff]  }
  0x1e   : > { %1778 = vmatpush1.bf16.msra.mxu0 %v3944_v5  ;;  %3902 = vmatpush1.bf16.msra.mxu1 %v3944_v5  ;;  %v4010_v54 = vld [vmem:[%s4307_s29 + $0x540] ss:$12 sps:$4 sm:$0xff]   ;;  %v4012_v55 = vld [vmem:[%s4307_s29 + $0xdc] ss:$12 sps:$4 sm:$0xff]   ;;  %v4016_v57 = vld [vmem:[%s4307_s29 + $0xd8] ss:$12 sps:$4 sm:$0xff]  }
  0x1f   : > { %1779 = vmatprep.subr.bf16.mxu0 %v4239_v1  ;;  %3887 = vmatprep.subr.bf16.mxu1 %v4239_v1  ;;  %v4014_v56 = vld [vmem:[%s4307_s29 + $0x55c] ss:$12 sps:$4 sm:$0xff]   ;;  %v4017_v58 = vld [vmem:[%s4307_s29 + $0x558] ss:$12 sps:$4 sm:$0xff]   ;;  %v4018_v59 = vld [vmem:[%s4307_s29 + $0xf4] ss:$12 sps:$4 sm:$0xff]  }
  0x20   : > { %v4020_v60 = vld [vmem:[%s4307_s29 + $0x574] ss:$12 sps:$4 sm:$0xff]   ;;  %v4022_v61 = vld [vmem:[%s4307_s29 + $0xf0] ss:$12 sps:$4 sm:$0xff]   ;;  %v4024_v63 = vld [vmem:[%s4307_s29 + $0x10c] ss:$12 sps:$4 sm:$0xff]  }
  0x21   : > { %v4023_v62 = vld [vmem:[%s4307_s29 + $0x570] ss:$12 sps:$4 sm:$0xff]   ;;  %v4026_v0 = vld [vmem:[%s4307_s29 + $0x58c] ss:$12 sps:$4 sm:$0xff]   ;;  %v4029_v2 = vld [vmem:[%s4307_s29 + $0x588] ss:$12 sps:$4 sm:$0xff]  }
  0x22   : > { %1780 = vmatpush1.bf16.msra.mxu0 %v3945_v7  ;;  %3903 = vmatpush1.bf16.msra.mxu1 %v3945_v7  ;;  %v4030_v3 = vld [vmem:[%s4307_s29 + $0x124] ss:$12 sps:$4 sm:$0xff]   ;;  %v4034_v5 = vld [vmem:[%s4307_s29 + $0x120] ss:$12 sps:$4 sm:$0xff]   ;;  %v4036_v7 = vld [vmem:[%s4307_s29 + $0x13c] ss:$12 sps:$4 sm:$0xff]  }
  0x23   : > { %1781 = vmatprep.subr.bf16.mxu0 %v4239_v1  ;;  %3888 = vmatprep.subr.bf16.mxu1 %v4239_v1  ;;  %v4032_v4 = vld [vmem:[%s4307_s29 + $0x5a4] ss:$12 sps:$4 sm:$0xff]   ;;  %v4035_v6 = vld [vmem:[%s4307_s29 + $0x5a0] ss:$12 sps:$4 sm:$0xff]   ;;  %v4038_v8 = vld [vmem:[%s4307_s29 + $0x5bc] ss:$12 sps:$4 sm:$0xff]  }
  0x26   : > { %1782 = vmatpush1.bf16.msra.mxu0 %v3946_v9  ;;  %3904 = vmatpush1.bf16.msra.mxu1 %v3946_v9  ;;  %v4040_v9 = vld [vmem:[%s4307_s29 + $0x138] ss:$12 sps:$4 sm:$0xff]  }
  0x27   : > { %1783 = vmatprep.subr.bf16.mxu0 %v4239_v1  ;;  %3889 = vmatprep.subr.bf16.mxu1 %v4239_v1 }
  0x2a   : > { %1784 = vmatpush1.bf16.msra.mxu0 %v3947_v10  ;;  %3905 = vmatpush1.bf16.msra.mxu1 %v3947_v10  ;;  %v4041_v10 = vld [vmem:[%s4307_s29 + $0x5b8] ss:$12 sps:$4 sm:$0xff]  }
  0x2b   : > { %1785 = vmatprep.subr.bf16.mxu0 %v4239_v1  ;;  %3890 = vmatprep.subr.bf16.mxu1 %v4239_v1 }
  0x2e   : > { %1786 = vmatpush2.bf16.msra.mxu0 %v3948_v11  ;;  %3906 = vmatpush2.bf16.msra.mxu1 %v3948_v11  ;;  %v4042_v11 = vld [vmem:[%s4307_s29 + $0x154] ss:$12 sps:$4 sm:$0xff]  }
  0x2f   : > { %1787 = vmatprep.subr.bf16.mxu0 %v4239_v1  ;;  %3891 = vmatprep.subr.bf16.mxu1 %v4239_v1 }
  0x32   : > { %1788 = vmatpush2.bf16.msra.mxu0 %v3949_v12  ;;  %3907 = vmatpush2.bf16.msra.mxu1 %v3949_v12  ;;  %v4044_v12 = vld [vmem:[%s4307_s29 + $0x5d4] ss:$12 sps:$4 sm:$0xff]  }
  0x33   : > { %1789 = vmatprep.subr.bf16.mxu0 %v4239_v1  ;;  %3892 = vmatprep.subr.bf16.mxu1 %v4239_v1 }
  0x36   : > { %1790 = vmatpush2.bf16.msra.mxu0 %v3950_v13  ;;  %3908 = vmatpush2.bf16.msra.mxu1 %v3950_v13  ;;  %v4046_v13 = vld [vmem:[%s4307_s29 + $0x150] ss:$12 sps:$4 sm:$0xff]  }
  0x37   : > { %1791 = vmatprep.subr.bf16.mxu0 %v4239_v1  ;;  %3893 = vmatprep.subr.bf16.mxu1 %v4239_v1 }
  0x3a   : > { %1792 = vmatpush2.bf16.msra.mxu0 %v3951_v14  ;;  %3909 = vmatpush2.bf16.msra.mxu1 %v3951_v14  ;;  %v4047_v14 = vld [vmem:[%s4307_s29 + $0x5d0] ss:$12 sps:$4 sm:$0xff]  }
  0x3b   : > { %1793 = vmatprep.subr.bf16.mxu0 %v4239_v1  ;;  %3894 = vmatprep.subr.bf16.mxu1 %v4239_v1 }
  0x3e   : > { %1794 = vmatpush2.bf16.msra.mxu0 %v3952_v15  ;;  %3910 = vmatpush2.bf16.msra.mxu1 %v3952_v15  ;;  %v4048_v15 = vld [vmem:[%s4307_s29 + $0x16c] ss:$12 sps:$4 sm:$0xff]  }
  0x3f   : > { %1795 = vmatprep.subr.bf16.mxu0 %v4239_v1  ;;  %3895 = vmatprep.subr.bf16.mxu1 %v4239_v1 }
  0x42   : > { %1796 = vmatpush2.bf16.msra.mxu0 %v3953_v16  ;;  %3911 = vmatpush2.bf16.msra.mxu1 %v3953_v16  ;;  %v4050_v16 = vld [vmem:[%s4307_s29 + $0x5ec] ss:$12 sps:$4 sm:$0xff]  }
  0x43   : > { %1797 = vmatprep.subr.bf16.mxu0 %v4239_v1  ;;  %3896 = vmatprep.subr.bf16.mxu1 %v4239_v1 }
  0x46   : > { %1798 = vmatpush2.bf16.msra.mxu0 %v3954_v17  ;;  %3912 = vmatpush2.bf16.msra.mxu1 %v3954_v17  ;;  %v4052_v17 = vld [vmem:[%s4307_s29 + $0x168] ss:$12 sps:$4 sm:$0xff]  }
  0x47   : > { %1799 = vmatprep.subr.bf16.mxu0 %v4239_v1  ;;  %3897 = vmatprep.subr.bf16.mxu1 %v4239_v1  ;;  %v4028_v1 = vld [vmem:[%s4307_s29 + $0x108] ss:$12 sps:$4 sm:$0xff]  }
  0x4a   : > { %1800 = vmatpush2.bf16.msra.mxu0 %v3955_v18  ;;  %3913 = vmatpush2.bf16.msra.mxu1 %v3955_v18  ;;  %v4053_v18 = vld [vmem:[%s4307_s29 + $0x5e8] ss:$12 sps:$4 sm:$0xff]  }
  0x4b   : > { %3750 = vmatprep.subr.bf16.mxu1 %v3962_v19 }
  0x4d   : > { %1802 = vmatmul.mubr.bf16.vlgmr.msra.gmra.mxu0 %v3956_v20  ;;  %2186 = vmatmul.mubr.bf16.vlgmr.msra.gmra.mxu1 %v3959_v21  ;;  %v4056_v20 = vld [vmem:[%s4307_s29 + $0x8] ss:$12 sps:$4 sm:$0xff]   ;;  %v4057_v21 = vld [vmem:[%s4307_s29 + $0x180] ss:$12 sps:$4 sm:$0xff]  }
  0x4e   : > { %3751 = vmatpush3.bf16.msra.mxu1 %v3962_v19  ;;  %1809 = vmatprep.mubr.bf16.mxu0 %v3963_v22  ;;  %v4054_v19 = vld [vmem:[%s4307_s29 + $0x184] ss:$12 sps:$4 sm:$0xff]   ;;  %v4058_v22 = vld [vmem:[%s4307_s29 + $0x20] ss:$12 sps:$4 sm:$0xff]  }
  0x4f   : > { %2193 = vmatprep.mubr.bf16.mxu1 %v3965_v23  ;;  %3752 = vmatprep.subr.bf16.mxu1 %v4011_v24  ;;  %v4059_v23 = vld [vmem:[%s4307_s29 + $0x19c] ss:$12 sps:$4 sm:$0xff]  }
  0x52   : > { %3753 = vmatpush3.bf16.msra.mxu1 %v4011_v24  ;;  %v4061_v24 = vld [vmem:[%s4307_s29 + $0x38] ss:$12 sps:$4 sm:$0xff]  }
  0x55   : > { %1810 = vmatmul.mubr.bf16.gmra.mxu0 %v3967_v25  ;;  %2194 = vmatmul.mubr.bf16.gmra.mxu1 %v3968_v26  ;;  %v4062_v25 = vld [vmem:[%s4307_s29 + $0x198] ss:$12 sps:$4 sm:$0xff]   ;;  %v4063_v26 = vld [vmem:[%s4307_s29 + $0x50] ss:$12 sps:$4 sm:$0xff]  }
  0x56   : > { %1817 = vmatprep.mubr.bf16.mxu0 %v3969_v27  ;;  %2201 = vmatprep.mubr.bf16.mxu1 %v3971_v28  ;;  %v4064_v27 = vld [vmem:[%s4307_s29 + $0x1b4] ss:$12 sps:$4 sm:$0xff]  }
  0x57   : > { %v4066_v28 = vld [vmem:[%s4307_s29 + $0x68] ss:$12 sps:$4 sm:$0xff]  }
  0x5d   : > { %1818 = vmatmul.mubr.bf16.gmra.mxu0 %v3973_v29  ;;  %2202 = vmatmul.mubr.bf16.gmra.mxu1 %v3974_v30  ;;  %v4067_v29 = vld [vmem:[%s4307_s29 + $0x1b0] ss:$12 sps:$4 sm:$0xff]   ;;  %v4068_v30 = vld [vmem:[%s4307_s29 + $0x80] ss:$12 sps:$4 sm:$0xff]  }
  0x5e   : > { %1825 = vmatprep.mubr.bf16.mxu0 %v3975_v31  ;;  %2209 = vmatprep.mubr.bf16.mxu1 %v3977_v32  ;;  %v4069_v31 = vld [vmem:[%s4307_s29 + $0x1cc] ss:$12 sps:$4 sm:$0xff]  }
  0x5f   : > { %v4071_v32 = vld [vmem:[%s4307_s29 + $0x98] ss:$12 sps:$4 sm:$0xff]  }
  0x65   : > { %1826 = vmatmul.mubr.bf16.gmra.mxu0 %v3979_v33  ;;  %2210 = vmatmul.mubr.bf16.gmra.mxu1 %v3980_v34  ;;  %v4072_v33 = vld [vmem:[%s4307_s29 + $0x1c8] ss:$12 sps:$4 sm:$0xff]   ;;  %v4073_v34 = vld [vmem:[%s4307_s29 + $0xb0] ss:$12 sps:$4 sm:$0xff]  }
  0x66   : > { %1833 = vmatprep.mubr.bf16.mxu0 %v3981_v35  ;;  %2217 = vmatprep.mubr.bf16.mxu1 %v3983_v36  ;;  %v4074_v35 = vld [vmem:[%s4307_s29 + $0x1e4] ss:$12 sps:$4 sm:$0xff]   ;;  %v4076_v36 = vld [vmem:[%s4307_s29 + $0xc8] ss:$12 sps:$4 sm:$0xff]  }
  0x6d   : > { %1834 = vmatmul.mubr.bf16.gmra.mxu0 %v3985_v37  ;;  %2218 = vmatmul.mubr.bf16.gmra.mxu1 %v3986_v38  ;;  %v4077_v37 = vld [vmem:[%s4307_s29 + $0x1e0] ss:$12 sps:$4 sm:$0xff]  }
  0x6e   : > { %1841 = vmatprep.mubr.bf16.mxu0 %v3987_v39  ;;  %2225 = vmatprep.mubr.bf16.mxu1 %v3989_v40  ;;  %v4078_v38 = vld [vmem:[%s4307_s29 + $0xe0] ss:$12 sps:$4 sm:$0xff]   ;;  %v4079_v39 = vld [vmem:[%s4307_s29 + $0x1fc] ss:$12 sps:$4 sm:$0xff]   ;;  %v4081_v40 = vld [vmem:[%s4307_s29 + $0xf8] ss:$12 sps:$4 sm:$0xff]  }
  0x75   : > { %1842 = vmatmul.mubr.bf16.gmra.mxu0 %v3991_v41  ;;  %2226 = vmatmul.mubr.bf16.gmra.mxu1 %v3992_v42  ;;  %v4082_v41 = vld [vmem:[%s4307_s29 + $0x1f8] ss:$12 sps:$4 sm:$0xff]   ;;  %v4083_v42 = vld [vmem:[%s4307_s29 + $0x110] ss:$12 sps:$4 sm:$0xff]  }
  0x76   : > { %1849 = vmatprep.mubr.bf16.mxu0 %v3993_v43  ;;  %2233 = vmatprep.mubr.bf16.mxu1 %v3995_v44  ;;  %v4084_v43 = vld [vmem:[%s4307_s29 + $0x214] ss:$12 sps:$4 sm:$0xff]  }
  0x77   : > { %v4086_v44 = vld [vmem:[%s4307_s29 + $0x128] ss:$12 sps:$4 sm:$0xff]  }
  0x7d   : > { %1850 = vmatmul.mubr.bf16.gmra.mxu0 %v3997_v45  ;;  %2234 = vmatmul.mubr.bf16.gmra.mxu1 %v3998_v46  ;;  %v4087_v45 = vld [vmem:[%s4307_s29 + $0x210] ss:$12 sps:$4 sm:$0xff]   ;;  %v4088_v46 = vld [vmem:[%s4307_s29 + $0x140] ss:$12 sps:$4 sm:$0xff]  }
  0x7e   : > { %1857 = vmatprep.mubr.bf16.mxu0 %v3999_v47  ;;  %2241 = vmatprep.mubr.bf16.mxu1 %v4001_v48  ;;  %v4089_v47 = vld [vmem:[%s4307_s29 + $0x22c] ss:$12 sps:$4 sm:$0xff]  }
  0x7f   : > { %v4091_v48 = vld [vmem:[%s4307_s29 + $0x158] ss:$12 sps:$4 sm:$0xff]  }
  0x85   : > { %1858 = vmatmul.mubr.bf16.gmra.mxu0 %v4003_v49  ;;  %2242 = vmatmul.mubr.bf16.gmra.mxu1 %v4004_v50  ;;  %v4092_v49 = vld [vmem:[%s4307_s29 + $0x228] ss:$12 sps:$4 sm:$0xff]   ;;  %v4093_v50 = vld [vmem:[%s4307_s29 + $0x170] ss:$12 sps:$4 sm:$0xff]  }
  0x86   : > { %1865 = vmatprep.mubr.bf16.mxu0 %v4005_v51  ;;  %2249 = vmatprep.mubr.bf16.mxu1 %v4007_v52  ;;  %v4094_v51 = vld [vmem:[%s4307_s29 + $0x244] ss:$12 sps:$4 sm:$0xff]   ;;  %v4096_v52 = vld [vmem:[%s4307_s29 + $0x188] ss:$12 sps:$4 sm:$0xff]  }
  0x8d   : > { %1866 = vmatmul.mubr.bf16.gmra.mxu0 %v4009_v53  ;;  %2250 = vmatmul.mubr.bf16.gmra.mxu1 %v4010_v54  ;;  %v4097_v53 = vld [vmem:[%s4307_s29 + $0x240] ss:$12 sps:$4 sm:$0xff]  }
  0x8e   : > { %1873 = vmatprep.mubr.bf16.mxu0 %v4012_v55  ;;  %2257 = vmatprep.mubr.bf16.mxu1 %v4014_v56  ;;  %v4098_v54 = vld [vmem:[%s4307_s29 + $0x1a0] ss:$12 sps:$4 sm:$0xff]   ;;  %v4099_v55 = vld [vmem:[%s4307_s29 + $0x25c] ss:$12 sps:$4 sm:$0xff]   ;;  %v4101_v56 = vld [vmem:[%s4307_s29 + $0x1b8] ss:$12 sps:$4 sm:$0xff]  }
  0x95   : > { %1874 = vmatmul.mubr.bf16.gmra.mxu0 %v4016_v57  ;;  %2258 = vmatmul.mubr.bf16.gmra.mxu1 %v4017_v58 }
  0x96   : > { %1881 = vmatprep.mubr.bf16.mxu0 %v4018_v59  ;;  %2265 = vmatprep.mubr.bf16.mxu1 %v4020_v60 }
  0x9d   : > { %1882 = vmatmul.mubr.bf16.gmra.mxu0 %v4022_v61  ;;  %2266 = vmatmul.mubr.bf16.gmra.mxu1 %v4023_v62 }
  0x9e   : > { %1889 = vmatprep.mubr.bf16.mxu0 %v4024_v63  ;;  %2273 = vmatprep.mubr.bf16.mxu1 %v4026_v0  ;;  %v4102_v63 = vld [vmem:[%s4307_s29 + $0x258] ss:$12 sps:$4 sm:$0xff]   ;;  %v4103_v0 = vld [vmem:[%s4307_s29 + $0x1d0] ss:$12 sps:$4 sm:$0xff]  }
  0xa5   : > { %1890 = vmatmul.mubr.bf16.gmra.mxu0 %v4028_v1  ;;  %2274 = vmatmul.mubr.bf16.gmra.mxu1 %v4029_v2  ;;  %v4104_v1 = vld [vmem:[%s4307_s29 + $0x274] ss:$12 sps:$4 sm:$0xff]  }
  0xa6   : > { %1897 = vmatprep.mubr.bf16.mxu0 %v4030_v3  ;;  %2281 = vmatprep.mubr.bf16.mxu1 %v4032_v4  ;;  %v4106_v2 = vld [vmem:[%s4307_s29 + $0x1e8] ss:$12 sps:$4 sm:$0xff]  }
  0xad   : > { %1898 = vmatmul.mubr.bf16.gmra.mxu0 %v4034_v5  ;;  %2282 = vmatmul.mubr.bf16.gmra.mxu1 %v4035_v6 }
  0xae   : > { %1905 = vmatprep.mubr.bf16.mxu0 %v4036_v7  ;;  %2289 = vmatprep.mubr.bf16.mxu1 %v4038_v8 }
  0xb5   : > { %1906 = vmatmul.mubr.bf16.gmra.mxu0 %v4040_v9  ;;  %2290 = vmatmul.mubr.bf16.gmra.mxu1 %v4041_v10 }
  0xb6   : > { %1913 = vmatprep.mubr.bf16.mxu0 %v4042_v11  ;;  %2297 = vmatprep.mubr.bf16.mxu1 %v4044_v12  ;;  %v4107_v11 = vld [vmem:[%s4307_s29 + $0x270] ss:$12 sps:$4 sm:$0xff]   ;;  %v4108_v12 = vld [vmem:[%s4307_s29 + $0x200] ss:$12 sps:$4 sm:$0xff]  }
  0xbd   : > { %1914 = vmatmul.mubr.bf16.gmra.mxu0 %v4046_v13  ;;  %2298 = vmatmul.mubr.bf16.gmra.mxu1 %v4047_v14  ;;  %v4109_v13 = vld [vmem:[%s4307_s29 + $0x28c] ss:$12 sps:$4 sm:$0xff]  }
  0xbe   : > { %1921 = vmatprep.mubr.bf16.mxu0 %v4048_v15  ;;  %2305 = vmatprep.mubr.bf16.mxu1 %v4050_v16  ;;  %v4111_v14 = vld [vmem:[%s4307_s29 + $0x218] ss:$12 sps:$4 sm:$0xff]  }
  0xc5   : > { %1922 = vmatmul.mubr.bf16.gmra.mxu0 %v4052_v17  ;;  %2306 = vmatmul.mubr.bf16.gmra.mxu1 %v4053_v18 }
  0xc6   : > { %1929 = vmatprep.mubr.bf16.mxu0 %v4054_v19  ;;  %3754 = vmatprep.mubr.msk.bf16.mxu1 %vm1576_vm0, %v4056_v20 }
  0xcd   : > { %1930 = vmatmul.mubr.bf16.gmra.mxu0 %v4057_v21  ;;  %3755 = vmatmul.mubr.msk.bf16.vlgmr.msra.gmra.mxu1 %vm1576_vm0, %v4058_v22 }
  0xce   : > { %1937 = vmatprep.mubr.bf16.mxu0 %v4059_v23  ;;  %3758 = vmatprep.mubr.msk.bf16.mxu1 %vm1576_vm0, %v4061_v24  ;;  %v4112_v23 = vld [vmem:[%s4307_s29 + $0x288] ss:$12 sps:$4 sm:$0xff]   ;;  %v4113_v24 = vld [vmem:[%s4307_s29 + $0x230] ss:$12 sps:$4 sm:$0xff]  }
  0xd5   : > { %1938 = vmatmul.mubr.bf16.gmra.mxu0 %v4062_v25  ;;  %3759 = vmatmul.mubr.msk.bf16.gmra.mxu1 %vm1576_vm0, %v4063_v26  ;;  %v4116_v25 = vld [vmem:[%s4307_s29 + $0x2a4] ss:$12 sps:$4 sm:$0xff]   ;;  %v4117_v26 = vld [vmem:[%s4307_s29 + $0x248] ss:$12 sps:$4 sm:$0xff]  }
  0xd6   : > { %1945 = vmatprep.mubr.bf16.mxu0 %v4064_v27  ;;  %3762 = vmatprep.mubr.msk.bf16.mxu1 %vm1576_vm0, %v4066_v28 }
  0xdd   : > { %1946 = vmatmul.mubr.bf16.gmra.mxu0 %v4067_v29  ;;  %3763 = vmatmul.mubr.msk.bf16.gmra.mxu1 %vm1576_vm0, %v4068_v30 }
  0xde   : > { %1953 = vmatprep.mubr.bf16.mxu0 %v4069_v31  ;;  %3766 = vmatprep.mubr.msk.bf16.mxu1 %vm1576_vm0, %v4071_v32 }
  0xe5   : > { %1954 = vmatmul.mubr.bf16.gmra.mxu0 %v4072_v33  ;;  %3767 = vmatmul.mubr.msk.bf16.gmra.mxu1 %vm1576_vm0, %v4073_v34 }
  0xe6   : > { %1961 = vmatprep.mubr.bf16.mxu0 %v4074_v35  ;;  %3770 = vmatprep.mubr.msk.bf16.mxu1 %vm1576_vm0, %v4076_v36  ;;  %v4114_v35 = vld [vmem:[%s4307_s29 + $0x2a0] ss:$12 sps:$4 sm:$0xff]  }
  0xe7   : > { %v4118_v36 = vld [vmem:[%s4307_s29 + $0x260] ss:$12 sps:$4 sm:$0xff]  }
  0xed   : > { %1962 = vmatmul.mubr.bf16.gmra.mxu0 %v4077_v37  ;;  %3771 = vmatmul.mubr.msk.bf16.gmra.mxu1 %vm1576_vm0, %v4078_v38  ;;  %v4121_v37 = vld [vmem:[%s4307_s29 + $0x2bc] ss:$12 sps:$4 sm:$0xff]   ;;  %v4122_v38 = vld [vmem:[%s4307_s29 + $0x278] ss:$12 sps:$4 sm:$0xff]  }
  0xee   : > { %1969 = vmatprep.mubr.bf16.mxu0 %v4079_v39  ;;  %3774 = vmatprep.mubr.msk.bf16.mxu1 %vm1576_vm0, %v4081_v40 }
  0xf5   : > { %1970 = vmatmul.mubr.bf16.gmra.mxu0 %v4082_v41  ;;  %3775 = vmatmul.mubr.msk.bf16.gmra.mxu1 %vm1576_vm0, %v4083_v42 }
  0xf6   : > { %1977 = vmatprep.mubr.bf16.mxu0 %v4084_v43  ;;  %3778 = vmatprep.mubr.msk.bf16.mxu1 %vm1576_vm0, %v4086_v44 }
  0xfd   : > { %1978 = vmatmul.mubr.bf16.gmra.mxu0 %v4087_v45  ;;  %3779 = vmatmul.mubr.msk.bf16.gmra.mxu1 %vm1576_vm0, %v4088_v46 }
  0xfe   : > { %1985 = vmatprep.mubr.bf16.mxu0 %v4089_v47  ;;  %3782 = vmatprep.mubr.msk.bf16.mxu1 %vm1576_vm0, %v4091_v48  ;;  %v4119_v47 = vld [vmem:[%s4307_s29 + $0x2b8] ss:$12 sps:$4 sm:$0xff]   ;;  %v4123_v48 = vld [vmem:[%s4307_s29 + $0x290] ss:$12 sps:$4 sm:$0xff]  }
 0x105   : > { %1986 = vmatmul.mubr.bf16.gmra.mxu0 %v4092_v49  ;;  %3783 = vmatmul.mubr.msk.bf16.gmra.mxu1 %vm1576_vm0, %v4093_v50  ;;  %v4126_v49 = vld [vmem:[%s4307_s29 + $0x2d4] ss:$12 sps:$4 sm:$0xff]  }
 0x106   : > { %1993 = vmatprep.mubr.bf16.mxu0 %v4094_v51  ;;  %3786 = vmatprep.mubr.msk.bf16.mxu1 %vm1576_vm0, %v4096_v52  ;;  %v4127_v50 = vld [vmem:[%s4307_s29 + $0x2a8] ss:$12 sps:$4 sm:$0xff]  }
 0x10d   : > { %v4491_v57 = vpop.f32.mrf.mxu0  ;;  %1994 = vmatmul.mubr.bf16.gmra.mxu0 %v4097_v53  ;;  %v4493_v58 = vpop.f32.mrf.mxu1  ;;  %3787 = vmatmul.mubr.msk.bf16.gmra.mxu1 %vm1576_vm0, %v4098_v54 }
 0x10e   : > { %5527 = vst [vmem:[#allocation2_spill] sm:$0xff] %v4493_v58  ;;  %2001 = vmatprep.mubr.bf16.mxu0 %v4099_v55  ;;  %3790 = vmatprep.mubr.msk.bf16.mxu1 %vm1576_vm0, %v4101_v56 }
 0x10f   : > { %v1805_v59 = vpop.f32.mrf.mxu0  ;;  %v2189_v60 = vpop.f32.mrf.mxu1 }
 0x111   : > { %v4497_v61 = vpop.f32.mrf.mxu0  ;;  %v4499_v62 = vpop.f32.mrf.mxu1 }
 0x112   : > { %5528 = vst [vmem:[#allocation3_spill] sm:$0xff] %v4499_v62 }
 0x113   : > { %v1808_v3 = vpop.f32.mrf.mxu0  ;;  %v2192_v4 = vpop.f32.mrf.mxu1 }
 0x115   : > { %v4505_v5 = vpop.f32.mrf.mxu0  ;;  %2002 = vmatmul.mubr.bf16.gmra.mxu0 %v4102_v63  ;;  %v4507_v6 = vpop.f32.mrf.mxu1  ;;  %3791 = vmatmul.mubr.msk.bf16.gmra.mxu1 %vm1576_vm0, %v4103_v0  ;;  %v4124_v63 = vld [vmem:[%s4307_s29 + $0x2d0] ss:$12 sps:$4 sm:$0xff]   ;;  %v4128_v0 = vld [vmem:[%s4307_s29 + $0x2c0] ss:$12 sps:$4 sm:$0xff]  }
 0x116   : > { %5529 = vst [vmem:[#allocation4_spill] sm:$0xff] %v4507_v6  ;;  %2009 = vmatprep.mubr.bf16.mxu0 %v4104_v1  ;;  %3794 = vmatprep.mubr.msk.bf16.mxu1 %vm1576_vm0, %v4106_v2  ;;  %v4131_v1 = vld [vmem:[%s4307_s29 + $0x2ec] ss:$12 sps:$4 sm:$0xff]  }
 0x117   : > { %v1813_v7 = vpop.f32.mrf.mxu0  ;;  %v2197_v8 = vpop.f32.mrf.mxu1  ;;  %v4132_v2 = vld [vmem:[%s4307_s29 + $0x2d8] ss:$12 sps:$4 sm:$0xff]  }
 0x119   : > { %v4511_v9 = vpop.f32.mrf.mxu0  ;;  %v4513_v10 = vpop.f32.mrf.mxu1 }
 0x11a   : > { %5530 = vst [vmem:[#allocation5_spill] sm:$0xff] %v4513_v10 }
 0x11b   : > { %v1816_v15 = vpop.f32.mrf.mxu0  ;;  %v2200_v16 = vpop.f32.mrf.mxu1 }
 0x11c   : > { %v4129_v15 = vld [vmem:[%s4307_s29 + $0x2e8] ss:$12 sps:$4 sm:$0xff]   ;;  %v4133_v16 = vld [vmem:[%s4307_s29 + $0x2f0] ss:$12 sps:$4 sm:$0xff]  }
 0x11d   : > { %v4519_v17 = vpop.f32.mrf.mxu0  ;;  %2010 = vmatmul.mubr.bf16.gmra.mxu0 %v4107_v11  ;;  %v4521_v18 = vpop.f32.mrf.mxu1  ;;  %3795 = vmatmul.mubr.msk.bf16.gmra.mxu1 %vm1576_vm0, %v4108_v12 }
 0x11e   : > { %5531 = vst [vmem:[#allocation6_spill] sm:$0xff] %v4521_v18  ;;  %2017 = vmatprep.mubr.bf16.mxu0 %v4109_v13  ;;  %3798 = vmatprep.mubr.msk.bf16.mxu1 %vm1576_vm0, %v4111_v14 }
 0x11f   : > { %v1821_v19 = vpop.f32.mrf.mxu0  ;;  %v2205_v20 = vpop.f32.mrf.mxu1 }
 0x120   : > { %v4136_v19 = vld [vmem:[%s4307_s29 + $0x304] ss:$12 sps:$4 sm:$0xff]   ;;  %v4137_v20 = vld [vmem:[%s4307_s29 + $0x308] ss:$12 sps:$4 sm:$0xff]  }
 0x121   : > { %v4525_v21 = vpop.f32.mrf.mxu0  ;;  %v4527_v22 = vpop.f32.mrf.mxu1 }
 0x122   : > { %5532 = vst [vmem:[#allocation7_spill] sm:$0xff] %v4527_v22  ;;  %v4209_v22 = vld [vmem:[%s4307_s29 + $0x468] ss:$12 sps:$4 sm:$0xff]  }
 0x123   : > { %v1824_v27 = vpop.f32.mrf.mxu0  ;;  %v2208_v28 = vpop.f32.mrf.mxu1 }
 0x125   : > { %v4533_v29 = vpop.f32.mrf.mxu0  ;;  %2018 = vmatmul.mubr.bf16.gmra.mxu0 %v4112_v23  ;;  %v4535_v30 = vpop.f32.mrf.mxu1  ;;  %3799 = vmatmul.mubr.msk.bf16.gmra.mxu1 %vm1576_vm0, %v4113_v24 }
 0x126   : > { %5533 = vst [vmem:[#allocation8_spill] sm:$0xff] %v4535_v30  ;;  %2025 = vmatprep.mubr.bf16.mxu0 %v4116_v25  ;;  %3802 = vmatprep.mubr.msk.bf16.mxu1 %vm1576_vm0, %v4117_v26 }
 0x127   : > { %v1829_v31 = vpop.f32.mrf.mxu0  ;;  %v2213_v32 = vpop.f32.mrf.mxu1 }
 0x129   : > { %v4539_v33 = vpop.f32.mrf.mxu0  ;;  %v4541_v34 = vpop.f32.mrf.mxu1 }
 0x12a   : > { %5534 = vst [vmem:[#allocation9_spill] sm:$0xff] %v4541_v34  ;;  %v4208_v34 = vld [vmem:[%s4307_s29 + $0x5c0] ss:$12 sps:$4 sm:$0xff]  }
 0x12b   : > { %v1832_v39 = vpop.f32.mrf.mxu0  ;;  %v2216_v40 = vpop.f32.mrf.mxu1 }
 0x12d   : > { %v4547_v41 = vpop.f32.mrf.mxu0  ;;  %2026 = vmatmul.mubr.bf16.gmra.mxu0 %v4114_v35  ;;  %v4549_v42 = vpop.f32.mrf.mxu1  ;;  %3803 = vmatmul.mubr.msk.bf16.gmra.mxu1 %vm1576_vm0, %v4118_v36  ;;  %v4134_v35 = vld [vmem:[%s4307_s29 + $0x300] ss:$12 sps:$4 sm:$0xff]  }
 0x12e   : > { %5535 = vst [vmem:[#allocation10_spill] sm:$0xff] %v4549_v42  ;;  %2033 = vmatprep.mubr.bf16.mxu0 %v4121_v37  ;;  %3806 = vmatprep.mubr.msk.bf16.mxu1 %vm1576_vm0, %v4122_v38  ;;  %v4138_v36 = vld [vmem:[%s4307_s29 + $0x320] ss:$12 sps:$4 sm:$0xff]   ;;  %v4141_v37 = vld [vmem:[%s4307_s29 + $0x31c] ss:$12 sps:$4 sm:$0xff]  }
 0x12f   : > { %v1837_v43 = vpop.f32.mrf.mxu0  ;;  %v2221_v44 = vpop.f32.mrf.mxu1  ;;  %v4142_v38 = vld [vmem:[%s4307_s29 + $0x338] ss:$12 sps:$4 sm:$0xff]  }
 0x131   : > { %v4553_v45 = vpop.f32.mrf.mxu0  ;;  %v4555_v46 = vpop.f32.mrf.mxu1 }
 0x132   : > { %5536 = vst [vmem:[#allocation11_spill] sm:$0xff] %v4555_v46  ;;  %v4203_v46 = vld [vmem:[%s4307_s29 + $0x590] ss:$12 sps:$4 sm:$0xff]  }
 0x133   : > { %v1840_v51 = vpop.f32.mrf.mxu0  ;;  %v2224_v52 = vpop.f32.mrf.mxu1 }
 0x134   : > { %v4139_v51 = vld [vmem:[%s4307_s29 + $0x318] ss:$12 sps:$4 sm:$0xff]   ;;  %v4143_v52 = vld [vmem:[%s4307_s29 + $0x350] ss:$12 sps:$4 sm:$0xff]  }
 0x135   : > { %v4561_v53 = vpop.f32.mrf.mxu0  ;;  %2034 = vmatmul.mubr.bf16.gmra.mxu0 %v4119_v47  ;;  %v4563_v54 = vpop.f32.mrf.mxu1  ;;  %3807 = vmatmul.mubr.msk.bf16.gmra.mxu1 %vm1576_vm0, %v4123_v48 }
 0x136   : > { %5537 = vst [vmem:[#allocation12_spill] sm:$0xff] %v4563_v54  ;;  %2041 = vmatprep.mubr.bf16.mxu0 %v4126_v49  ;;  %3810 = vmatprep.mubr.msk.bf16.mxu1 %vm1576_vm0, %v4127_v50 }
 0x137   : > { %v1845_v55 = vpop.f32.mrf.mxu0  ;;  %v2229_v56 = vpop.f32.mrf.mxu1 }
 0x138   : > { %v4146_v55 = vld [vmem:[%s4307_s29 + $0x334] ss:$12 sps:$4 sm:$0xff]  }
 0x139   : > { %v4567_v59 = vpop.f32.mrf.mxu0  ;;  %v4569_v60 = vpop.f32.mrf.mxu1  ;;  %v4147_v56 = vld [vmem:[%s4307_s29 + $0x368] ss:$12 sps:$4 sm:$0xff]  }
 0x13a   : > { %5538 = vst [vmem:[#allocation13_spill] sm:$0xff] %v4569_v60  ;;  %v4198_v60 = vld [vmem:[%s4307_s29 + $0x560] ss:$12 sps:$4 sm:$0xff]  }
 0x13b   : > { %v1848_v3 = vpop.f32.mrf.mxu0  ;;  %v2232_v4 = vpop.f32.mrf.mxu1 }
 0x13d   : > { %v4575_v7 = vpop.f32.mrf.mxu0  ;;  %2042 = vmatmul.mubr.bf16.gmra.mxu0 %v4124_v63  ;;  %v4577_v8 = vpop.f32.mrf.mxu1  ;;  %3811 = vmatmul.mubr.msk.bf16.gmra.mxu1 %vm1576_vm0, %v4128_v0 }
 0x13e   : > { %5539 = vst [vmem:[#allocation14_spill] sm:$0xff] %v4577_v8  ;;  %2049 = vmatprep.mubr.bf16.mxu0 %v4131_v1  ;;  %3814 = vmatprep.mubr.msk.bf16.mxu1 %vm1576_vm0, %v4132_v2 }
 0x13f   : > { %v1853_v11 = vpop.f32.mrf.mxu0  ;;  %v2237_v12 = vpop.f32.mrf.mxu1 }
 0x141   : > { %v4581_v13 = vpop.f32.mrf.mxu0  ;;  %v4583_v14 = vpop.f32.mrf.mxu1 }
 0x142   : > { %5540 = vst [vmem:[#allocation15_spill] sm:$0xff] %v4583_v14  ;;  %v4193_v14 = vld [vmem:[%s4307_s29 + $0x530] ss:$12 sps:$4 sm:$0xff]  }
 0x143   : > { %v1856_v23 = vpop.f32.mrf.mxu0  ;;  %v2240_v24 = vpop.f32.mrf.mxu1 }
 0x145   : > { %v4589_v25 = vpop.f32.mrf.mxu0  ;;  %2050 = vmatmul.mubr.bf16.gmra.mxu0 %v4129_v15  ;;  %v4591_v26 = vpop.f32.mrf.mxu1  ;;  %3815 = vmatmul.mubr.msk.bf16.gmra.mxu1 %vm1576_vm0, %v4133_v16  ;;  %v4144_v15 = vld [vmem:[%s4307_s29 + $0x330] ss:$12 sps:$4 sm:$0xff]   ;;  %v4148_v16 = vld [vmem:[%s4307_s29 + $0x380] ss:$12 sps:$4 sm:$0xff]  }
 0x146   : > { %5541 = vst [vmem:[#allocation16_spill] sm:$0xff] %v4591_v26  ;;  %2057 = vmatprep.mubr.bf16.mxu0 %v4136_v19  ;;  %3818 = vmatprep.mubr.msk.bf16.mxu1 %vm1576_vm0, %v4137_v20  ;;  %v4151_v19 = vld [vmem:[%s4307_s29 + $0x34c] ss:$12 sps:$4 sm:$0xff]  }
 0x147   : > { %v1861_v27 = vpop.f32.mrf.mxu0  ;;  %v2245_v28 = vpop.f32.mrf.mxu1  ;;  %v4152_v20 = vld [vmem:[%s4307_s29 + $0x398] ss:$12 sps:$4 sm:$0xff]  }
 0x149   : > { %v4595_v31 = vpop.f32.mrf.mxu0  ;;  %v4597_v32 = vpop.f32.mrf.mxu1 }
 0x14a   : > { %5542 = vst [vmem:[#allocation17_spill] sm:$0xff] %v4597_v32  ;;  %v4188_v32 = vld [vmem:[%s4307_s29 + $0x500] ss:$12 sps:$4 sm:$0xff]  }
 0x14b   : > { %v1864_v39 = vpop.f32.mrf.mxu0  ;;  %v2248_v40 = vpop.f32.mrf.mxu1 }
 0x14c   : > { %v4149_v39 = vld [vmem:[%s4307_s29 + $0x348] ss:$12 sps:$4 sm:$0xff]   ;;  %v4153_v40 = vld [vmem:[%s4307_s29 + $0x3b0] ss:$12 sps:$4 sm:$0xff]  }
 0x14d   : > { %v4603_v43 = vpop.f32.mrf.mxu0  ;;  %2058 = vmatmul.mubr.bf16.gmra.mxu0 %v4134_v35  ;;  %v4605_v44 = vpop.f32.mrf.mxu1  ;;  %3819 = vmatmul.mubr.msk.bf16.gmra.mxu1 %vm1576_vm0, %v4138_v36 }
 0x14e   : > { %5543 = vst [vmem:[#allocation18_spill] sm:$0xff] %v4605_v44  ;;  %2065 = vmatprep.mubr.bf16.mxu0 %v4141_v37  ;;  %3822 = vmatprep.mubr.msk.bf16.mxu1 %vm1576_vm0, %v4142_v38 }
 0x14f   : > { %v1869_v47 = vpop.f32.mrf.mxu0  ;;  %v2253_v48 = vpop.f32.mrf.mxu1 }
 0x150   : > { %v4156_v47 = vld [vmem:[%s4307_s29 + $0x364] ss:$12 sps:$4 sm:$0xff]   ;;  %v4157_v48 = vld [vmem:[%s4307_s29 + $0x3c8] ss:$12 sps:$4 sm:$0xff]  }
 0x151   : > { %v4609_v49 = vpop.f32.mrf.mxu0  ;;  %v4611_v50 = vpop.f32.mrf.mxu1 }
 0x152   : > { %5544 = vst [vmem:[#allocation19_spill] sm:$0xff] %v4611_v50  ;;  %v4183_v50 = vld [vmem:[%s4307_s29 + $0x4d0] ss:$12 sps:$4 sm:$0xff]  }
 0x153   : > { %v1872_v63 = vpop.f32.mrf.mxu0  ;;  %v2256_v0 = vpop.f32.mrf.mxu1 }
 0x155   : > { %v4617_v1 = vpop.f32.mrf.mxu0  ;;  %2066 = vmatmul.mubr.bf16.gmra.mxu0 %v4139_v51  ;;  %v4619_v2 = vpop.f32.mrf.mxu1  ;;  %3823 = vmatmul.mubr.msk.bf16.gmra.mxu1 %vm1576_vm0, %v4143_v52 }
 0x156   : > { %5545 = vst [vmem:[#allocation20_spill] sm:$0xff] %v4619_v2  ;;  %2073 = vmatprep.mubr.bf16.mxu0 %v4146_v55  ;;  %3826 = vmatprep.mubr.msk.bf16.mxu1 %vm1576_vm0, %v4147_v56 }
 0x157   : > { %v1877_v3 = vpop.f32.mrf.mxu0  ;;  %v2261_v4 = vpop.f32.mrf.mxu1 }
 0x159   : > { %v4623_v11 = vpop.f32.mrf.mxu0  ;;  %v4625_v12 = vpop.f32.mrf.mxu1 }
 0x15a   : > { %5546 = vst [vmem:[#allocation21_spill] sm:$0xff] %v4625_v12 }
 0x15b   : > { %v1880_v23 = vpop.f32.mrf.mxu0  ;;  %v2264_v24 = vpop.f32.mrf.mxu1 }
 0x15d   : > { %v4631_v27 = vpop.f32.mrf.mxu0  ;;  %2074 = vmatmul.mubr.bf16.gmra.mxu0 %v4144_v15  ;;  %v4633_v28 = vpop.f32.mrf.mxu1  ;;  %3827 = vmatmul.mubr.msk.bf16.gmra.mxu1 %vm1576_vm0, %v4148_v16  ;;  %v4154_v15 = vld [vmem:[%s4307_s29 + $0x360] ss:$12 sps:$4 sm:$0xff]  }
 0x15e   : > { %5547 = vst [vmem:[#allocation22_spill] sm:$0xff] %v4633_v28  ;;  %2081 = vmatprep.mubr.bf16.mxu0 %v4151_v19  ;;  %3830 = vmatprep.mubr.msk.bf16.mxu1 %vm1576_vm0, %v4152_v20  ;;  %v4158_v16 = vld [vmem:[%s4307_s29 + $0x3e0] ss:$12 sps:$4 sm:$0xff]   ;;  %v4161_v19 = vld [vmem:[%s4307_s29 + $0x37c] ss:$12 sps:$4 sm:$0xff]  }
 0x15f   : > { %v1885_v35 = vpop.f32.mrf.mxu0  ;;  %v2269_v36 = vpop.f32.mrf.mxu1  ;;  %v4162_v20 = vld [vmem:[%s4307_s29 + $0x3f8] ss:$12 sps:$4 sm:$0xff]   ;;  %v4178_v28 = vld [vmem:[%s4307_s29 + $0x4a0] ss:$12 sps:$4 sm:$0xff]  }
 0x161   : > { %v4637_v37 = vpop.f32.mrf.mxu0  ;;  %v4639_v38 = vpop.f32.mrf.mxu1 }
 0x162   : > { %5548 = vst [vmem:[#allocation23_spill] sm:$0xff] %v4639_v38  ;;  %v4174_v38 = vld [vmem:[%s4307_s29 + $0x3c0] ss:$12 sps:$4 sm:$0xff]  }
 0x163   : > { %v1888_v51 = vpop.f32.mrf.mxu0  ;;  %v2272_v52 = vpop.f32.mrf.mxu1 }
 0x164   : > { %v4159_v51 = vld [vmem:[%s4307_s29 + $0x378] ss:$12 sps:$4 sm:$0xff]   ;;  %v4163_v52 = vld [vmem:[%s4307_s29 + $0x410] ss:$12 sps:$4 sm:$0xff]  }
 0x165   : > { %v4645_v55 = vpop.f32.mrf.mxu0  ;;  %2082 = vmatmul.mubr.bf16.gmra.mxu0 %v4149_v39  ;;  %v4647_v56 = vpop.f32.mrf.mxu1  ;;  %3831 = vmatmul.mubr.msk.bf16.gmra.mxu1 %vm1576_vm0, %v4153_v40 }
 0x166   : > { %5549 = vst [vmem:[#allocation24_spill] sm:$0xff] %v4647_v56  ;;  %2089 = vmatprep.mubr.bf16.mxu0 %v4156_v47  ;;  %3834 = vmatprep.mubr.msk.bf16.mxu1 %vm1576_vm0, %v4157_v48 }
 0x167   : > { %v1893_v63 = vpop.f32.mrf.mxu0  ;;  %v2277_v0 = vpop.f32.mrf.mxu1 }
 0x168   : > { %v4166_v63 = vld [vmem:[%s4307_s29 + $0x394] ss:$12 sps:$4 sm:$0xff]  }
 0x169   : > { %v4651_v3 = vpop.f32.mrf.mxu0  ;;  %v4653_v4 = vpop.f32.mrf.mxu1  ;;  %v4167_v0 = vld [vmem:[%s4307_s29 + $0x428] ss:$12 sps:$4 sm:$0xff]  }
 0x16a   : > { %5550 = vst [vmem:[#allocation25_spill] sm:$0xff] %v4653_v4  ;;  %v4169_v4 = vld [vmem:[%s4307_s29 + $0x3a8] ss:$12 sps:$4 sm:$0xff]  }
 0x16b   : > { %v1896_v23 = vpop.f32.mrf.mxu0  ;;  %v2280_v24 = vpop.f32.mrf.mxu1 }
 0x16d   : > { %v4659_v35 = vpop.f32.mrf.mxu0  ;;  %2090 = vmatmul.mubr.bf16.gmra.mxu0 %v4154_v15  ;;  %v4661_v36 = vpop.f32.mrf.mxu1  ;;  %3835 = vmatmul.mubr.msk.bf16.gmra.mxu1 %vm1576_vm0, %v4158_v16 }
 0x16e   : > { %5551 = vst [vmem:[#allocation26_spill] sm:$0xff] %v4661_v36  ;;  %2097 = vmatprep.mubr.bf16.mxu0 %v4161_v19  ;;  %3838 = vmatprep.mubr.msk.bf16.mxu1 %vm1576_vm0, %v4162_v20 }
 0x16f   : > { %v1901_v39 = vpop.f32.mrf.mxu0  ;;  %v2285_v40 = vpop.f32.mrf.mxu1 }
 0x171   : > { %v4665_v47 = vpop.f32.mrf.mxu0  ;;  %v4667_v48 = vpop.f32.mrf.mxu1 }
 0x172   : > { %5552 = vst [vmem:[#allocation27_spill] sm:$0xff] %v4667_v48  ;;  %v4164_v48 = vld [vmem:[%s4307_s29 + $0x390] ss:$12 sps:$4 sm:$0xff]  }
 0x173   : > { %v1904_v15 = vpop.f32.mrf.mxu0  ;;  %v2288_v23 = vpop.f32.mrf.mxu1 }
 0x174   : > { %v4168_v15 = vld [vmem:[%s4307_s29 + $0x440] ss:$12 sps:$4 sm:$0xff]  }
 0x175   : > { %v4673_v16 = vpop.f32.mrf.mxu0  ;;  %2098 = vmatmul.mubr.bf16.gmra.mxu0 %v4159_v51  ;;  %v4675_v19 = vpop.f32.mrf.mxu1  ;;  %3839 = vmatmul.mubr.msk.bf16.gmra.mxu1 %vm1576_vm0, %v4163_v52  ;;  %v4171_v23 = vld [vmem:[%s4307_s29 + $0x3ac] ss:$12 sps:$4 sm:$0xff]  }
 0x176   : > { %5553 = vst [vmem:[#allocation28_spill] sm:$0xff] %v4675_v19  ;;  %2105 = vmatprep.mubr.bf16.mxu0 %v4166_v63  ;;  %3842 = vmatprep.mubr.msk.bf16.mxu1 %vm1576_vm0, %v4167_v0  ;;  %v4172_v51 = vld [vmem:[%s4307_s29 + $0x458] ss:$12 sps:$4 sm:$0xff]  }
 0x177   : > { %v1909_v20 = vpop.f32.mrf.mxu0  ;;  %v2293_v24 = vpop.f32.mrf.mxu1 }
 0x179   : > { %v4679_v39 = vpop.f32.mrf.mxu0  ;;  %v4681_v40 = vpop.f32.mrf.mxu1 }
 0x17a   : > { %5554 = vst [vmem:[#allocation29_spill] sm:$0xff] %v4681_v40 }
 0x17b   : > { %v1912_v19 = vpop.f32.mrf.mxu0  ;;  %v2296_v36 = vpop.f32.mrf.mxu1 }
 0x17c   : > { %v4173_v19 = vld [vmem:[%s4307_s29 + $0x470] ss:$12 sps:$4 sm:$0xff]  }
 0x17d   : > { %v4687_v52 = vpop.f32.mrf.mxu0  ;;  %2106 = vmatmul.mubr.bf16.gmra.mxu0 %v4164_v48  ;;  %v4689_v63 = vpop.f32.mrf.mxu1  ;;  %3843 = vmatmul.mubr.msk.bf16.gmra.mxu1 %vm1576_vm0, %v4168_v15  ;;  %v4176_v36 = vld [vmem:[%s4307_s29 + $0x3c4] ss:$12 sps:$4 sm:$0xff]   ;;  %v4177_v48 = vld [vmem:[%s4307_s29 + $0x488] ss:$12 sps:$4 sm:$0xff]  }
 0x17e   : > { %5555 = vst [vmem:[#allocation30_spill] sm:$0xff] %v4689_v63  ;;  %2113 = vmatprep.mubr.bf16.mxu0 %v4171_v23  ;;  %3846 = vmatprep.mubr.msk.bf16.mxu1 %vm1576_vm0, %v4172_v51 }
 0x17f   : > { %v1917_v0 = vpop.f32.mrf.mxu0  ;;  %v2301_v20 = vpop.f32.mrf.mxu1 }
 0x181   : > { %v4693_v24 = vpop.f32.mrf.mxu0  ;;  %v4695_v40 = vpop.f32.mrf.mxu1 }
 0x182   : > { %5556 = vst [vmem:[#allocation31_spill] sm:$0xff] %v4695_v40 }
 0x183   : > { %v1920_v63 = vpop.f32.mrf.mxu0  ;;  %v2304_v56 = vpop.f32.mrf.mxu1 }
 0x184   : > { %v4181_v63 = vld [vmem:[%s4307_s29 + $0x3dc] ss:$12 sps:$4 sm:$0xff]   ;;  %v4182_v56 = vld [vmem:[%s4307_s29 + $0x4b8] ss:$12 sps:$4 sm:$0xff]  }
 0x185   : > { %v4701_v15 = vpop.f32.mrf.mxu0  ;;  %2114 = vmatmul.mubr.bf16.gmra.mxu0 %v4169_v4  ;;  %v4703_v23 = vpop.f32.mrf.mxu1  ;;  %3847 = vmatmul.mubr.msk.bf16.gmra.mxu1 %vm1576_vm0, %v4173_v19  ;;  %v4718_v4 = vld [vmem:[%s5525_s2] ss:$0 sm:$0xff] }
 0x186   : > { %5557 = vst [vmem:[#allocation32_spill] sm:$0xff] %v4703_v23  ;;  %2121 = vmatprep.mubr.bf16.mxu0 %v4176_v36  ;;  %3850 = vmatprep.mubr.msk.bf16.mxu1 %vm1576_vm0, %v4177_v48  ;;  %v1812_v36 = vadd.f32 %v4718_v4, %v4505_v5  ;;  %v1815_v5 = vadd.f32 %v4718_v4, %v4511_v9 }
 0x187   : > { %v1925_v51 = vpop.f32.mrf.mxu0  ;;  %v2309_v0 = vpop.f32.mrf.mxu1  ;;  %v1828_v44 = vadd.f32 %v4718_v4, %v4533_v29  ;;  %v1844_v26 = vadd.f32 %v4718_v4, %v4561_v53  ;;  %v1860_v8 = vadd.f32 %v4718_v4, %v4589_v25  ;;  %v1876_v54 = vadd.f32 %v4718_v4, %v4617_v1 }
 0x188   : > { %v1804_v0 = vadd.f32 %v4718_v4, %v4491_v57  ;;  %v1807_v57 = vadd.f32 %v4718_v4, %v4497_v61  ;;  %v1820_v61 = vadd.f32 %v4718_v4, %v4519_v17  ;;  %v1823_v17 = vadd.f32 %v4718_v4, %v4525_v21 }
 0x189   : > { %v4707_v20 = vpop.f32.mrf.mxu0  ;;  %v4709_v40 = vpop.f32.mrf.mxu1  ;;  %v1836_v21 = vadd.f32 %v4718_v4, %v4547_v41  ;;  %v1839_v41 = vadd.f32 %v4718_v4, %v4553_v45  ;;  %v1852_v45 = vadd.f32 %v4718_v4, %v4575_v7  ;;  %v1855_v7 = vadd.f32 %v4718_v4, %v4581_v13 }
 0x18a   : > { %5558 = vst [vmem:[#allocation33_spill] sm:$0xff] %v4709_v40  ;;  %v1868_v13 = vadd.f32 %v4718_v4, %v4603_v43  ;;  %v1871_v43 = vadd.f32 %v4718_v4, %v4609_v49  ;;  %v1892_v42 = vadd.f32 %v4718_v4, %v4645_v55  ;;  %v1884_v49 = vadd.f32 %v4718_v4, %v4631_v27 }
 0x18b   : > { %v1928_v23 = vpop.f32.mrf.mxu0  ;;  %v2312_v19 = vpop.f32.mrf.mxu1  ;;  %v1887_v27 = vadd.f32 %v4718_v4, %v4637_v37  ;;  %v1908_v30 = vadd.f32 %v4718_v4, %v4673_v16  ;;  %v1900_v37 = vadd.f32 %v4718_v4, %v4659_v35  ;;  %v1903_v35 = vadd.f32 %v4718_v4, %v4665_v47 }
 0x18d   : > { %v4722_v48 = vpop.f32.mrf.mxu0  ;;  %2122 = vmatmul.mubr.bf16.gmra.mxu0 %v4174_v38  ;;  %v3756_v51 = vpop.f32.mrf.mxu1  ;;  %3851 = vmatmul.mubr.msk.bf16.gmra.mxu1 %vm1576_vm0, %v4178_v28  ;;  %v4179_v28 = vld [vmem:[%s4307_s29 + $0x3d8] ss:$12 sps:$4 sm:$0xff]  }
 0x18e   : > { %v4727_v40 = vadd.f32 %v3756_v51, %v1812_v36  ;;  %2129 = vmatprep.mubr.bf16.mxu0 %v4181_v63  ;;  %3854 = vmatprep.mubr.msk.bf16.mxu1 %vm1576_vm0, %v4182_v56  ;;  %v4186_v63 = vld [vmem:[%s4307_s29 + $0x3f4] ss:$12 sps:$4 sm:$0xff]  }
 0x18f   : > { %v1933_v23 = vpop.f32.mrf.mxu0  ;;  %v2348_v19 = vpop.f32.mrf.mxu1  ;;  %v4187_v51 = vld [vmem:[%s4307_s29 + $0x4e8] ss:$12 sps:$4 sm:$0xff]  }
 0x190   : > { %v4732_v12 = vadd.f32 %v2348_v19, %v1804_v0 }
 0x191   : > { %v4734_v38 = vpop.f32.mrf.mxu0  ;;  %v3757_v2 = vpop.f32.mrf.mxu1 }
 0x192   : > { %v4740_v36 = vadd.f32 %v3757_v2, %v1815_v5  ;;  %v1935_v62 = vadd.f32 %v4718_v4, %v4734_v38 }
 0x193   : > { %v1936_v56 = vpop.f32.mrf.mxu0  ;;  %v2351_v23 = vpop.f32.mrf.mxu1 }
 0x194   : > { %v4746_v9 = vadd.f32 %v2351_v23, %v1807_v57  ;;  %v1831_v57 = vadd.f32 %v4718_v4, %v4539_v33 }
 0x195   : > { %v4748_v0 = vpop.f32.mrf.mxu0  ;;  %2130 = vmatmul.mubr.bf16.gmra.mxu0 %v4179_v28  ;;  %v3760_v19 = vpop.f32.mrf.mxu1  ;;  %3855 = vmatmul.mubr.msk.bf16.gmra.mxu1 %vm1576_vm0, %v4183_v50  ;;  %v4184_v50 = vld [vmem:[%s4307_s29 + $0x3f0] ss:$12 sps:$4 sm:$0xff]  }
 0x196   : > { %v4753_v2 = vadd.f32 %v3760_v19, %v1828_v44  ;;  %2137 = vmatprep.mubr.bf16.mxu0 %v4186_v63  ;;  %3858 = vmatprep.mubr.msk.bf16.mxu1 %vm1576_vm0, %v4187_v51  ;;  %v4191_v63 = vld [vmem:[%s4307_s29 + $0x40c] ss:$12 sps:$4 sm:$0xff]  }
 0x197   : > { %v1941_v29 = vpop.f32.mrf.mxu0  ;;  %v2364_v5 = vpop.f32.mrf.mxu1  ;;  %v4192_v19 = vld [vmem:[%s4307_s29 + $0x518] ss:$12 sps:$4 sm:$0xff]  }
 0x198   : > { %v4758_v56 = vadd.f32 %v2364_v5, %v1820_v61 }
 0x199   : > { %v4760_v28 = vpop.f32.mrf.mxu0  ;;  %v3761_v23 = vpop.f32.mrf.mxu1 }
 0x19a   : > { %v4766_v44 = vadd.f32 %v3761_v23, %v1831_v57 }
 0x19b   : > { %v1944_v51 = vpop.f32.mrf.mxu0  ;;  %v2367_v29 = vpop.f32.mrf.mxu1 }
 0x19c   : > { %v4772_v33 = vadd.f32 %v2367_v29, %v1823_v17  ;;  %v1847_v17 = vadd.f32 %v4718_v4, %v4567_v59 }
 0x19d   : > { %v4774_v61 = vpop.f32.mrf.mxu0  ;;  %2138 = vmatmul.mubr.bf16.gmra.mxu0 %v4184_v50  ;;  %v3764_v5 = vpop.f32.mrf.mxu1  ;;  %3859 = vmatmul.mubr.msk.bf16.gmra.mxu1 %vm1576_vm0, %v4188_v32  ;;  %v4189_v32 = vld [vmem:[%s4307_s29 + $0x408] ss:$12 sps:$4 sm:$0xff]  }
 0x19e   : > { %v4779_v57 = vadd.f32 %v3764_v5, %v1844_v26  ;;  %2145 = vmatprep.mubr.bf16.mxu0 %v4191_v63  ;;  %3862 = vmatprep.mubr.msk.bf16.mxu1 %vm1576_vm0, %v4192_v19  ;;  %v4196_v63 = vld [vmem:[%s4307_s29 + $0x424] ss:$12 sps:$4 sm:$0xff]   ;;  %v4197_v5 = vld [vmem:[%s4307_s29 + $0x548] ss:$12 sps:$4 sm:$0xff]  }
 0x19f   : > { %v1949_v53 = vpop.f32.mrf.mxu0  ;;  %v2380_v23 = vpop.f32.mrf.mxu1 }
 0x1a0   : > { %v4784_v51 = vadd.f32 %v2380_v23, %v1836_v21 }
 0x1a1   : > { %v4786_v50 = vpop.f32.mrf.mxu0  ;;  %v3765_v29 = vpop.f32.mrf.mxu1 }
 0x1a2   : > { %v4792_v26 = vadd.f32 %v3765_v29, %v1847_v17 }
 0x1a3   : > { %v1952_v19 = vpop.f32.mrf.mxu0  ;;  %v2383_v53 = vpop.f32.mrf.mxu1 }
 0x1a4   : > { %v4798_v59 = vadd.f32 %v2383_v53, %v1839_v41  ;;  %v1863_v41 = vadd.f32 %v4718_v4, %v4595_v31 }
 0x1a5   : > { %v4800_v21 = vpop.f32.mrf.mxu0  ;;  %2146 = vmatmul.mubr.bf16.gmra.mxu0 %v4189_v32  ;;  %v3768_v23 = vpop.f32.mrf.mxu1  ;;  %3863 = vmatmul.mubr.msk.bf16.gmra.mxu1 %vm1576_vm0, %v4193_v14  ;;  %v4194_v14 = vld [vmem:[%s4307_s29 + $0x420] ss:$12 sps:$4 sm:$0xff]  }
 0x1a6   : > { %v4805_v17 = vadd.f32 %v3768_v23, %v1860_v8  ;;  %2153 = vmatprep.mubr.bf16.mxu0 %v4196_v63  ;;  %3866 = vmatprep.mubr.msk.bf16.mxu1 %vm1576_vm0, %v4197_v5  ;;  %v4201_v63 = vld [vmem:[%s4307_s29 + $0x43c] ss:$12 sps:$4 sm:$0xff]   ;;  %v4202_v23 = vld [vmem:[%s4307_s29 + $0x578] ss:$12 sps:$4 sm:$0xff]  }
 0x1a7   : > { %v1957_v25 = vpop.f32.mrf.mxu0  ;;  %v2396_v29 = vpop.f32.mrf.mxu1 }
 0x1a8   : > { %v4810_v19 = vadd.f32 %v2396_v29, %v1852_v45 }
 0x1a9   : > { %v4812_v32 = vpop.f32.mrf.mxu0  ;;  %v3769_v53 = vpop.f32.mrf.mxu1 }
 0x1aa   : > { %v4818_v8 = vadd.f32 %v3769_v53, %v1863_v41 }
 0x1ab   : > { %v1960_v5 = vpop.f32.mrf.mxu0  ;;  %v2399_v25 = vpop.f32.mrf.mxu1 }
 0x1ac   : > { %v4824_v31 = vadd.f32 %v2399_v25, %v1855_v7  ;;  %v1879_v7 = vadd.f32 %v4718_v4, %v4623_v11 }
 0x1ad   : > { %v4826_v45 = vpop.f32.mrf.mxu0  ;;  %2154 = vmatmul.mubr.bf16.gmra.mxu0 %v4194_v14  ;;  %v3772_v29 = vpop.f32.mrf.mxu1  ;;  %3867 = vmatmul.mubr.msk.bf16.gmra.mxu1 %vm1576_vm0, %v4198_v60  ;;  %v4199_v60 = vld [vmem:[%s4307_s29 + $0x438] ss:$12 sps:$4 sm:$0xff]  }
 0x1ae   : > { %v4831_v41 = vadd.f32 %v3772_v29, %v1876_v54  ;;  %2161 = vmatprep.mubr.bf16.mxu0 %v4201_v63  ;;  %3870 = vmatprep.mubr.msk.bf16.mxu1 %vm1576_vm0, %v4202_v23  ;;  %v4206_v63 = vld [vmem:[%s4307_s29 + $0x454] ss:$12 sps:$4 sm:$0xff]  }
 0x1af   : > { %v1965_v1 = vpop.f32.mrf.mxu0  ;;  %v2412_v53 = vpop.f32.mrf.mxu1  ;;  %v4207_v29 = vld [vmem:[%s4307_s29 + $0x5a8] ss:$12 sps:$4 sm:$0xff]  }
 0x1b0   : > { %v4836_v5 = vadd.f32 %v2412_v53, %v1868_v13 }
 0x1b1   : > { %v4838_v14 = vpop.f32.mrf.mxu0  ;;  %v3773_v25 = vpop.f32.mrf.mxu1 }
 0x1b2   : > { %v4844_v54 = vadd.f32 %v3773_v25, %v1879_v7 }
 0x1b3   : > { %v1968_v23 = vpop.f32.mrf.mxu0  ;;  %v2415_v1 = vpop.f32.mrf.mxu1 }
 0x1b4   : > { %v4850_v11 = vadd.f32 %v2415_v1, %v1871_v43  ;;  %v1895_v43 = vadd.f32 %v4718_v4, %v4651_v3 }
 0x1b5   : > { %v4852_v13 = vpop.f32.mrf.mxu0  ;;  %2162 = vmatmul.mubr.bf16.gmra.mxu0 %v4199_v60  ;;  %v3776_v53 = vpop.f32.mrf.mxu1  ;;  %3871 = vmatmul.mubr.msk.bf16.gmra.mxu1 %vm1576_vm0, %v4203_v46  ;;  %v4204_v46 = vld [vmem:[%s4307_s29 + $0x450] ss:$12 sps:$4 sm:$0xff]  }
 0x1b6   : > { %v4857_v7 = vadd.f32 %v3776_v53, %v1892_v42  ;;  %2169 = vmatprep.mubr.bf16.mxu0 %v4206_v63  ;;  %3874 = vmatprep.mubr.msk.bf16.mxu1 %vm1576_vm0, %v4207_v29  ;;  %v4211_v63 = vld [vmem:[%s4307_s29 + $0x46c] ss:$12 sps:$4 sm:$0xff]  }
 0x1b7   : > { %v1973_v55 = vpop.f32.mrf.mxu0  ;;  %v2428_v25 = vpop.f32.mrf.mxu1  ;;  %v4212_v53 = vld [vmem:[%s4307_s29 + $0x5d8] ss:$12 sps:$4 sm:$0xff]  }
 0x1b8   : > { %v4862_v23 = vadd.f32 %v2428_v25, %v1884_v49 }
 0x1b9   : > { %v4864_v60 = vpop.f32.mrf.mxu0  ;;  %v3777_v1 = vpop.f32.mrf.mxu1 }
 0x1ba   : > { %v4870_v42 = vadd.f32 %v3777_v1, %v1895_v43 }
 0x1bb   : > { %v1976_v29 = vpop.f32.mrf.mxu0  ;;  %v2431_v55 = vpop.f32.mrf.mxu1 }
 0x1bc   : > { %v4876_v3 = vadd.f32 %v2431_v55, %v1887_v27  ;;  %v1911_v27 = vadd.f32 %v4718_v4, %v4679_v39 }
 0x1bd   : > { %v4878_v49 = vpop.f32.mrf.mxu0  ;;  %2170 = vmatmul.mubr.bf16.gmra.mxu0 %v4204_v46  ;;  %v3780_v25 = vpop.f32.mrf.mxu1  ;;  %3875 = vmatmul.mubr.msk.bf16.gmra.mxu1 %vm1576_vm0, %v4208_v34  ;;  %v4213_v34 = vld [vmem:[%s4307_s29 + $0x5f0] ss:$12 sps:$4 sm:$0xff]  }
 0x1be   : > { %v4883_v43 = vadd.f32 %v3780_v25, %v1908_v30  ;;  %2177 = vmatprep.mubr.bf16.mxu0 %v4211_v63  ;;  %3878 = vmatprep.mubr.msk.bf16.mxu1 %vm1576_vm0, %v4212_v53  ;;  %v1924_v53 = vadd.f32 %v4718_v4, %v4701_v15 }
 0x1bf   : > { %v1981_v1 = vpop.f32.mrf.mxu0  ;;  %v2444_v16 = vpop.f32.mrf.mxu1 }
 0x1c0   : > { %v4888_v29 = vadd.f32 %v2444_v16, %v1900_v37  ;;  %v1916_v16 = vadd.f32 %v4718_v4, %v4687_v52  ;;  %v1940_v52 = vadd.f32 %v4718_v4, %v4748_v0  ;;  %v2859_v0 = vmax.f32 %v4732_v12, 0.0 }
 0x1c1   : > { %v4890_v55 = vpop.f32.mrf.mxu0  ;;  %v3781_v46 = vpop.f32.mrf.mxu1 }
 0x1c2   : > { %v4896_v30 = vadd.f32 %v3781_v46, %v1911_v27  ;;  %v1927_v46 = vadd.f32 %v4718_v4, %v4707_v20 }
 0x1c3   : > { %v1984_v63 = vpop.f32.mrf.mxu0  ;;  %v2447_v25 = vpop.f32.mrf.mxu1 }
 0x1c4   : > { %v4900_v1 = vadd.f32 %v2447_v25, %v1903_v35 }
 0x1c5   : > { %v4902_v39 = vpop.f32.mrf.mxu0  ;;  %2178 = vmatmul.mubr.bf16.gmra.mxu0 %v4209_v22  ;;  %v3784_v37 = vpop.f32.mrf.mxu1  ;;  %3879 = vmatmul.mubr.msk.bf16.gmra.mxu1 %vm1576_vm0, %v4213_v34  ;;  %v1919_v22 = vadd.f32 %v4718_v4, %v4693_v24  ;;  %v2861_v24 = vmax.f32 %v4727_v40, 0.0 }
 0x1c6   : > { %v4907_v18 = vadd.f32 %v3784_v37, %v1924_v53 }
 0x1c7   : > { %v1989_v47 = vpop.f32.mrf.mxu0  ;;  %v2460_v27 = vpop.f32.mrf.mxu1 }
 0x1c8   : > { %v4911_v63 = vadd.f32 %v2460_v27, %v1916_v16  ;;  %v1932_v16 = vadd.f32 %v4718_v4, %v4722_v48 }
 0x1c9   : > { %v4913_v15 = vpop.f32.mrf.mxu0  ;;  %v3785_v35 = vpop.f32.mrf.mxu1 }
 0x1ca   : > { %v4917_v25 = vadd.f32 %v3785_v35, %v1927_v46  ;;  %v1943_v46 = vadd.f32 %v4718_v4, %v4760_v28  ;;  %v1956_v28 = vadd.f32 %v4718_v4, %v4800_v21 }
 0x1cb   : > { %v1992_v34 = vpop.f32.mrf.mxu0  ;;  %v2463_v10 = vpop.f32.mrf.mxu1 }
 0x1cc   : > { %v4921_v53 = vadd.f32 %v2463_v10, %v1919_v22 }
 0x1cd   : > { %v4923_v37 = vpop.f32.mrf.mxu0  ;;  %v3788_v20 = vpop.f32.mrf.mxu1 }
 0x1ce   : > { %5559 = vst [vmem:[#allocation34_spill] sm:$0xff] %v4921_v53  ;;  %v2485_v47 = vadd.f32 %v3788_v20, %v1940_v52  ;;  %v2862_v20 = vmax.f32 %v4740_v36, 0.0 }
 0x1cf   : > { %v1997_v27 = vpop.f32.mrf.mxu0  ;;  %v2476_v6 = vpop.f32.mrf.mxu1 }
 0x1d0   : > { %v2893_v35 = vmax.f32 %v2485_v47, 0.0  ;;  %v2477_v34 = vadd.f32 %v2476_v6, %v1932_v16  ;;  %v2860_v47 = vmax.f32 %v4746_v9, 0.0 }
 0x1d1   : > { %v4931_v10 = vpop.f32.mrf.mxu0  ;;  %v3789_v22 = vpop.f32.mrf.mxu1 }
 0x1d2   : > { %v4935_v58 = vmax.f32 %v2861_v24, %v2893_v35  ;;  %v2891_v48 = vmax.f32 %v2477_v34, 0.0  ;;  %v2488_v52 = vadd.f32 %v3789_v22, %v1943_v46  ;;  %v1948_v24 = vadd.f32 %v4718_v4, %v4774_v61 }
 0x1d3   : > { %v2000_v40 = vpop.f32.mrf.mxu0  ;;  %v2479_v27 = vpop.f32.mrf.mxu1  ;;  %v2865_v34 = vmax.f32 %v4753_v2, 0.0 }
 0x1d4   : > { %v4940_v6 = vmax.f32 %v2859_v0, %v2891_v48  ;;  %v2894_v12 = vmax.f32 %v2488_v52, 0.0  ;;  %v2480_v16 = vadd.f32 %v2479_v27, %v1935_v62  ;;  %v1959_v0 = vadd.f32 %v4718_v4, %v4812_v32 }
 0x1d5   : > { %v4943_v53 = vpop.f32.mrf.mxu0  ;;  %v3792_v38 = vpop.f32.mrf.mxu1  ;;  %v2863_v52 = vmax.f32 %v4758_v56, 0.0 }
 0x1d6   : > { %v4947_v46 = vmax.f32 %v2862_v20, %v2894_v12  ;;  %v2892_v36 = vmax.f32 %v2480_v16, 0.0  ;;  %v2501_v35 = vadd.f32 %v3792_v38, %v1956_v28  ;;  %v1951_v20 = vadd.f32 %v4718_v4, %v4786_v50 }
 0x1d7   : > { %v2005_v22 = vpop.f32.mrf.mxu0  ;;  %v2492_v21 = vpop.f32.mrf.mxu1  ;;  %v2866_v12 = vmax.f32 %v4766_v44, 0.0 }
 0x1d8   : > { %v4952_v62 = vmax.f32 %v2860_v47, %v2892_v36  ;;  %v2897_v9 = vmax.f32 %v2501_v35, 0.0  ;;  %v2493_v48 = vadd.f32 %v2492_v21, %v1948_v24  ;;  %v1972_v47 = vadd.f32 %v4718_v4, %v4852_v13 }
 0x1d9   : > { %v4955_v40 = vpop.f32.mrf.mxu0  ;;  %v3793_v61 = vpop.f32.mrf.mxu1  ;;  %v2864_v36 = vmax.f32 %v4772_v33, 0.0 }
 0x1da   : > { %v4959_v27 = vmax.f32 %v2865_v34, %v2897_v9  ;;  %v2895_v2 = vmax.f32 %v2493_v48, 0.0  ;;  %v2504_v28 = vadd.f32 %v3793_v61, %v1959_v0  ;;  %v1964_v34 = vadd.f32 %v4718_v4, %v4826_v45 }
 0x1db   : > { %v2008_v16 = vpop.f32.mrf.mxu0  ;;  %v2495_v32 = vpop.f32.mrf.mxu1  ;;  %v2869_v0 = vmax.f32 %v4779_v57, 0.0  ;;  %v1975_v48 = vadd.f32 %v4718_v4, %v4864_v60 }
 0x1dc   : > { %v4964_v38 = vmax.f32 %v2863_v52, %v2895_v2  ;;  %v2898_v56 = vmax.f32 %v2504_v28, 0.0  ;;  %v2496_v24 = vadd.f32 %v2495_v32, %v1951_v20  ;;  %v2867_v20 = vmax.f32 %v4784_v51, 0.0 }
 0x1dd   : > { %v4967_v35 = vpop.f32.mrf.mxu0  ;;  %v3796_v50 = vpop.f32.mrf.mxu1  ;;  %v1967_v28 = vadd.f32 %v4718_v4, %v4838_v14  ;;  %v2870_v32 = vmax.f32 %v4792_v26, 0.0  ;;  %v1980_v14 = vadd.f32 %v4718_v4, %v4878_v49  ;;  %v1983_v49 = vadd.f32 %v4718_v4, %v4890_v55 }
 0x1de   : > { %v4971_v22 = vmax.f32 %v2866_v12, %v2898_v56  ;;  %v2896_v44 = vmax.f32 %v2496_v24, 0.0  ;;  %v2517_v21 = vadd.f32 %v3796_v50, %v1972_v47  ;;  %v1988_v56 = vadd.f32 %v4718_v4, %v4902_v39 }
 0x1df   : > { %v2013_v9 = vpop.f32.mrf.mxu0  ;;  %v2508_v13 = vpop.f32.mrf.mxu1  ;;  %v2868_v50 = vmax.f32 %v4798_v59, 0.0  ;;  %v1991_v39 = vadd.f32 %v4718_v4, %v4913_v15  ;;  %v2004_v15 = vadd.f32 %v4718_v4, %v4943_v53  ;;  %v1996_v55 = vadd.f32 %v4718_v4, %v4923_v37 }
 0x1e0   : > { %v4976_v52 = vmax.f32 %v2864_v36, %v2896_v44  ;;  %v2901_v33 = vmax.f32 %v2517_v21, 0.0  ;;  %v2509_v61 = vadd.f32 %v2508_v13, %v1964_v34  ;;  %v2873_v9 = vmax.f32 %v4805_v17, 0.0 }
 0x1e1   : > { %v4979_v2 = vpop.f32.mrf.mxu0  ;;  %v3797_v45 = vpop.f32.mrf.mxu1  ;;  %v2007_v53 = vadd.f32 %v4718_v4, %v4955_v40  ;;  %v1999_v37 = vadd.f32 %v4718_v4, %v4931_v10  ;;  %v2012_v10 = vadd.f32 %v4718_v4, %v4967_v35 }
 0x1e2   : > { %v4983_v12 = vmax.f32 %v2869_v0, %v2901_v33  ;;  %v2899_v57 = vmax.f32 %v2509_v61, 0.0  ;;  %v2520_v16 = vadd.f32 %v3797_v45, %v1975_v48  ;;  %v2015_v35 = vadd.f32 %v4718_v4, %v4979_v2 }
 0x1e3   : > { %v2016_v47 = vpop.f32.mrf.mxu0  ;;  %v2511_v60 = vpop.f32.mrf.mxu1 }
 0x1e4   : > { %v4988_v24 = vmax.f32 %v2867_v20, %v2899_v57  ;;  %v2902_v51 = vmax.f32 %v2520_v16, 0.0  ;;  %v2512_v36 = vadd.f32 %v2511_v60, %v1967_v28  ;;  %v2871_v20 = vmax.f32 %v4810_v19, 0.0 }
 0x1e5   : > { %v2019_v34 = vpop.f32.mrf.mxu0  ;;  %v3800_v44 = vpop.f32.mrf.mxu1 }
 0x1e6   : > { %v4993_v21 = vmax.f32 %v2870_v32, %v2902_v51  ;;  %v2900_v0 = vmax.f32 %v2512_v36, 0.0  ;;  %v2533_v26 = vadd.f32 %v3800_v44, %v1988_v56  ;;  %v2874_v32 = vmax.f32 %v4818_v8, 0.0 }
 0x1e7   : > { %v2021_v13 = vpop.f32.mrf.mxu0  ;;  %v2524_v48 = vpop.f32.mrf.mxu1  ;;  %v2872_v36 = vmax.f32 %v4824_v31, 0.0  ;;  %v2020_v40 = vadd.f32 %v4718_v4, %v2019_v34 }
 0x1e8   : > { %5560 = vst [vmem:[#allocation35_spill] sm:$0xff] %v4993_v21  ;;  %v4998_v33 = vmax.f32 %v2868_v50, %v2900_v0  ;;  %v2905_v61 = vmax.f32 %v2533_v26, 0.0  ;;  %v2525_v59 = vadd.f32 %v2524_v48, %v1980_v14  ;;  %v2877_v26 = vmax.f32 %v4831_v41, 0.0 }
 0x1e9   : > { %v2022_v45 = vpop.f32.mrf.mxu0  ;;  %v3801_v28 = vpop.f32.mrf.mxu1 }
 0x1ea   : > { %5561 = vst [vmem:[#allocation36_spill] sm:$0xff] %v4998_v33  ;;  %v5003_v57 = vmax.f32 %v2873_v9, %v2905_v61  ;;  %v2903_v16 = vmax.f32 %v2525_v59, 0.0  ;;  %v2536_v17 = vadd.f32 %v3801_v28, %v1991_v39  ;;  %v2875_v61 = vmax.f32 %v4836_v5, 0.0 }
 0x1eb   : > { %v2024_v47 = vpop.f32.mrf.mxu0  ;;  %v2527_v60 = vpop.f32.mrf.mxu1  ;;  %v2876_v5 = vmax.f32 %v4850_v11, 0.0  ;;  %v2023_v34 = vadd.f32 %v4718_v4, %v2022_v45  ;;  %v2879_v11 = vmax.f32 %v4862_v23, 0.0  ;;  %v2880_v23 = vmax.f32 %v4876_v3, 0.0 }
 0x1ec   : > { %5562 = vst [vmem:[#allocation37_spill] sm:$0xff] %v5003_v57  ;;  %v5008_v56 = vmax.f32 %v2871_v20, %v2903_v16  ;;  %v2906_v51 = vmax.f32 %v2536_v17, 0.0  ;;  %v2528_v19 = vadd.f32 %v2527_v60, %v1983_v49  ;;  %v2878_v16 = vmax.f32 %v4844_v54, 0.0 }
 0x1ed   : > { %v2027_v50 = vpop.f32.mrf.mxu0  ;;  %v3804_v44 = vpop.f32.mrf.mxu1  ;;  %v2881_v54 = vmax.f32 %v4857_v7, 0.0  ;;  %v2882_v7 = vmax.f32 %v4870_v42, 0.0  ;;  %v2885_v42 = vmax.f32 %v4883_v43, 0.0  ;;  %v2883_v3 = vmax.f32 %v4888_v29, 0.0 }
 0x1ee   : > { %5563 = vst [vmem:[#allocation38_spill] sm:$0xff] %v5008_v56  ;;  %v5013_v14 = vmax.f32 %v2874_v32, %v2906_v51  ;;  %v2904_v0 = vmax.f32 %v2528_v19, 0.0  ;;  %v2549_v8 = vadd.f32 %v3804_v44, %v2004_v15  ;;  %v2028_v2 = vadd.f32 %v4718_v4, %v2027_v50 }
 0x1ef   : > { %v2029_v9 = vpop.f32.mrf.mxu0  ;;  %v2540_v13 = vpop.f32.mrf.mxu1 }
 0x1f0   : > { %5564 = vst [vmem:[#allocation39_spill] sm:$0xff] %v5013_v14  ;;  %v5018_v48 = vmax.f32 %v2872_v36, %v2904_v0  ;;  %v2909_v39 = vmax.f32 %v2549_v8, 0.0  ;;  %v2541_v31 = vadd.f32 %v2540_v13, %v1996_v55 }
 0x1f1   : > { %v2030_v59 = vpop.f32.mrf.mxu0  ;;  %v3805_v20 = vpop.f32.mrf.mxu1 }
 0x1f2   : > { %5565 = vst [vmem:[#allocation40_spill] sm:$0xff] %v5018_v48  ;;  %v5023_v28 = vmax.f32 %v2877_v26, %v2909_v39  ;;  %v2907_v49 = vmax.f32 %v2541_v31, 0.0  ;;  %v2552_v41 = vadd.f32 %v3805_v20, %v2007_v53  ;;  %v2031_v50 = vadd.f32 %v4718_v4, %v2030_v59  ;;  %v5607_v48 = vld [vmem:[#allocation9_spill] sm:$0xff] }
 0x1f3   : > { %v2032_v17 = vpop.f32.mrf.mxu0  ;;  %v2543_v32 = vpop.f32.mrf.mxu1 }
 0x1f4   : > { %5566 = vst [vmem:[#allocation41_spill] sm:$0xff] %v5023_v28  ;;  %v5027_v47 = vmax.f32 %v2875_v61, %v2907_v49  ;;  %v2910_v60 = vmax.f32 %v2552_v41, 0.0  ;;  %v2544_v15 = vadd.f32 %v2543_v32, %v1999_v37  ;;  %v5603_v28 = vld [vmem:[#allocation5_spill] sm:$0xff] }
 0x1f5   : > { %v2035_v51 = vpop.f32.mrf.mxu0  ;;  %v3808_v19 = vpop.f32.mrf.mxu1 }
 0x1f6   : > { %5567 = vst [vmem:[#allocation42_spill] sm:$0xff] %v5027_v47  ;;  %v5032_v36 = vmax.f32 %v2878_v16, %v2910_v60  ;;  %v2908_v44 = vmax.f32 %v2544_v15, 0.0  ;;  %v2565_v55 = vadd.f32 %v3808_v19, %v2020_v40  ;;  %v2036_v45 = vadd.f32 %v4718_v4, %v2035_v51 }
 0x1f7   : > { %v2037_v0 = vpop.f32.mrf.mxu0  ;;  %v2556_v8 = vpop.f32.mrf.mxu1 }
 0x1f8   : > { %5568 = vst [vmem:[#allocation43_spill] sm:$0xff] %v5032_v36  ;;  %v5036_v26 = vmax.f32 %v2876_v5, %v2908_v44  ;;  %v2913_v9 = vmax.f32 %v2565_v55, 0.0  ;;  %v2557_v13 = vadd.f32 %v2556_v8, %v2012_v10 }
 0x1f9   : > { %v2038_v53 = vpop.f32.mrf.mxu0  ;;  %v3809_v39 = vpop.f32.mrf.mxu1 }
 0x1fa   : > { %5569 = vst [vmem:[#allocation44_spill] sm:$0xff] %v5036_v26  ;;  %v5041_v31 = vmax.f32 %v2881_v54, %v2913_v9  ;;  %v2911_v61 = vmax.f32 %v2557_v13, 0.0  ;;  %v2568_v20 = vadd.f32 %v3809_v39, %v2023_v34  ;;  %v2039_v51 = vadd.f32 %v4718_v4, %v2038_v53 }
 0x1fb   : > { %v2040_v37 = vpop.f32.mrf.mxu0  ;;  %v2559_v49 = vpop.f32.mrf.mxu1  ;;  %v2886_v39 = vmax.f32 %v4896_v30, 0.0 }
 0x1fc   : > { %5570 = vst [vmem:[#allocation45_spill] sm:$0xff] %v5041_v31  ;;  %v5045_v41 = vmax.f32 %v2879_v11, %v2911_v61  ;;  %v2914_v16 = vmax.f32 %v2568_v20, 0.0  ;;  %v2560_v17 = vadd.f32 %v2559_v49, %v2015_v35  ;;  %v2884_v20 = vmax.f32 %v4900_v1, 0.0 }
 0x1fd   : > { %v2043_v32 = vpop.f32.mrf.mxu0  ;;  %v3812_v40 = vpop.f32.mrf.mxu1 }
 0x1fe   : > { %5571 = vst [vmem:[#allocation46_spill] sm:$0xff] %v5045_v41  ;;  %v5049_v60 = vmax.f32 %v2882_v7, %v2914_v16  ;;  %v2912_v15 = vmax.f32 %v2560_v17, 0.0  ;;  %v2581_v5 = vadd.f32 %v3812_v40, %v2036_v45  ;;  %v2044_v37 = vadd.f32 %v4718_v4, %v2043_v32 }
 0x1ff   : > { %v2045_v19 = vpop.f32.mrf.mxu0  ;;  %v2572_v10 = vpop.f32.mrf.mxu1 }
 0x200   : > { %5572 = vst [vmem:[#allocation47_spill] sm:$0xff] %v5049_v60  ;;  %v5053_v44 = vmax.f32 %v2880_v23, %v2912_v15  ;;  %v2917_v55 = vmax.f32 %v2581_v5, 0.0  ;;  %v2573_v54 = vadd.f32 %v2572_v10, %v2028_v2  ;;  %v2889_v2 = vmax.f32 %v4907_v18, 0.0 }
 0x201   : > { %v2046_v0 = vpop.f32.mrf.mxu0  ;;  %v3813_v8 = vpop.f32.mrf.mxu1  ;;  %v2887_v15 = vmax.f32 %v4911_v63, 0.0  ;;  %v2890_v18 = vmax.f32 %v4917_v25, 0.0 }
 0x202   : > { %5573 = vst [vmem:[#allocation48_spill] sm:$0xff] %v5053_v44  ;;  %v5057_v34 = vmax.f32 %v2885_v42, %v2917_v55  ;;  %v2915_v9 = vmax.f32 %v2573_v54, 0.0  ;;  %v2584_v13 = vadd.f32 %v3813_v8, %v2039_v51  ;;  %v2047_v42 = vadd.f32 %v4718_v4, %v2046_v0 }
 0x203   : > { %v2048_v11 = vpop.f32.mrf.mxu0  ;;  %v2575_v43 = vpop.f32.mrf.mxu1 }
 0x204   : > { %5574 = vst [vmem:[#allocation49_spill] sm:$0xff] %v5057_v34  ;;  %v5060_v35 = vmax.f32 %v2883_v3, %v2915_v9  ;;  %v2918_v53 = vmax.f32 %v2584_v13, 0.0  ;;  %v2576_v61 = vadd.f32 %v2575_v43, %v2031_v50  ;;  %v5580_v13 = vld [vmem:[#allocation34_spill] sm:$0xff] }
 0x205   : > { %v2051_v7 = vpop.f32.mrf.mxu0  ;;  %v3816_v29 = vpop.f32.mrf.mxu1  ;;  %v2888_v11 = vmax.f32 %v5580_v13, 0.0 }
 0x206   : > { %5575 = vst [vmem:[#allocation50_spill] sm:$0xff] %v5060_v35  ;;  %v5064_v49 = vmax.f32 %v2886_v39, %v2918_v53  ;;  %v2916_v59 = vmax.f32 %v2576_v61, 0.0  ;;  %v2052_v45 = vadd.f32 %v4718_v4, %v2051_v7 }
 0x207   : > { %v2053_v16 = vpop.f32.mrf.mxu0  ;;  %v2588_v17 = vpop.f32.mrf.mxu1 }
 0x208   : > { %5576 = vst [vmem:[#allocation51_spill] sm:$0xff] %v5064_v49  ;;  %v5067_v23 = vmax.f32 %v2884_v20, %v2916_v59  ;;  %v2597_v30 = vadd.f32 %v3816_v29, %v2052_v45  ;;  %v2589_v40 = vadd.f32 %v2588_v17, %v2044_v37 }
 0x209   : > { %v2054_v1 = vpop.f32.mrf.mxu0  ;;  %v3817_v5 = vpop.f32.mrf.mxu1 }
 0x20a   : > { %5577 = vst [vmem:[#allocation52_spill] sm:$0xff] %v5067_v23  ;;  %v2921_v32 = vmax.f32 %v2597_v30, 0.0  ;;  %v2919_v19 = vmax.f32 %v2589_v40, 0.0  ;;  %v2055_v10 = vadd.f32 %v4718_v4, %v2054_v1 }
 0x20b   : > { %v2056_v51 = vpop.f32.mrf.mxu0  ;;  %v2591_v55 = vpop.f32.mrf.mxu1 }
 0x20c   : > { %v5073_v54 = vmax.f32 %v2889_v2, %v2921_v32  ;;  %v5075_v3 = vmax.f32 %v2887_v15, %v2919_v19  ;;  %v2600_v8 = vadd.f32 %v3817_v5, %v2055_v10  ;;  %v2592_v50 = vadd.f32 %v2591_v55, %v2047_v42 }
 0x20d   : > { %v2059_v9 = vpop.f32.mrf.mxu0  ;;  %v5078_v63 = vpop.f32.mrf.mxu1 }
 0x20e   : > { %5578 = vst [vmem:[#allocation53_spill] sm:$0xff] %v5073_v54  ;;  %5579 = vst [vmem:[#allocation54_spill] sm:$0xff] %v5075_v3  ;;  %v2922_v0 = vmax.f32 %v2600_v8, 0.0  ;;  %v2920_v43 = vmax.f32 %v2592_v50, 0.0  ;;  %v2060_v39 = vadd.f32 %v4718_v4, %v2059_v9 }
 0x20f   : > { %v2061_v53 = vpop.f32.mrf.mxu0  ;;  %v2604_v61 = vpop.f32.mrf.mxu1 }
 0x210   : > { %v5082_v20 = vmax.f32 %v2890_v18, %v2922_v0  ;;  %v5084_v7 = vmax.f32 %v2888_v11, %v2920_v43  ;;  %v5086_v29 = vadd.f32 %v2604_v61, %v2060_v39 }
 0x211   : > { %v2062_v37 = vpop.f32.mrf.mxu0  ;;  %v5088_v59 = vpop.f32.mrf.mxu1 }
 0x212   : > { %5581 = vst [vmem:[#allocation34_spill] sm:$0xff] %v5082_v20  ;;  %5582 = vst [vmem:[#allocation55_spill] sm:$0xff] %v5084_v7  ;;  %v2063_v25 = vadd.f32 %v4718_v4, %v2062_v37 }
 0x213   : > { %v2064_v45 = vpop.f32.mrf.mxu0  ;;  %v2607_v16 = vpop.f32.mrf.mxu1 }
 0x214   : > { %v5091_v17 = vadd.f32 %v2607_v16, %v2063_v25 }
 0x215   : > { %v2067_v30 = vpop.f32.mrf.mxu0  ;;  %v5093_v40 = vpop.f32.mrf.mxu1 }
 0x217   : > { %v2069_v2 = vpop.f32.mrf.mxu0  ;;  %v5095_v15 = vpop.f32.mrf.mxu1 }
 0x219   : > { %v5097_v1 = vpop.f32.mrf.mxu0  ;;  %v5099_v5 = vpop.f32.mrf.mxu1 }
 0x21b   : > { %v2072_v42 = vpop.f32.mrf.mxu0  ;;  %v5101_v32 = vpop.f32.mrf.mxu1 }
 0x21d   : > { %v5103_v19 = vpop.f32.mrf.mxu0  ;;  %v5105_v10 = vpop.f32.mrf.mxu1 }
 0x21f   : > { %v2077_v51 = vpop.f32.mrf.mxu0  ;;  %v5107_v55 = vpop.f32.mrf.mxu1 }
 0x221   : > { %v5109_v8 = vpop.f32.mrf.mxu0  ;;  %v5111_v50 = vpop.f32.mrf.mxu1 }
 0x223   : > { %v2080_v18 = vpop.f32.mrf.mxu0  ;;  %v5113_v9 = vpop.f32.mrf.mxu1 }
 0x225   : > { %v5115_v13 = vpop.f32.mrf.mxu0  ;;  %v5117_v11 = vpop.f32.mrf.mxu1 }
 0x227   : > { %v2085_v0 = vpop.f32.mrf.mxu0  ;;  %v5119_v43 = vpop.f32.mrf.mxu1 }
 0x229   : > { %v5121_v39 = vpop.f32.mrf.mxu0  ;;  %v5123_v53 = vpop.f32.mrf.mxu1 }
 0x22a   : > { %5583 = vst [vmem:[#allocation56_spill] sm:$0xff] %v5123_v53 }
 0x22b   : > { %v2088_v61 = vpop.f32.mrf.mxu0  ;;  %v5125_v37 = vpop.f32.mrf.mxu1 }
 0x22c   : > { %5584 = vst [vmem:[#allocation57_spill] sm:$0xff] %v5125_v37  ;;  %v5618_v37 = vld [vmem:[#allocation17_spill] sm:$0xff] }
 0x22d   : > { %v5127_v25 = vpop.f32.mrf.mxu0  ;;  %v5129_v45 = vpop.f32.mrf.mxu1 }
 0x22e   : > { %5585 = vst [vmem:[#allocation58_spill] sm:$0xff] %v5129_v45  ;;  %v5613_v45 = vld [vmem:[#allocation14_spill] sm:$0xff] }
 0x22f   : > { %v2093_v16 = vpop.f32.mrf.mxu0  ;;  %v5131_v2 = vpop.f32.mrf.mxu1 }
 0x230   : > { %5586 = vst [vmem:[#allocation59_spill] sm:$0xff] %v5131_v2 }
 0x231   : > { %v5133_v42 = vpop.f32.mrf.mxu0  ;;  %v5135_v51 = vpop.f32.mrf.mxu1 }
 0x232   : > { %5587 = vst [vmem:[#allocation60_spill] sm:$0xff] %v5135_v51 }
 0x233   : > { %v2096_v18 = vpop.f32.mrf.mxu0  ;;  %v5137_v0 = vpop.f32.mrf.mxu1 }
 0x234   : > { %5588 = vst [vmem:[#allocation61_spill] sm:$0xff] %v5137_v0 }
 0x235   : > { %v5139_v7 = vpop.f32.mrf.mxu0  ;;  %v5141_v20 = vpop.f32.mrf.mxu1 }
 0x236   : > { %5589 = vst [vmem:[#allocation62_spill] sm:$0xff] %v5141_v20  ;;  %v5606_v20 = vld [vmem:[#allocation8_spill] sm:$0xff] }
 0x237   : > { %v2101_v61 = vpop.f32.mrf.mxu0  ;;  %v5143_v3 = vpop.f32.mrf.mxu1 }
 0x238   : > { %5590 = vst [vmem:[#allocation63_spill] sm:$0xff] %v5143_v3 }
 0x239   : > { %v5145_v54 = vpop.f32.mrf.mxu0  ;;  %v5147_v23 = vpop.f32.mrf.mxu1 }
 0x23a   : > { %5591 = vst [vmem:[#allocation64_spill] sm:$0xff] %v5147_v23 }
 0x23b   : > { %v2104_v16 = vpop.f32.mrf.mxu0  ;;  %v5149_v49 = vpop.f32.mrf.mxu1 }
 0x23c   : > { %5592 = vst [vmem:[#allocation65_spill] sm:$0xff] %v5149_v49  ;;  %v2068_v49 = vadd.f32 %v4718_v4, %v2067_v30  ;;  %v5605_v30 = vld [vmem:[#allocation7_spill] sm:$0xff] }
 0x23d   : > { %v5151_v35 = vpop.f32.mrf.mxu0  ;;  %v5153_v34 = vpop.f32.mrf.mxu1 }
 0x23e   : > { %5593 = vst [vmem:[#allocation66_spill] sm:$0xff] %v5153_v34  ;;  %v5599_v34 = vld [vmem:[#allocation2_spill] sm:$0xff] }
 0x23f   : > { %v2109_v18 = vpop.f32.mrf.mxu0  ;;  %v5155_v44 = vpop.f32.mrf.mxu1 }
 0x240   : > { %5594 = vst [vmem:[#allocation67_spill] sm:$0xff] %v5155_v44  ;;  %v2188_v18 = vadd.f32 %v4718_v4, %v5599_v34  ;;  %v5188_v34 = vadd.f32 %v4718_v4, %v5605_v30  ;;  %v5611_v30 = vld [vmem:[#allocation12_spill] sm:$0xff] }
 0x241   : > { %v5157_v60 = vpop.f32.mrf.mxu0  ;;  %v5159_v41 = vpop.f32.mrf.mxu1  ;;  %v5210_v56 = vadd.f32 %v4718_v4, %v5611_v30  ;;  %v2071_v30 = vadd.f32 %v4718_v4, %v5097_v1  ;;  %v5624_v1 = vld [vmem:[#allocation20_spill] sm:$0xff] }
 0x242   : > { %5595 = vst [vmem:[#allocation68_spill] sm:$0xff] %v5159_v41  ;;  %v5601_v41 = vld [vmem:[#allocation3_spill] sm:$0xff]  ;;  %v5249_v53 = vadd.f32 %v4718_v4, %v5624_v1  ;;  %v5264_v1 = vld [vmem:[%s5525_s2] ss:$0 sm:$0xff] }
 0x243   : > { %v2112_v61 = vpop.f32.mrf.mxu0  ;;  %v5161_v31 = vpop.f32.mrf.mxu1 }
 0x244   : > { %5596 = vst [vmem:[#allocation69_spill] sm:$0xff] %v5161_v31  ;;  %v2191_v61 = vadd.f32 %v4718_v4, %v5601_v41  ;;  %v5602_v31 = vld [vmem:[#allocation4_spill] sm:$0xff]  ;;  %v5196_v41 = vadd.f32 %v4718_v4, %v5607_v48  ;;  %v2613_v48 = vadd.f32 %v5078_v63, %v2068_v49  ;;  %v5235_v49 = vadd.f32 %v4718_v4, %v5618_v37  ;;  %v5620_v63 = vld [vmem:[#allocation18_spill] sm:$0xff] }
 0x245   : > { %v5163_v26 = vpop.f32.mrf.mxu0  ;;  %v5165_v36 = vpop.f32.mrf.mxu1  ;;  %v2196_v3 = vadd.f32 %v4718_v4, %v5602_v31  ;;  %v5608_v31 = vld [vmem:[#allocation10_spill] sm:$0xff]  ;;  %5625 = vst [vmem:[#allocation9_spill] sm:$0xff] %v5249_v53  ;;  %v5634_v53 = vld [vmem:[#allocation25_spill] sm:$0xff] }
 0x246   : > { %5597 = vst [vmem:[#allocation70_spill] sm:$0xff] %v5165_v36  ;;  %v5604_v36 = vld [vmem:[#allocation6_spill] sm:$0xff]  ;;  %v5200_v0 = vadd.f32 %v4718_v4, %v5608_v31  ;;  %v5219_v31 = vadd.f32 %v4718_v4, %v5613_v45  ;;  %v5239_v45 = vadd.f32 %v4718_v4, %v5620_v63  ;;  %v2084_v63 = vadd.f32 %v4718_v4, %v5115_v13  ;;  %v5632_v13 = vld [vmem:[#allocation24_spill] sm:$0xff] }
 0x247   : > { %v2117_v16 = vpop.f32.mrf.mxu0  ;;  %v5167_v23 = vpop.f32.mrf.mxu1  ;;  %5619 = vst [vmem:[#allocation6_spill] sm:$0xff] %v5235_v49 }
 0x248   : > { %5598 = vst [vmem:[#allocation71_spill] sm:$0xff] %v5167_v23  ;;  %v2199_v16 = vadd.f32 %v4718_v4, %v5603_v28  ;;  %v5184_v23 = vadd.f32 %v4718_v4, %v5604_v36  ;;  %v5610_v36 = vld [vmem:[#allocation11_spill] sm:$0xff]  ;;  %5614 = vst [vmem:[#allocation4_spill] sm:$0xff] %v5219_v31  ;;  %v5626_v31 = vld [vmem:[#allocation21_spill] sm:$0xff] }
 0x249   : > { %v5172_v44 = vpop.f32.mrf.mxu0  ;;  %v5174_v47 = vpop.f32.mrf.mxu1  ;;  %v5206_v51 = vadd.f32 %v4718_v4, %v5610_v36  ;;  %v5617_v36 = vld [vmem:[#allocation16_spill] sm:$0xff]  ;;  %5621 = vst [vmem:[#allocation7_spill] sm:$0xff] %v5239_v45  ;;  %v5253_v37 = vadd.f32 %v4718_v4, %v5626_v31  ;;  %v5630_v31 = vld [vmem:[#allocation23_spill] sm:$0xff] }
 0x24a   : > { %5600 = vst [vmem:[#allocation2_spill] sm:$0xff] %v5174_v47  ;;  %v5192_v47 = vadd.f32 %v4718_v4, %v5606_v20  ;;  %v5612_v20 = vld [vmem:[#allocation13_spill] sm:$0xff]  ;;  %v5227_v2 = vadd.f32 %v4718_v4, %v5617_v36  ;;  %v5622_v36 = vld [vmem:[#allocation19_spill] sm:$0xff] }
 0x24b   : > { %v2120_v28 = vpop.f32.mrf.mxu0  ;;  %v5202_v14 = vpop.f32.mrf.mxu1  ;;  %v5214_v57 = vadd.f32 %v4718_v4, %v5612_v20  ;;  %v5245_v21 = vadd.f32 %v4718_v4, %v5622_v36  ;;  %5627 = vst [vmem:[#allocation10_spill] sm:$0xff] %v5253_v37  ;;  %v5268_v37 = vadd.f32 %v5264_v1, %v5630_v31 }
 0x24c   : > { %5609 = vst [vmem:[#allocation3_spill] sm:$0xff] %v5202_v14  ;;  %v5615_v28 = vld [vmem:[#allocation15_spill] sm:$0xff] }
 0x24d   : > { %v5223_v14 = vadd.f32 %v4718_v4, %v5615_v28  ;;  %v5231_v33 = vpop.f32.mrf.mxu0  ;;  %v3852_v20 = vpop.f32.mrf.mxu1  ;;  %v2076_v28 = vadd.f32 %v4718_v4, %v5103_v19  ;;  %5623 = vst [vmem:[#allocation8_spill] sm:$0xff] %v5245_v21  ;;  %v5628_v19 = vld [vmem:[#allocation22_spill] sm:$0xff]  ;;  %5631 = vst [vmem:[#allocation12_spill] sm:$0xff] %v5268_v37 }
 0x24f   : > { %5616 = vst [vmem:[#allocation5_spill] sm:$0xff] %v5223_v14  ;;  %v2741_v14 = vadd.f32 %v3852_v20, %v2196_v3  ;;  %v2125_v45 = vpop.f32.mrf.mxu0  ;;  %v2732_v49 = vpop.f32.mrf.mxu1  ;;  %v5259_v3 = vadd.f32 %v4718_v4, %v5628_v19  ;;  %v2925_v20 = vmax.f32 %v2613_v48, 0.0  ;;  %v5276_v4 = vadd.f32 %v5264_v1, %v5634_v53 }
 0x250   : > { %v2733_v21 = vadd.f32 %v2732_v49, %v2188_v18  ;;  %v5272_v45 = vadd.f32 %v5264_v1, %v5632_v13  ;;  %v2923_v49 = vmax.f32 %v5086_v29, 0.0  ;;  %v2621_v19 = vadd.f32 %v5095_v15, %v2076_v28 }
 0x251   : > { %5629 = vst [vmem:[#allocation11_spill] sm:$0xff] %v5259_v3  ;;  %v2957_v36 = vmax.f32 %v2741_v14, 0.0  ;;  %5635 = vst [vmem:[#allocation14_spill] sm:$0xff] %v5276_v4  ;;  %v2616_v14 = vadd.f32 %v5088_v59, %v2071_v30  ;;  %v5279_v18 = vpop.f32.mrf.mxu0  ;;  %v3853_v48 = vpop.f32.mrf.mxu1  ;;  %v5636_v3 = vld [vmem:[#allocation26_spill] sm:$0xff]  ;;  %v2079_v53 = vadd.f32 %v5264_v1, %v5109_v8  ;;  %v2629_v4 = vadd.f32 %v5093_v40, %v2084_v63 }
 0x252   : > { %5633 = vst [vmem:[#allocation13_spill] sm:$0xff] %v5272_v45  ;;  %v2955_v37 = vmax.f32 %v2733_v21, 0.0  ;;  %v5286_v13 = vadd.f32 %v5264_v1, %v5636_v3  ;;  %v2744_v59 = vadd.f32 %v3853_v48, %v2199_v16  ;;  %v2087_v29 = vadd.f32 %v5264_v1, %v5121_v39 }
 0x253   : > { %v3021_v31 = vmax.f32 %v2925_v20, %v2957_v36  ;;  %v2128_v30 = vpop.f32.mrf.mxu0  ;;  %v2735_v45 = vpop.f32.mrf.mxu1  ;;  %v2924_v21 = vmax.f32 %v5091_v17, 0.0  ;;  %v2926_v36 = vmax.f32 %v2616_v14, 0.0  ;;  %v2927_v63 = vmax.f32 %v2621_v19, 0.0 }
 0x254   : > { %v3019_v28 = vmax.f32 %v2923_v49, %v2955_v37  ;;  %v2736_v20 = vadd.f32 %v2735_v45, %v2191_v61  ;;  %v2958_v40 = vmax.f32 %v2744_v59, 0.0  ;;  %v2624_v61 = vadd.f32 %v5101_v32, %v2079_v53 }
 0x255   : > { %v3053_v15 = vmax.f32 %v4935_v58, %v3021_v31  ;;  %v5300_v8 = vpop.f32.mrf.mxu0  ;;  %v3856_v16 = vpop.f32.mrf.mxu1  ;;  %v2929_v17 = vmax.f32 %v2629_v4, 0.0  ;;  %v2632_v49 = vadd.f32 %v5099_v5, %v2087_v29  ;;  %v2100_v32 = vadd.f32 %v5264_v1, %v5139_v7 }
 0x256   : > { %v3051_v58 = vmax.f32 %v4940_v6, %v3019_v28  ;;  %v2956_v37 = vmax.f32 %v2736_v20, 0.0  ;;  %v3022_v3 = vmax.f32 %v2926_v36, %v2958_v40  ;;  %v2757_v45 = vadd.f32 %v3856_v16, %v5192_v47 }
 0x257   : > { %v3654_v39 = vpack.c.bf16 %v3053_v15, %v3053_v15  ;;  %v2133_v14 = vpop.f32.mrf.mxu0  ;;  %v2748_v48 = vpop.f32.mrf.mxu1  ;;  %v2092_v6 = vadd.f32 %v5264_v1, %v5127_v25  ;;  %v2095_v5 = vadd.f32 %v5264_v1, %v5133_v42  ;;  %v5637_v15 = vld [vmem:[#allocation27_spill] sm:$0xff]  ;;  %v2930_v36 = vmax.f32 %v2632_v49, 0.0 }
 0x258   : > { %v3652_v31 = vpack.c.bf16 %v3051_v58, %v3051_v58  ;;  %v3020_v59 = vmax.f32 %v2924_v21, %v2956_v37  ;;  %v2749_v19 = vadd.f32 %v2748_v48, %v5184_v23  ;;  %v3054_v4 = vmax.f32 %v4947_v46, %v3022_v3 }
 0x259   : > { %3214 = vst.msk [vmem:[%s5298_s16 + $0x8] sm:$0xf] %vm3211_vm1, %v3654_v39  ;;  %v2961_v53 = vmax.f32 %v2757_v45, 0.0  ;;  %v5314_v47 = vpop.f32.mrf.mxu0  ;;  %v3857_v30 = vpop.f32.mrf.mxu1  ;;  %v5324_v7 = vadd.f32 %v5264_v1, %v5637_v15  ;;  %v2103_v46 = vadd.f32 %v5264_v1, %v5145_v54  ;;  %v2645_v58 = vadd.f32 %v5105_v10, %v2100_v32 }
 0x25a   : > { %3212 = vst.msk [vmem:[%s5298_s16] sm:$0xf] %vm3211_vm1, %v3652_v31  ;;  %v3052_v23 = vmax.f32 %v4952_v62, %v3020_v59  ;;  %v2959_v29 = vmax.f32 %v2749_v19, 0.0  ;;  %v2760_v25 = vadd.f32 %v3857_v30, %v5196_v41  ;;  %v3655_v28 = vpack.c.bf16 %v3054_v4, %v3054_v4  ;;  %v5638_v19 = vld [vmem:[#allocation28_spill] sm:$0xff] }
 0x25b   : > { %v3025_v20 = vmax.f32 %v2929_v17, %v2961_v53  ;;  %v2136_v21 = vpop.f32.mrf.mxu0  ;;  %v2751_v42 = vpop.f32.mrf.mxu1  ;;  %v2928_v62 = vmax.f32 %v2624_v61, 0.0  ;;  %v2637_v17 = vadd.f32 %v5107_v55, %v2092_v6  ;;  %v2640_v45 = vadd.f32 %v5113_v9, %v2095_v5 }
 0x25c   : > { %v3653_v40 = vpack.c.bf16 %v3052_v23, %v3052_v23  ;;  %v3023_v16 = vmax.f32 %v2927_v63, %v2959_v29  ;;  %v2962_v39 = vmax.f32 %v2760_v25, 0.0  ;;  %3215 = vst.msk [vmem:[%s5298_s16 + $0xc] sm:$0xf] %vm3211_vm1, %v3655_v28  ;;  %v2752_v37 = vadd.f32 %v2751_v42, %v5188_v34 }
 0x25d   : > { %v3057_v41 = vmax.f32 %v4959_v27, %v3025_v20  ;;  %v5333_v3 = vpop.f32.mrf.mxu0  ;;  %v3860_v54 = vpop.f32.mrf.mxu1  ;;  %v2648_v10 = vadd.f32 %v5111_v50, %v2103_v46  ;;  %v2116_v55 = vadd.f32 %v5264_v1, %v5163_v26  ;;  %v2933_v50 = vmax.f32 %v2645_v58, 0.0 }
 0x25e   : > { %3213 = vst.msk [vmem:[%s5298_s16 + $0x4] sm:$0xf] %vm3211_vm1, %v3653_v40  ;;  %v3055_v63 = vmax.f32 %v4964_v38, %v3023_v16  ;;  %v3026_v61 = vmax.f32 %v2930_v36, %v2962_v39  ;;  %v2960_v48 = vmax.f32 %v2752_v37, 0.0  ;;  %v2773_v27 = vadd.f32 %v3860_v54, %v5210_v56 }
 0x25f   : > { %v3658_v14 = vpack.c.bf16 %v3057_v41, %v3057_v41  ;;  %v2141_v34 = vpop.f32.mrf.mxu0  ;;  %v2764_v49 = vpop.f32.mrf.mxu1  ;;  %v5348_v38 = vadd.f32 %v5264_v1, %v5638_v19  ;;  %v2931_v53 = vmax.f32 %v2637_v17, 0.0  ;;  %v2108_v26 = vadd.f32 %v5264_v1, %v5151_v35 }
 0x260   : > { %v3656_v31 = vpack.c.bf16 %v3055_v63, %v3055_v63  ;;  %v3058_v9 = vmax.f32 %v4971_v22, %v3026_v61  ;;  %v2765_v59 = vadd.f32 %v2764_v49, %v5200_v0  ;;  %v3024_v6 = vmax.f32 %v2928_v62, %v2960_v48  ;;  %v5640_v63 = vld [vmem:[#allocation56_spill] sm:$0xff]  ;;  %v5642_v34 = vld [vmem:[#allocation57_spill] sm:$0xff] }
 0x261   : > { %3218 = vst.msk [vmem:[%s5298_s16 + $0x18] sm:$0xf] %vm3211_vm1, %v3658_v14  ;;  %v2965_v56 = vmax.f32 %v2773_v27, 0.0  ;;  %v5352_v32 = vpop.f32.mrf.mxu0  ;;  %v3861_v4 = vpop.f32.mrf.mxu1  ;;  %v2932_v30 = vmax.f32 %v2640_v45, 0.0  ;;  %v2934_v46 = vmax.f32 %v2648_v10, 0.0  ;;  %v2661_v28 = vadd.f32 %v5117_v11, %v2116_v55  ;;  %v5643_v55 = vld [vmem:[#allocation36_spill] sm:$0xff] }
 0x262   : > { %3216 = vst.msk [vmem:[%s5298_s16 + $0x10] sm:$0xf] %vm3211_vm1, %v3656_v31  ;;  %v3659_v22 = vpack.c.bf16 %v3058_v9, %v3058_v9  ;;  %v2963_v0 = vmax.f32 %v2765_v59, 0.0  ;;  %v3056_v5 = vmax.f32 %v4976_v52, %v3024_v6  ;;  %v2776_v29 = vadd.f32 %v3861_v4, %v5214_v57  ;;  %v5644_v59 = vld [vmem:[#allocation59_spill] sm:$0xff]  ;;  %v5645_v6 = vld [vmem:[#allocation6_spill] sm:$0xff] }
 0x263   : > { %v3029_v23 = vmax.f32 %v2933_v50, %v2965_v56  ;;  %v2144_v25 = vpop.f32.mrf.mxu0  ;;  %v2767_v15 = vpop.f32.mrf.mxu1  ;;  %v2119_v21 = vadd.f32 %v5264_v1, %v5172_v44  ;;  %v2653_v16 = vadd.f32 %v5119_v43, %v2108_v26  ;;  %v2111_v39 = vadd.f32 %v5264_v1, %v5157_v60  ;;  %v5639_v60 = vld [vmem:[#allocation4_spill] sm:$0xff] }
 0x264   : > { %3219 = vst.msk [vmem:[%s5298_s16 + $0x1c] sm:$0xf] %vm3211_vm1, %v3659_v22  ;;  %v3027_v20 = vmax.f32 %v2931_v53, %v2963_v0  ;;  %v2768_v35 = vadd.f32 %v2767_v15, %v5206_v51  ;;  %v3657_v42 = vpack.c.bf16 %v3056_v5, %v3056_v5  ;;  %v2966_v36 = vmax.f32 %v2776_v29, 0.0  ;;  %v5647_v29 = vld [vmem:[#allocation58_spill] sm:$0xff]  ;;  %v5648_v15 = vld [vmem:[#allocation37_spill] sm:$0xff] }
 0x265   : > { %v3061_v52 = vmax.f32 %v4983_v12, %v3029_v23  ;;  %v2147_v40 = vpop.f32.mrf.mxu0  ;;  %v3864_v57 = vpop.f32.mrf.mxu1  ;;  %v2124_v51 = vadd.f32 %v5264_v1, %v5231_v33  ;;  %v2937_v43 = vmax.f32 %v2661_v28, 0.0  ;;  %v2132_v61 = vadd.f32 %v5264_v1, %v5300_v8  ;;  %v5641_v33 = vld [vmem:[#allocation35_spill] sm:$0xff] }
 0x266   : > { %v3059_v11 = vmax.f32 %v4988_v24, %v3027_v20  ;;  %v2964_v62 = vmax.f32 %v2768_v35, 0.0  ;;  %3217 = vst.msk [vmem:[%s5298_s16 + $0x14] sm:$0xf] %vm3211_vm1, %v3657_v42  ;;  %v3030_v58 = vmax.f32 %v2934_v46, %v2966_v36  ;;  %v2789_v12 = vadd.f32 %v3864_v57, %v5227_v2 }
 0x267   : > { %v3662_v44 = vpack.c.bf16 %v3061_v52, %v3061_v52  ;;  %v2149_v41 = vpop.f32.mrf.mxu0  ;;  %v2780_v37 = vpop.f32.mrf.mxu1  ;;  %v2664_v24 = vadd.f32 %v5640_v63, %v2119_v21  ;;  %v2935_v27 = vmax.f32 %v2653_v16, 0.0  ;;  %v2656_v49 = vadd.f32 %v5642_v34, %v2111_v39 }
 0x268   : > { %v3660_v54 = vpack.c.bf16 %v3059_v11, %v3059_v11  ;;  %v3028_v17 = vmax.f32 %v2932_v30, %v2964_v62  ;;  %v2781_v45 = vadd.f32 %v2780_v37, %v5639_v60  ;;  %v3062_v10 = vmax.f32 %v5641_v33, %v3030_v58  ;;  %v5646_v30 = vld [vmem:[#allocation5_spill] sm:$0xff]  ;;  %v5651_v58 = vld [vmem:[#allocation60_spill] sm:$0xff]  ;;  %v5653_v60 = vld [vmem:[#allocation39_spill] sm:$0xff] }
 0x269   : > { %3222 = vst.msk [vmem:[%s5298_s16 + $0x28] sm:$0xf] %vm3211_vm1, %v3662_v44  ;;  %v2969_v14 = vmax.f32 %v2789_v12, 0.0  ;;  %v2150_v48 = vpop.f32.mrf.mxu0  ;;  %v3865_v2 = vpop.f32.mrf.mxu1  ;;  %v2669_v19 = vadd.f32 %v5644_v59, %v2124_v51  ;;  %v2135_v26 = vadd.f32 %v5264_v1, %v5314_v47  ;;  %v2938_v23 = vmax.f32 %v2664_v24, 0.0  ;;  %v5649_v47 = vld [vmem:[#allocation38_spill] sm:$0xff]  ;;  %v5650_v11 = vld [vmem:[#allocation9_spill] sm:$0xff] }
 0x26a   : > { %3220 = vst.msk [vmem:[%s5298_s16 + $0x20] sm:$0xf] %vm3211_vm1, %v3660_v54  ;;  %v3060_v31 = vmax.f32 %v5643_v55, %v3028_v17  ;;  %v2967_v9 = vmax.f32 %v2781_v45, 0.0  ;;  %v3663_v50 = vpack.c.bf16 %v3062_v10, %v3062_v10  ;;  %v2792_v56 = vadd.f32 %v3865_v2, %v5645_v6  ;;  %v5654_v33 = vld [vmem:[#allocation61_spill] sm:$0xff]  ;;  %v5655_v2 = vld [vmem:[#allocation40_spill] sm:$0xff] }
 0x26b   : > { %v3033_v8 = vmax.f32 %v2937_v43, %v2969_v14  ;;  %v2152_v4 = vpop.f32.mrf.mxu0  ;;  %v2783_v53 = vpop.f32.mrf.mxu1  ;;  %v2677_v25 = vadd.f32 %v5647_v29, %v2132_v61  ;;  %v2936_v21 = vmax.f32 %v2656_v49, 0.0  ;;  %v2127_v42 = vadd.f32 %v5264_v1, %v5279_v18  ;;  %v5652_v43 = vld [vmem:[#allocation7_spill] sm:$0xff] }
 0x26c   : > { %v3661_v22 = vpack.c.bf16 %v3060_v31, %v3060_v31  ;;  %v3031_v0 = vmax.f32 %v2935_v27, %v2967_v9  ;;  %v2784_v5 = vadd.f32 %v2783_v53, %v5646_v30  ;;  %3223 = vst.msk [vmem:[%s5298_s16 + $0x2c] sm:$0xf] %vm3211_vm1, %v3663_v50  ;;  %v2970_v28 = vmax.f32 %v2792_v56, 0.0  ;;  %v5656_v31 = vld [vmem:[#allocation10_spill] sm:$0xff]  ;;  %v5660_v29 = vld [vmem:[#allocation63_spill] sm:$0xff] }
 0x26d   : > { %v3065_v46 = vmax.f32 %v5648_v15, %v3033_v8  ;;  %v5396_v20 = vpop.f32.mrf.mxu0  ;;  %v3868_v35 = vpop.f32.mrf.mxu1  ;;  %v2939_v57 = vmax.f32 %v2669_v19, 0.0  ;;  %v2680_v12 = vadd.f32 %v5651_v58, %v2135_v26  ;;  %v2941_v54 = vmax.f32 %v2677_v25, 0.0  ;;  %v5658_v4 = vld [vmem:[#allocation62_spill] sm:$0xff]  ;;  %v5665_v58 = vld [vmem:[#allocation64_spill] sm:$0xff] }
 0x26e   : > { %3221 = vst.msk [vmem:[%s5298_s16 + $0x24] sm:$0xf] %vm3211_vm1, %v3661_v22  ;;  %v3063_v52 = vmax.f32 %v5649_v47, %v3031_v0  ;;  %v2968_v36 = vmax.f32 %v2784_v5, 0.0  ;;  %v3034_v39 = vmax.f32 %v2938_v23, %v2970_v28  ;;  %v2805_v62 = vadd.f32 %v3868_v35, %v5650_v11  ;;  %v5659_v22 = vld [vmem:[#allocation41_spill] sm:$0xff]  ;;  %v5661_v15 = vld [vmem:[#allocation42_spill] sm:$0xff] }
 0x26f   : > { %v3666_v16 = vpack.c.bf16 %v3065_v46, %v3065_v46  ;;  %v2157_v51 = vpop.f32.mrf.mxu0  ;;  %v2796_v44 = vpop.f32.mrf.mxu1  ;;  %v2148_v17 = vadd.f32 %v5264_v1, %v2147_v40  ;;  %v2672_v10 = vadd.f32 %v5654_v33, %v2127_v42  ;;  %v2140_v14 = vadd.f32 %v5264_v1, %v5333_v3  ;;  %v5657_v3 = vld [vmem:[#allocation8_spill] sm:$0xff]  ;;  %v5662_v35 = vld [vmem:[#allocation65_spill] sm:$0xff] }
 0x270   : > { %v3664_v41 = vpack.c.bf16 %v3063_v52, %v3063_v52  ;;  %v3032_v37 = vmax.f32 %v2936_v21, %v2968_v36  ;;  %v2797_v18 = vadd.f32 %v2796_v44, %v5652_v43  ;;  %v3066_v45 = vmax.f32 %v5653_v60, %v3034_v39  ;;  %v5663_v47 = vld [vmem:[#allocation13_spill] sm:$0xff] }
 0x271   : > { %3226 = vst.msk [vmem:[%s5298_s16 + $0x38] sm:$0xf] %vm3211_vm1, %v3666_v16  ;;  %v2973_v63 = vmax.f32 %v2805_v62, 0.0  ;;  %v5410_v24 = vpop.f32.mrf.mxu0  ;;  %v3869_v61 = vpop.f32.mrf.mxu1  ;;  %v2143_v40 = vadd.f32 %v5264_v1, %v5352_v32  ;;  %v2942_v50 = vmax.f32 %v2680_v12, 0.0  ;;  %v2693_v53 = vadd.f32 %v5658_v4, %v2148_v17  ;;  %v5664_v62 = vld [vmem:[#allocation11_spill] sm:$0xff] }
 0x272   : > { %3224 = vst.msk [vmem:[%s5298_s16 + $0x30] sm:$0xf] %vm3211_vm1, %v3664_v41  ;;  %v3064_v27 = vmax.f32 %v5655_v2, %v3032_v37  ;;  %v2971_v34 = vmax.f32 %v2797_v18, 0.0  ;;  %v3667_v49 = vpack.c.bf16 %v3066_v45, %v3066_v45  ;;  %v2808_v9 = vadd.f32 %v3869_v61, %v5656_v31  ;;  %v5666_v41 = vld [vmem:[#allocation43_spill] sm:$0xff]  ;;  %v5667_v45 = vld [vmem:[#allocation44_spill] sm:$0xff]  ;;  %v5668_v2 = vld [vmem:[#allocation14_spill] sm:$0xff] }
 0x273   : > { %v3037_v55 = vmax.f32 %v2941_v54, %v2973_v63  ;;  %v2160_v59 = vpop.f32.mrf.mxu0  ;;  %v2799_v19 = vpop.f32.mrf.mxu1  ;;  %v2151_v26 = vadd.f32 %v5264_v1, %v2150_v48  ;;  %v2940_v23 = vmax.f32 %v2672_v10, 0.0  ;;  %v2685_v25 = vadd.f32 %v5660_v29, %v2140_v14 }
 0x274   : > { %v3665_v8 = vpack.c.bf16 %v3064_v27, %v3064_v27  ;;  %v3035_v6 = vmax.f32 %v2939_v57, %v2971_v34  ;;  %v2800_v56 = vadd.f32 %v2799_v19, %v5657_v3  ;;  %3227 = vst.msk [vmem:[%s5298_s16 + $0x3c] sm:$0xf] %vm3211_vm1, %v3667_v49  ;;  %v2974_v0 = vmax.f32 %v2808_v9, 0.0  ;;  %v5670_v59 = vld [vmem:[#allocation12_spill] sm:$0xff] }
 0x275   : > { %v3069_v32 = vmax.f32 %v5659_v22, %v3037_v55  ;;  %v2163_v30 = vpop.f32.mrf.mxu0  ;;  %v3872_v5 = vpop.f32.mrf.mxu1  ;;  %v2688_v21 = vadd.f32 %v5662_v35, %v2143_v40  ;;  %v2945_v44 = vmax.f32 %v2693_v53, 0.0  ;;  %v2696_v12 = vadd.f32 %v5665_v58, %v2151_v26  ;;  %v5669_v55 = vld [vmem:[#allocation66_spill] sm:$0xff]  ;;  %v5672_v53 = vld [vmem:[#allocation67_spill] sm:$0xff] }
 0x276   : > { %3225 = vst.msk [vmem:[%s5298_s16 + $0x34] sm:$0xf] %vm3211_vm1, %v3665_v8  ;;  %v3067_v46 = vmax.f32 %v5661_v15, %v3035_v6  ;;  %v2972_v28 = vmax.f32 %v2800_v56, 0.0  ;;  %v3038_v48 = vmax.f32 %v2942_v50, %v2974_v0  ;;  %v2821_v52 = vadd.f32 %v3872_v5, %v5663_v47  ;;  %v5671_v50 = vld [vmem:[#allocation45_spill] sm:$0xff] }
 0x277   : > { %v3670_v42 = vpack.c.bf16 %v3069_v32, %v3069_v32  ;;  %v2165_v36 = vpop.f32.mrf.mxu0  ;;  %v2812_v57 = vpop.f32.mrf.mxu1  ;;  %v2164_v11 = vadd.f32 %v5264_v1, %v2163_v30  ;;  %v2943_v17 = vmax.f32 %v2685_v25, 0.0  ;;  %v2156_v60 = vadd.f32 %v5264_v1, %v5396_v20  ;;  %v5673_v32 = vld [vmem:[#allocation46_spill] sm:$0xff]  ;;  %v5674_v5 = vld [vmem:[#allocation29_spill] sm:$0xff] }
 0x278   : > { %v3668_v16 = vpack.c.bf16 %v3067_v46, %v3067_v46  ;;  %v3036_v39 = vmax.f32 %v2940_v23, %v2972_v28  ;;  %v2813_v51 = vadd.f32 %v2812_v57, %v5664_v62  ;;  %v3070_v37 = vmax.f32 %v5666_v41, %v3038_v48  ;;  %v5675_v48 = vld [vmem:[#allocation68_spill] sm:$0xff]  ;;  %v5677_v62 = vld [vmem:[#allocation69_spill] sm:$0xff] }
 0x279   : > { %3230 = vst.msk [vmem:[%s5298_s16 + $0x48] sm:$0xf] %vm3211_vm1, %v3670_v42  ;;  %v2977_v43 = vmax.f32 %v2821_v52, 0.0  ;;  %v2166_v18 = vpop.f32.mrf.mxu0  ;;  %v3873_v54 = vpop.f32.mrf.mxu1  ;;  %v2944_v33 = vmax.f32 %v2688_v21, 0.0  ;;  %v2709_v31 = vadd.f32 %v5669_v55, %v2164_v11  ;;  %v2946_v20 = vmax.f32 %v2696_v12, 0.0  ;;  %v5676_v52 = vld [vmem:[#allocation47_spill] sm:$0xff] }
 0x27a   : > { %3228 = vst.msk [vmem:[%s5298_s16 + $0x40] sm:$0xf] %vm3211_vm1, %v3668_v16  ;;  %v3068_v63 = vmax.f32 %v5667_v45, %v3036_v39  ;;  %v2975_v61 = vmax.f32 %v2813_v51, 0.0  ;;  %v3671_v10 = vpack.c.bf16 %v3070_v37, %v3070_v37  ;;  %v2824_v27 = vadd.f32 %v3873_v54, %v5668_v2  ;;  %v5679_v12 = vld [vmem:[#allocation30_spill] sm:$0xff] }
 0x27b   : > { %v3041_v14 = vmax.f32 %v2945_v44, %v2977_v43  ;;  %v2168_v34 = vpop.f32.mrf.mxu0  ;;  %v2815_v40 = vpop.f32.mrf.mxu1  ;;  %v2167_v6 = vadd.f32 %v5264_v1, %v2166_v18  ;;  %v2701_v26 = vadd.f32 %v5672_v53, %v2156_v60  ;;  %v2159_v22 = vadd.f32 %v5264_v1, %v5410_v24  ;;  %v5678_v44 = vld [vmem:[#allocation48_spill] sm:$0xff] }
 0x27c   : > { %v3669_v49 = vpack.c.bf16 %v3068_v63, %v3068_v63  ;;  %v3039_v9 = vmax.f32 %v2943_v17, %v2975_v61  ;;  %v2816_v19 = vadd.f32 %v2815_v40, %v5670_v59  ;;  %3231 = vst.msk [vmem:[%s5298_s16 + $0x4c] sm:$0xf] %vm3211_vm1, %v3671_v10  ;;  %v2978_v3 = vmax.f32 %v2824_v27, 0.0  ;;  %v5680_v60 = vld [vmem:[#allocation32_spill] sm:$0xff]  ;;  %v5682_v27 = vld [vmem:[#allocation49_spill] sm:$0xff] }
 0x27d   : > { %v3073_v8 = vmax.f32 %v5671_v50, %v3041_v14  ;;  %v2171_v56 = vpop.f32.mrf.mxu0  ;;  %v3876_v4 = vpop.f32.mrf.mxu1  ;;  %v2295_v23 = vadd.f32 %v5264_v1, %v5674_v5  ;;  %v2949_v35 = vmax.f32 %v2709_v31, 0.0  ;;  %v2712_v47 = vadd.f32 %v5675_v48, %v2167_v6  ;;  %v5681_v14 = vld [vmem:[#allocation71_spill] sm:$0xff] }
 0x27e   : > { %3229 = vst.msk [vmem:[%s5298_s16 + $0x44] sm:$0xf] %vm3211_vm1, %v3669_v49  ;;  %v3071_v0 = vmax.f32 %v5673_v32, %v3039_v9  ;;  %v2976_v30 = vmax.f32 %v2816_v19, 0.0  ;;  %v3042_v25 = vmax.f32 %v2946_v20, %v2978_v3  ;;  %v2837_v15 = vadd.f32 %v3876_v4, %v5348_v38  ;;  %v5683_v9 = vld [vmem:[#allocation50_spill] sm:$0xff]  ;;  %v5688_v48 = vld [vmem:[#allocation31_spill] sm:$0xff] }
 0x27f   : > { %v3674_v29 = vpack.c.bf16 %v3073_v8, %v3073_v8  ;;  %v2173_v46 = vpop.f32.mrf.mxu0  ;;  %v2828_v28 = vpop.f32.mrf.mxu1  ;;  %v2172_v57 = vadd.f32 %v5264_v1, %v2171_v56  ;;  %v2947_v38 = vmax.f32 %v2701_v26, 0.0  ;;  %v2704_v51 = vadd.f32 %v5677_v62, %v2159_v22  ;;  %v5684_v26 = vld [vmem:[#allocation70_spill] sm:$0xff] }
 0x280   : > { %v3672_v21 = vpack.c.bf16 %v3071_v0, %v3071_v0  ;;  %v3040_v42 = vmax.f32 %v2944_v33, %v2976_v30  ;;  %v2829_v24 = vadd.f32 %v2828_v28, %v5286_v13  ;;  %v3074_v36 = vmax.f32 %v5676_v52, %v3042_v25  ;;  %v5685_v0 = vld [vmem:[#allocation33_spill] sm:$0xff]  ;;  %v5687_v28 = vld [vmem:[#allocation52_spill] sm:$0xff]  ;;  %v5689_v52 = vld [vmem:[#allocation3_spill] sm:$0xff] }
 0x281   : > { %3234 = vst.msk [vmem:[%s5298_s16 + $0x58] sm:$0xf] %vm3211_vm1, %v3674_v29  ;;  %v2981_v16 = vmax.f32 %v2837_v15, 0.0  ;;  %v2174_v39 = vpop.f32.mrf.mxu0  ;;  %v3877_v11 = vpop.f32.mrf.mxu1  ;;  %v2300_v41 = vadd.f32 %v5264_v1, %v5679_v12  ;;  %v2308_v45 = vadd.f32 %v5264_v1, %v5680_v60  ;;  %v2950_v10 = vmax.f32 %v2712_v47, 0.0  ;;  %v5691_v12 = vld [vmem:[#allocation53_spill] sm:$0xff] }
 0x282   : > { %3232 = vst.msk [vmem:[%s5298_s16 + $0x50] sm:$0xf] %vm3211_vm1, %v3672_v21  ;;  %v3072_v58 = vmax.f32 %v5678_v44, %v3040_v42  ;;  %v2979_v13 = vmax.f32 %v2829_v24, 0.0  ;;  %v3675_v37 = vpack.c.bf16 %v3074_v36, %v3074_v36  ;;  %v2840_v18 = vadd.f32 %v3877_v11, %v2295_v23  ;;  %v5686_v23 = vld [vmem:[#allocation51_spill] sm:$0xff]  ;;  %v5690_v44 = vld [vmem:[#allocation2_spill] sm:$0xff] }
 0x283   : > { %v3045_v43 = vmax.f32 %v2949_v35, %v2981_v16  ;;  %v2176_v54 = vpop.f32.mrf.mxu0  ;;  %v2831_v17 = vpop.f32.mrf.mxu1  ;;  %v2717_v2 = vadd.f32 %v5681_v14, %v2172_v57  ;;  %v2948_v31 = vmax.f32 %v2704_v51, 0.0  ;;  %v2175_v50 = vadd.f32 %v5264_v1, %v2174_v39  ;;  %v5694_v14 = vld [vmem:[#allocation55_spill] sm:$0xff] }
 0x284   : > { %v3673_v63 = vpack.c.bf16 %v3072_v58, %v3072_v58  ;;  %v3043_v61 = vmax.f32 %v2947_v38, %v2979_v13  ;;  %v2832_v33 = vadd.f32 %v2831_v17, %v5324_v7  ;;  %3235 = vst.msk [vmem:[%s5298_s16 + $0x5c] sm:$0xf] %vm3211_vm1, %v3675_v37  ;;  %v2982_v40 = vmax.f32 %v2840_v18, 0.0 }
 0x285   : > { %v3077_v34 = vmax.f32 %v5682_v27, %v3045_v43  ;;  %v2179_v49 = vpop.f32.mrf.mxu0  ;;  %v3880_v55 = vpop.f32.mrf.mxu1  ;;  %v2311_v30 = vadd.f32 %v5264_v1, %v5685_v0  ;;  %v2951_v5 = vmax.f32 %v2717_v2, 0.0  ;;  %v2303_v47 = vadd.f32 %v5264_v1, %v5688_v48 }
 0x286   : > { %3233 = vst.msk [vmem:[%s5298_s16 + $0x54] sm:$0xf] %vm3211_vm1, %v3673_v63  ;;  %v3075_v59 = vmax.f32 %v5683_v9, %v3043_v61  ;;  %v2980_v19 = vmax.f32 %v2832_v33, 0.0  ;;  %v2180_v20 = vadd.f32 %v5264_v1, %v2179_v49  ;;  %v3046_v8 = vmax.f32 %v2950_v10, %v2982_v40  ;;  %v5693_v33 = vld [vmem:[#allocation34_spill] sm:$0xff] }
 0x287   : > { %v3678_v7 = vpack.c.bf16 %v3077_v34, %v3077_v34  ;;  %v2853_v6 = vadd.f32 %v3880_v55, %v2308_v45  ;;  %v2181_v3 = vpop.f32.mrf.mxu0  ;;  %v2844_v56 = vpop.f32.mrf.mxu1  ;;  %v2720_v36 = vadd.f32 %v5689_v52, %v2175_v50 }
 0x288   : > { %v3676_v4 = vpack.c.bf16 %v3075_v59, %v3075_v59  ;;  %v3044_v53 = vmax.f32 %v2948_v31, %v2980_v19  ;;  %v2725_v22 = vadd.f32 %v5684_v26, %v2180_v20  ;;  %v2845_v32 = vadd.f32 %v2844_v56, %v2300_v41  ;;  %v5692_v41 = vld [vmem:[#allocation54_spill] sm:$0xff] }
 0x289   : > { %3238 = vst.msk [vmem:[%s5298_s16 + $0x68] sm:$0xf] %vm3211_vm1, %v3678_v7  ;;  %v3078_v29 = vmax.f32 %v5686_v23, %v3046_v8  ;;  %v2985_v25 = vmax.f32 %v2853_v6, 0.0  ;;  %v2182_v15 = vpop.f32.mrf.mxu0  ;;  %v3881_v46 = vpop.f32.mrf.mxu1  ;;  %v2952_v54 = vmax.f32 %v2720_v36, 0.0 }
 0x28a   : > { %3236 = vst.msk [vmem:[%s5298_s16 + $0x60] sm:$0xf] %vm3211_vm1, %v3676_v4  ;;  %v3076_v35 = vmax.f32 %v5687_v28, %v3044_v53  ;;  %v2953_v21 = vmax.f32 %v2725_v22, 0.0  ;;  %v2983_v42 = vmax.f32 %v2845_v32, 0.0  ;;  %v2183_v24 = vadd.f32 %v5264_v1, %v2182_v15 }
 0x28b   : > { %v3679_v57 = vpack.c.bf16 %v3078_v29, %v3078_v29  ;;  %v2856_v16 = vadd.f32 %v3881_v46, %v2311_v30  ;;  %v2184_v39 = vpop.f32.mrf.mxu0  ;;  %v2847_v11 = vpop.f32.mrf.mxu1 }
 0x28c   : > { %v3677_v38 = vpack.c.bf16 %v3076_v35, %v3076_v35  ;;  %v3049_v62 = vmax.f32 %v2953_v21, %v2985_v25  ;;  %v3047_v51 = vmax.f32 %v2951_v5, %v2983_v42  ;;  %v2728_v58 = vadd.f32 %v5690_v44, %v2183_v24 }
 0x28d   : > { %3239 = vst.msk [vmem:[%s5298_s16 + $0x6c] sm:$0xf] %vm3211_vm1, %v3679_v57  ;;  %v2848_v13 = vadd.f32 %v2847_v11, %v2303_v47  ;;  %v2986_v18 = vmax.f32 %v2856_v16, 0.0 }
 0x28e   : > { %3237 = vst.msk [vmem:[%s5298_s16 + $0x64] sm:$0xf] %vm3211_vm1, %v3677_v38  ;;  %v3081_v1 = vmax.f32 %v5691_v12, %v3049_v62  ;;  %v3079_v37 = vmax.f32 %v5692_v41, %v3047_v51  ;;  %v2954_v43 = vmax.f32 %v2728_v58, 0.0 }
 0x28f   : > { %v2984_v17 = vmax.f32 %v2848_v13, 0.0 }
 0x290   : > { %v3682_v60 = vpack.c.bf16 %v3081_v1, %v3081_v1  ;;  %v3680_v45 = vpack.c.bf16 %v3079_v37, %v3079_v37  ;;  %v3050_v63 = vmax.f32 %v2954_v43, %v2986_v18 }
 0x291   : > { %v3048_v61 = vmax.f32 %v2952_v54, %v2984_v17 }
 0x292   : > { %3242 = vst.msk [vmem:[%s5298_s16 + $0x78] sm:$0xf] %vm3211_vm1, %v3682_v60  ;;  %3240 = vst.msk [vmem:[%s5298_s16 + $0x70] sm:$0xf] %vm3211_vm1, %v3680_v45  ;;  %v3082_v10 = vmax.f32 %v5693_v33, %v3050_v63 }
 0x293   : > { %v3080_v2 = vmax.f32 %v5694_v14, %v3048_v61 }
 0x294   : > { %v3683_v27 = vpack.c.bf16 %v3082_v10, %v3082_v10 }
 0x295   : > { %v3681_v34 = vpack.c.bf16 %v3080_v2, %v3080_v2 }
 0x296   : > { %3243 = vst.msk [vmem:[%s5298_s16 + $0x7c] sm:$0xf] %vm3211_vm1, %v3683_v27 }
 0x297   : > { %3241 = vst.msk [vmem:[%s5298_s16 + $0x74] sm:$0xf] %vm3211_vm1, %v3681_v34 }
 0x298 PF: > { %s13_s14 = sadd.s32 1, %s4237_s14   ;;  %s5695_s12 = smov %s4233_s13 }
 0x299   : > { %p10_p5 = scmp.ge.s32.totalorder %s13_s14, 4   ;;  %s5696_s13 = smov %s5698_s15 }
 0x29b   :  { %12 = sbr.rel (!%p10_p5) target bundleno = 2 (0x2), region = 62 }

// kernel: forward_pallas.7
= control target key start
LH: loop header
LB: loop body
LE: loop exit
PB: predicated region body
PF: predicated region fallthrough
CT: control target
= control target key end

     0   :  { %s2396_s12 = smov 0   ;;  %s2398_s13 = smov 0   ;;  %s2904_s0 = inlined_call_operand.vmem [shape: bf16[2,1,256,576], index: 0, kind: input, shape index: {}]   ;;  %s2905_s1 = inlined_call_operand.vmem [shape: bf16[576,64], index: 1, kind: input, shape index: {}]   ;;  %s2906_s2 = inlined_call_operand.vmem [shape: f32[1,64], index: 2, kind: input, shape index: {}]   ;;  %s2907_s3 = inlined_call_operand.vmem [shape: bf16[2,64,64], index: 3, kind: output, shape index: {}]  }
   0x1   :  { %s2400_s14 = smov 0  }
   0x2 LB: > { %s25_s15 = sadd.s32 1, %s2370_s13  ;;  %p1723_p0 = scmp.ge.s32.totalorder %s2374_s14, 1  ;;  %s2374_s14 = sphi %s2400_s14, %s13_s14   ;;  %s2370_s13 = sphi %s2398_s13, %s2913_s13   ;;  %s2366_s12 = sphi %s2396_s12, %s2912_s12  }
   0x3   : > { %p27_p1 = scmp.ge.s32.totalorder %s25_s15, 2  ;;  %p157_p2 = scmp.lt.s32.totalorder %s2374_s14, 3 }
   0x5   : > { %s2915_s15 = smov (%p27_p1, %s25_s15), 0  ;;  %p158_p3 = pnand %p1723_p0, %p157_p2 }
   0x7   : > { %161 = sbr.rel (%p158_p3) target bundleno = 411 (0x19b), region = 32 }
   0xc   : > { %v2204_v0 = vld [vmem:[%s2905_s1 + $0x78] sm:$0xff]   ;;  %v2206_v2 = vld [vmem:[%s2905_s1 + $0x70] sm:$0xff]   ;;  %p189_p4 = scmp.lt.s32.totalorder %s2366_s12, 1  ;;  %v2208_v4 = vld [vmem:[%s2905_s1 + $0x68] sm:$0xff]   ;;  %vm1000_vm0 = vcmask 523264   ;;  %vm1620_vm1 = vcmask 519168  }
   0xd   : > { %v2205_v1 = vld [vmem:[%s2905_s1 + $0x38] sm:$0xff]   ;;  %1879 = vmatprep.subr.bf16.mxu0 %v2204_v0  ;;  %2163 = vmatprep.subr.bf16.mxu1 %v2204_v0  ;;  %v2207_v3 = vld [vmem:[%s2905_s1 + $0x30] sm:$0xff]   ;;  %v2209_v5 = vld [vmem:[%s2905_s1 + $0x28] sm:$0xff]  }
   0xe   : > { %1880 = vmatpush3.bf16.msra.mxu0 %v2205_v1  ;;  %2171 = vmatpush3.bf16.msra.mxu1 %v2205_v1  ;;  %s2917_s12 = smov (!%p189_p4, %s2366_s12), 1  ;;  %v2210_v6 = vld [vmem:[%s2905_s1 + $0x60] sm:$0xff]   ;;  %v2212_v8 = vld [vmem:[%s2905_s1 + $0x58] sm:$0xff]   ;;  %v2214_v10 = vld [vmem:[%s2905_s1 + $0x50] sm:$0xff]  }
   0xf   : > { %1881 = vmatprep.subr.bf16.mxu0 %v2206_v2  ;;  %2164 = vmatprep.subr.bf16.mxu1 %v2206_v2  ;;  %s2179_s30 = smul.u32 640, %s2917_s12  ;;  %v2211_v7 = vld [vmem:[%s2905_s1 + $0x20] sm:$0xff]   ;;  %v2213_v9 = vld [vmem:[%s2905_s1 + $0x18] sm:$0xff]   ;;  %v2215_v13 = vld [vmem:[%s2905_s1 + $0x10] sm:$0xff]   ;;  %s1870_s26 = sshll.u32 %s2917_s12, 5 }
  0x10   : > { %v2216_v14 = vld [vmem:[%s2905_s1 + $0x48] sm:$0xff]   ;;  %v2218_v16 = vld [vmem:[%s2905_s1 + $0x40] sm:$0xff]   ;;  %v2226_v18 = vld [vmem:[%s2905_s1 + $0xf8] sm:$0xff]   ;;  %s2860_s28 = scalar_lea.vmem %s2907_s3, %s1870_s26 }
  0x11   : > { %s2447_s10 = scalar_lea.vmem %s2904_s0, %s2179_s30  ;;  %v2217_v15 = vld [vmem:[%s2905_s1 + $0x8] sm:$0xff]   ;;  %v2219_v17 = vld [vmem:[%s2905_s1] sm:$0xff]   ;;  %v2229_v19 = vld [vmem:[%s2905_s1 + $0x118] sm:$0xff]  }
  0x12   : > { %1882 = vmatpush3.bf16.msra.mxu0 %v2207_v3  ;;  %2172 = vmatpush3.bf16.msra.mxu1 %v2207_v3  ;;  %v2222_v11 = vld [vmem:[%s2447_s10 + $0x4] ss:$20 sps:$4 sm:$0xff]   ;;  %v2220_v20 = vld [vmem:[%s2447_s10] ss:$20 sps:$4 sm:$0xff]   ;;  %v2235_v27 = vld [vmem:[%s2447_s10 + $0x28] ss:$20 sps:$4 sm:$0xff]  }
  0x13   : > { %1883 = vmatprep.subr.bf16.mxu0 %v2208_v4  ;;  %2165 = vmatprep.subr.bf16.mxu1 %v2208_v4  ;;  %v2225_v12 = vld [vmem:[%s2447_s10 + $0x1e4] ss:$20 sps:$4 sm:$0xff]   ;;  %v2223_v21 = vld [vmem:[%s2447_s10 + $0x1e0] ss:$20 sps:$4 sm:$0xff]   ;;  %v2237_v28 = vld [vmem:[%s2905_s1 + $0xe8] sm:$0xff]  }
  0x14   : > { %1081 = vmatprep.mubr.bf16.mxu0 %v2222_v11  ;;  %1177 = vmatprep.mubr.bf16.mxu1 %v2225_v12  ;;  %v2227_v22 = vld [vmem:[%s2905_s1 + $0xb8] sm:$0xff]   ;;  %v2228_v23 = vld [vmem:[%s2905_s1 + $0xf0] sm:$0xff]   ;;  %v2231_v24 = vld [vmem:[%s2447_s10 + $0x2c] ss:$20 sps:$4 sm:$0xff]  }
  0x15   : > { %v2233_v25 = vld [vmem:[%s2447_s10 + $0x20c] ss:$20 sps:$4 sm:$0xff]   ;;  %v2230_v26 = vld [vmem:[%s2905_s1 + $0xb0] sm:$0xff]   ;;  %v2236_v29 = vld [vmem:[%s2447_s10 + $0x208] ss:$20 sps:$4 sm:$0xff]  }
  0x16   : > { %1884 = vmatpush3.bf16.msra.mxu0 %v2209_v5  ;;  %2173 = vmatpush3.bf16.msra.mxu1 %v2209_v5  ;;  %v2238_v30 = vld [vmem:[%s2905_s1 + $0xa8] sm:$0xff]   ;;  %v2239_v31 = vld [vmem:[%s2905_s1 + $0xe0] sm:$0xff]   ;;  %v2260_v35 = vld [vmem:[%s2905_s1 + $0x110] sm:$0xff]  }
  0x17   : > { %1885 = vmatprep.subr.bf16.mxu0 %v2210_v6  ;;  %2166 = vmatprep.subr.bf16.mxu1 %v2210_v6  ;;  %v2241_v32 = vld [vmem:[%s2447_s10 + $0x54] ss:$20 sps:$4 sm:$0xff]   ;;  %v2240_v34 = vld [vmem:[%s2905_s1 + $0xa0] sm:$0xff]   ;;  %v2247_v37 = vld [vmem:[%s2905_s1 + $0xd8] sm:$0xff]  }
  0x18   : > { %v2243_v33 = vld [vmem:[%s2447_s10 + $0x234] ss:$20 sps:$4 sm:$0xff]   ;;  %v2245_v36 = vld [vmem:[%s2447_s10 + $0x50] ss:$20 sps:$4 sm:$0xff]   ;;  %v2248_v39 = vld [vmem:[%s2905_s1 + $0x98] sm:$0xff]  }
  0x19   : > { %v2246_v38 = vld [vmem:[%s2447_s10 + $0x230] ss:$20 sps:$4 sm:$0xff]   ;;  %v2255_v44 = vld [vmem:[%s2447_s10 + $0x78] ss:$20 sps:$4 sm:$0xff]   ;;  %v2264_v53 = vld [vmem:[%s2447_s10 + $0x8] ss:$20 sps:$4 sm:$0xff]  }
  0x1a   : > { %1886 = vmatpush3.bf16.msra.mxu0 %v2211_v7  ;;  %2174 = vmatpush3.bf16.msra.mxu1 %v2211_v7  ;;  %v2249_v40 = vld [vmem:[%s2905_s1 + $0xd0] sm:$0xff]   ;;  %v2256_v45 = vld [vmem:[%s2447_s10 + $0x258] ss:$20 sps:$4 sm:$0xff]   ;;  %v2259_v49 = vld [vmem:[%s2905_s1 + $0xc0] sm:$0xff]  }
  0x1b   : > { %1887 = vmatprep.subr.bf16.mxu0 %v2212_v8  ;;  %2167 = vmatprep.subr.bf16.mxu1 %v2212_v8  ;;  %v2251_v41 = vld [vmem:[%s2447_s10 + $0x7c] ss:$20 sps:$4 sm:$0xff]   ;;  %v2257_v46 = vld [vmem:[%s2905_s1 + $0xc8] sm:$0xff]   ;;  %v2262_v50 = vld [vmem:[%s2447_s10 + $0xa4] ss:$20 sps:$4 sm:$0xff]  }
  0x1c   : > { %v2253_v42 = vld [vmem:[%s2447_s10 + $0x25c] ss:$20 sps:$4 sm:$0xff]   ;;  %v2280_v47 = vld [vmem:[%s2905_s1 + $0x108] sm:$0xff]   ;;  %v2261_v52 = vld [vmem:[%s2905_s1 + $0x80] sm:$0xff]  }
  0x1d   : > { %v2250_v43 = vld [vmem:[%s2905_s1 + $0x90] sm:$0xff]   ;;  %v2258_v48 = vld [vmem:[%s2905_s1 + $0x88] sm:$0xff]   ;;  %v2299_v56 = vld [vmem:[%s2905_s1 + $0x100] sm:$0xff]  }
  0x1e   : > { %1888 = vmatpush3.bf16.msra.mxu0 %v2213_v9  ;;  %2175 = vmatpush3.bf16.msra.mxu1 %v2213_v9  ;;  %v2266_v51 = vld [vmem:[%s2447_s10 + $0xc] ss:$20 sps:$4 sm:$0xff]   ;;  %v2270_v57 = vld [vmem:[%s2447_s10 + $0x34] ss:$20 sps:$4 sm:$0xff]   ;;  %v2273_v59 = vld [vmem:[%s2447_s10 + $0x30] ss:$20 sps:$4 sm:$0xff]  }
  0x1f   : > { %1889 = vmatprep.subr.bf16.mxu0 %v2214_v10  ;;  %2168 = vmatprep.subr.bf16.mxu1 %v2214_v10  ;;  %v2267_v54 = vld [vmem:[%s2447_s10 + $0xa0] ss:$20 sps:$4 sm:$0xff]   ;;  %v2272_v58 = vld [vmem:[%s2447_s10 + $0xc8] ss:$20 sps:$4 sm:$0xff]   ;;  %v2278_v62 = vld [vmem:[%s2447_s10 + $0xf0] ss:$20 sps:$4 sm:$0xff]  }
  0x20   : > { %v2268_v55 = vld [vmem:[%s2447_s10 + $0xcc] ss:$20 sps:$4 sm:$0xff]   ;;  %v2274_v60 = vld [vmem:[%s2447_s10 + $0xf4] ss:$20 sps:$4 sm:$0xff]   ;;  %v2276_v61 = vld [vmem:[%s2447_s10 + $0x5c] ss:$20 sps:$4 sm:$0xff]  }
  0x21   : > { %v2279_v63 = vld [vmem:[%s2447_s10 + $0x58] ss:$20 sps:$4 sm:$0xff]   ;;  %v2281_v0 = vld [vmem:[%s2447_s10 + $0x11c] ss:$20 sps:$4 sm:$0xff]   ;;  %v2286_v3 = vld [vmem:[%s2447_s10 + $0x80] ss:$20 sps:$4 sm:$0xff]  }
  0x22   : > { %1890 = vmatpush3.bf16.msra.mxu0 %v2215_v13  ;;  %2176 = vmatpush3.bf16.msra.mxu1 %v2215_v13  ;;  %v2283_v1 = vld [vmem:[%s2447_s10 + $0x84] ss:$20 sps:$4 sm:$0xff]   ;;  %v2289_v5 = vld [vmem:[%s2447_s10 + $0xac] ss:$20 sps:$4 sm:$0xff]   ;;  %v2292_v7 = vld [vmem:[%s2447_s10 + $0xa8] ss:$20 sps:$4 sm:$0xff]  }
  0x23   : > { %1891 = vmatprep.subr.bf16.mxu0 %v2216_v14  ;;  %2169 = vmatprep.subr.bf16.mxu1 %v2216_v14  ;;  %v2285_v2 = vld [vmem:[%s2447_s10 + $0x118] ss:$20 sps:$4 sm:$0xff]   ;;  %v2291_v6 = vld [vmem:[%s2447_s10 + $0x140] ss:$20 sps:$4 sm:$0xff]   ;;  %v2297_v10 = vld [vmem:[%s2447_s10 + $0x168] ss:$20 sps:$4 sm:$0xff]  }
  0x24   : > { %v2287_v4 = vld [vmem:[%s2447_s10 + $0x144] ss:$20 sps:$4 sm:$0xff]   ;;  %v2293_v8 = vld [vmem:[%s2447_s10 + $0x16c] ss:$20 sps:$4 sm:$0xff]   ;;  %v2295_v9 = vld [vmem:[%s2447_s10 + $0xd4] ss:$20 sps:$4 sm:$0xff]  }
  0x25   : > { %v2298_v11 = vld [vmem:[%s2447_s10 + $0xd0] ss:$20 sps:$4 sm:$0xff]   ;;  %v2300_v12 = vld [vmem:[%s2447_s10 + $0x194] ss:$20 sps:$4 sm:$0xff]  }
  0x26   : > { %1892 = vmatpush3.bf16.msra.mxu0 %v2217_v15  ;;  %2177 = vmatpush3.bf16.msra.mxu1 %v2217_v15  ;;  %v2302_v13 = vld [vmem:[%s2447_s10 + $0xfc] ss:$20 sps:$4 sm:$0xff]   ;;  %v2305_v15 = vld [vmem:[%s2447_s10 + $0xf8] ss:$20 sps:$4 sm:$0xff]  }
  0x27   : > { %1893 = vmatprep.subr.bf16.mxu0 %v2218_v16  ;;  %2170 = vmatprep.subr.bf16.mxu1 %v2218_v16  ;;  %v2304_v14 = vld [vmem:[%s2447_s10 + $0x190] ss:$20 sps:$4 sm:$0xff]  }
  0x28   : > { %v2306_v16 = vld [vmem:[%s2447_s10 + $0x1bc] ss:$20 sps:$4 sm:$0xff]  }
  0x2a   : > { %1894 = vmatpush3.bf16.msra.mxu0 %v2219_v17  ;;  %2178 = vmatpush3.bf16.msra.mxu1 %v2219_v17  ;;  %v2308_v17 = vld [vmem:[%s2447_s10 + $0x124] ss:$20 sps:$4 sm:$0xff]  }
  0x2b   : > { %1991 = vmatprep.subr.bf16.mxu1 %v2226_v18  ;;  %2123 = vmatprep.subr.bf16.mxu0 %v2229_v19  ;;  %v2310_v18 = vld [vmem:[%s2447_s10 + $0x1b8] ss:$20 sps:$4 sm:$0xff]  }
  0x2d   : > { %1082 = vmatmul.mubr.bf16.vlgmr.msra.gmra.mxu0 %v2220_v20  ;;  %1178 = vmatmul.mubr.bf16.vlgmr.msra.gmra.mxu1 %v2223_v21  ;;  %v2312_v20 = vld [vmem:[%s2447_s10 + $0x14c] ss:$20 sps:$4 sm:$0xff]   ;;  %v2314_v21 = vld [vmem:[%s2447_s10 + $0x10] ss:$20 sps:$4 sm:$0xff]  }
  0x2e   : > { %1992 = vmatpush3.bf16.msra.mxu1 %v2227_v22  ;;  %2124 = vmatpush3.bf16.msra.mxu0 %v2229_v19  ;;  %v2311_v19 = vld [vmem:[%s2447_s10 + $0x120] ss:$20 sps:$4 sm:$0xff]   ;;  %v2315_v22 = vld [vmem:[%s2447_s10 + $0x148] ss:$20 sps:$4 sm:$0xff]  }
  0x2f   : > { %1993 = vmatprep.subr.bf16.mxu1 %v2228_v23  ;;  %1089 = vmatprep.mubr.bf16.mxu0 %v2231_v24  ;;  %v2316_v23 = vld [vmem:[%s2447_s10 + $0x38] ss:$20 sps:$4 sm:$0xff]   ;;  %v2317_v24 = vld [vmem:[%s2447_s10 + $0x174] ss:$20 sps:$4 sm:$0xff]  }
  0x30   : > { %1185 = vmatprep.mubr.bf16.mxu1 %v2233_v25  ;;  %2125 = vmatprep.subr.bf16.mxu0 %v2260_v35  ;;  %v2319_v25 = vld [vmem:[%s2447_s10 + $0x60] ss:$20 sps:$4 sm:$0xff]  }
  0x32   : > { %1994 = vmatpush3.bf16.msra.mxu1 %v2230_v26  ;;  %2126 = vmatpush3.bf16.msra.mxu0 %v2260_v35  ;;  %v2320_v26 = vld [vmem:[%s2447_s10 + $0x170] ss:$20 sps:$4 sm:$0xff]   ;;  %v2331_v35 = vld [vmem:[%s2447_s10 + $0x128] ss:$20 sps:$4 sm:$0xff]  }
  0x33   : > { %1995 = vmatprep.subr.bf16.mxu1 %v2237_v28  ;;  %2127 = vmatprep.subr.bf16.mxu0 %v2280_v47  ;;  %v2322_v28 = vld [vmem:[%s2447_s10 + $0x19c] ss:$20 sps:$4 sm:$0xff]  }
  0x35   : > { %1090 = vmatmul.mubr.bf16.gmra.mxu0 %v2235_v27  ;;  %1186 = vmatmul.mubr.bf16.gmra.mxu1 %v2236_v29  ;;  %v2321_v27 = vld [vmem:[%s2447_s10 + $0x88] ss:$20 sps:$4 sm:$0xff]   ;;  %v2324_v29 = vld [vmem:[%s2447_s10 + $0xb0] ss:$20 sps:$4 sm:$0xff]  }
  0x36   : > { %1996 = vmatpush3.bf16.msra.mxu1 %v2238_v30  ;;  %1097 = vmatprep.mubr.bf16.mxu0 %v2241_v32  ;;  %v2325_v30 = vld [vmem:[%s2447_s10 + $0x198] ss:$20 sps:$4 sm:$0xff]  }
  0x37   : > { %1997 = vmatprep.subr.bf16.mxu1 %v2239_v31  ;;  %1193 = vmatprep.mubr.bf16.mxu1 %v2243_v33  ;;  %v2326_v31 = vld [vmem:[%s2447_s10 + $0xd8] ss:$20 sps:$4 sm:$0xff]   ;;  %v2329_v33 = vld [vmem:[%s2447_s10 + $0x100] ss:$20 sps:$4 sm:$0xff]  }
  0x38   : > { %2128 = vmatpush3.bf16.msra.mxu0 %v2280_v47  ;;  %v2327_v32 = vld [vmem:[%s2447_s10 + $0x1c4] ss:$20 sps:$4 sm:$0xff]  }
  0x39   : > { %2129 = vmatprep.subr.bf16.mxu0 %v2299_v56  ;;  %v2346_v47 = vld [vmem:[%s2447_s10 + $0x218] ss:$20 sps:$4 sm:$0xff]  }
  0x3a   : > { %1998 = vmatpush3.bf16.msra.mxu1 %v2240_v34  ;;  %v2330_v34 = vld [vmem:[%s2447_s10 + $0x1c0] ss:$20 sps:$4 sm:$0xff]  }
  0x3b   : > { %1999 = vmatprep.subr.bf16.mxu1 %v2247_v37  ;;  %v2334_v37 = vld [vmem:[%s2447_s10 + $0x150] ss:$20 sps:$4 sm:$0xff]  }
  0x3c   : > { %2130 = vmatpush3.bf16.msra.mxu0 %v2299_v56 }
  0x3d   : > { %1098 = vmatmul.mubr.bf16.gmra.mxu0 %v2245_v36  ;;  %1194 = vmatmul.mubr.bf16.gmra.mxu1 %v2246_v38  ;;  %v2332_v36 = vld [vmem:[%s2447_s10 + $0x1ec] ss:$20 sps:$4 sm:$0xff]   ;;  %v2335_v38 = vld [vmem:[%s2447_s10 + $0x1e8] ss:$20 sps:$4 sm:$0xff]  }
  0x3e   : > { %2000 = vmatpush3.bf16.msra.mxu1 %v2248_v39  ;;  %1105 = vmatprep.mubr.bf16.mxu0 %v2251_v41  ;;  %v2336_v39 = vld [vmem:[%s2447_s10 + $0x178] ss:$20 sps:$4 sm:$0xff]   ;;  %v2339_v41 = vld [vmem:[%s2447_s10 + $0x1a0] ss:$20 sps:$4 sm:$0xff]  }
  0x3f   : > { %2001 = vmatprep.subr.bf16.mxu1 %v2249_v40  ;;  %1201 = vmatprep.mubr.bf16.mxu1 %v2253_v42  ;;  %v2337_v40 = vld [vmem:[%s2447_s10 + $0x214] ss:$20 sps:$4 sm:$0xff]   ;;  %v2340_v42 = vld [vmem:[%s2447_s10 + $0x210] ss:$20 sps:$4 sm:$0xff]  }
  0x42   : > { %2002 = vmatpush3.bf16.msra.mxu1 %v2250_v43  ;;  %v2341_v43 = vld [vmem:[%s2447_s10 + $0x1c8] ss:$20 sps:$4 sm:$0xff]  }
  0x43   : > { %2003 = vmatprep.subr.bf16.mxu1 %v2257_v46  ;;  %v2345_v46 = vld [vmem:[%s2447_s10 + $0x238] ss:$20 sps:$4 sm:$0xff]  }
  0x45   : > { %1106 = vmatmul.mubr.bf16.gmra.mxu0 %v2255_v44  ;;  %1202 = vmatmul.mubr.bf16.gmra.mxu1 %v2256_v45  ;;  %v2342_v44 = vld [vmem:[%s2447_s10 + $0x23c] ss:$20 sps:$4 sm:$0xff]  }
  0x46   : > { %2004 = vmatpush3.bf16.msra.mxu1 %v2258_v48  ;;  %1113 = vmatprep.mubr.bf16.mxu0 %v2262_v50  ;;  %v2344_v45 = vld [vmem:[%s2447_s10 + $0x1f0] ss:$20 sps:$4 sm:$0xff]   ;;  %v2350_v50 = vld [vmem:[%s2447_s10 + $0x260] ss:$20 sps:$4 sm:$0xff]  }
  0x47   : > { %2005 = vmatprep.subr.bf16.mxu1 %v2259_v49  ;;  %1242 = vmatprep.mubr.bf16.mxu1 %v2266_v51  ;;  %v2347_v48 = vld [vmem:[%s2447_s10 + $0x264] ss:$20 sps:$4 sm:$0xff]   ;;  %v2349_v49 = vld [vmem:[%s2447_s10 + $0x240] ss:$20 sps:$4 sm:$0xff]   ;;  %v2351_v51 = vld [vmem:[%s2447_s10 + $0x268] ss:$20 sps:$4 sm:$0xff]  }
  0x4a   : > { %2006 = vmatpush3.bf16.msra.mxu1 %v2261_v52 }
  0x4d   : > { %1114 = vmatmul.mubr.bf16.gmra.mxu0 %v2267_v54  ;;  %1243 = vmatmul.mubr.bf16.vlgmr.msra.gmra.mxu1 %v2264_v53 }
  0x4e   : > { %1121 = vmatprep.mubr.bf16.mxu0 %v2268_v55  ;;  %1250 = vmatprep.mubr.bf16.mxu1 %v2270_v57 }
  0x55   : > { %1122 = vmatmul.mubr.bf16.gmra.mxu0 %v2272_v58  ;;  %1251 = vmatmul.mubr.bf16.gmra.mxu1 %v2273_v59 }
  0x56   : > { %1129 = vmatprep.mubr.bf16.mxu0 %v2274_v60  ;;  %1258 = vmatprep.mubr.bf16.mxu1 %v2276_v61 }
  0x5d   : > { %1130 = vmatmul.mubr.bf16.gmra.mxu0 %v2278_v62  ;;  %1259 = vmatmul.mubr.bf16.gmra.mxu1 %v2279_v63 }
  0x5e   : > { %1137 = vmatprep.mubr.bf16.mxu0 %v2281_v0  ;;  %1266 = vmatprep.mubr.bf16.mxu1 %v2283_v1 }
  0x65   : > { %1138 = vmatmul.mubr.bf16.gmra.mxu0 %v2285_v2  ;;  %1267 = vmatmul.mubr.bf16.gmra.mxu1 %v2286_v3 }
  0x66   : > { %1145 = vmatprep.mubr.bf16.mxu0 %v2287_v4  ;;  %1274 = vmatprep.mubr.bf16.mxu1 %v2289_v5 }
  0x6d   : > { %1146 = vmatmul.mubr.bf16.gmra.mxu0 %v2291_v6  ;;  %1275 = vmatmul.mubr.bf16.gmra.mxu1 %v2292_v7 }
  0x6e   : > { %1153 = vmatprep.mubr.bf16.mxu0 %v2293_v8  ;;  %1282 = vmatprep.mubr.bf16.mxu1 %v2295_v9 }
  0x75   : > { %1154 = vmatmul.mubr.bf16.gmra.mxu0 %v2297_v10  ;;  %1283 = vmatmul.mubr.bf16.gmra.mxu1 %v2298_v11 }
  0x76   : > { %1161 = vmatprep.mubr.bf16.mxu0 %v2300_v12  ;;  %1290 = vmatprep.mubr.bf16.mxu1 %v2302_v13 }
  0x7d   : > { %1162 = vmatmul.mubr.bf16.gmra.mxu0 %v2304_v14  ;;  %1291 = vmatmul.mubr.bf16.gmra.mxu1 %v2305_v15 }
  0x7e   : > { %1169 = vmatprep.mubr.bf16.mxu0 %v2306_v16  ;;  %1298 = vmatprep.mubr.bf16.mxu1 %v2308_v17 }
  0x85   : > { %1170 = vmatmul.mubr.bf16.gmra.mxu0 %v2310_v18  ;;  %1299 = vmatmul.mubr.bf16.gmra.mxu1 %v2311_v19 }
  0x86   : > { %1306 = vmatprep.mubr.bf16.mxu1 %v2312_v20  ;;  %2131 = vmatprep.mubr.msk.bf16.mxu0 %vm1000_vm0, %v2314_v21 }
  0x8d   : > { %1307 = vmatmul.mubr.bf16.gmra.mxu1 %v2315_v22  ;;  %2132 = vmatmul.mubr.msk.bf16.vlgmr.msra.gmra.mxu0 %vm1000_vm0, %v2316_v23 }
  0x8e   : > { %1314 = vmatprep.mubr.bf16.mxu1 %v2317_v24  ;;  %2135 = vmatprep.mubr.msk.bf16.mxu0 %vm1000_vm0, %v2319_v25 }
  0x95   : > { %1315 = vmatmul.mubr.bf16.gmra.mxu1 %v2320_v26  ;;  %2136 = vmatmul.mubr.msk.bf16.gmra.mxu0 %vm1000_vm0, %v2321_v27 }
  0x96   : > { %1322 = vmatprep.mubr.bf16.mxu1 %v2322_v28  ;;  %2139 = vmatprep.mubr.msk.bf16.mxu0 %vm1000_vm0, %v2324_v29 }
  0x9d   : > { %1323 = vmatmul.mubr.bf16.gmra.mxu1 %v2325_v30  ;;  %2140 = vmatmul.mubr.msk.bf16.gmra.mxu0 %vm1000_vm0, %v2326_v31 }
  0x9e   : > { %1330 = vmatprep.mubr.bf16.mxu1 %v2327_v32  ;;  %2143 = vmatprep.mubr.msk.bf16.mxu0 %vm1000_vm0, %v2329_v33 }
  0xa5   : > { %1331 = vmatmul.mubr.bf16.gmra.mxu1 %v2330_v34  ;;  %2144 = vmatmul.mubr.msk.bf16.gmra.mxu0 %vm1000_vm0, %v2331_v35 }
  0xa6   : > { %1338 = vmatprep.mubr.bf16.mxu1 %v2332_v36  ;;  %2147 = vmatprep.mubr.msk.bf16.mxu0 %vm1000_vm0, %v2334_v37 }
  0xad   : > { %1339 = vmatmul.mubr.bf16.gmra.mxu1 %v2335_v38  ;;  %2148 = vmatmul.mubr.msk.bf16.gmra.mxu0 %vm1000_vm0, %v2336_v39  ;;  %v2647_v38 = vld [vmem:[%s2906_s2] ss:$0 sm:$0xff] }
  0xae   : > { %1346 = vmatprep.mubr.bf16.mxu1 %v2337_v40  ;;  %2151 = vmatprep.mubr.msk.bf16.mxu0 %vm1000_vm0, %v2339_v41 }
  0xb5   : > { %1347 = vmatmul.mubr.bf16.gmra.mxu1 %v2340_v42  ;;  %2152 = vmatmul.mubr.msk.bf16.gmra.mxu0 %vm1000_vm0, %v2341_v43 }
  0xb6   : > { %1354 = vmatprep.mubr.bf16.mxu1 %v2342_v44  ;;  %2155 = vmatprep.mubr.msk.bf16.mxu0 %vm1000_vm0, %v2344_v45 }
  0xbd   : > { %1355 = vmatmul.mubr.bf16.gmra.mxu1 %v2345_v46  ;;  %2156 = vmatmul.mubr.msk.bf16.gmra.mxu0 %vm1000_vm0, %v2346_v47 }
  0xbe   : > { %1362 = vmatprep.mubr.bf16.mxu1 %v2347_v48  ;;  %2159 = vmatprep.mubr.msk.bf16.mxu0 %vm1000_vm0, %v2349_v49 }
  0xc5   : > { %1363 = vmatmul.mubr.bf16.gmra.mxu1 %v2350_v50  ;;  %2160 = vmatmul.mubr.msk.bf16.gmra.mxu0 %vm1000_vm0, %v2351_v51 }
  0xed   : > { %v1895_v52 = vpop.f32.mrf.mxu0  ;;  %v1967_v53 = vpop.f32.mrf.mxu1 }
  0xef   : > { %v1896_v54 = vpop.f32.mrf.mxu0  ;;  %v1968_v55 = vpop.f32.mrf.mxu1 }
  0xf0   : > { %v1897_v56 = vadd.f32 %v1896_v54, %v1895_v52  ;;  %v2626_v57 = vadd.f32 %v1968_v55, %v1967_v53 }
  0xf1   : > { %v1898_v58 = vpop.f32.mrf.mxu0  ;;  %v1970_v59 = vpop.f32.mrf.mxu1 }
  0xf2   : > { %v1084_v41 = vadd.f32 %v1897_v56, %v2647_v38 }
  0xf3   : > { %v1899_v60 = vpop.f32.mrf.mxu0  ;;  %v1971_v61 = vpop.f32.mrf.mxu1 }
  0xf4   : > { %v1900_v62 = vadd.f32 %v1899_v60, %v1898_v58  ;;  %v2628_v63 = vadd.f32 %v1971_v61, %v1970_v59 }
  0xf5   : > { %v1901_v0 = vpop.f32.mrf.mxu0  ;;  %v1973_v1 = vpop.f32.mrf.mxu1 }
  0xf6   : > { %v1087_v49 = vadd.f32 %v1900_v62, %v2647_v38 }
  0xf7   : > { %v1902_v2 = vpop.f32.mrf.mxu0  ;;  %v1974_v3 = vpop.f32.mrf.mxu1 }
  0xf8   : > { %v1903_v4 = vadd.f32 %v1902_v2, %v1901_v0  ;;  %v2630_v5 = vadd.f32 %v1974_v3, %v1973_v1 }
  0xf9   : > { %v1904_v6 = vpop.f32.mrf.mxu0  ;;  %v1976_v7 = vpop.f32.mrf.mxu1 }
  0xfa   : > { %v1092_v58 = vadd.f32 %v1903_v4, %v2647_v38 }
  0xfb   : > { %v1905_v8 = vpop.f32.mrf.mxu0  ;;  %v1977_v9 = vpop.f32.mrf.mxu1 }
  0xfc   : > { %v1906_v10 = vadd.f32 %v1905_v8, %v1904_v6  ;;  %v2632_v11 = vadd.f32 %v1977_v9, %v1976_v7 }
  0xfd   : > { %v1907_v12 = vpop.f32.mrf.mxu0  ;;  %v1979_v13 = vpop.f32.mrf.mxu1 }
  0xfe   : > { %v1095_v3 = vadd.f32 %v1906_v10, %v2647_v38 }
  0xff   : > { %v1908_v14 = vpop.f32.mrf.mxu0  ;;  %v1980_v15 = vpop.f32.mrf.mxu1 }
 0x100   : > { %v1909_v16 = vadd.f32 %v1908_v14, %v1907_v12  ;;  %v2634_v17 = vadd.f32 %v1980_v15, %v1979_v13 }
 0x101   : > { %v1910_v18 = vpop.f32.mrf.mxu0  ;;  %v1982_v19 = vpop.f32.mrf.mxu1 }
 0x102   : > { %v1100_v14 = vadd.f32 %v1909_v16, %v2647_v38 }
 0x103   : > { %v1911_v20 = vpop.f32.mrf.mxu0  ;;  %v1983_v21 = vpop.f32.mrf.mxu1 }
 0x104   : > { %v1912_v22 = vadd.f32 %v1911_v20, %v1910_v18  ;;  %v2636_v23 = vadd.f32 %v1983_v21, %v1982_v19 }
 0x105   : > { %v1913_v24 = vpop.f32.mrf.mxu0  ;;  %v1985_v25 = vpop.f32.mrf.mxu1 }
 0x107   : > { %v1914_v26 = vpop.f32.mrf.mxu0  ;;  %v1986_v27 = vpop.f32.mrf.mxu1 }
 0x108   : > { %v1915_v28 = vadd.f32 %v1914_v26, %v1913_v24  ;;  %v2638_v29 = vadd.f32 %v1986_v27, %v1985_v25  ;;  %v1103_v25 = vadd.f32 %v1912_v22, %v2647_v38 }
 0x109   : > { %v1916_v30 = vpop.f32.mrf.mxu0  ;;  %v1988_v31 = vpop.f32.mrf.mxu1 }
 0x10b   : > { %v1917_v32 = vpop.f32.mrf.mxu0  ;;  %v1989_v33 = vpop.f32.mrf.mxu1 }
 0x10c   : > { %v2640_v34 = vadd.f32 %v1917_v32, %v1916_v30  ;;  %v2642_v35 = vadd.f32 %v1989_v33, %v1988_v31 }
 0x10d   : > { %v1919_v36 = vpop.f32.mrf.mxu0  ;;  %v2007_v37 = vpop.f32.mrf.mxu1 }
 0x10e   : > { %2908 = vst [vmem:[#allocation2_spill] sm:$0xff] %v2642_v35 }
 0x10f   : > { %v1920_v39 = vpop.f32.mrf.mxu0  ;;  %v2008_v40 = vpop.f32.mrf.mxu1 }
 0x110   : > { %v2650_v42 = vadd.f32 %v1920_v39, %v1919_v36  ;;  %v2009_v43 = vadd.f32 %v2008_v40, %v2007_v37  ;;  %v1108_v36 = vadd.f32 %v1915_v28, %v2647_v38 }
 0x111   : > { %v1922_v44 = vpop.f32.mrf.mxu0  ;;  %v2010_v45 = vpop.f32.mrf.mxu1 }
 0x112   : > { %v2652_v46 = vadd.f32 %v2009_v43, %v1084_v41 }
 0x113   : > { %v1923_v47 = vpop.f32.mrf.mxu0  ;;  %v2011_v48 = vpop.f32.mrf.mxu1 }
 0x114   : > { %v2655_v50 = vadd.f32 %v1923_v47, %v1922_v44  ;;  %v2012_v51 = vadd.f32 %v2011_v48, %v2010_v45  ;;  %v1111_v45 = vadd.f32 %v2640_v34, %v2647_v38 }
 0x115   : > { %v1925_v52 = vpop.f32.mrf.mxu0  ;;  %v2013_v53 = vpop.f32.mrf.mxu1 }
 0x116   : > { %v2657_v54 = vadd.f32 %v2012_v51, %v1087_v49 }
 0x117   : > { %v1926_v55 = vpop.f32.mrf.mxu0  ;;  %v2014_v56 = vpop.f32.mrf.mxu1 }
 0x118   : > { %v2660_v59 = vadd.f32 %v1926_v55, %v1925_v52  ;;  %v2015_v60 = vadd.f32 %v2014_v56, %v2013_v53  ;;  %v1116_v55 = vadd.f32 %v2650_v42, %v2647_v38 }
 0x119   : > { %v1928_v61 = vpop.f32.mrf.mxu0  ;;  %v2016_v0 = vpop.f32.mrf.mxu1 }
 0x11a   : > { %v2662_v1 = vadd.f32 %v2015_v60, %v1092_v58 }
 0x11b   : > { %v1929_v2 = vpop.f32.mrf.mxu0  ;;  %v2017_v62 = vpop.f32.mrf.mxu1 }
 0x11c   : > { %v2665_v6 = vadd.f32 %v1929_v2, %v1928_v61  ;;  %v2018_v7 = vadd.f32 %v2017_v62, %v2016_v0  ;;  %v1119_v62 = vadd.f32 %v2655_v50, %v2647_v38 }
 0x11d   : > { %v1931_v8 = vpop.f32.mrf.mxu0  ;;  %v2019_v9 = vpop.f32.mrf.mxu1 }
 0x11e   : > { %v2667_v12 = vadd.f32 %v2018_v7, %v1095_v3 }
 0x11f   : > { %v1932_v13 = vpop.f32.mrf.mxu0  ;;  %v2020_v4 = vpop.f32.mrf.mxu1 }
 0x120   : > { %v2670_v15 = vadd.f32 %v1932_v13, %v1931_v8  ;;  %v2021_v18 = vadd.f32 %v2020_v4, %v2019_v9 }
 0x121   : > { %v1934_v19 = vpop.f32.mrf.mxu0  ;;  %v2022_v20 = vpop.f32.mrf.mxu1 }
 0x122   : > { %v2672_v21 = vadd.f32 %v2021_v18, %v1100_v14  ;;  %v1124_v14 = vadd.f32 %v2660_v59, %v2647_v38  ;;  %v1132_v59 = vadd.f32 %v2670_v15, %v2647_v38 }
 0x123   : > { %v1935_v24 = vpop.f32.mrf.mxu0  ;;  %v2023_v10 = vpop.f32.mrf.mxu1 }
 0x124   : > { %v2675_v26 = vadd.f32 %v1935_v24, %v1934_v19  ;;  %v2024_v27 = vadd.f32 %v2023_v10, %v2022_v20 }
 0x125   : > { %v1937_v30 = vpop.f32.mrf.mxu0  ;;  %v2025_v31 = vpop.f32.mrf.mxu1 }
 0x126   : > { %v2677_v32 = vadd.f32 %v2024_v27, %v1103_v25  ;;  %v1127_v27 = vadd.f32 %v2665_v6, %v2647_v38 }
 0x127   : > { %v1938_v33 = vpop.f32.mrf.mxu0  ;;  %v2026_v16 = vpop.f32.mrf.mxu1 }
 0x128   : > { %v2680_v37 = vadd.f32 %v1938_v33, %v1937_v30  ;;  %v2027_v39 = vadd.f32 %v2026_v16, %v2025_v31 }
 0x129   : > { %v1940_v40 = vpop.f32.mrf.mxu0  ;;  %v2028_v41 = vpop.f32.mrf.mxu1 }
 0x12a   : > { %v2682_v43 = vadd.f32 %v2027_v39, %v1108_v36 }
 0x12b   : > { %v1941_v44 = vpop.f32.mrf.mxu0  ;;  %v2029_v22 = vpop.f32.mrf.mxu1 }
 0x12c   : > { %v1942_v47 = vadd.f32 %v1941_v44, %v1940_v40  ;;  %v2030_v48 = vadd.f32 %v2029_v22, %v2028_v41 }
 0x12d   : > { %v1943_v49 = vpop.f32.mrf.mxu0  ;;  %v2031_v51 = vpop.f32.mrf.mxu1 }
 0x12e   : > { %v2686_v52 = vadd.f32 %v2030_v48, %v1111_v45 }
 0x12f   : > { %v1944_v53 = vpop.f32.mrf.mxu0  ;;  %v2032_v28 = vpop.f32.mrf.mxu1 }
 0x130   : > { %v2690_v56 = vadd.f32 %v1944_v53, %v1943_v49  ;;  %v2033_v58 = vadd.f32 %v2032_v28, %v2031_v51  ;;  %v1135_v51 = vadd.f32 %v2675_v26, %v2647_v38 }
 0x131   : > { %v1946_v60 = vpop.f32.mrf.mxu0  ;;  %v2034_v61 = vpop.f32.mrf.mxu1 }
 0x132   : > { %v2692_v0 = vadd.f32 %v2033_v58, %v1116_v55 }
 0x133   : > { %v1947_v2 = vpop.f32.mrf.mxu0  ;;  %v2035_v34 = vpop.f32.mrf.mxu1 }
 0x134   : > { %v2696_v3 = vadd.f32 %v1947_v2, %v1946_v60  ;;  %v2036_v7 = vadd.f32 %v2035_v34, %v2034_v61  ;;  %v1140_v2 = vadd.f32 %v2680_v37, %v2647_v38 }
 0x135   : > { %v1949_v8 = vpop.f32.mrf.mxu0  ;;  %v2037_v9 = vpop.f32.mrf.mxu1 }
 0x136   : > { %v2698_v13 = vadd.f32 %v2036_v7, %v1119_v62 }
 0x137   : > { %v1950_v42 = vpop.f32.mrf.mxu0  ;;  %v2038_v4 = vpop.f32.mrf.mxu1 }
 0x138   : > { %v2702_v18 = vadd.f32 %v1950_v42, %v1949_v8  ;;  %v2039_v19 = vadd.f32 %v2038_v4, %v2037_v9  ;;  %v1143_v42 = vadd.f32 %v1942_v47, %v2647_v38 }
 0x139   : > { %v1952_v20 = vpop.f32.mrf.mxu0  ;;  %v2040_v24 = vpop.f32.mrf.mxu1 }
 0x13a   : > { %v1285_v10 = vadd.f32 %v2039_v19, %v1124_v14 }
 0x13b   : > { %v1953_v25 = vpop.f32.mrf.mxu0  ;;  %v2041_v50 = vpop.f32.mrf.mxu1 }
 0x13c   : > { %v2706_v30 = vadd.f32 %v1953_v25, %v1952_v20  ;;  %v2042_v31 = vadd.f32 %v2041_v50, %v2040_v24 }
 0x13d   : > { %v1955_v33 = vpop.f32.mrf.mxu0  ;;  %v2043_v16 = vpop.f32.mrf.mxu1 }
 0x13e   : > { %v1288_v36 = vadd.f32 %v2042_v31, %v1127_v27 }
 0x13f   : > { %v1956_v39 = vpop.f32.mrf.mxu0  ;;  %v2044_v40 = vpop.f32.mrf.mxu1 }
 0x140   : > { %v2710_v41 = vadd.f32 %v1956_v39, %v1955_v33  ;;  %v2045_v44 = vadd.f32 %v2044_v40, %v2043_v16 }
 0x141   : > { %v1958_v22 = vpop.f32.mrf.mxu0  ;;  %v2046_v45 = vpop.f32.mrf.mxu1 }
 0x142   : > { %v2712_v48 = vadd.f32 %v2045_v44, %v1132_v59 }
 0x143   : > { %v1959_v49 = vpop.f32.mrf.mxu0  ;;  %v2047_v6 = vpop.f32.mrf.mxu1 }
 0x144   : > { %v2716_v53 = vadd.f32 %v1959_v49, %v1958_v22  ;;  %v2048_v28 = vadd.f32 %v2047_v6, %v2046_v45 }
 0x145   : > { %v2718_v55 = vpop.f32.mrf.mxu0  ;;  %v2049_v58 = vpop.f32.mrf.mxu1 }
 0x146   : > { %v2720_v60 = vadd.f32 %v2048_v28, %v1135_v51 }
 0x147   : > { %v2722_v15 = vpop.f32.mrf.mxu0  ;;  %v2050_v61 = vpop.f32.mrf.mxu1 }
 0x148   : > { %v2051_v34 = vadd.f32 %v2050_v61, %v2049_v58 }
 0x149   : > { %v2726_v62 = vpop.f32.mrf.mxu0  ;;  %v2052_v7 = vpop.f32.mrf.mxu1 }
 0x14a   : > { %v1301_v8 = vadd.f32 %v2051_v34, %v1140_v2 }
 0x14b   : > { %v2728_v26 = vpop.f32.mrf.mxu0  ;;  %v2053_v9 = vpop.f32.mrf.mxu1 }
 0x14c   : > { %v2054_v4 = vadd.f32 %v2053_v9, %v2052_v7 }
 0x14d   : > { %v2731_v14 = vpop.f32.mrf.mxu1  ;;  %v2133_v19 = vpop.f32.mrf.mxu0 }
 0x14e   : > { %v1304_v20 = vadd.f32 %v2054_v4, %v1143_v42  ;;  %v1414_v45 = vadd.f32 %v2133_v19, %v2662_v1 }
 0x14f   : > { %v2733_v24 = vpop.f32.mrf.mxu1  ;;  %v1405_v25 = vpop.f32.mrf.mxu0 }
 0x150   : > { %v1406_v49 = vadd.f32 %v1405_v25, %v2652_v46  ;;  %v1534_v2 = vmax.f32 %v1414_v45, 0.0 }
 0x151   : > { %v2735_v50 = vpop.f32.mrf.mxu1  ;;  %v2134_v37 = vpop.f32.mrf.mxu0 }
 0x152   : > { %v1417_v34 = vadd.f32 %v2134_v37, %v2667_v12  ;;  %v1532_v42 = vmax.f32 %v1406_v49, 0.0 }
 0x153   : > { %v2737_v27 = vpop.f32.mrf.mxu1  ;;  %v1408_v31 = vpop.f32.mrf.mxu0 }
 0x154   : > { %v1409_v1 = vadd.f32 %v1408_v31, %v2657_v54 }
 0x155   : > { %v2739_v33 = vpop.f32.mrf.mxu1  ;;  %v2137_v16 = vpop.f32.mrf.mxu0 }
 0x156   : > { %v1533_v31 = vmax.f32 %v1409_v1, 0.0 }
 0x157   : > { %v2741_v39 = vpop.f32.mrf.mxu1  ;;  %v1421_v47 = vpop.f32.mrf.mxu0 }
 0x158   : > { %v1422_v49 = vadd.f32 %v1421_v47, %v2672_v21 }
 0x159   : > { %v2743_v40 = vpop.f32.mrf.mxu1  ;;  %v2138_v59 = vpop.f32.mrf.mxu0 }
 0x15a   : > { %v1536_v21 = vmax.f32 %v1422_v49, 0.0 }
 0x15b   : > { %v2745_v44 = vpop.f32.mrf.mxu1  ;;  %v1424_v22 = vpop.f32.mrf.mxu0 }
 0x15d   : > { %v2749_v6 = vpop.f32.mrf.mxu1  ;;  %v2141_v51 = vpop.f32.mrf.mxu0 }
 0x15e   : > { %v1446_v28 = vadd.f32 %v2141_v51, %v1285_v10  ;;  %v1430_v10 = vadd.f32 %v2137_v16, %v2682_v43 }
 0x15f   : > { %v2751_v58 = vpop.f32.mrf.mxu1  ;;  %v1437_v61 = vpop.f32.mrf.mxu0 }
 0x160   : > { %2909 = vst [vmem:[#allocation3_spill] sm:$0xff] %v2751_v58  ;;  %v1542_v7 = vmax.f32 %v1446_v28, 0.0  ;;  %v1438_v9 = vadd.f32 %v1437_v61, %v2692_v0  ;;  %v1535_v58 = vmax.f32 %v1417_v34, 0.0  ;;  %v1538_v43 = vmax.f32 %v1430_v10, 0.0 }
 0x161   : > { %v2755_v4 = vpop.f32.mrf.mxu1  ;;  %v2142_v35 = vpop.f32.mrf.mxu0  ;;  %v1433_v34 = vadd.f32 %v2138_v59, %v2686_v52 }
 0x162   : > { %v2758_v46 = vmax.f32 %v1534_v2, %v1542_v7  ;;  %v1540_v19 = vmax.f32 %v1438_v9, 0.0  ;;  %v1449_v25 = vadd.f32 %v2142_v35, %v1288_v36 }
 0x163   : > { %v2761_v51 = vpop.f32.mrf.mxu1  ;;  %v1440_v45 = vpop.f32.mrf.mxu0 }
 0x164   : > { %v2763_v12 = vmax.f32 %v1532_v42, %v1540_v19  ;;  %v1543_v37 = vmax.f32 %v1449_v25, 0.0  ;;  %v1441_v0 = vadd.f32 %v1440_v45, %v2698_v13  ;;  %v1539_v45 = vmax.f32 %v1433_v34, 0.0 }
 0x165   : > { %v2767_v28 = vpop.f32.mrf.mxu1  ;;  %v2145_v54 = vpop.f32.mrf.mxu0  ;;  %v2063_v34 = vadd.f32 %v2741_v39, %v2739_v33  ;;  %v1188_v33 = vadd.f32 %v2630_v5, %v2647_v38  ;;  %v1191_v39 = vadd.f32 %v2632_v11, %v2647_v38  ;;  %v2066_v5 = vadd.f32 %v2745_v44, %v2743_v40 }
 0x166   : > { %v2769_v61 = vmax.f32 %v1535_v58, %v1543_v37  ;;  %v1541_v35 = vmax.f32 %v1441_v0, 0.0  ;;  %v1462_v36 = vadd.f32 %v2145_v54, %v1301_v8  ;;  %v1425_v58 = vadd.f32 %v1424_v22, %v2677_v32 }
 0x167   : > { %v2771_v16 = vpop.f32.mrf.mxu1  ;;  %v1453_v2 = vpop.f32.mrf.mxu0  ;;  %v2827_v11 = vadd.f32 %v2638_v29, %v2647_v38  ;;  %v1164_v29 = vadd.f32 %v2710_v41, %v2647_v38  ;;  %v2910_v41 = vld [vmem:[#allocation3_spill] sm:$0xff] }
 0x168   : > { %v2774_v7 = vmax.f32 %v1533_v31, %v1541_v35  ;;  %v1546_v9 = vmax.f32 %v1462_v36, 0.0  ;;  %v1454_v13 = vadd.f32 %v1453_v2, %v2712_v48  ;;  %v1537_v49 = vmax.f32 %v1425_v58, 0.0 }
 0x169   : > { %v2777_v47 = vpop.f32.mrf.mxu1  ;;  %v2146_v42 = vpop.f32.mrf.mxu0  ;;  %v1180_v58 = vadd.f32 %v2626_v57, %v2647_v38 }
 0x16a   : > { %v2780_v1 = vmax.f32 %v1538_v43, %v1546_v9  ;;  %v1544_v8 = vmax.f32 %v1454_v13, 0.0  ;;  %v1465_v19 = vadd.f32 %v2146_v42, %v1304_v20  ;;  %v1156_v13 = vadd.f32 %v2702_v18, %v2647_v38 }
 0x16b   : > { %v2782_v25 = vpop.f32.mrf.mxu1  ;;  %v1456_v10 = vpop.f32.mrf.mxu0  ;;  %v2813_v18 = vadd.f32 %v2634_v17, %v2647_v38  ;;  %v1151_v17 = vadd.f32 %v2696_v3, %v2647_v38  ;;  %v1966_v3 = vadd.f32 %v2728_v26, %v2726_v62 }
 0x16c   : > { %v2784_v52 = vmax.f32 %v1536_v21, %v1544_v8  ;;  %v1547_v59 = vmax.f32 %v1465_v19, 0.0  ;;  %v1457_v37 = vadd.f32 %v1456_v10, %v2720_v60  ;;  %v1183_v8 = vadd.f32 %v2628_v63, %v2647_v38 }
 0x16d   : > { %v2079_v48 = vpop.f32.mrf.mxu1  ;;  %v2149_v0 = vpop.f32.mrf.mxu0  ;;  %v2057_v19 = vadd.f32 %v2733_v24, %v2731_v14  ;;  %v2819_v63 = vadd.f32 %v2636_v23, %v2647_v38  ;;  %v1148_v14 = vadd.f32 %v2690_v56, %v2647_v38  ;;  %v1159_v56 = vadd.f32 %v2706_v30, %v2647_v38 }
 0x16e   : > { %v2787_v54 = vmax.f32 %v1539_v45, %v1547_v59  ;;  %v1545_v31 = vmax.f32 %v1457_v37, 0.0  ;;  %v1317_v45 = vadd.f32 %v2063_v34, %v1156_v13  ;;  %v1963_v37 = vadd.f32 %v2722_v15, %v2718_v55 }
 0x16f   : > { %v2080_v32 = vpop.f32.mrf.mxu1  ;;  %v1469_v22 = vpop.f32.mrf.mxu0  ;;  %v1309_v34 = vadd.f32 %v2057_v19, %v1148_v14  ;;  %v2060_v55 = vadd.f32 %v2737_v27, %v2735_v50  ;;  %v1320_v30 = vadd.f32 %v2066_v5, %v1159_v56  ;;  %v2069_v19 = vadd.f32 %v2910_v41, %v2749_v6 }
 0x170   : > { %v2789_v35 = vmax.f32 %v1537_v49, %v1545_v31  ;;  %v2081_v24 = vadd.f32 %v2080_v32, %v2079_v48  ;;  %v1478_v49 = vadd.f32 %v2149_v0, %v1317_v45  ;;  %v1167_v48 = vadd.f32 %v2716_v53, %v2647_v38 }
 0x171   : > { %v2082_v20 = vpop.f32.mrf.mxu1  ;;  %v2150_v36 = vpop.f32.mrf.mxu0  ;;  %v1470_v32 = vadd.f32 %v1469_v22, %v1309_v34  ;;  %v2072_v22 = vadd.f32 %v2761_v51, %v2755_v4 }
 0x172   : > { %v1341_v13 = vadd.f32 %v2081_v24, %v1180_v58  ;;  %v1550_v53 = vmax.f32 %v1478_v49, 0.0  ;;  %v1481_v26 = vadd.f32 %v2150_v36, %v1320_v30  ;;  %v1312_v58 = vadd.f32 %v2060_v55, %v1151_v17 }
 0x173   : > { %v2083_v43 = vpop.f32.mrf.mxu1  ;;  %v2791_v2 = vpop.f32.mrf.mxu0  ;;  %v2075_v36 = vadd.f32 %v2771_v16, %v2767_v28 }
 0x175   : > { %v2085_v9 = vpop.f32.mrf.mxu1  ;;  %v2795_v60 = vpop.f32.mrf.mxu0 }
 0x177   : > { %v2086_v21 = vpop.f32.mrf.mxu1  ;;  %v2799_v42 = vpop.f32.mrf.mxu0 }
 0x178   : > { %v2087_v10 = vadd.f32 %v2086_v21, %v2085_v9  ;;  %v1172_v21 = vadd.f32 %v1963_v37, %v2647_v38  ;;  %v1548_v37 = vmax.f32 %v1470_v32, 0.0 }
 0x179   : > { %v2088_v59 = vpop.f32.mrf.mxu1  ;;  %v2815_v57 = vpop.f32.mrf.mxu0 }
 0x17a   : > { %v1349_v44 = vadd.f32 %v2087_v10, %v1188_v33  ;;  %v2084_v10 = vadd.f32 %v2083_v43, %v2082_v20  ;;  %v1473_v43 = vadd.f32 %v2791_v2, %v1312_v58 }
 0x17b   : > { %v2089_v23 = vpop.f32.mrf.mxu1  ;;  %v2833_v31 = vpop.f32.mrf.mxu0 }
 0x17c   : > { %v2090_v40 = vadd.f32 %v2089_v23, %v2088_v59  ;;  %v1175_v59 = vadd.f32 %v1966_v3, %v2647_v38  ;;  %v1344_v56 = vadd.f32 %v2084_v10, %v1183_v8  ;;  %v1328_v3 = vadd.f32 %v2072_v22, %v1167_v48 }
 0x17d   : > { %v2091_v15 = vpop.f32.mrf.mxu1  ;;  %v2157_v0 = vpop.f32.mrf.mxu0  ;;  %v1549_v48 = vmax.f32 %v1473_v43, 0.0 }
 0x17e   : > { %v1510_v9 = vadd.f32 %v2157_v0, %v1349_v44  ;;  %v1352_v27 = vadd.f32 %v2090_v40, %v1191_v39  ;;  %v1325_v39 = vadd.f32 %v2069_v19, %v1164_v29  ;;  %v1551_v40 = vmax.f32 %v1481_v26, 0.0 }
 0x17f   : > { %v2092_v33 = vpop.f32.mrf.mxu1  ;;  %v1501_v62 = vpop.f32.mrf.mxu0  ;;  %v1333_v0 = vadd.f32 %v2075_v36, %v1172_v21  ;;  %v1489_v10 = vadd.f32 %v2833_v31, %v1328_v3 }
 0x180   : > { %v1558_v45 = vmax.f32 %v1510_v9, 0.0  ;;  %v1502_v50 = vadd.f32 %v1501_v62, %v1341_v13  ;;  %v2093_v14 = vadd.f32 %v2092_v33, %v2091_v15  ;;  %v1486_v44 = vadd.f32 %v2799_v42, %v1325_v39 }
 0x181   : > { %v2094_v5 = vpop.f32.mrf.mxu1  ;;  %v2158_v24 = vpop.f32.mrf.mxu0  ;;  %v2078_v42 = vadd.f32 %v2782_v25, %v2777_v47 }
 0x182   : > { %v1574_v6 = vmax.f32 %v1550_v53, %v1558_v45  ;;  %v1556_v49 = vmax.f32 %v1502_v50, 0.0  ;;  %v1513_v20 = vadd.f32 %v2158_v24, %v1352_v27  ;;  %v1357_v8 = vadd.f32 %v2093_v14, %v2813_v18 }
 0x183   : > { %v2095_v23 = vpop.f32.mrf.mxu1  ;;  %v1504_v34 = vpop.f32.mrf.mxu0  ;;  %v1552_v53 = vmax.f32 %v1486_v44, 0.0  ;;  %v1336_v27 = vadd.f32 %v2078_v42, %v1175_v59 }
 0x184   : > { %v1582_v4 = vmax.f32 %v2758_v46, %v1574_v6  ;;  %v1572_v51 = vmax.f32 %v1548_v37, %v1556_v49  ;;  %v1559_v17 = vmax.f32 %v1513_v20, 0.0  ;;  %v1505_v28 = vadd.f32 %v1504_v34, %v1344_v56 }
 0x185   : > { %v2097_v16 = vpop.f32.mrf.mxu1  ;;  %v2161_v2 = vpop.f32.mrf.mxu0  ;;  %v2096_v15 = vadd.f32 %v2095_v23, %v2094_v5  ;;  %v1497_v37 = vadd.f32 %v2815_v57, %v1336_v27 }
 0x186   : > { %v1873_v29 = vpack.c.bf16 %v1582_v4, %v1582_v4  ;;  %v1580_v55 = vmax.f32 %v2763_v12, %v1572_v51  ;;  %v1575_v46 = vmax.f32 %v1551_v40, %v1559_v17  ;;  %v1557_v32 = vmax.f32 %v1505_v28, 0.0 }
 0x187   : > { %v2098_v30 = vpop.f32.mrf.mxu1  ;;  %v1517_v9 = vpop.f32.mrf.mxu0  ;;  %v1494_v12 = vadd.f32 %v2795_v60, %v1333_v0  ;;  %v1360_v45 = vadd.f32 %v2096_v15, %v2819_v63  ;;  %v1553_v63 = vmax.f32 %v1489_v10, 0.0  ;;  %v1555_v23 = vmax.f32 %v1497_v37, 0.0 }
 0x188   : > { %1623 = vst.msk [vmem:[%s2860_s28 + $0x8] sm:$0xf] %vm1620_vm1, %v1873_v29  ;;  %v1871_v13 = vpack.c.bf16 %v1580_v55, %v1580_v55  ;;  %v1583_v41 = vmax.f32 %v2769_v61, %v1575_v46  ;;  %v2099_v18 = vadd.f32 %v2098_v30, %v2097_v16  ;;  %v1518_v19 = vadd.f32 %v1517_v9, %v1357_v8  ;;  %v2911_v61 = vld [vmem:[#allocation2_spill] sm:$0xff] }
 0x189   : > { %v1573_v47 = vmax.f32 %v1549_v48, %v1557_v32  ;;  %v2100_v25 = vpop.f32.mrf.mxu1  ;;  %v2162_v33 = vpop.f32.mrf.mxu0  ;;  %v1207_v50 = vadd.f32 %v2911_v61, %v2647_v38 }
 0x18a   : > { %1621 = vst.msk [vmem:[%s2860_s28] sm:$0xf] %vm1620_vm1, %v1871_v13  ;;  %v1874_v21 = vpack.c.bf16 %v1583_v41, %v1583_v41  ;;  %v1365_v62 = vadd.f32 %v2099_v18, %v2827_v11  ;;  %v1560_v26 = vmax.f32 %v1518_v19, 0.0  ;;  %v1554_v11 = vmax.f32 %v1494_v12, 0.0 }
 0x18b   : > { %v1581_v60 = vmax.f32 %v2774_v7, %v1573_v47  ;;  %v2101_v22 = vpop.f32.mrf.mxu1  ;;  %v1520_v31 = vpop.f32.mrf.mxu0 }
 0x18c   : > { %1624 = vst.msk [vmem:[%s2860_s28 + $0xc] sm:$0xf] %vm1620_vm1, %v1874_v21  ;;  %v1526_v58 = vadd.f32 %v2161_v2, %v1365_v62  ;;  %v1576_v14 = vmax.f32 %v1552_v53, %v1560_v26  ;;  %v2102_v5 = vadd.f32 %v2101_v22, %v2100_v25  ;;  %v1521_v24 = vadd.f32 %v1520_v31, %v1360_v45 }
 0x18d   : > { %v1872_v6 = vpack.c.bf16 %v1581_v60, %v1581_v60 }
 0x18e   : > { %v1562_v49 = vmax.f32 %v1526_v58, 0.0  ;;  %v1584_v38 = vmax.f32 %v2784_v52, %v1576_v14  ;;  %v1368_v7 = vadd.f32 %v2102_v5, %v1207_v50  ;;  %v1561_v59 = vmax.f32 %v1521_v24, 0.0 }
 0x18f   : > { %1622 = vst.msk [vmem:[%s2860_s28 + $0x4] sm:$0xf] %vm1620_vm1, %v1872_v6 }
 0x190   : > { %v1578_v20 = vmax.f32 %v1554_v11, %v1562_v49  ;;  %v1875_v36 = vpack.c.bf16 %v1584_v38, %v1584_v38  ;;  %v1529_v43 = vadd.f32 %v2162_v33, %v1368_v7  ;;  %v1577_v39 = vmax.f32 %v1553_v63, %v1561_v59 }
 0x192   : > { %v1586_v56 = vmax.f32 %v2780_v1, %v1578_v20  ;;  %1625 = vst.msk [vmem:[%s2860_s28 + $0x10] sm:$0xf] %vm1620_vm1, %v1875_v36  ;;  %v1563_v57 = vmax.f32 %v1529_v43, 0.0  ;;  %v1585_v34 = vmax.f32 %v2789_v35, %v1577_v39 }
 0x194   : > { %v1877_v52 = vpack.c.bf16 %v1586_v56, %v1586_v56  ;;  %v1579_v40 = vmax.f32 %v1555_v23, %v1563_v57  ;;  %v1876_v4 = vpack.c.bf16 %v1585_v34, %v1585_v34 }
 0x196   : > { %1627 = vst.msk [vmem:[%s2860_s28 + $0x18] sm:$0xf] %vm1620_vm1, %v1877_v52  ;;  %v1587_v51 = vmax.f32 %v2787_v54, %v1579_v40  ;;  %1626 = vst.msk [vmem:[%s2860_s28 + $0x14] sm:$0xf] %vm1620_vm1, %v1876_v4 }
 0x198   : > { %v1878_v17 = vpack.c.bf16 %v1587_v51, %v1587_v51 }
 0x19a   : > { %1628 = vst.msk [vmem:[%s2860_s28 + $0x1c] sm:$0xf] %vm1620_vm1, %v1878_v17 }
 0x19b PF: > { %s13_s14 = sadd.s32 1, %s2374_s14   ;;  %s2912_s12 = smov %s2370_s13 }
 0x19c   : > { %p10_p5 = scmp.ge.s32.totalorder %s13_s14, 4   ;;  %s2913_s13 = smov %s2915_s15 }
 0x19e   :  { %12 = sbr.rel (!%p10_p5) target bundleno = 2 (0x2), region = 62 }

// kernel: forward_pallas.8
= control target key start
LH: loop header
LB: loop body
LE: loop exit
PB: predicated region body
PF: predicated region fallthrough
CT: control target
= control target key end

     0   :  { %s1272_s12 = smov 0   ;;  %s1274_s13 = smov 0   ;;  %s1446_s0 = inlined_call_operand.vmem [shape: bf16[2,1,64,576], index: 0, kind: input, shape index: {}]   ;;  %s1447_s1 = inlined_call_operand.vmem [shape: bf16[576,64], index: 1, kind: input, shape index: {}]   ;;  %s1448_s2 = inlined_call_operand.vmem [shape: f32[1,64], index: 2, kind: input, shape index: {}]   ;;  %s1449_s3 = inlined_call_operand.vmem [shape: bf16[2,16,64], index: 3, kind: output, shape index: {}]  }
   0x1   :  { %s1276_s14 = smov 0  }
   0x2 LB: > { %s25_s15 = sadd.s32 1, %s1246_s13  ;;  %p955_p0 = scmp.ge.s32.totalorder %s1250_s14, 1  ;;  %s1250_s14 = sphi %s1276_s14, %s13_s14   ;;  %s1246_s13 = sphi %s1274_s13, %s1451_s13   ;;  %s1242_s12 = sphi %s1272_s12, %s1450_s12  }
   0x3   : > { %p27_p1 = scmp.ge.s32.totalorder %s25_s15, 2  ;;  %p157_p2 = scmp.lt.s32.totalorder %s1250_s14, 3 }
   0x5   : > { %s1453_s15 = smov (%p27_p1, %s25_s15), 0  ;;  %p158_p3 = pnand %p955_p0, %p157_p2 }
   0x6   : > { %p189_p4 = scmp.lt.s32.totalorder (!%p158_p3), %s1242_s12, 1 }
   0x7   : > { %161 = sbr.rel (%p158_p3) target bundleno = 289 (0x121), region = 32 }
   0xc   : > { %v1164_v0 = vld [vmem:[%s1447_s1 + $0x78] sm:$0xff]   ;;  %v1168_v4 = vld [vmem:[%s1447_s1 + $0x70] sm:$0xff]   ;;  %v1172_v8 = vld [vmem:[%s1447_s1 + $0x68] sm:$0xff]   ;;  %s1455_s12 = smov (!%p189_p4, %s1242_s12), 1  ;;  %vm628_vm0 = vcmask 523264   ;;  %vm858_vm1 = vcmask 519168  }
   0xd   : > { %v1165_v1 = vld [vmem:[%s1447_s1 + $0xf8] sm:$0xff]   ;;  %1027 = vmatprep.subr.bf16.mxu0 %v1164_v0  ;;  %v1169_v5 = vld [vmem:[%s1447_s1 + $0xf0] sm:$0xff]   ;;  %v1173_v9 = vld [vmem:[%s1447_s1 + $0xe8] sm:$0xff]   ;;  %s1139_s22 = smul.u32 160, %s1455_s12  ;;  %s1024_s25 = sshll.u32 %s1455_s12, 3 }
   0xe   : > { %v1166_v2 = vld [vmem:[%s1447_s1 + $0x38] sm:$0xff]   ;;  %1067 = vmatprep.subr.bf16.mxu1 %v1165_v1  ;;  %v1170_v6 = vld [vmem:[%s1447_s1 + $0x30] sm:$0xff]   ;;  %v1174_v10 = vld [vmem:[%s1447_s1 + $0x28] sm:$0xff]   ;;  %s206_s28 = scalar_lea.vmem %s1449_s3, %s1024_s25 }
   0xf   : > { %v1167_v3 = vld [vmem:[%s1447_s1 + $0xb8] sm:$0xff]   ;;  %1028 = vmatpush3.bf16.msra.mxu0 %v1166_v2  ;;  %v1171_v7 = vld [vmem:[%s1447_s1 + $0xb0] sm:$0xff]   ;;  %v1175_v11 = vld [vmem:[%s1447_s1 + $0xa8] sm:$0xff]   ;;  %s1390_s6 = scalar_lea.vmem %s1446_s0, %s1139_s22 }
  0x10   : > { %1068 = vmatpush3.bf16.msra.mxu1 %v1167_v3  ;;  %1029 = vmatprep.subr.bf16.mxu0 %v1168_v4  ;;  %v1176_v12 = vld [vmem:[%s1447_s1 + $0x60] sm:$0xff]   ;;  %v1180_v16 = vld [vmem:[%s1447_s1 + $0x58] sm:$0xff]   ;;  %v1184_v20 = vld [vmem:[%s1447_s1 + $0x50] sm:$0xff]  }
  0x11   : > { %1069 = vmatprep.subr.bf16.mxu1 %v1169_v5  ;;  %v1177_v13 = vld [vmem:[%s1447_s1 + $0xe0] sm:$0xff]   ;;  %v1181_v17 = vld [vmem:[%s1447_s1 + $0xd8] sm:$0xff]   ;;  %v1185_v21 = vld [vmem:[%s1447_s1 + $0xd0] sm:$0xff]  }
  0x12   : > { %v1178_v14 = vld [vmem:[%s1447_s1 + $0x20] sm:$0xff]   ;;  %v1182_v18 = vld [vmem:[%s1447_s1 + $0x18] sm:$0xff]   ;;  %v1186_v22 = vld [vmem:[%s1447_s1 + $0x10] sm:$0xff]  }
  0x13   : > { %1030 = vmatpush3.bf16.msra.mxu0 %v1170_v6  ;;  %v1179_v15 = vld [vmem:[%s1447_s1 + $0xa0] sm:$0xff]   ;;  %v1183_v19 = vld [vmem:[%s1447_s1 + $0x98] sm:$0xff]   ;;  %v1187_v23 = vld [vmem:[%s1447_s1 + $0x90] sm:$0xff]  }
  0x14   : > { %1070 = vmatpush3.bf16.msra.mxu1 %v1171_v7  ;;  %1031 = vmatprep.subr.bf16.mxu0 %v1172_v8  ;;  %v1188_v24 = vld [vmem:[%s1447_s1 + $0x48] sm:$0xff]   ;;  %v1192_v28 = vld [vmem:[%s1447_s1 + $0x40] sm:$0xff]   ;;  %v1202_v36 = vld [vmem:[%s1447_s1 + $0x118] sm:$0xff]  }
  0x15   : > { %1071 = vmatprep.subr.bf16.mxu1 %v1173_v9  ;;  %v1189_v25 = vld [vmem:[%s1447_s1 + $0xc8] sm:$0xff]   ;;  %v1193_v29 = vld [vmem:[%s1447_s1 + $0xc0] sm:$0xff]   ;;  %v1209_v39 = vld [vmem:[%s1447_s1 + $0x110] sm:$0xff]  }
  0x16   : > { %v1190_v26 = vld [vmem:[%s1447_s1 + $0x8] sm:$0xff]   ;;  %v1194_v30 = vld [vmem:[%s1447_s1] sm:$0xff]   ;;  %v1212_v43 = vld [vmem:[%s1390_s6 + $0x5c] ss:$20 sps:$4 sm:$0xff]  }
  0x17   : > { %1032 = vmatpush3.bf16.msra.mxu0 %v1174_v10  ;;  %v1191_v27 = vld [vmem:[%s1447_s1 + $0x88] sm:$0xff]   ;;  %v1195_v31 = vld [vmem:[%s1447_s1 + $0x80] sm:$0xff]   ;;  %v1217_v48 = vld [vmem:[%s1390_s6 + $0x7c] ss:$20 sps:$4 sm:$0xff]  }
  0x18   : > { %1072 = vmatpush3.bf16.msra.mxu1 %v1175_v11  ;;  %1033 = vmatprep.subr.bf16.mxu0 %v1176_v12  ;;  %v1196_v32 = vld [vmem:[%s1390_s6] ss:$20 sps:$4 sm:$0xff]   ;;  %v1198_v33 = vld [vmem:[%s1390_s6 + $0x4] ss:$20 sps:$4 sm:$0xff]   ;;  %v1199_v34 = vld [vmem:[%s1390_s6 + $0x8] ss:$20 sps:$4 sm:$0xff]  }
  0x19   : > { %1073 = vmatprep.subr.bf16.mxu1 %v1177_v13  ;;  %v1201_v35 = vld [vmem:[%s1390_s6 + $0xc] ss:$20 sps:$4 sm:$0xff]   ;;  %673 = vmatprep.mubr.bf16.mxu0 %v1198_v33  ;;  %v1205_v38 = vld [vmem:[%s1390_s6 + $0x34] ss:$20 sps:$4 sm:$0xff]   ;;  %v1208_v41 = vld [vmem:[%s1390_s6 + $0x30] ss:$20 sps:$4 sm:$0xff]  }
  0x1a   : > { %738 = vmatprep.mubr.bf16.mxu1 %v1201_v35  ;;  %v1203_v37 = vld [vmem:[%s1390_s6 + $0x2c] ss:$20 sps:$4 sm:$0xff]   ;;  %v1207_v40 = vld [vmem:[%s1390_s6 + $0x28] ss:$20 sps:$4 sm:$0xff]   ;;  %v1214_v46 = vld [vmem:[%s1390_s6 + $0x50] ss:$20 sps:$4 sm:$0xff]  }
  0x1b   : > { %1034 = vmatpush3.bf16.msra.mxu0 %v1178_v14  ;;  %v1210_v42 = vld [vmem:[%s1390_s6 + $0x54] ss:$20 sps:$4 sm:$0xff]   ;;  %v1223_v45 = vld [vmem:[%s1447_s1 + $0x100] sm:$0xff]   ;;  %v1215_v47 = vld [vmem:[%s1390_s6 + $0x58] ss:$20 sps:$4 sm:$0xff]  }
  0x1c   : > { %1074 = vmatpush3.bf16.msra.mxu1 %v1179_v15  ;;  %1035 = vmatprep.subr.bf16.mxu0 %v1180_v16  ;;  %v1216_v44 = vld [vmem:[%s1447_s1 + $0x108] sm:$0xff]   ;;  %v1219_v49 = vld [vmem:[%s1390_s6 + $0x84] ss:$20 sps:$4 sm:$0xff]   ;;  %v1222_v51 = vld [vmem:[%s1390_s6 + $0x80] ss:$20 sps:$4 sm:$0xff]  }
  0x1d   : > { %1075 = vmatprep.subr.bf16.mxu1 %v1181_v17  ;;  %v1221_v50 = vld [vmem:[%s1390_s6 + $0x78] ss:$20 sps:$4 sm:$0xff]   ;;  %v1224_v52 = vld [vmem:[%s1390_s6 + $0x10] ss:$20 sps:$4 sm:$0xff]   ;;  %v1225_v53 = vld [vmem:[%s1390_s6 + $0x60] ss:$20 sps:$4 sm:$0xff]  }
  0x1e   : > { %v1226_v54 = vld [vmem:[%s1390_s6 + $0x38] ss:$20 sps:$4 sm:$0xff]   ;;  %v1227_v55 = vld [vmem:[%s1390_s6 + $0x88] ss:$20 sps:$4 sm:$0xff]  }
  0x1f   : > { %1036 = vmatpush3.bf16.msra.mxu0 %v1182_v18 }
  0x20   : > { %1076 = vmatpush3.bf16.msra.mxu1 %v1183_v19  ;;  %1037 = vmatprep.subr.bf16.mxu0 %v1184_v20  ;;  %v959_v19 = vld [vmem:[%s1448_s2] ss:$0 sm:$0xff] }
  0x21   : > { %1077 = vmatprep.subr.bf16.mxu1 %v1185_v21 }
  0x23   : > { %1038 = vmatpush3.bf16.msra.mxu0 %v1186_v22 }
  0x24   : > { %1078 = vmatpush3.bf16.msra.mxu1 %v1187_v23  ;;  %1039 = vmatprep.subr.bf16.mxu0 %v1188_v24 }
  0x25   : > { %1079 = vmatprep.subr.bf16.mxu1 %v1189_v25 }
  0x27   : > { %1040 = vmatpush3.bf16.msra.mxu0 %v1190_v26 }
  0x28   : > { %1080 = vmatpush3.bf16.msra.mxu1 %v1191_v27  ;;  %1041 = vmatprep.subr.bf16.mxu0 %v1192_v28 }
  0x29   : > { %1081 = vmatprep.subr.bf16.mxu1 %v1193_v29 }
  0x2b   : > { %1042 = vmatpush3.bf16.msra.mxu0 %v1194_v30 }
  0x2c   : > { %1082 = vmatpush3.bf16.msra.mxu1 %v1195_v31  ;;  %1115 = vmatprep.subr.bf16.mxu0 %v1202_v36 }
  0x2d   : > { %1131 = vmatprep.subr.bf16.mxu1 %v1202_v36 }
  0x2e   : > { %674 = vmatmul.mubr.bf16.vlgmr.msra.gmra.mxu0 %v1196_v32 }
  0x2f   : > { %739 = vmatmul.mubr.bf16.vlgmr.msra.gmra.mxu1 %v1199_v34  ;;  %1116 = vmatpush3.bf16.msra.mxu0 %v1202_v36 }
  0x30   : > { %1135 = vmatpush3.bf16.msra.mxu1 %v1202_v36  ;;  %681 = vmatprep.mubr.bf16.mxu0 %v1203_v37 }
  0x31   : > { %746 = vmatprep.mubr.bf16.mxu1 %v1205_v38  ;;  %1117 = vmatprep.subr.bf16.mxu0 %v1209_v39 }
  0x32   : > { %1132 = vmatprep.subr.bf16.mxu1 %v1209_v39 }
  0x33   : > { %1118 = vmatpush3.bf16.msra.mxu0 %v1209_v39 }
  0x34   : > { %1136 = vmatpush3.bf16.msra.mxu1 %v1209_v39  ;;  %1119 = vmatprep.subr.bf16.mxu0 %v1216_v44 }
  0x35   : > { %1133 = vmatprep.subr.bf16.mxu1 %v1216_v44 }
  0x36   : > { %682 = vmatmul.mubr.bf16.gmra.mxu0 %v1207_v40 }
  0x37   : > { %747 = vmatmul.mubr.bf16.gmra.mxu1 %v1208_v41  ;;  %689 = vmatprep.mubr.bf16.mxu0 %v1210_v42 }
  0x38   : > { %754 = vmatprep.mubr.bf16.mxu1 %v1212_v43  ;;  %1120 = vmatpush3.bf16.msra.mxu0 %v1216_v44 }
  0x39   : > { %1137 = vmatpush3.bf16.msra.mxu1 %v1216_v44  ;;  %1121 = vmatprep.subr.bf16.mxu0 %v1223_v45 }
  0x3a   : > { %1134 = vmatprep.subr.bf16.mxu1 %v1223_v45 }
  0x3c   : > { %1122 = vmatpush3.bf16.msra.mxu0 %v1223_v45 }
  0x3d   : > { %1138 = vmatpush3.bf16.msra.mxu1 %v1223_v45 }
  0x3e   : > { %690 = vmatmul.mubr.bf16.gmra.mxu0 %v1214_v46 }
  0x3f   : > { %755 = vmatmul.mubr.bf16.gmra.mxu1 %v1215_v47  ;;  %697 = vmatprep.mubr.bf16.mxu0 %v1217_v48 }
  0x40   : > { %762 = vmatprep.mubr.bf16.mxu1 %v1219_v49 }
  0x46   : > { %698 = vmatmul.mubr.bf16.gmra.mxu0 %v1221_v50 }
  0x47   : > { %763 = vmatmul.mubr.bf16.gmra.mxu1 %v1222_v51  ;;  %1123 = vmatprep.mubr.msk.bf16.mxu0 %vm628_vm0, %v1224_v52 }
  0x48   : > { %1127 = vmatprep.mubr.msk.bf16.mxu1 %vm628_vm0, %v1225_v53 }
  0x4e   : > { %1124 = vmatmul.mubr.msk.bf16.vlgmr.msra.gmra.mxu0 %vm628_vm0, %v1226_v54 }
  0x4f   : > { %1128 = vmatmul.mubr.msk.bf16.vlgmr.msra.gmra.mxu1 %vm628_vm0, %v1227_v55 }
  0xee   : > { %v1043_v56 = vpop.f32.mrf.mxu0 }
  0xef   : > { %v1083_v57 = vpop.f32.mrf.mxu1 }
  0xf0   : > { %v1044_v58 = vpop.f32.mrf.mxu0 }
  0xf1   : > { %v1084_v59 = vpop.f32.mrf.mxu1  ;;  %v1045_v17 = vadd.f32 %v1044_v58, %v1043_v56 }
  0xf2   : > { %v1046_v60 = vpop.f32.mrf.mxu0  ;;  %v1085_v34 = vadd.f32 %v1084_v59, %v1083_v57 }
  0xf3   : > { %v1086_v61 = vpop.f32.mrf.mxu1  ;;  %v676_v27 = vadd.f32 %v1045_v17, %v959_v19 }
  0xf4   : > { %v1047_v62 = vpop.f32.mrf.mxu0 }
  0xf5   : > { %v1087_v63 = vpop.f32.mrf.mxu1  ;;  %v1048_v28 = vadd.f32 %v1047_v62, %v1046_v60  ;;  %v741_v46 = vadd.f32 %v1085_v34, %v676_v27 }
  0xf6   : > { %v1049_v0 = vpop.f32.mrf.mxu0  ;;  %v1088_v56 = vadd.f32 %v1087_v63, %v1086_v61 }
  0xf7   : > { %v1089_v1 = vpop.f32.mrf.mxu1  ;;  %v679_v43 = vadd.f32 %v1048_v28, %v959_v19 }
  0xf8   : > { %v1050_v2 = vpop.f32.mrf.mxu0 }
  0xf9   : > { %v1090_v3 = vpop.f32.mrf.mxu1  ;;  %v1051_v15 = vadd.f32 %v1050_v2, %v1049_v0 }
  0xfa   : > { %v1052_v4 = vpop.f32.mrf.mxu0  ;;  %v1091_v30 = vadd.f32 %v1090_v3, %v1089_v1 }
  0xfb   : > { %v1092_v5 = vpop.f32.mrf.mxu1  ;;  %v684_v23 = vadd.f32 %v1051_v15, %v959_v19 }
  0xfc   : > { %v1053_v6 = vpop.f32.mrf.mxu0 }
  0xfd   : > { %v1093_v7 = vpop.f32.mrf.mxu1  ;;  %v1054_v24 = vadd.f32 %v1053_v6, %v1052_v4  ;;  %v749_v41 = vadd.f32 %v1091_v30, %v684_v23  ;;  %v744_v6 = vadd.f32 %v1088_v56, %v679_v43 }
  0xfe   : > { %v1055_v8 = vpop.f32.mrf.mxu0  ;;  %v1094_v47 = vadd.f32 %v1093_v7, %v1092_v5 }
  0xff   : > { %v1095_v9 = vpop.f32.mrf.mxu1  ;;  %v687_v38 = vadd.f32 %v1054_v24, %v959_v19 }
 0x100   : > { %v1056_v10 = vpop.f32.mrf.mxu0 }
 0x101   : > { %v1096_v11 = vpop.f32.mrf.mxu1  ;;  %v1057_v21 = vadd.f32 %v1056_v10, %v1055_v8  ;;  %v752_v59 = vadd.f32 %v1094_v47, %v687_v38 }
 0x102   : > { %v1058_v12 = vpop.f32.mrf.mxu0  ;;  %v1097_v44 = vadd.f32 %v1096_v11, %v1095_v9 }
 0x103   : > { %v1098_v13 = vpop.f32.mrf.mxu1  ;;  %v692_v35 = vadd.f32 %v1057_v21, %v959_v19 }
 0x104   : > { %v1059_v14 = vpop.f32.mrf.mxu0 }
 0x105   : > { %v1099_v16 = vpop.f32.mrf.mxu1  ;;  %v1060_v36 = vadd.f32 %v1059_v14, %v1058_v12  ;;  %v757_v55 = vadd.f32 %v1097_v44, %v692_v35 }
 0x106   : > { %v1061_v18 = vpop.f32.mrf.mxu0  ;;  %v1100_v62 = vadd.f32 %v1099_v16, %v1098_v13 }
 0x107   : > { %v1101_v20 = vpop.f32.mrf.mxu1  ;;  %v695_v52 = vadd.f32 %v1060_v36, %v959_v19 }
 0x108   : > { %v1062_v22 = vpop.f32.mrf.mxu0 }
 0x109   : > { %v1063_v25 = vadd.f32 %v1062_v22, %v1061_v18  ;;  %v1102_v26 = vpop.f32.mrf.mxu1  ;;  %v760_v11 = vadd.f32 %v1100_v62, %v695_v52 }
 0x10a   : > { %v1064_v29 = vpop.f32.mrf.mxu0  ;;  %v1103_v32 = vadd.f32 %v1102_v26, %v1101_v20 }
 0x10b   : > { %v700_v31 = vadd.f32 %v1063_v25, %v959_v19  ;;  %v1104_v33 = vpop.f32.mrf.mxu1 }
 0x10c   : > { %v1065_v37 = vpop.f32.mrf.mxu0 }
 0x10d   : > { %v1066_v39 = vadd.f32 %v1065_v37, %v1064_v29  ;;  %v1105_v40 = vpop.f32.mrf.mxu1  ;;  %v765_v42 = vadd.f32 %v1103_v32, %v700_v31 }
 0x10e   : > { %v1125_v45 = vpop.f32.mrf.mxu0  ;;  %v1106_v49 = vadd.f32 %v1105_v40, %v1104_v33 }
 0x10f   : > { %v703_v48 = vadd.f32 %v1066_v39, %v959_v19  ;;  %v814_v50 = vadd.f32 %v1125_v45, %v749_v41  ;;  %v1129_v51 = vpop.f32.mrf.mxu1 }
 0x110   : > { %v830_v53 = vadd.f32 %v1129_v51, %v765_v42  ;;  %v805_v54 = vpop.f32.mrf.mxu0 }
 0x111   : > { %v806_v57 = vadd.f32 %v805_v54, %v741_v46  ;;  %v821_v58 = vpop.f32.mrf.mxu1  ;;  %v768_v60 = vadd.f32 %v1106_v49, %v703_v48  ;;  %v838_v2 = vmax.f32 %v814_v50, 0.0 }
 0x112   : > { %v822_v0 = vadd.f32 %v821_v58, %v757_v55  ;;  %v1126_v1 = vpop.f32.mrf.mxu0  ;;  %v842_v7 = vmax.f32 %v830_v53, 0.0 }
 0x113   : > { %v836_v3 = vmax.f32 %v806_v57, 0.0  ;;  %v817_v4 = vadd.f32 %v1126_v1, %v752_v59  ;;  %v1130_v5 = vpop.f32.mrf.mxu1 }
 0x114   : > { %v840_v8 = vmax.f32 %v822_v0, 0.0  ;;  %v833_v9 = vadd.f32 %v1130_v5, %v768_v60  ;;  %v808_v10 = vpop.f32.mrf.mxu0 }
 0x115   : > { %v844_v12 = vmax.f32 %v836_v3, %v838_v2  ;;  %v809_v61 = vadd.f32 %v808_v10, %v744_v6  ;;  %v824_v63 = vpop.f32.mrf.mxu1  ;;  %v839_v13 = vmax.f32 %v817_v4, 0.0 }
 0x116   : > { %v846_v14 = vmax.f32 %v840_v8, %v842_v7  ;;  %v825_v15 = vadd.f32 %v824_v63, %v760_v11  ;;  %v843_v18 = vmax.f32 %v833_v9, 0.0 }
 0x117   : > { %v837_v16 = vmax.f32 %v809_v61, 0.0 }
 0x118   : > { %v848_v17 = vmax.f32 %v844_v12, %v846_v14  ;;  %v841_v19 = vmax.f32 %v825_v15, 0.0 }
 0x119   : > { %v845_v20 = vmax.f32 %v837_v16, %v839_v13 }
 0x11a   : > { %v1025_v21 = vpack.c.bf16 %v848_v17, %v848_v17  ;;  %v847_v22 = vmax.f32 %v841_v19, %v843_v18 }
 0x11c   : > { %859 = vst.msk [vmem:[%s206_s28] sm:$0xf] %vm858_vm1, %v1025_v21  ;;  %v849_v23 = vmax.f32 %v845_v20, %v847_v22 }
 0x11e   : > { %v1026_v24 = vpack.c.bf16 %v849_v23, %v849_v23 }
 0x120   : > { %860 = vst.msk [vmem:[%s206_s28 + $0x4] sm:$0xf] %vm858_vm1, %v1026_v24 }
 0x121 PF: > { %s13_s14 = sadd.s32 1, %s1250_s14   ;;  %s1450_s12 = smov %s1246_s13 }
 0x122   : > { %p10_p5 = scmp.ge.s32.totalorder %s13_s14, 4   ;;  %s1451_s13 = smov %s1453_s15 }
 0x124   :  { %12 = sbr.rel (!%p10_p5) target bundleno = 2 (0x2), region = 62 }

// kernel: forward_pallas.9
= control target key start
LH: loop header
LB: loop body
LE: loop exit
PB: predicated region body
PF: predicated region fallthrough
CT: control target
= control target key end

     0   :  { %12 = vsyncpa [#allocation3], 0  ;;  %v283_v36 = vlaneseq  ;;  %v2993_v37 = vmov 1966171168   ;;  %s4067_s0 = inlined_call_operand.vmem [shape: bf16[2,1024], index: 0, kind: input, shape index: {}]   ;;  %s4068_s1 = inlined_call_operand.vmem [shape: bf16[1024,512], index: 1, kind: input, shape index: {}]   ;;  %s4069_s2 = inlined_call_operand.vmem [shape: f32[1,512], index: 2, kind: input, shape index: {}]   ;;  %s4070_s3 = inlined_call_operand.vmem [shape: f32[512,10], index: 3, kind: input, shape index: {}]   ;;  %s4071_s4 = inlined_call_operand.vmem [shape: f32[1,10], index: 4, kind: input, shape index: {}]   ;;  %s4072_s5 = inlined_call_operand.hbm [shape: f32[2,512], index: 5, kind: output, shape index: {0}]   ;;  %s4073_s6 = inlined_call_operand.hbm [shape: f32[2,10], index: 6, kind: output, shape index: {1}]  }
   0x1   :  { %v2564_v0 = vld [vmem:[%s4068_s1 + $0xe4] ss:$16 sps:$4 sm:$0xff]   ;;  %v2568_v2 = vld [vmem:[%s4068_s1 + $0xe0] ss:$16 sps:$4 sm:$0xff]   ;;  %v306_v38 = vunpack.c.l.s4 %v2993_v37 }
   0x2   :  { %v2566_v1 = vld [vmem:[%s4068_s1 + $0x2e4] ss:$16 sps:$4 sm:$0xff]   ;;  %1641 = vmatprep.subr.bf16.mxu0 %v2564_v0  ;;  %v2569_v3 = vld [vmem:[%s4068_s1 + $0x2e0] ss:$16 sps:$4 sm:$0xff]   ;;  %v3149_v42 = vshrl.u32 %v283_v36, 7 }
   0x3   :  { %1682 = vmatprep.subr.bf16.mxu1 %v2566_v1  ;;  %v2570_v4 = vld [vmem:[%s4068_s1 + $0xc4] ss:$16 sps:$4 sm:$0xff]   ;;  %1642 = vmatpush1.bf16.msra.mxu0 %v2568_v2  ;;  %v2574_v6 = vld [vmem:[%s4068_s1 + $0xc0] ss:$16 sps:$4 sm:$0xff]   ;;  %v307_v43 = vunpack.c.0.s8 %v306_v38 }
   0x4   :  { %1683 = vmatpush1.bf16.msra.mxu1 %v2569_v3  ;;  %v2572_v5 = vld [vmem:[%s4068_s1 + $0x2c4] ss:$16 sps:$4 sm:$0xff]   ;;  %1643 = vmatprep.subr.bf16.mxu0 %v2570_v4  ;;  %v2575_v7 = vld [vmem:[%s4068_s1 + $0x2c0] ss:$16 sps:$4 sm:$0xff]  }
   0x5   :  { %1684 = vmatprep.subr.bf16.mxu1 %v2572_v5  ;;  %v2576_v8 = vld [vmem:[%s4068_s1 + $0xa4] ss:$16 sps:$4 sm:$0xff]   ;;  %v2580_v10 = vld [vmem:[%s4068_s1 + $0xa0] ss:$16 sps:$4 sm:$0xff]   ;;  %v310_v49 = vsub.s32 %v307_v43, %v3149_v42 }
   0x6   :  { %v2578_v9 = vld [vmem:[%s4068_s1 + $0x2a4] ss:$16 sps:$4 sm:$0xff]   ;;  %v2581_v11 = vld [vmem:[%s4068_s1 + $0x2a0] ss:$16 sps:$4 sm:$0xff]  }
   0x7   :  { %1644 = vmatpush1.bf16.msra.mxu0 %v2574_v6  ;;  %v2582_v12 = vld [vmem:[%s4068_s1 + $0x84] ss:$16 sps:$4 sm:$0xff]   ;;  %v2586_v14 = vld [vmem:[%s4068_s1 + $0x80] ss:$16 sps:$4 sm:$0xff]  }
   0x8   :  { %1685 = vmatpush1.bf16.msra.mxu1 %v2575_v7  ;;  %1645 = vmatprep.subr.bf16.mxu0 %v2576_v8  ;;  %v2584_v13 = vld [vmem:[%s4068_s1 + $0x284] ss:$16 sps:$4 sm:$0xff]   ;;  %v2587_v15 = vld [vmem:[%s4068_s1 + $0x280] ss:$16 sps:$4 sm:$0xff]  }
   0x9   :  { %1686 = vmatprep.subr.bf16.mxu1 %v2578_v9  ;;  %v2588_v16 = vld [vmem:[%s4068_s1 + $0x64] ss:$16 sps:$4 sm:$0xff]   ;;  %v2592_v18 = vld [vmem:[%s4068_s1 + $0x60] ss:$16 sps:$4 sm:$0xff]  }
   0xa   :  { %v2590_v17 = vld [vmem:[%s4068_s1 + $0x264] ss:$16 sps:$4 sm:$0xff]   ;;  %v2593_v19 = vld [vmem:[%s4068_s1 + $0x260] ss:$16 sps:$4 sm:$0xff]  }
   0xb   :  { %1646 = vmatpush1.bf16.msra.mxu0 %v2580_v10  ;;  %v2594_v20 = vld [vmem:[%s4068_s1 + $0x44] ss:$16 sps:$4 sm:$0xff]   ;;  %v2598_v22 = vld [vmem:[%s4068_s1 + $0x40] ss:$16 sps:$4 sm:$0xff]  }
   0xc   :  { %1687 = vmatpush1.bf16.msra.mxu1 %v2581_v11  ;;  %1647 = vmatprep.subr.bf16.mxu0 %v2582_v12  ;;  %v2596_v21 = vld [vmem:[%s4068_s1 + $0x244] ss:$16 sps:$4 sm:$0xff]   ;;  %v2599_v23 = vld [vmem:[%s4068_s1 + $0x240] ss:$16 sps:$4 sm:$0xff]  }
   0xd   :  { %1688 = vmatprep.subr.bf16.mxu1 %v2584_v13  ;;  %v2600_v24 = vld [vmem:[%s4068_s1 + $0x24] ss:$16 sps:$4 sm:$0xff]   ;;  %v2604_v26 = vld [vmem:[%s4068_s1 + $0x20] ss:$16 sps:$4 sm:$0xff]  }
   0xe   :  { %v2602_v25 = vld [vmem:[%s4068_s1 + $0x224] ss:$16 sps:$4 sm:$0xff]   ;;  %v2605_v27 = vld [vmem:[%s4068_s1 + $0x220] ss:$16 sps:$4 sm:$0xff]  }
   0xf   :  { %1648 = vmatpush1.bf16.msra.mxu0 %v2586_v14  ;;  %v2606_v28 = vld [vmem:[%s4068_s1 + $0x4] ss:$16 sps:$4 sm:$0xff]   ;;  %v2610_v30 = vld [vmem:[%s4068_s1] ss:$16 sps:$4 sm:$0xff]  }
  0x10   :  { %1689 = vmatpush1.bf16.msra.mxu1 %v2587_v15  ;;  %1649 = vmatprep.subr.bf16.mxu0 %v2588_v16  ;;  %v2608_v29 = vld [vmem:[%s4068_s1 + $0x204] ss:$16 sps:$4 sm:$0xff]   ;;  %v2611_v31 = vld [vmem:[%s4068_s1 + $0x200] ss:$16 sps:$4 sm:$0xff]  }
  0x11   :  { %1690 = vmatprep.subr.bf16.mxu1 %v2590_v17  ;;  %v2612_v32 = vld [vmem:[%s4068_s1 + $0x1e4] ss:$16 sps:$4 sm:$0xff]   ;;  %v2616_v34 = vld [vmem:[%s4068_s1 + $0x1e0] ss:$16 sps:$4 sm:$0xff]  }
  0x12   :  { %v2614_v33 = vld [vmem:[%s4068_s1 + $0x3e4] ss:$16 sps:$4 sm:$0xff]   ;;  %v2617_v35 = vld [vmem:[%s4068_s1 + $0x3e0] ss:$16 sps:$4 sm:$0xff]  }
  0x13   :  { %1650 = vmatpush1.bf16.msra.mxu0 %v2592_v18  ;;  %v2618_v39 = vld [vmem:[%s4068_s1 + $0x1c4] ss:$16 sps:$4 sm:$0xff]   ;;  %v2622_v41 = vld [vmem:[%s4068_s1 + $0x1c0] ss:$16 sps:$4 sm:$0xff]  }
  0x14   :  { %1691 = vmatpush1.bf16.msra.mxu1 %v2593_v19  ;;  %1651 = vmatprep.subr.bf16.mxu0 %v2594_v20  ;;  %v2620_v40 = vld [vmem:[%s4068_s1 + $0x3c4] ss:$16 sps:$4 sm:$0xff]   ;;  %v2623_v44 = vld [vmem:[%s4068_s1 + $0x3c0] ss:$16 sps:$4 sm:$0xff]  }
  0x15   :  { %1692 = vmatprep.subr.bf16.mxu1 %v2596_v21  ;;  %v2624_v45 = vld [vmem:[%s4068_s1 + $0x1a4] ss:$16 sps:$4 sm:$0xff]   ;;  %v2628_v47 = vld [vmem:[%s4068_s1 + $0x1a0] ss:$16 sps:$4 sm:$0xff]  }
  0x16   :  { %v2626_v46 = vld [vmem:[%s4068_s1 + $0x3a4] ss:$16 sps:$4 sm:$0xff]   ;;  %v2629_v48 = vld [vmem:[%s4068_s1 + $0x3a0] ss:$16 sps:$4 sm:$0xff]  }
  0x17   :  { %1652 = vmatpush1.bf16.msra.mxu0 %v2598_v22  ;;  %v2630_v50 = vld [vmem:[%s4068_s1 + $0x184] ss:$16 sps:$4 sm:$0xff]   ;;  %v2634_v53 = vld [vmem:[%s4068_s1 + $0x180] ss:$16 sps:$4 sm:$0xff]  }
  0x18   :  { %1693 = vmatpush1.bf16.msra.mxu1 %v2599_v23  ;;  %1653 = vmatprep.subr.bf16.mxu0 %v2600_v24  ;;  %v2632_v51 = vld [vmem:[%s4068_s1 + $0x384] ss:$16 sps:$4 sm:$0xff]   ;;  %v2635_v56 = vld [vmem:[%s4068_s1 + $0x380] ss:$16 sps:$4 sm:$0xff]  }
  0x19   :  { %1694 = vmatprep.subr.bf16.mxu1 %v2602_v25  ;;  %v24_v52 = vld [vmem:[%s4067_s0] sm:$0xff] }
  0x1a   :  { %v311_v54 = vrot.slane %v24_v52, %v310_v49  ;;  %v304_v55 = vcombine.high %v24_v52, %v24_v52  ;;  %v2636_v57 = vld [vmem:[%s4068_s1 + $0x164] ss:$16 sps:$4 sm:$0xff]   ;;  %v2640_v61 = vld [vmem:[%s4068_s1 + $0x160] ss:$16 sps:$4 sm:$0xff]  }
  0x1b   :  { %1654 = vmatpush1.bf16.msra.mxu0 %v2604_v26  ;;  %v2638_v58 = vld [vmem:[%s4068_s1 + $0x364] ss:$16 sps:$4 sm:$0xff]   ;;  %v2641_v0 = vld [vmem:[%s4068_s1 + $0x360] ss:$16 sps:$4 sm:$0xff]  }
  0x1c   :  { %1695 = vmatpush1.bf16.msra.mxu1 %v2605_v27  ;;  %1655 = vmatprep.subr.bf16.mxu0 %v2606_v28  ;;  %v319_v59 = vcombine.high %v311_v54, %v311_v54  ;;  %v318_v60 = vrot.slane %v304_v55, %v310_v49  ;;  %v2642_v1 = vld [vmem:[%s4068_s1 + $0x144] ss:$16 sps:$4 sm:$0xff]   ;;  %v2646_v4 = vld [vmem:[%s4068_s1 + $0x140] ss:$16 sps:$4 sm:$0xff]   ;;  %v3237_v14 = vrot.slane %v311_v54, %v310_v49 }
  0x1d   :  { %1696 = vmatprep.subr.bf16.mxu1 %v2608_v29  ;;  %v2644_v2 = vld [vmem:[%s4068_s1 + $0x344] ss:$16 sps:$4 sm:$0xff]   ;;  %v2647_v5 = vld [vmem:[%s4068_s1 + $0x340] ss:$16 sps:$4 sm:$0xff]  }
  0x1e   :  { %v3191_v62 = vrot.slane %v319_v59, %v310_v49  ;;  %v3193_v63 = vrot.slane %v318_v60, %v310_v49  ;;  %v2648_v6 = vld [vmem:[%s4068_s1 + $0x124] ss:$16 sps:$4 sm:$0xff]   ;;  %v2652_v8 = vld [vmem:[%s4068_s1 + $0x120] ss:$16 sps:$4 sm:$0xff]   ;;  %v320_v12 = vcombine.high %v318_v60, %v318_v60  ;;  %v3252_v19 = vcombine.high %v3237_v14, %v3237_v14 }
  0x1f   :  { %1656 = vmatpush1.bf16.msra.mxu0 %v2610_v30  ;;  %v2650_v7 = vld [vmem:[%s4068_s1 + $0x324] ss:$16 sps:$4 sm:$0xff]   ;;  %v2653_v9 = vld [vmem:[%s4068_s1 + $0x320] ss:$16 sps:$4 sm:$0xff]  }
  0x20   :  { %1697 = vmatpush1.bf16.msra.mxu1 %v2611_v31  ;;  %1657 = vmatprep.subr.bf16.mxu0 %v2612_v32  ;;  %v3206_v3 = vcombine.high %v3191_v62, %v3191_v62  ;;  %v2654_v10 = vld [vmem:[%s4068_s1 + $0x104] ss:$16 sps:$4 sm:$0xff]   ;;  %v2658_v13 = vld [vmem:[%s4068_s1 + $0x100] ss:$16 sps:$4 sm:$0xff]   ;;  %v3248_v18 = vrot.slane %v320_v12, %v310_v49 }
  0x21   :  { %1698 = vmatprep.subr.bf16.mxu1 %v2614_v33  ;;  %1673 = vmatprep.mubr.bf16.mxu0 %v3191_v62  ;;  %v2656_v11 = vld [vmem:[%s4068_s1 + $0x304] ss:$16 sps:$4 sm:$0xff]   ;;  %v2659_v15 = vld [vmem:[%s4068_s1 + $0x300] ss:$16 sps:$4 sm:$0xff]  }
  0x22   :  { %1714 = vmatprep.mubr.bf16.mxu1 %v3206_v3  ;;  %v2662_v16 = vld [vmem:[%s4068_s1 + $0x4e4] ss:$16 sps:$4 sm:$0xff]   ;;  %v2660_v20 = vld [vmem:[%s4068_s1 + $0x4e0] ss:$16 sps:$4 sm:$0xff]   ;;  %v3268_v24 = vcombine.high %v3248_v18, %v3248_v18 }
  0x23   :  { %1658 = vmatpush2.bf16.msra.mxu0 %v2616_v34  ;;  %v2665_v17 = vld [vmem:[%s4068_s1 + $0x6e4] ss:$16 sps:$4 sm:$0xff]   ;;  %v2663_v21 = vld [vmem:[%s4068_s1 + $0x6e0] ss:$16 sps:$4 sm:$0xff]  }
  0x24   :  { %1699 = vmatpush2.bf16.msra.mxu1 %v2617_v35  ;;  %1659 = vmatprep.subr.bf16.mxu0 %v2618_v39  ;;  %v2668_v22 = vld [vmem:[%s4068_s1 + $0x4c4] ss:$16 sps:$4 sm:$0xff]   ;;  %v2666_v25 = vld [vmem:[%s4068_s1 + $0x4c0] ss:$16 sps:$4 sm:$0xff]  }
  0x25   :  { %1700 = vmatprep.subr.bf16.mxu1 %v2620_v40  ;;  %v2671_v23 = vld [vmem:[%s4068_s1 + $0x6c4] ss:$16 sps:$4 sm:$0xff]   ;;  %v2669_v26 = vld [vmem:[%s4068_s1 + $0x6c0] ss:$16 sps:$4 sm:$0xff]  }
  0x26   :  { %v2674_v27 = vld [vmem:[%s4068_s1 + $0x4a4] ss:$16 sps:$4 sm:$0xff]   ;;  %v2672_v29 = vld [vmem:[%s4068_s1 + $0x4a0] ss:$16 sps:$4 sm:$0xff]  }
  0x27   :  { %1660 = vmatpush2.bf16.msra.mxu0 %v2622_v41  ;;  %v2677_v28 = vld [vmem:[%s4068_s1 + $0x6a4] ss:$16 sps:$4 sm:$0xff]   ;;  %v2675_v30 = vld [vmem:[%s4068_s1 + $0x6a0] ss:$16 sps:$4 sm:$0xff]  }
  0x28   :  { %1701 = vmatpush2.bf16.msra.mxu1 %v2623_v44  ;;  %1661 = vmatprep.subr.bf16.mxu0 %v2624_v45  ;;  %v2680_v31 = vld [vmem:[%s4068_s1 + $0x484] ss:$16 sps:$4 sm:$0xff]   ;;  %v2678_v33 = vld [vmem:[%s4068_s1 + $0x480] ss:$16 sps:$4 sm:$0xff]  }
  0x29   :  { %1702 = vmatprep.subr.bf16.mxu1 %v2626_v46  ;;  %v2683_v32 = vld [vmem:[%s4068_s1 + $0x684] ss:$16 sps:$4 sm:$0xff]   ;;  %v2681_v34 = vld [vmem:[%s4068_s1 + $0x680] ss:$16 sps:$4 sm:$0xff]  }
  0x2a   :  { %v2686_v35 = vld [vmem:[%s4068_s1 + $0x464] ss:$16 sps:$4 sm:$0xff]   ;;  %v2684_v37 = vld [vmem:[%s4068_s1 + $0x460] ss:$16 sps:$4 sm:$0xff]  }
  0x2b   :  { %1662 = vmatpush2.bf16.msra.mxu0 %v2628_v47  ;;  %v2689_v36 = vld [vmem:[%s4068_s1 + $0x664] ss:$16 sps:$4 sm:$0xff]   ;;  %v2687_v38 = vld [vmem:[%s4068_s1 + $0x660] ss:$16 sps:$4 sm:$0xff]  }
  0x2c   :  { %1703 = vmatpush2.bf16.msra.mxu1 %v2629_v48  ;;  %1663 = vmatprep.subr.bf16.mxu0 %v2630_v50  ;;  %v2692_v39 = vld [vmem:[%s4068_s1 + $0x444] ss:$16 sps:$4 sm:$0xff]   ;;  %v2690_v41 = vld [vmem:[%s4068_s1 + $0x440] ss:$16 sps:$4 sm:$0xff]  }
  0x2d   :  { %1704 = vmatprep.subr.bf16.mxu1 %v2632_v51  ;;  %v2695_v40 = vld [vmem:[%s4068_s1 + $0x644] ss:$16 sps:$4 sm:$0xff]   ;;  %v2693_v43 = vld [vmem:[%s4068_s1 + $0x640] ss:$16 sps:$4 sm:$0xff]  }
  0x2e   :  { %v2698_v44 = vld [vmem:[%s4068_s1 + $0x424] ss:$16 sps:$4 sm:$0xff]   ;;  %v2696_v46 = vld [vmem:[%s4068_s1 + $0x420] ss:$16 sps:$4 sm:$0xff]  }
  0x2f   :  { %1664 = vmatpush2.bf16.msra.mxu0 %v2634_v53  ;;  %v2701_v45 = vld [vmem:[%s4068_s1 + $0x624] ss:$16 sps:$4 sm:$0xff]   ;;  %v2699_v47 = vld [vmem:[%s4068_s1 + $0x620] ss:$16 sps:$4 sm:$0xff]  }
  0x30   :  { %1705 = vmatpush2.bf16.msra.mxu1 %v2635_v56  ;;  %1665 = vmatprep.subr.bf16.mxu0 %v2636_v57  ;;  %v2704_v48 = vld [vmem:[%s4068_s1 + $0x404] ss:$16 sps:$4 sm:$0xff]   ;;  %v2702_v50 = vld [vmem:[%s4068_s1 + $0x400] ss:$16 sps:$4 sm:$0xff]  }
  0x31   :  { %1706 = vmatprep.subr.bf16.mxu1 %v2638_v58  ;;  %v2707_v49 = vld [vmem:[%s4068_s1 + $0x604] ss:$16 sps:$4 sm:$0xff]   ;;  %v2705_v51 = vld [vmem:[%s4068_s1 + $0x600] ss:$16 sps:$4 sm:$0xff]  }
  0x32   :  { %v2710_v52 = vld [vmem:[%s4068_s1 + $0x5e4] ss:$16 sps:$4 sm:$0xff]   ;;  %v2708_v54 = vld [vmem:[%s4068_s1 + $0x5e0] ss:$16 sps:$4 sm:$0xff]  }
  0x33   :  { %1666 = vmatpush2.bf16.msra.mxu0 %v2640_v61  ;;  %v2713_v53 = vld [vmem:[%s4068_s1 + $0x7e4] ss:$16 sps:$4 sm:$0xff]   ;;  %v2711_v55 = vld [vmem:[%s4068_s1 + $0x7e0] ss:$16 sps:$4 sm:$0xff]  }
  0x34   :  { %1707 = vmatpush2.bf16.msra.mxu1 %v2641_v0  ;;  %1667 = vmatprep.subr.bf16.mxu0 %v2642_v1  ;;  %v2716_v56 = vld [vmem:[%s4068_s1 + $0x5c4] ss:$16 sps:$4 sm:$0xff]   ;;  %v2714_v58 = vld [vmem:[%s4068_s1 + $0x5c0] ss:$16 sps:$4 sm:$0xff]  }
  0x35   :  { %1708 = vmatprep.subr.bf16.mxu1 %v2644_v2  ;;  %v2719_v57 = vld [vmem:[%s4068_s1 + $0x7c4] ss:$16 sps:$4 sm:$0xff]   ;;  %v2717_v59 = vld [vmem:[%s4068_s1 + $0x7c0] ss:$16 sps:$4 sm:$0xff]  }
  0x36   :  { %v2722_v60 = vld [vmem:[%s4068_s1 + $0x5a4] ss:$16 sps:$4 sm:$0xff]   ;;  %v2720_v0 = vld [vmem:[%s4068_s1 + $0x5a0] ss:$16 sps:$4 sm:$0xff]  }
  0x37   :  { %1668 = vmatpush2.bf16.msra.mxu0 %v2646_v4  ;;  %v2725_v61 = vld [vmem:[%s4068_s1 + $0x7a4] ss:$16 sps:$4 sm:$0xff]   ;;  %v2723_v1 = vld [vmem:[%s4068_s1 + $0x7a0] ss:$16 sps:$4 sm:$0xff]  }
  0x38   :  { %1709 = vmatpush2.bf16.msra.mxu1 %v2647_v5  ;;  %1669 = vmatprep.subr.bf16.mxu0 %v2648_v6  ;;  %v2728_v2 = vld [vmem:[%s4068_s1 + $0x584] ss:$16 sps:$4 sm:$0xff]   ;;  %v2726_v5 = vld [vmem:[%s4068_s1 + $0x580] ss:$16 sps:$4 sm:$0xff]  }
  0x39   :  { %1710 = vmatprep.subr.bf16.mxu1 %v2650_v7  ;;  %v2731_v4 = vld [vmem:[%s4068_s1 + $0x784] ss:$16 sps:$4 sm:$0xff]   ;;  %v2729_v6 = vld [vmem:[%s4068_s1 + $0x780] ss:$16 sps:$4 sm:$0xff]  }
  0x3a   :  { %v2734_v7 = vld [vmem:[%s4068_s1 + $0x564] ss:$16 sps:$4 sm:$0xff]  }
  0x3b   :  { %1670 = vmatpush2.bf16.msra.mxu0 %v2652_v8  ;;  %v2737_v8 = vld [vmem:[%s4068_s1 + $0x764] ss:$16 sps:$4 sm:$0xff]  }
  0x3c   :  { %1711 = vmatpush2.bf16.msra.mxu1 %v2653_v9  ;;  %1671 = vmatprep.subr.bf16.mxu0 %v2654_v10  ;;  %v2732_v9 = vld [vmem:[%s4068_s1 + $0x560] ss:$16 sps:$4 sm:$0xff]   ;;  %v2743_v12 = vld [vmem:[%s4068_s1 + $0x744] ss:$16 sps:$4 sm:$0xff]  }
  0x3d   :  { %1712 = vmatprep.subr.bf16.mxu1 %v2656_v11  ;;  %v2735_v10 = vld [vmem:[%s4068_s1 + $0x760] ss:$16 sps:$4 sm:$0xff]   ;;  %v2740_v11 = vld [vmem:[%s4068_s1 + $0x544] ss:$16 sps:$4 sm:$0xff]  }
  0x3f   :  { %1672 = vmatpush2.bf16.msra.mxu0 %v2658_v13  ;;  %v2738_v13 = vld [vmem:[%s4068_s1 + $0x540] ss:$16 sps:$4 sm:$0xff]  }
  0x40   :  { %1713 = vmatpush2.bf16.msra.mxu1 %v2659_v15  ;;  %1723 = vmatprep.subr.bf16.mxu0 %v2662_v16  ;;  %v2741_v15 = vld [vmem:[%s4068_s1 + $0x740] ss:$16 sps:$4 sm:$0xff]   ;;  %v2746_v16 = vld [vmem:[%s4068_s1 + $0x524] ss:$16 sps:$4 sm:$0xff]  }
  0x41   :  { %1764 = vmatprep.subr.bf16.mxu1 %v2665_v17  ;;  %v2749_v17 = vld [vmem:[%s4068_s1 + $0x724] ss:$16 sps:$4 sm:$0xff]  }
  0x42   :  { %1674 = vmatmul.mubr.bf16.vlgmr.msra.gmra.mxu0 %v3237_v14 }
  0x43   :  { %1715 = vmatmul.mubr.bf16.vlgmr.msra.gmra.mxu1 %v3252_v19  ;;  %1724 = vmatpush1.bf16.msra.mxu0 %v2660_v20  ;;  %v2744_v20 = vld [vmem:[%s4068_s1 + $0x520] ss:$16 sps:$4 sm:$0xff]  }
  0x44   :  { %1765 = vmatpush1.bf16.msra.mxu1 %v2663_v21  ;;  %1725 = vmatprep.subr.bf16.mxu0 %v2668_v22  ;;  %v2747_v21 = vld [vmem:[%s4068_s1 + $0x720] ss:$16 sps:$4 sm:$0xff]   ;;  %v2752_v22 = vld [vmem:[%s4068_s1 + $0x504] ss:$16 sps:$4 sm:$0xff]  }
  0x45   :  { %1766 = vmatprep.subr.bf16.mxu1 %v2671_v23  ;;  %1755 = vmatprep.mubr.bf16.mxu0 %v3248_v18  ;;  %v2755_v23 = vld [vmem:[%s4068_s1 + $0x704] ss:$16 sps:$4 sm:$0xff]  }
  0x46   :  { %1796 = vmatprep.mubr.bf16.mxu1 %v3268_v24 }
  0x47   :  { %1726 = vmatpush1.bf16.msra.mxu0 %v2666_v25  ;;  %v2750_v25 = vld [vmem:[%s4068_s1 + $0x500] ss:$16 sps:$4 sm:$0xff]  }
  0x48   :  { %1767 = vmatpush1.bf16.msra.mxu1 %v2669_v26  ;;  %1727 = vmatprep.subr.bf16.mxu0 %v2674_v27  ;;  %v2753_v26 = vld [vmem:[%s4068_s1 + $0x700] ss:$16 sps:$4 sm:$0xff]   ;;  %v2759_v27 = vld [vmem:[%s4068_s1 + $0xec] ss:$16 sps:$4 sm:$0xff]  }
  0x49   :  { %1768 = vmatprep.subr.bf16.mxu1 %v2677_v28  ;;  %v2762_v28 = vld [vmem:[%s4068_s1 + $0x2ec] ss:$16 sps:$4 sm:$0xff]  }
  0x4b   :  { %1728 = vmatpush1.bf16.msra.mxu0 %v2672_v29  ;;  %v3456_v29 = vcombine.high %v3193_v63, %v3193_v63 }
  0x4c   :  { %1769 = vmatpush1.bf16.msra.mxu1 %v2675_v30  ;;  %1729 = vmatprep.subr.bf16.mxu0 %v2680_v31  ;;  %v2757_v30 = vld [vmem:[%s4068_s1 + $0xe8] ss:$16 sps:$4 sm:$0xff]  }
  0x4d   :  { %1770 = vmatprep.subr.bf16.mxu1 %v2683_v32  ;;  %v2760_v31 = vld [vmem:[%s4068_s1 + $0x2e8] ss:$16 sps:$4 sm:$0xff]   ;;  %v2765_v32 = vld [vmem:[%s4068_s1 + $0xcc] ss:$16 sps:$4 sm:$0xff]  }
  0x4f   :  { %1730 = vmatpush1.bf16.msra.mxu0 %v2678_v33  ;;  %v2768_v33 = vld [vmem:[%s4068_s1 + $0x2cc] ss:$16 sps:$4 sm:$0xff]  }
  0x50   :  { %1771 = vmatpush1.bf16.msra.mxu1 %v2681_v34  ;;  %1731 = vmatprep.subr.bf16.mxu0 %v2686_v35  ;;  %v2763_v34 = vld [vmem:[%s4068_s1 + $0xc8] ss:$16 sps:$4 sm:$0xff]  }
  0x51   :  { %1772 = vmatprep.subr.bf16.mxu1 %v2689_v36  ;;  %v2766_v35 = vld [vmem:[%s4068_s1 + $0x2c8] ss:$16 sps:$4 sm:$0xff]   ;;  %v2771_v36 = vld [vmem:[%s4068_s1 + $0xac] ss:$16 sps:$4 sm:$0xff]  }
  0x53   :  { %1732 = vmatpush1.bf16.msra.mxu0 %v2684_v37  ;;  %v2774_v37 = vld [vmem:[%s4068_s1 + $0x2ac] ss:$16 sps:$4 sm:$0xff]  }
  0x54   :  { %1773 = vmatpush1.bf16.msra.mxu1 %v2687_v38  ;;  %1733 = vmatprep.subr.bf16.mxu0 %v2692_v39  ;;  %v2769_v38 = vld [vmem:[%s4068_s1 + $0xa8] ss:$16 sps:$4 sm:$0xff]  }
  0x55   :  { %1774 = vmatprep.subr.bf16.mxu1 %v2695_v40  ;;  %v2772_v39 = vld [vmem:[%s4068_s1 + $0x2a8] ss:$16 sps:$4 sm:$0xff]   ;;  %v2777_v40 = vld [vmem:[%s4068_s1 + $0x8c] ss:$16 sps:$4 sm:$0xff]  }
  0x57   :  { %1734 = vmatpush1.bf16.msra.mxu0 %v2690_v41  ;;  %v2778_v41 = vld [vmem:[%s4068_s1 + $0x288] ss:$16 sps:$4 sm:$0xff]  }
  0x58   :  { %1775 = vmatpush1.bf16.msra.mxu1 %v2693_v43  ;;  %1735 = vmatprep.subr.bf16.mxu0 %v2698_v44  ;;  %v2783_v43 = vld [vmem:[%s4068_s1 + $0x6c] ss:$16 sps:$4 sm:$0xff]  }
  0x59   :  { %1776 = vmatprep.subr.bf16.mxu1 %v2701_v45  ;;  %v2786_v44 = vld [vmem:[%s4068_s1 + $0x26c] ss:$16 sps:$4 sm:$0xff]   ;;  %v2781_v45 = vld [vmem:[%s4068_s1 + $0x68] ss:$16 sps:$4 sm:$0xff]  }
  0x5b   :  { %1736 = vmatpush1.bf16.msra.mxu0 %v2696_v46  ;;  %v2784_v46 = vld [vmem:[%s4068_s1 + $0x268] ss:$16 sps:$4 sm:$0xff]  }
  0x5c   :  { %1777 = vmatpush1.bf16.msra.mxu1 %v2699_v47  ;;  %1737 = vmatprep.subr.bf16.mxu0 %v2704_v48  ;;  %v2789_v47 = vld [vmem:[%s4068_s1 + $0x4c] ss:$16 sps:$4 sm:$0xff]  }
  0x5d   :  { %1778 = vmatprep.subr.bf16.mxu1 %v2707_v49  ;;  %v2792_v48 = vld [vmem:[%s4068_s1 + $0x24c] ss:$16 sps:$4 sm:$0xff]   ;;  %v2787_v49 = vld [vmem:[%s4068_s1 + $0x48] ss:$16 sps:$4 sm:$0xff]  }
  0x5f   :  { %1738 = vmatpush1.bf16.msra.mxu0 %v2702_v50  ;;  %v2790_v50 = vld [vmem:[%s4068_s1 + $0x248] ss:$16 sps:$4 sm:$0xff]  }
  0x60   :  { %1779 = vmatpush1.bf16.msra.mxu1 %v2705_v51  ;;  %1739 = vmatprep.subr.bf16.mxu0 %v2710_v52  ;;  %v2795_v51 = vld [vmem:[%s4068_s1 + $0x2c] ss:$16 sps:$4 sm:$0xff]  }
  0x61   :  { %1780 = vmatprep.subr.bf16.mxu1 %v2713_v53  ;;  %v2798_v52 = vld [vmem:[%s4068_s1 + $0x22c] ss:$16 sps:$4 sm:$0xff]   ;;  %v2793_v53 = vld [vmem:[%s4068_s1 + $0x28] ss:$16 sps:$4 sm:$0xff]  }
  0x63   :  { %1740 = vmatpush2.bf16.msra.mxu0 %v2708_v54  ;;  %v2796_v54 = vld [vmem:[%s4068_s1 + $0x228] ss:$16 sps:$4 sm:$0xff]  }
  0x64   :  { %1781 = vmatpush2.bf16.msra.mxu1 %v2711_v55  ;;  %1741 = vmatprep.subr.bf16.mxu0 %v2716_v56  ;;  %v2801_v55 = vld [vmem:[%s4068_s1 + $0xc] ss:$16 sps:$4 sm:$0xff]  }
  0x65   :  { %1782 = vmatprep.subr.bf16.mxu1 %v2719_v57  ;;  %v2804_v56 = vld [vmem:[%s4068_s1 + $0x20c] ss:$16 sps:$4 sm:$0xff]   ;;  %v2799_v57 = vld [vmem:[%s4068_s1 + $0x8] ss:$16 sps:$4 sm:$0xff]  }
  0x67   :  { %1742 = vmatpush2.bf16.msra.mxu0 %v2714_v58  ;;  %v2802_v58 = vld [vmem:[%s4068_s1 + $0x208] ss:$16 sps:$4 sm:$0xff]  }
  0x68   :  { %1783 = vmatpush2.bf16.msra.mxu1 %v2717_v59  ;;  %1743 = vmatprep.subr.bf16.mxu0 %v2722_v60  ;;  %v2807_v59 = vld [vmem:[%s4068_s1 + $0x1ec] ss:$16 sps:$4 sm:$0xff]  }
  0x69   :  { %1784 = vmatprep.subr.bf16.mxu1 %v2725_v61  ;;  %v2810_v60 = vld [vmem:[%s4068_s1 + $0x3ec] ss:$16 sps:$4 sm:$0xff]   ;;  %v2805_v61 = vld [vmem:[%s4068_s1 + $0x1e8] ss:$16 sps:$4 sm:$0xff]  }
  0x6b   :  { %1744 = vmatpush2.bf16.msra.mxu0 %v2720_v0  ;;  %v2808_v0 = vld [vmem:[%s4068_s1 + $0x3e8] ss:$16 sps:$4 sm:$0xff]  }
  0x6c   :  { %1785 = vmatpush2.bf16.msra.mxu1 %v2723_v1  ;;  %1745 = vmatprep.subr.bf16.mxu0 %v2728_v2  ;;  %v2813_v1 = vld [vmem:[%s4068_s1 + $0x1cc] ss:$16 sps:$4 sm:$0xff]  }
  0x6d   :  { %1786 = vmatprep.subr.bf16.mxu1 %v2731_v4  ;;  %v2816_v2 = vld [vmem:[%s4068_s1 + $0x3cc] ss:$16 sps:$4 sm:$0xff]   ;;  %v2811_v4 = vld [vmem:[%s4068_s1 + $0x1c8] ss:$16 sps:$4 sm:$0xff]  }
  0x6f   :  { %1746 = vmatpush2.bf16.msra.mxu0 %v2726_v5  ;;  %v2814_v5 = vld [vmem:[%s4068_s1 + $0x3c8] ss:$16 sps:$4 sm:$0xff]  }
  0x70   :  { %1787 = vmatpush2.bf16.msra.mxu1 %v2729_v6  ;;  %1747 = vmatprep.subr.bf16.mxu0 %v2734_v7  ;;  %v2819_v6 = vld [vmem:[%s4068_s1 + $0x1ac] ss:$16 sps:$4 sm:$0xff]  }
  0x71   :  { %1788 = vmatprep.subr.bf16.mxu1 %v2737_v8  ;;  %v2822_v7 = vld [vmem:[%s4068_s1 + $0x3ac] ss:$16 sps:$4 sm:$0xff]   ;;  %v2817_v8 = vld [vmem:[%s4068_s1 + $0x1a8] ss:$16 sps:$4 sm:$0xff]  }
  0x73   :  { %1748 = vmatpush2.bf16.msra.mxu0 %v2732_v9  ;;  %v2820_v9 = vld [vmem:[%s4068_s1 + $0x3a8] ss:$16 sps:$4 sm:$0xff]  }
  0x74   :  { %1789 = vmatpush2.bf16.msra.mxu1 %v2735_v10  ;;  %1749 = vmatprep.subr.bf16.mxu0 %v2740_v11  ;;  %v2825_v10 = vld [vmem:[%s4068_s1 + $0x18c] ss:$16 sps:$4 sm:$0xff]  }
  0x75   :  { %1790 = vmatprep.subr.bf16.mxu1 %v2743_v12  ;;  %v2828_v11 = vld [vmem:[%s4068_s1 + $0x38c] ss:$16 sps:$4 sm:$0xff]   ;;  %v2823_v12 = vld [vmem:[%s4068_s1 + $0x188] ss:$16 sps:$4 sm:$0xff]  }
  0x77   :  { %1750 = vmatpush2.bf16.msra.mxu0 %v2738_v13  ;;  %v2826_v13 = vld [vmem:[%s4068_s1 + $0x388] ss:$16 sps:$4 sm:$0xff]  }
  0x78   :  { %1791 = vmatpush2.bf16.msra.mxu1 %v2741_v15  ;;  %1751 = vmatprep.subr.bf16.mxu0 %v2746_v16  ;;  %v2831_v15 = vld [vmem:[%s4068_s1 + $0x16c] ss:$16 sps:$4 sm:$0xff]  }
  0x79   :  { %1792 = vmatprep.subr.bf16.mxu1 %v2749_v17  ;;  %v2834_v16 = vld [vmem:[%s4068_s1 + $0x36c] ss:$16 sps:$4 sm:$0xff]   ;;  %v2829_v17 = vld [vmem:[%s4068_s1 + $0x168] ss:$16 sps:$4 sm:$0xff]  }
  0x7b   :  { %1752 = vmatpush2.bf16.msra.mxu0 %v2744_v20  ;;  %v2832_v20 = vld [vmem:[%s4068_s1 + $0x368] ss:$16 sps:$4 sm:$0xff]  }
  0x7c   :  { %1793 = vmatpush2.bf16.msra.mxu1 %v2747_v21  ;;  %1753 = vmatprep.subr.bf16.mxu0 %v2752_v22  ;;  %v2837_v21 = vld [vmem:[%s4068_s1 + $0x14c] ss:$16 sps:$4 sm:$0xff]  }
  0x7d   :  { %1794 = vmatprep.subr.bf16.mxu1 %v2755_v23  ;;  %v2840_v22 = vld [vmem:[%s4068_s1 + $0x34c] ss:$16 sps:$4 sm:$0xff]  }
  0x7f   :  { %1754 = vmatpush2.bf16.msra.mxu0 %v2750_v25 }
  0x80   :  { %1795 = vmatpush2.bf16.msra.mxu1 %v2753_v26  ;;  %1805 = vmatprep.subr.bf16.mxu0 %v2759_v27 }
  0x81   :  { %1846 = vmatprep.subr.bf16.mxu1 %v2762_v28 }
  0x82   :  { %1756 = vmatmul.mubr.bf16.vlgmr.msra.gmra.mxu0 %v3193_v63 }
  0x83   :  { %1797 = vmatmul.mubr.bf16.vlgmr.msra.gmra.mxu1 %v3456_v29  ;;  %1806 = vmatpush1.bf16.msra.mxu0 %v2757_v30 }
  0x84   :  { %1847 = vmatpush1.bf16.msra.mxu1 %v2760_v31  ;;  %1807 = vmatprep.subr.bf16.mxu0 %v2765_v32 }
  0x85   :  { %1848 = vmatprep.subr.bf16.mxu1 %v2768_v33  ;;  %1837 = vmatprep.mubr.bf16.mxu0 %v3191_v62  ;;  %v2780_v62 = vld [vmem:[%s4068_s1 + $0x28c] ss:$16 sps:$4 sm:$0xff]  }
  0x86   :  { %1878 = vmatprep.mubr.bf16.mxu1 %v3206_v3  ;;  %v2775_v3 = vld [vmem:[%s4068_s1 + $0x88] ss:$16 sps:$4 sm:$0xff]  }
  0x87   :  { %1808 = vmatpush1.bf16.msra.mxu0 %v2763_v34 }
  0x88   :  { %1849 = vmatpush1.bf16.msra.mxu1 %v2766_v35  ;;  %1809 = vmatprep.subr.bf16.mxu0 %v2771_v36 }
  0x89   :  { %1850 = vmatprep.subr.bf16.mxu1 %v2774_v37 }
  0x8b   :  { %1810 = vmatpush1.bf16.msra.mxu0 %v2769_v38 }
  0x8c   :  { %1851 = vmatpush1.bf16.msra.mxu1 %v2772_v39  ;;  %1811 = vmatprep.subr.bf16.mxu0 %v2777_v40 }
  0x8d   :  { %1852 = vmatprep.subr.bf16.mxu1 %v2780_v62 }
  0x8f   :  { %1812 = vmatpush1.bf16.msra.mxu0 %v2775_v3 }
  0x90   :  { %1853 = vmatpush1.bf16.msra.mxu1 %v2778_v41  ;;  %1813 = vmatprep.subr.bf16.mxu0 %v2783_v43 }
  0x91   :  { %1854 = vmatprep.subr.bf16.mxu1 %v2786_v44 }
  0x93   :  { %1814 = vmatpush1.bf16.msra.mxu0 %v2781_v45 }
  0x94   :  { %1855 = vmatpush1.bf16.msra.mxu1 %v2784_v46  ;;  %1815 = vmatprep.subr.bf16.mxu0 %v2789_v47 }
  0x95   :  { %1856 = vmatprep.subr.bf16.mxu1 %v2792_v48 }
  0x97   :  { %1816 = vmatpush1.bf16.msra.mxu0 %v2787_v49 }
  0x98   :  { %1857 = vmatpush1.bf16.msra.mxu1 %v2790_v50  ;;  %1817 = vmatprep.subr.bf16.mxu0 %v2795_v51 }
  0x99   :  { %1858 = vmatprep.subr.bf16.mxu1 %v2798_v52 }
  0x9b   :  { %1818 = vmatpush1.bf16.msra.mxu0 %v2793_v53 }
  0x9c   :  { %1859 = vmatpush1.bf16.msra.mxu1 %v2796_v54  ;;  %1819 = vmatprep.subr.bf16.mxu0 %v2801_v55 }
  0x9d   :  { %1860 = vmatprep.subr.bf16.mxu1 %v2804_v56 }
  0x9f   :  { %1820 = vmatpush1.bf16.msra.mxu0 %v2799_v57 }
  0xa0   :  { %1861 = vmatpush1.bf16.msra.mxu1 %v2802_v58  ;;  %1821 = vmatprep.subr.bf16.mxu0 %v2807_v59 }
  0xa1   :  { %1862 = vmatprep.subr.bf16.mxu1 %v2810_v60 }
  0xa3   :  { %1822 = vmatpush2.bf16.msra.mxu0 %v2805_v61 }
  0xa4   :  { %1863 = vmatpush2.bf16.msra.mxu1 %v2808_v0  ;;  %1823 = vmatprep.subr.bf16.mxu0 %v2813_v1 }
  0xa5   :  { %1864 = vmatprep.subr.bf16.mxu1 %v2816_v2 }
  0xa7   :  { %1824 = vmatpush2.bf16.msra.mxu0 %v2811_v4 }
  0xa8   :  { %1865 = vmatpush2.bf16.msra.mxu1 %v2814_v5  ;;  %1825 = vmatprep.subr.bf16.mxu0 %v2819_v6 }
  0xa9   :  { %1866 = vmatprep.subr.bf16.mxu1 %v2822_v7 }
  0xab   :  { %1826 = vmatpush2.bf16.msra.mxu0 %v2817_v8 }
  0xac   :  { %1867 = vmatpush2.bf16.msra.mxu1 %v2820_v9  ;;  %1827 = vmatprep.subr.bf16.mxu0 %v2825_v10 }
  0xad   :  { %1868 = vmatprep.subr.bf16.mxu1 %v2828_v11 }
  0xaf   :  { %1828 = vmatpush2.bf16.msra.mxu0 %v2823_v12 }
  0xb0   :  { %1869 = vmatpush2.bf16.msra.mxu1 %v2826_v13  ;;  %1829 = vmatprep.subr.bf16.mxu0 %v2831_v15 }
  0xb1   :  { %1870 = vmatprep.subr.bf16.mxu1 %v2834_v16 }
  0xb2   :  { %13 = vsyncpa [#allocation5], 0  ;;  %v2835_v23 = vld [vmem:[%s4068_s1 + $0x148] ss:$16 sps:$4 sm:$0xff]   ;;  %v2843_v26 = vld [vmem:[%s4068_s1 + $0x12c] ss:$16 sps:$4 sm:$0xff]  }
  0xb3   :  { %1830 = vmatpush2.bf16.msra.mxu0 %v2829_v17  ;;  %v2838_v25 = vld [vmem:[%s4068_s1 + $0x348] ss:$16 sps:$4 sm:$0xff]   ;;  %v2846_v27 = vld [vmem:[%s4068_s1 + $0x32c] ss:$16 sps:$4 sm:$0xff]  }
  0xb4   :  { %1871 = vmatpush2.bf16.msra.mxu1 %v2832_v20  ;;  %1831 = vmatprep.subr.bf16.mxu0 %v2837_v21  ;;  %v2841_v28 = vld [vmem:[%s4068_s1 + $0x128] ss:$16 sps:$4 sm:$0xff]   ;;  %v2849_v31 = vld [vmem:[%s4068_s1 + $0x10c] ss:$16 sps:$4 sm:$0xff]  }
  0xb5   :  { %1872 = vmatprep.subr.bf16.mxu1 %v2840_v22  ;;  %v2844_v30 = vld [vmem:[%s4068_s1 + $0x328] ss:$16 sps:$4 sm:$0xff]   ;;  %v2852_v32 = vld [vmem:[%s4068_s1 + $0x30c] ss:$16 sps:$4 sm:$0xff]  }
  0xb6   :  { %v2847_v33 = vld [vmem:[%s4068_s1 + $0x108] ss:$16 sps:$4 sm:$0xff]   ;;  %v2855_v35 = vld [vmem:[%s4068_s1 + $0x4ec] ss:$16 sps:$4 sm:$0xff]  }
  0xb7   :  { %1832 = vmatpush2.bf16.msra.mxu0 %v2835_v23  ;;  %v2850_v34 = vld [vmem:[%s4068_s1 + $0x308] ss:$16 sps:$4 sm:$0xff]   ;;  %v2858_v36 = vld [vmem:[%s4068_s1 + $0x6ec] ss:$16 sps:$4 sm:$0xff]  }
  0xb8   :  { %1873 = vmatpush2.bf16.msra.mxu1 %v2838_v25  ;;  %1833 = vmatprep.subr.bf16.mxu0 %v2843_v26  ;;  %v2853_v37 = vld [vmem:[%s4068_s1 + $0x4e8] ss:$16 sps:$4 sm:$0xff]   ;;  %v2861_v39 = vld [vmem:[%s4068_s1 + $0x4cc] ss:$16 sps:$4 sm:$0xff]  }
  0xb9   :  { %1874 = vmatprep.subr.bf16.mxu1 %v2846_v27  ;;  %v2856_v38 = vld [vmem:[%s4068_s1 + $0x6e8] ss:$16 sps:$4 sm:$0xff]   ;;  %v2864_v40 = vld [vmem:[%s4068_s1 + $0x6cc] ss:$16 sps:$4 sm:$0xff]  }
  0xba   :  { %v2859_v62 = vld [vmem:[%s4068_s1 + $0x4c8] ss:$16 sps:$4 sm:$0xff]   ;;  %v2867_v41 = vld [vmem:[%s4068_s1 + $0x4ac] ss:$16 sps:$4 sm:$0xff]  }
  0xbb   :  { %1834 = vmatpush2.bf16.msra.mxu0 %v2841_v28  ;;  %v2862_v3 = vld [vmem:[%s4068_s1 + $0x6c8] ss:$16 sps:$4 sm:$0xff]   ;;  %v2873_v44 = vld [vmem:[%s4068_s1 + $0x48c] ss:$16 sps:$4 sm:$0xff]  }
  0xbc   :  { %1875 = vmatpush2.bf16.msra.mxu1 %v2844_v30  ;;  %1835 = vmatprep.subr.bf16.mxu0 %v2849_v31  ;;  %v2868_v43 = vld [vmem:[%s4068_s1 + $0x6a8] ss:$16 sps:$4 sm:$0xff]   ;;  %v2879_v46 = vld [vmem:[%s4068_s1 + $0x46c] ss:$16 sps:$4 sm:$0xff]  }
  0xbd   :  { %1876 = vmatprep.subr.bf16.mxu1 %v2852_v32  ;;  %v2874_v45 = vld [vmem:[%s4068_s1 + $0x688] ss:$16 sps:$4 sm:$0xff]   ;;  %v2882_v47 = vld [vmem:[%s4068_s1 + $0x66c] ss:$16 sps:$4 sm:$0xff]  }
  0xbe   :  { %v2877_v48 = vld [vmem:[%s4068_s1 + $0x468] ss:$16 sps:$4 sm:$0xff]   ;;  %v2885_v50 = vld [vmem:[%s4068_s1 + $0x44c] ss:$16 sps:$4 sm:$0xff]  }
  0xbf   :  { %1836 = vmatpush2.bf16.msra.mxu0 %v2847_v33  ;;  %v2880_v49 = vld [vmem:[%s4068_s1 + $0x668] ss:$16 sps:$4 sm:$0xff]   ;;  %v2888_v51 = vld [vmem:[%s4068_s1 + $0x64c] ss:$16 sps:$4 sm:$0xff]  }
  0xc0   :  { %1877 = vmatpush2.bf16.msra.mxu1 %v2850_v34  ;;  %1887 = vmatprep.subr.bf16.mxu0 %v2855_v35  ;;  %v2883_v52 = vld [vmem:[%s4068_s1 + $0x448] ss:$16 sps:$4 sm:$0xff]   ;;  %v2891_v54 = vld [vmem:[%s4068_s1 + $0x42c] ss:$16 sps:$4 sm:$0xff]  }
  0xc1   :  { %1928 = vmatprep.subr.bf16.mxu1 %v2858_v36  ;;  %v2886_v53 = vld [vmem:[%s4068_s1 + $0x648] ss:$16 sps:$4 sm:$0xff]   ;;  %v2894_v55 = vld [vmem:[%s4068_s1 + $0x62c] ss:$16 sps:$4 sm:$0xff]  }
  0xc2   :  { %1838 = vmatmul.mubr.bf16.vlgmr.msra.gmra.mxu0 %v3237_v14  ;;  %v2870_v14 = vld [vmem:[%s4068_s1 + $0x6ac] ss:$16 sps:$4 sm:$0xff]   ;;  %v2889_v56 = vld [vmem:[%s4068_s1 + $0x428] ss:$16 sps:$4 sm:$0xff]  }
  0xc3   :  { %1879 = vmatmul.mubr.bf16.vlgmr.msra.gmra.mxu1 %v3252_v19  ;;  %1888 = vmatpush1.bf16.msra.mxu0 %v2853_v37  ;;  %v2865_v19 = vld [vmem:[%s4068_s1 + $0x4a8] ss:$16 sps:$4 sm:$0xff]   ;;  %v2897_v58 = vld [vmem:[%s4068_s1 + $0x40c] ss:$16 sps:$4 sm:$0xff]  }
  0xc4   :  { %1929 = vmatpush1.bf16.msra.mxu1 %v2856_v38  ;;  %1889 = vmatprep.subr.bf16.mxu0 %v2861_v39  ;;  %v2892_v57 = vld [vmem:[%s4068_s1 + $0x628] ss:$16 sps:$4 sm:$0xff]   ;;  %v2900_v59 = vld [vmem:[%s4068_s1 + $0x60c] ss:$16 sps:$4 sm:$0xff]  }
  0xc5   :  { %1930 = vmatprep.subr.bf16.mxu1 %v2864_v40  ;;  %1919 = vmatprep.mubr.bf16.mxu0 %v3248_v18  ;;  %v2876_v18 = vld [vmem:[%s4068_s1 + $0x68c] ss:$16 sps:$4 sm:$0xff]   ;;  %v2895_v60 = vld [vmem:[%s4068_s1 + $0x408] ss:$16 sps:$4 sm:$0xff]   ;;  %v2022_v40 = vld [vmem:[%s4070_s3 + $0xf0] sm:$0xff] }
  0xc6   :  { %1960 = vmatprep.mubr.bf16.mxu1 %v3268_v24  ;;  %v2871_v24 = vld [vmem:[%s4068_s1 + $0x488] ss:$16 sps:$4 sm:$0xff]   ;;  %v2903_v0 = vld [vmem:[%s4068_s1 + $0x5ec] ss:$16 sps:$4 sm:$0xff]  }
  0xc7   :  { %1890 = vmatpush1.bf16.msra.mxu0 %v2859_v62  ;;  %v2898_v61 = vld [vmem:[%s4068_s1 + $0x608] ss:$16 sps:$4 sm:$0xff]   ;;  %v2906_v1 = vld [vmem:[%s4068_s1 + $0x7ec] ss:$16 sps:$4 sm:$0xff]  }
  0xc8   :  { %1931 = vmatpush1.bf16.msra.mxu1 %v2862_v3  ;;  %1891 = vmatprep.subr.bf16.mxu0 %v2867_v41  ;;  %v2901_v2 = vld [vmem:[%s4068_s1 + $0x5e8] ss:$16 sps:$4 sm:$0xff]   ;;  %v2909_v5 = vld [vmem:[%s4068_s1 + $0x5cc] ss:$16 sps:$4 sm:$0xff]   ;;  %v2006_v41 = vld [vmem:[%s4070_s3 + $0x70] sm:$0xff] }
  0xc9   :  { %1932 = vmatprep.subr.bf16.mxu1 %v2870_v14  ;;  %v2904_v4 = vld [vmem:[%s4068_s1 + $0x7e8] ss:$16 sps:$4 sm:$0xff]   ;;  %v2912_v6 = vld [vmem:[%s4068_s1 + $0x7cc] ss:$16 sps:$4 sm:$0xff]  }
  0xca   :  { %v2907_v7 = vld [vmem:[%s4068_s1 + $0x5c8] ss:$16 sps:$4 sm:$0xff]   ;;  %v2915_v9 = vld [vmem:[%s4068_s1 + $0x5ac] ss:$16 sps:$4 sm:$0xff]  }
  0xcb   :  { %1892 = vmatpush1.bf16.msra.mxu0 %v2865_v19  ;;  %v2910_v8 = vld [vmem:[%s4068_s1 + $0x7c8] ss:$16 sps:$4 sm:$0xff]   ;;  %v2918_v10 = vld [vmem:[%s4068_s1 + $0x7ac] ss:$16 sps:$4 sm:$0xff]  }
  0xcc   :  { %1933 = vmatpush1.bf16.msra.mxu1 %v2868_v43  ;;  %1893 = vmatprep.subr.bf16.mxu0 %v2873_v44  ;;  %v2913_v11 = vld [vmem:[%s4068_s1 + $0x5a8] ss:$16 sps:$4 sm:$0xff]   ;;  %v2921_v13 = vld [vmem:[%s4068_s1 + $0x58c] ss:$16 sps:$4 sm:$0xff]  }
  0xcd   :  { %1934 = vmatprep.subr.bf16.mxu1 %v2876_v18  ;;  %v2916_v12 = vld [vmem:[%s4068_s1 + $0x7a8] ss:$16 sps:$4 sm:$0xff]   ;;  %v2924_v15 = vld [vmem:[%s4068_s1 + $0x78c] ss:$16 sps:$4 sm:$0xff]  }
  0xce   :  { %v2919_v16 = vld [vmem:[%s4068_s1 + $0x588] ss:$16 sps:$4 sm:$0xff]   ;;  %v2927_v20 = vld [vmem:[%s4068_s1 + $0x56c] ss:$16 sps:$4 sm:$0xff]  }
  0xcf   :  { %1894 = vmatpush1.bf16.msra.mxu0 %v2871_v24  ;;  %v2922_v17 = vld [vmem:[%s4068_s1 + $0x788] ss:$16 sps:$4 sm:$0xff]   ;;  %v2930_v21 = vld [vmem:[%s4068_s1 + $0x76c] ss:$16 sps:$4 sm:$0xff]   ;;  %v2004_v24 = vld [vmem:[%s4070_s3 + $0x60] sm:$0xff] }
  0xd0   :  { %1935 = vmatpush1.bf16.msra.mxu1 %v2874_v45  ;;  %1895 = vmatprep.subr.bf16.mxu0 %v2879_v46  ;;  %v2925_v22 = vld [vmem:[%s4068_s1 + $0x568] ss:$16 sps:$4 sm:$0xff]   ;;  %v2933_v25 = vld [vmem:[%s4068_s1 + $0x54c] ss:$16 sps:$4 sm:$0xff]  }
  0xd1   :  { %1936 = vmatprep.subr.bf16.mxu1 %v2882_v47  ;;  %v2928_v23 = vld [vmem:[%s4068_s1 + $0x768] ss:$16 sps:$4 sm:$0xff]   ;;  %v2936_v26 = vld [vmem:[%s4068_s1 + $0x74c] ss:$16 sps:$4 sm:$0xff]  }
  0xd2   :  { %v2931_v27 = vld [vmem:[%s4068_s1 + $0x548] ss:$16 sps:$4 sm:$0xff]   ;;  %v2939_v30 = vld [vmem:[%s4068_s1 + $0x52c] ss:$16 sps:$4 sm:$0xff]  }
  0xd3   :  { %1896 = vmatpush1.bf16.msra.mxu0 %v2877_v48  ;;  %v2934_v28 = vld [vmem:[%s4068_s1 + $0x748] ss:$16 sps:$4 sm:$0xff]   ;;  %v2942_v31 = vld [vmem:[%s4068_s1 + $0x72c] ss:$16 sps:$4 sm:$0xff]  }
  0xd4   :  { %1937 = vmatpush1.bf16.msra.mxu1 %v2880_v49  ;;  %1897 = vmatprep.subr.bf16.mxu0 %v2885_v50  ;;  %v2937_v32 = vld [vmem:[%s4068_s1 + $0x528] ss:$16 sps:$4 sm:$0xff]   ;;  %v2945_v34 = vld [vmem:[%s4068_s1 + $0x50c] ss:$16 sps:$4 sm:$0xff]  }
  0xd5   :  { %1938 = vmatprep.subr.bf16.mxu1 %v2888_v51  ;;  %v2940_v33 = vld [vmem:[%s4068_s1 + $0x728] ss:$16 sps:$4 sm:$0xff]   ;;  %v2948_v35 = vld [vmem:[%s4068_s1 + $0x70c] ss:$16 sps:$4 sm:$0xff]   ;;  %v2054_v51 = vld [vmem:[%s4070_s3 + $0x1f0] sm:$0xff] }
  0xd6   :  { %v2943_v36 = vld [vmem:[%s4068_s1 + $0x508] ss:$16 sps:$4 sm:$0xff]  }
  0xd7   :  { %1898 = vmatpush1.bf16.msra.mxu0 %v2883_v52  ;;  %v2946_v37 = vld [vmem:[%s4068_s1 + $0x708] ss:$16 sps:$4 sm:$0xff]   ;;  %v2018_v52 = vld [vmem:[%s4070_s3 + $0xd0] sm:$0xff] }
  0xd8   :  { %1939 = vmatpush1.bf16.msra.mxu1 %v2886_v53  ;;  %1899 = vmatprep.subr.bf16.mxu0 %v2891_v54  ;;  %v2023_v38 = vld [vmem:[%s4070_s3 + $0xf8] sm:$0xff]  ;;  %v2021_v14 = vld [vmem:[%s4070_s3 + $0xe8] sm:$0xff]  ;;  %v2038_v53 = vld [vmem:[%s4070_s3 + $0x170] sm:$0xff] }
  0xd9   :  { %1940 = vmatprep.subr.bf16.mxu1 %v2894_v55  ;;  %v2007_v39 = vld [vmem:[%s4070_s3 + $0x78] sm:$0xff]  ;;  %v2002_v54 = vld [vmem:[%s4070_s3 + $0x50] sm:$0xff]  ;;  %v2053_v55 = vld [vmem:[%s4070_s3 + $0x1e8] sm:$0xff] }
  0xda   :  { %v2019_v45 = vld [vmem:[%s4070_s3 + $0xd8] sm:$0xff] }
  0xdb   :  { %1900 = vmatpush1.bf16.msra.mxu0 %v2889_v56  ;;  %v2003_v46 = vld [vmem:[%s4070_s3 + $0x58] sm:$0xff]  ;;  %v2017_v56 = vld [vmem:[%s4070_s3 + $0xc8] sm:$0xff] }
  0xdc   :  { %1941 = vmatpush1.bf16.msra.mxu1 %v2892_v57  ;;  %1901 = vmatprep.subr.bf16.mxu0 %v2897_v58  ;;  %v2055_v49 = vld [vmem:[%s4070_s3 + $0x1f8] sm:$0xff]  ;;  %v2037_v57 = vld [vmem:[%s4070_s3 + $0x168] sm:$0xff] }
  0xdd   :  { %1942 = vmatprep.subr.bf16.mxu1 %v2900_v59  ;;  %v2039_v50 = vld [vmem:[%s4070_s3 + $0x178] sm:$0xff]  ;;  %v2001_v58 = vld [vmem:[%s4070_s3 + $0x48] sm:$0xff]  ;;  %v2052_v59 = vld [vmem:[%s4070_s3 + $0x1e0] sm:$0xff] }
  0xdf   :  { %1902 = vmatpush1.bf16.msra.mxu0 %v2895_v60  ;;  %v2016_v60 = vld [vmem:[%s4070_s3 + $0xc0] sm:$0xff] }
  0xe0   :  { %1943 = vmatpush1.bf16.msra.mxu1 %v2898_v61  ;;  %1903 = vmatprep.subr.bf16.mxu0 %v2903_v0  ;;  %v2036_v61 = vld [vmem:[%s4070_s3 + $0x160] sm:$0xff] }
  0xe1   :  { %1944 = vmatprep.subr.bf16.mxu1 %v2906_v1  ;;  %v2000_v0 = vld [vmem:[%s4070_s3 + $0x40] sm:$0xff]  ;;  %v2051_v1 = vld [vmem:[%s4070_s3 + $0x1d8] sm:$0xff] }
  0xe3   :  { %1904 = vmatpush2.bf16.msra.mxu0 %v2901_v2  ;;  %v2015_v2 = vld [vmem:[%s4070_s3 + $0xb8] sm:$0xff] }
  0xe4   :  { %1945 = vmatpush2.bf16.msra.mxu1 %v2904_v4  ;;  %1905 = vmatprep.subr.bf16.mxu0 %v2909_v5  ;;  %v2035_v4 = vld [vmem:[%s4070_s3 + $0x158] sm:$0xff] }
  0xe5   :  { %1946 = vmatprep.subr.bf16.mxu1 %v2912_v6  ;;  %v1999_v5 = vld [vmem:[%s4070_s3 + $0x38] sm:$0xff]  ;;  %v2050_v6 = vld [vmem:[%s4070_s3 + $0x1d0] sm:$0xff] }
  0xe7   :  { %1906 = vmatpush2.bf16.msra.mxu0 %v2907_v7  ;;  %v2014_v7 = vld [vmem:[%s4070_s3 + $0xb0] sm:$0xff] }
  0xe8   :  { %1947 = vmatpush2.bf16.msra.mxu1 %v2910_v8  ;;  %1907 = vmatprep.subr.bf16.mxu0 %v2915_v9  ;;  %v2034_v8 = vld [vmem:[%s4070_s3 + $0x150] sm:$0xff] }
  0xe9   :  { %1948 = vmatprep.subr.bf16.mxu1 %v2918_v10  ;;  %v1998_v9 = vld [vmem:[%s4070_s3 + $0x30] sm:$0xff]  ;;  %v2049_v10 = vld [vmem:[%s4070_s3 + $0x1c8] sm:$0xff] }
  0xeb   :  { %1908 = vmatpush2.bf16.msra.mxu0 %v2913_v11  ;;  %v2013_v11 = vld [vmem:[%s4070_s3 + $0xa8] sm:$0xff] }
  0xec   :  { %1949 = vmatpush2.bf16.msra.mxu1 %v2916_v12  ;;  %1909 = vmatprep.subr.bf16.mxu0 %v2921_v13  ;;  %v2033_v12 = vld [vmem:[%s4070_s3 + $0x148] sm:$0xff] }
  0xed   :  { %1950 = vmatprep.subr.bf16.mxu1 %v2924_v15  ;;  %v1997_v13 = vld [vmem:[%s4070_s3 + $0x28] sm:$0xff]  ;;  %v2048_v15 = vld [vmem:[%s4070_s3 + $0x1c0] sm:$0xff] }
  0xef   :  { %1910 = vmatpush2.bf16.msra.mxu0 %v2919_v16  ;;  %v2012_v16 = vld [vmem:[%s4070_s3 + $0xa0] sm:$0xff] }
  0xf0   :  { %1951 = vmatpush2.bf16.msra.mxu1 %v2922_v17  ;;  %1911 = vmatprep.subr.bf16.mxu0 %v2927_v20  ;;  %v2032_v17 = vld [vmem:[%s4070_s3 + $0x140] sm:$0xff] }
  0xf1   :  { %1952 = vmatprep.subr.bf16.mxu1 %v2930_v21  ;;  %v1996_v20 = vld [vmem:[%s4070_s3 + $0x20] sm:$0xff]  ;;  %v2047_v21 = vld [vmem:[%s4070_s3 + $0x1b8] sm:$0xff] }
  0xf3   :  { %1912 = vmatpush2.bf16.msra.mxu0 %v2925_v22  ;;  %v2011_v22 = vld [vmem:[%s4070_s3 + $0x98] sm:$0xff] }
  0xf4   :  { %1953 = vmatpush2.bf16.msra.mxu1 %v2928_v23  ;;  %1913 = vmatprep.subr.bf16.mxu0 %v2933_v25  ;;  %v2031_v23 = vld [vmem:[%s4070_s3 + $0x138] sm:$0xff] }
  0xf5   :  { %1954 = vmatprep.subr.bf16.mxu1 %v2936_v26  ;;  %v1995_v25 = vld [vmem:[%s4070_s3 + $0x18] sm:$0xff]  ;;  %v2046_v26 = vld [vmem:[%s4070_s3 + $0x1b0] sm:$0xff] }
  0xf7   :  { %1914 = vmatpush2.bf16.msra.mxu0 %v2931_v27  ;;  %v2010_v27 = vld [vmem:[%s4070_s3 + $0x90] sm:$0xff] }
  0xf8   :  { %1955 = vmatpush2.bf16.msra.mxu1 %v2934_v28  ;;  %1915 = vmatprep.subr.bf16.mxu0 %v2939_v30  ;;  %v2030_v28 = vld [vmem:[%s4070_s3 + $0x130] sm:$0xff] }
  0xf9   :  { %1956 = vmatprep.subr.bf16.mxu1 %v2942_v31  ;;  %v1994_v30 = vld [vmem:[%s4070_s3 + $0x10] sm:$0xff]  ;;  %v2045_v31 = vld [vmem:[%s4070_s3 + $0x1a8] sm:$0xff] }
  0xfb   :  { %1916 = vmatpush2.bf16.msra.mxu0 %v2937_v32  ;;  %v2009_v32 = vld [vmem:[%s4070_s3 + $0x88] sm:$0xff] }
  0xfc   :  { %1957 = vmatpush2.bf16.msra.mxu1 %v2940_v33  ;;  %1917 = vmatprep.subr.bf16.mxu0 %v2945_v34  ;;  %v2029_v33 = vld [vmem:[%s4070_s3 + $0x128] sm:$0xff] }
  0xfd   :  { %1958 = vmatprep.subr.bf16.mxu1 %v2948_v35  ;;  %v1993_v34 = vld [vmem:[%s4070_s3 + $0x8] sm:$0xff]  ;;  %v2044_v35 = vld [vmem:[%s4070_s3 + $0x1a0] sm:$0xff] }
  0xff   :  { %1918 = vmatpush2.bf16.msra.mxu0 %v2943_v36  ;;  %v2008_v36 = vld [vmem:[%s4070_s3 + $0x80] sm:$0xff] }
 0x100   :  { %1959 = vmatpush2.bf16.msra.mxu1 %v2946_v37  ;;  %2490 = vmatprep.subr.mxu0 %v2023_v38  ;;  %v2028_v37 = vld [vmem:[%s4070_s3 + $0x120] sm:$0xff] }
 0x101   :  { %2525 = vmatprep.subr.mxu1 %v2055_v49  ;;  %v1992_v38 = vld [vmem:[%s4070_s3] sm:$0xff] }
 0x102   :  { %v3853_v62 = vpop.f32.mrf.mxu0  ;;  %1920 = vmatmul.mubr.bf16.vlgmr.msra.gmra.mxu0 %v3193_v63  ;;  %v2005_v63 = vld [vmem:[%s4070_s3 + $0x68] sm:$0xff] }
 0x103   :  { %v3855_v3 = vpop.f32.mrf.mxu1  ;;  %1961 = vmatmul.mubr.bf16.vlgmr.msra.gmra.mxu1 %v3456_v29  ;;  %2491 = vmatpush3.msra.mxu0 %v2007_v39  ;;  %v2020_v29 = vld [vmem:[%s4070_s3 + $0xe0] sm:$0xff]  ;;  %v285_v39 = vsub.s32 0, %v3149_v42 }
 0x104   :  { %v3865_v19 = vpop.f32.mrf.mxu0  ;;  %2492 = vmatprep.subr.mxu0 %v2022_v40  ;;  %2526 = vmatpush3.msra.mxu1 %v2039_v50  ;;  %v281_v40 = vld [vmem:[%s4069_s2] sm:$0xf]  ;;  %v2026_v50 = vld [vmem:[%s4070_s3 + $0x110] sm:$0xff] }
 0x105   :  { %v3867_v43 = vpop.f32.mrf.mxu1  ;;  %2493 = vmatpush3.msra.mxu0 %v2006_v41  ;;  %2527 = vmatprep.subr.mxu1 %v2054_v51  ;;  %v289_v41 = vsub.s32 1, %v3149_v42 }
 0x106   :  { %v1679_v44 = vpop.f32.mrf.mxu0  ;;  %2494 = vmatprep.subr.mxu0 %v2021_v14  ;;  %2528 = vmatpush3.msra.mxu1 %v2038_v53  ;;  %v286_v14 = vrot.slane %v281_v40, %v285_v39 }
 0x107   :  { %v1720_v18 = vpop.f32.mrf.mxu1  ;;  %2495 = vmatpush3.msra.mxu0 %v2005_v63  ;;  %2529 = vmatprep.subr.mxu1 %v2053_v55  ;;  %v290_v63 = vrot.slane %v281_v40, %v289_v41 }
 0x108   :  { %v1680_v47 = vpop.f32.mrf.mxu0  ;;  %2496 = vmatprep.subr.mxu0 %v2020_v29  ;;  %2530 = vmatpush3.msra.mxu1 %v2037_v57  ;;  %v1676_v29 = vadd.f32 %v3853_v62, %v286_v14  ;;  %v2042_v62 = vld [vmem:[%s4070_s3 + $0x190] sm:$0xff]  ;;  %v2040_v57 = vld [vmem:[%s4070_s3 + $0x180] sm:$0xff] }
 0x109   :  { %v1721_v48 = vpop.f32.mrf.mxu1  ;;  %2497 = vmatpush3.msra.mxu0 %v2004_v24  ;;  %2531 = vmatprep.subr.mxu1 %v2052_v59  ;;  %v1678_v44 = vadd.f32 %v3865_v19, %v290_v63  ;;  %v2043_v24 = vld [vmem:[%s4070_s3 + $0x198] sm:$0xff] }
 0x10a   :  { %2498 = vmatprep.subr.mxu0 %v2019_v45  ;;  %2532 = vmatpush3.msra.mxu1 %v2036_v61  ;;  %v1717_v18 = vadd.f32 %v3855_v3, %v1676_v29  ;;  %v2027_v47 = vld [vmem:[%s4070_s3 + $0x118] sm:$0xff] }
 0x10b   :  { %2499 = vmatpush3.msra.mxu0 %v2003_v46  ;;  %2533 = vmatprep.subr.mxu1 %v2051_v1  ;;  %v1719_v48 = vadd.f32 %v3867_v43, %v1678_v44 }
 0x10c   :  { %2500 = vmatprep.subr.mxu0 %v2018_v52  ;;  %2534 = vmatpush3.msra.mxu1 %v2035_v4  ;;  %v2041_v52 = vld [vmem:[%s4070_s3 + $0x188] sm:$0xff] }
 0x10d   :  { %2501 = vmatpush3.msra.mxu0 %v2002_v54  ;;  %2535 = vmatprep.subr.mxu1 %v2050_v6  ;;  %v2025_v54 = vld [vmem:[%s4070_s3 + $0x108] sm:$0xff] }
 0x10e   :  { %2502 = vmatprep.subr.mxu0 %v2017_v56  ;;  %2536 = vmatpush3.msra.mxu1 %v2034_v8 }
 0x10f   :  { %2503 = vmatpush3.msra.mxu0 %v2001_v58  ;;  %2537 = vmatprep.subr.mxu1 %v2049_v10  ;;  %v297_v10 = vsub.s32 3, %v3149_v42 }
 0x110   :  { %2504 = vmatprep.subr.mxu0 %v2016_v60  ;;  %2538 = vmatpush3.msra.mxu1 %v2033_v12  ;;  %v2024_v60 = vld [vmem:[%s4070_s3 + $0x100] sm:$0xff]  ;;  %s2995_s3 = smov [#allocation2]  }
 0x111   :  { %2505 = vmatpush3.msra.mxu0 %v2000_v0  ;;  %2539 = vmatprep.subr.mxu1 %v2048_v15  ;;  %v298_v12 = vrot.slane %v281_v40, %v297_v10  ;;  %s2211_s13 = sshll.u32 %s2995_s3, 4  ;;  %s2212_s13 = int_to_ptr.vmem [resolvable:$true] %s2211_s13 }
 0x112   :  { %2506 = vmatprep.subr.mxu0 %v2015_v2  ;;  %2540 = vmatpush3.msra.mxu1 %v2032_v17  ;;  %s2949_s14 = scalar_lea.vmem %s2212_s13, 128  ;;  %p2954_p1 = scmp.lt.s32.totalorder %s2212_s13, %s2212_s13 }
 0x113   :  { %2507 = vmatpush3.msra.mxu0 %v1999_v5  ;;  %2541 = vmatprep.subr.mxu1 %v2047_v21  ;;  %p2950_p0 = scmp.ne.s32.totalorder %s2212_s13, %s2949_s14  ;;  %p2955_p2 = scmp.lt.s32.totalorder %s2949_s14, %s2949_s14 }
 0x114   :  { %2508 = vmatprep.subr.mxu0 %v2014_v7  ;;  %2542 = vmatpush3.msra.mxu1 %v2031_v23 }
 0x115   :  { %2509 = vmatpush3.msra.mxu0 %v1998_v9  ;;  %2543 = vmatprep.subr.mxu1 %v2046_v26  ;;  %v293_v9 = vsub.s32 2, %v3149_v42  ;;  %p2956_p3 = por %p2955_p2, %p2954_p1 }
 0x116   :  { %2510 = vmatprep.subr.mxu0 %v2013_v11  ;;  %2544 = vmatpush3.msra.mxu1 %v2030_v28 }
 0x117   :  { %2511 = vmatpush3.msra.mxu0 %v1997_v13  ;;  %2545 = vmatprep.subr.mxu1 %v2045_v31  ;;  %v294_v11 = vrot.slane %v281_v40, %v293_v9  ;;  %p2957_p4 = pnand %p2956_p3, %p2950_p0 }
 0x118   :  { %2512 = vmatprep.subr.mxu0 %v2012_v16  ;;  %2546 = vmatpush3.msra.mxu1 %v2029_v33  ;;  %v2994_v16 = vmov 1983009808  }
 0x119   :  { %2513 = vmatpush3.msra.mxu0 %v1996_v20  ;;  %2547 = vmatprep.subr.mxu1 %v2044_v35  ;;  %v1976_v17 = vunpack.c.l.s4 %v2994_v16 }
 0x11a   :  { %2514 = vmatprep.subr.mxu0 %v2011_v22  ;;  %2548 = vmatpush3.msra.mxu1 %v2028_v37 }
 0x11b   :  { %2515 = vmatpush3.msra.mxu0 %v1995_v25  ;;  %2549 = vmatprep.subr.mxu1 %v2043_v24  ;;  %v1977_v26 = vunpack.c.0.s8 %v1976_v17 }
 0x11c   :  { %2516 = vmatprep.subr.mxu0 %v2010_v27  ;;  %2550 = vmatpush3.msra.mxu1 %v2027_v47 }
 0x11d   :  { %2517 = vmatpush3.msra.mxu0 %v1994_v30  ;;  %2551 = vmatprep.subr.mxu1 %v2042_v62  ;;  %v1980_v35 = vsub.s32 %v1977_v26, %v3149_v42 }
 0x11e   :  { %2518 = vmatprep.subr.mxu0 %v2009_v32  ;;  %2552 = vmatpush3.msra.mxu1 %v2026_v50 }
 0x11f   :  { %2519 = vmatpush3.msra.mxu0 %v1993_v34  ;;  %2553 = vmatprep.subr.mxu1 %v2041_v52 }
 0x120   :  { %2520 = vmatprep.subr.mxu0 %v2008_v36  ;;  %2554 = vmatpush3.msra.mxu1 %v2025_v54 }
 0x121   :  { %2521 = vmatpush3.msra.mxu0 %v1992_v38  ;;  %2555 = vmatprep.subr.mxu1 %v2040_v57 }
 0x122   :  { %2556 = vmatpush3.msra.mxu1 %v2024_v60 }
 0x142   :  { %v1757_v45 = vpop.f32.mrf.mxu0 }
 0x143   :  { %v1798_v46 = vpop.f32.mrf.mxu1  ;;  %v1758_v49 = vadd.f32 %v1757_v45, %v1717_v18 }
 0x144   :  { %v1759_v3 = vpop.f32.mrf.mxu0 }
 0x145   :  { %v1800_v19 = vpop.f32.mrf.mxu1  ;;  %v1760_v51 = vadd.f32 %v1759_v3, %v1719_v48  ;;  %v1799_v55 = vadd.f32 %v1798_v46, %v1758_v49 }
 0x146   :  { %v1761_v43 = vpop.f32.mrf.mxu0 }
 0x147   :  { %v1802_v53 = vpop.f32.mrf.mxu1  ;;  %v1801_v56 = vadd.f32 %v1800_v19, %v1760_v51 }
 0x148   :  { %v1762_v58 = vpop.f32.mrf.mxu0 }
 0x149   :  { %v1803_v59 = vpop.f32.mrf.mxu1  ;;  %v1973_v61 = vcombine.low %v1799_v55, %v1801_v56  ;;  %2127 = vmatprep.mubr.f32.mxu0 %v1801_v56 }
 0x14a   :  { %2128 = vmatmul.mubr.f32.vlgmr.msra.gmra.mxu0 %v1799_v55 }
 0x14b   :  { %v1981_v39 = vrot.slane %v1973_v61, %v1980_v35 }
 0x182   :  { %v1839_v0 = vpop.f32.mrf.mxu0 }
 0x183   :  { %v1880_v1 = vpop.f32.mrf.mxu1  ;;  %v1840_v13 = vadd.f32 %v1839_v0, %v294_v11 }
 0x184   :  { %v1841_v2 = vpop.f32.mrf.mxu0 }
 0x185   :  { %v1882_v4 = vpop.f32.mrf.mxu1  ;;  %v1842_v15 = vadd.f32 %v1841_v2, %v298_v12  ;;  %v1881_v20 = vadd.f32 %v1880_v1, %v1840_v13 }
 0x186   :  { %v1843_v5 = vpop.f32.mrf.mxu0 }
 0x187   :  { %v1884_v6 = vpop.f32.mrf.mxu1  ;;  %v1883_v23 = vadd.f32 %v1882_v4, %v1842_v15 }
 0x188   :  { %v1844_v7 = vpop.f32.mrf.mxu0 }
 0x189   :  { %v1885_v8 = vpop.f32.mrf.mxu1 }
 0x1c2   :  { %v1921_v21 = vpop.f32.mrf.mxu0 }
 0x1c3   :  { %v1962_v22 = vpop.f32.mrf.mxu1  ;;  %v1922_v25 = vadd.f32 %v1921_v21, %v1881_v20 }
 0x1c4   :  { %v1923_v27 = vpop.f32.mrf.mxu0 }
 0x1c5   :  { %v1964_v28 = vpop.f32.mrf.mxu1  ;;  %v1924_v30 = vadd.f32 %v1923_v27, %v1883_v23  ;;  %v1963_v33 = vadd.f32 %v1962_v22, %v1922_v25 }
 0x1c6   :  { %v1925_v31 = vpop.f32.mrf.mxu0 }
 0x1c7   :  { %v1966_v32 = vpop.f32.mrf.mxu1  ;;  %v1965_v34 = vadd.f32 %v1964_v28, %v1924_v30 }
 0x1c8   :  { %v1926_v36 = vpop.f32.mrf.mxu0 }
 0x1c9   :  { %v1967_v37 = vpop.f32.mrf.mxu1  ;;  %v1974_v38 = vcombine.low %v1963_v33, %v1965_v34  ;;  %2197 = vmatprep.mubr.f32.mxu1 %v1965_v34 }
 0x1ca   :  { %2198 = vmatmul.mubr.f32.vlgmr.msra.gmra.mxu1 %v1963_v33 }
 0x1cb   :  { %v1988_v40 = vrot.slane %v1974_v38, %v1980_v35 }
 0x1cd   :  { %v1989_v41 = vcombine.low %v1981_v39, %v1988_v40 }
 0x1cf   :  { %1991 = vst [vmem:[#allocation2] sm:$0xff] %v1989_v41 }
 0x1d0   :  { %2960 = shalt.err (!%p2957_p4)
}
 0x1d1   :  { %2214 = dma.vmem_to_hbm [thread:$0]  %s2212_s13, 128, %s4072_s5, [#allocation3]   ;;  %v2489_v29 = vld [vmem:[%s4071_s4] ss:$0 sm:$0xff]  ;;  %vm2203_vm0 = vcmask 74752  }
 0x1d2   :  { %s2996_s19 = smov [#allocation4]  }
 0x1d3   :  { %s2221_s1 = sshll.u32 %s2996_s19, 4  ;;  %s2222_s1 = int_to_ptr.vmem [resolvable:$true] %s2221_s1 }
 0x1d4   :  { %s2969_s20 = scalar_lea.vmem %s2222_s1, 32  ;;  %p2974_p6 = scmp.lt.s32.totalorder %s2222_s1, %s2222_s1 }
 0x1d5   :  { %p2970_p5 = scmp.ne.s32.totalorder %s2222_s1, %s2969_s20  ;;  %p2975_p7 = scmp.lt.s32.totalorder %s2969_s20, %s2969_s20 }
 0x1d7   :  { %p2976_p8 = por %p2975_p7, %p2974_p6 }
 0x1d9   :  { %p2977_p9 = pnand %p2976_p8, %p2970_p5 }
 0x20a   :  { %v2522_v42 = vpop.f32.mrf.mxu0 }
 0x20c   :  { %v2523_v14 = vpop.f32.mrf.mxu0 }
 0x20d   :  { %v2524_v63 = vadd.f32 %v2523_v14, %v2522_v42 }
 0x20f   :  { %v2130_v24 = vadd.f32 %v2524_v63, %v2489_v29 }
 0x28a   :  { %v2557_v44 = vpop.f32.mrf.mxu1 }
 0x28c   :  { %v2558_v18 = vpop.f32.mrf.mxu1 }
 0x28d   :  { %v2559_v45 = vadd.f32 %v2558_v18, %v2557_v44 }
 0x28f   :  { %v2200_v46 = vadd.f32 %v2559_v45, %v2130_v24 }
 0x291   :  { %2204 = vst.msk [vmem:[#allocation4] sm:$0x3] %vm2203_vm0, %v2200_v46 }
 0x292   :  { %2980 = shalt.err (!%p2977_p9)
}
 0x293   :  { %2224 = dma.vmem_to_hbm [thread:$0]  %s2222_s1, 32, %s4073_s6, [#allocation5]  }
 0x294   :  { %2989 = dma.done.wait [#allocation3], 128  }
 0x295   :  { %2990 = vsyncadd [#allocation3], 4294967168 }
 0x296   :  { %2991 = dma.done.wait [#allocation5], 32  }
 0x297   :  { %2992 = vsyncadd [#allocation5], 4294967264 }
 0x298   :  { %2231 = vsyncpa [#allocation3], 1 }
 0x299   :  { %2232 = vsyncpa [#allocation5], 1 }

</bundles_post_ra>
